<compile_context>
chip_gen: v5e
topology: v5e:2x2
jax: 0.10.0
libtpu: 0.0.40
codegen_flags: <defaults>
</compile_context>

<pallas_src>
import jax
import jax.numpy as jnp
from jax.experimental import pallas as pl
from jax.experimental.pallas import tpu as pltpu

IN_F = 6670
H1 = 1024
H2 = 256
OUT_F = 2

K_PAD = 7168          # 6670 padded up to a multiple of TK (and of 128)
TK = 1792             # 4 K steps; bf16 w1 tile = 3.5 MiB, double-buffered = 7 MiB
OUT_PAD = 128         # lane-dense output slab width


# ---------- Fused kernel: fc1 (K-tiled, bf16 stream) + ReLU + fc2 + ReLU + fc3 ----------
def net_kernel(x_ref, w1_ref, b1_ref, w2_ref, b2_ref, w3_ref, b3_ref,
               o_ref, acc_ref):
    k = pl.program_id(0)

    @pl.when(k == 0)
    def _():
        acc_ref[...] = jnp.zeros_like(acc_ref)

    # bf16 x bf16 -> f32 accumulate (single-pass MXU); w1 arrives as bf16 from HBM.
    acc_ref[...] += jnp.dot(x_ref[...].astype(jnp.bfloat16), w1_ref[...],
                            preferred_element_type=jnp.float32)

    @pl.when(k == pl.num_programs(0) - 1)
    def _():
        h1 = jnp.maximum(acc_ref[...] + b1_ref[...], 0.0)
        h2 = jnp.dot(h1, w2_ref[...], preferred_element_type=jnp.float32)
        h2 = jnp.maximum(h2 + b2_ref[...], 0.0)
        o = jnp.dot(h2, w3_ref[...], preferred_element_type=jnp.float32) + b3_ref[...]
        o_ref[...] = o.astype(o_ref.dtype)


def prepare_params(w1, b1, w2, b2, w3, b3):
    """One-time parameter prep (outside the per-call path):
    zero-pad fc1's reduction dim and cast the streamed w1 to bf16;
    lane-pad fc3's output dim; reshape biases to (1, H) rows."""
    w1_p = jnp.pad(w1, ((0, K_PAD - IN_F), (0, 0))).astype(jnp.bfloat16)
    w3_p = jnp.pad(w3, ((0, 0), (0, OUT_PAD - OUT_F)))
    b1_2d = b1.reshape(1, H1)
    b2_2d = b2.reshape(1, H2)
    b3_2d = jnp.pad(b3.reshape(1, OUT_F), ((0, 0), (0, OUT_PAD - OUT_F)))
    return w1_p, b1_2d, w2, b2_2d, w3_p, b3_2d


def prepare_input(x):
    """Pre-pad x's reduction dim in the data path (kept out of the jitted forward)."""
    return jnp.pad(x, ((0, 0), (0, K_PAD - x.shape[1])))


def net_forward(x, w1_p, b1_2d, w2, b2_2d, w3_p, b3_2d):
    B = x.shape[0]

    # Only pads if handed an unpadded x (static trace-time branch); the fast
    # path is to pre-pad once via prepare_input() in the data pipeline.
    if x.shape[1] != K_PAD:
        x = jnp.pad(x, ((0, 0), (0, K_PAD - x.shape[1])))

    out_pad = pl.pallas_call(
        net_kernel,
        out_shape=jax.ShapeDtypeStruct((B, OUT_PAD), jnp.float32),
        grid_spec=pltpu.PrefetchScalarGridSpec(
            num_scalar_prefetch=0,
            grid=(K_PAD // TK,),
            in_specs=[
                pl.BlockSpec((B, TK), lambda k: (0, k)),          # x tile
                pl.BlockSpec((TK, H1), lambda k: (k, 0)),         # w1 tile (bf16 stream)
                pl.BlockSpec((1, H1), lambda k: (0, 0)),          # b1 (resident)
                pl.BlockSpec((H1, H2), lambda k: (0, 0)),         # w2 (resident)
                pl.BlockSpec((1, H2), lambda k: (0, 0)),          # b2 (resident)
                pl.BlockSpec((H2, OUT_PAD), lambda k: (0, 0)),    # w3 padded (resident)
                pl.BlockSpec((1, OUT_PAD), lambda k: (0, 0)),     # b3 padded (resident)
            ],
            out_specs=pl.BlockSpec((B, OUT_PAD), lambda k: (0, 0)),
            scratch_shapes=[pltpu.VMEM((B, H1), jnp.float32)],
        ),
        compiler_params=pltpu.CompilerParams(
            dimension_semantics=("arbitrary",),
            vmem_limit_bytes=24 << 20,
        ),
    )(x, w1_p, b1_2d, w2, b2_2d, w3_p, b3_2d)

    return out_pad[:, :OUT_F]


def reference_forward_f32(x, w1, b1, w2, b2, w3, b3):
    h = jnp.maximum(x @ w1 + b1, 0.0)
    h = jnp.maximum(h @ w2 + b2, 0.0)
    return h @ w3 + b3


def reference_forward_mixed(x, w1, b1, w2, b2, w3, b3):
    """Matches the kernel's precision: fc1 with bf16 operands, f32 accumulation."""
    h = jnp.dot(x.astype(jnp.bfloat16), w1.astype(jnp.bfloat16),
                preferred_element_type=jnp.float32) + b1
    h = jnp.maximum(h, 0.0)
    h = jnp.maximum(h @ w2 + b2, 0.0)
    return h @ w3 + b3


if __name__ == "__main__":
    key = jax.random.PRNGKey(0)
    kx, k1, k2, k3, kb1, kb2, kb3 = jax.random.split(key, 7)

    B = 8  # small batch
    x = jax.random.normal(kx, (B, IN_F), dtype=jnp.float32)

    # Deterministic synthetic parameters (PyTorch-Linear-like scale).
    def init_w(k, fan_in, fan_out):
        bound = 1.0 / jnp.sqrt(fan_in)
        return jax.random.uniform(k, (fan_in, fan_out), jnp.float32, -bound, bound)

    w1 = init_w(k1, IN_F, H1)
    w2 = init_w(k2, H1, H2)
    w3 = init_w(k3, H2, OUT_F)
    b1 = jax.random.uniform(kb1, (H1,), jnp.float32, -1.0 / jnp.sqrt(IN_F), 1.0 / jnp.sqrt(IN_F))
    b2 = jax.random.uniform(kb2, (H2,), jnp.float32, -1.0 / jnp.sqrt(H1), 1.0 / jnp.sqrt(H1))
    b3 = jax.random.uniform(kb3, (OUT_F,), jnp.float32, -1.0 / jnp.sqrt(H2), 1.0 / jnp.sqrt(H2))

    # One-time parameter preparation and data-path input padding (both hoisted
    # out of the jitted forward).
    params = prepare_params(w1, b1, w2, b2, w3, b3)
    params = jax.tree_util.tree_map(jax.block_until_ready, params)
    x_p = jax.block_until_ready(prepare_input(x))

    fwd = jax.jit(net_forward)
    out = jax.block_until_ready(fwd(x_p, *params))
    assert out.shape == (B, OUT_F)

    # Precision-matched check (bf16 fc1 operands, f32 accumulation).
    ref_mixed = reference_forward_mixed(x, w1, b1, w2, b2, w3, b3)
    assert jnp.allclose(out, ref_mixed, atol=1e-3, rtol=1e-3), "mismatch vs mixed-precision reference"

    # Loose sanity check against the full-f32 PyTorch-equivalent forward.
    ref_f32 = reference_forward_f32(x, w1, b1, w2, b2, w3, b3)
    assert jnp.allclose(out, ref_f32, atol=1e-2, rtol=1e-2), "mismatch vs f32 reference"

    print("KERNEL_OK")
</pallas_src>

<mosaic_0001>
module attributes {stable_mosaic.version = 11 : i64} {
  func.func @net_kernel(%arg0: i32, %arg1: memref<8x1792xf32, #tpu.memory_space<vmem>>, %arg2: memref<1792x1024xbf16, #tpu.memory_space<vmem>>, %arg3: memref<1x1024xf32, #tpu.memory_space<vmem>>, %arg4: memref<1024x256xf32, #tpu.memory_space<vmem>>, %arg5: memref<1x256xf32, #tpu.memory_space<vmem>>, %arg6: memref<256x128xf32, #tpu.memory_space<vmem>>, %arg7: memref<1x128xf32, #tpu.memory_space<vmem>>, %arg8: memref<8x128xf32, #tpu.memory_space<vmem>>, %arg9: memref<8x1024xf32, #tpu.memory_space<vmem>>) attributes {dimension_semantics = [#tpu.dimension_semantics<arbitrary>], iteration_bounds = array<i64: 4>, scalar_prefetch = 0 : i64, scratch_operands = 1 : i64, tpu.core_type = #tpu.core_type<tc>, window_params = [{transform_indices = @transform_0, window_bounds = array<i64: 8, 1792>}, {transform_indices = @transform_1, window_bounds = array<i64: 1792, 1024>}, {pipeline_mode = #tpu.pipeline_mode<synchronous>, transform_indices = @transform_2, window_bounds = array<i64: 1, 1024>}, {pipeline_mode = #tpu.pipeline_mode<synchronous>, transform_indices = @transform_3, window_bounds = array<i64: 1024, 256>}, {pipeline_mode = #tpu.pipeline_mode<synchronous>, transform_indices = @transform_4, window_bounds = array<i64: 1, 256>}, {pipeline_mode = #tpu.pipeline_mode<synchronous>, transform_indices = @transform_5, window_bounds = array<i64: 256, 128>}, {pipeline_mode = #tpu.pipeline_mode<synchronous>, transform_indices = @transform_6, window_bounds = array<i64: 1, 128>}, {pipeline_mode = #tpu.pipeline_mode<synchronous>, transform_indices = @transform_7, window_bounds = array<i64: 8, 128>}]} {
    %c0_i32 = arith.constant 0 : i32
    %0 = arith.cmpi eq, %arg0, %c0_i32 : i32
    %1 = arith.extui %0 : i1 to i32
    %c0_i32_0 = arith.constant 0 : i32
    %2 = arith.cmpi ne, %1, %c0_i32_0 : i32
    scf.if %2 {
      %cst_9 = arith.constant 0.000000e+00 : f32
      %13 = vector.broadcast %cst_9 : f32 to vector<8x1024xf32>
      %c0_10 = arith.constant 0 : index
      %c0_11 = arith.constant 0 : index
      %14 = vector.load %arg9[%c0_10, %c0_11] : memref<8x1024xf32, #tpu.memory_space<vmem>>, vector<8x1024xf32>
      tpu.vector_store %arg9[%c0_10, %c0_11], %13 {strides = array<i32>} : memref<8x1024xf32, #tpu.memory_space<vmem>>, vector<8x1024xf32>,
    } else {
    }
    %c0 = arith.constant 0 : index
    %c0_1 = arith.constant 0 : index
    %3 = vector.load %arg9[%c0, %c0_1] : memref<8x1024xf32, #tpu.memory_space<vmem>>, vector<8x1024xf32>
    %c0_2 = arith.constant 0 : index
    %c0_3 = arith.constant 0 : index
    %4 = vector.load %arg1[%c0_2, %c0_3] : memref<8x1792xf32, #tpu.memory_space<vmem>>, vector<8x1792xf32>
    %5 = arith.truncf %4 : vector<8x1792xf32> to vector<8x1792xbf16>
    %c0_4 = arith.constant 0 : index
    %c0_5 = arith.constant 0 : index
    %6 = vector.load %arg2[%c0_4, %c0_5] : memref<1792x1024xbf16, #tpu.memory_space<vmem>>, vector<1792x1024xbf16>
    %cst = arith.constant dense<0.000000e+00> : vector<8x1024xf32>
    %7 = tpu.matmul %5, %6, %cst {dimension_numbers = #tpu.dot_dimension_numbers<[1], [0], [0], [1], [0, 0, 1, 1], [], []>} : vector<8x1792xbf16>, vector<1792x1024xbf16>, vector<8x1024xf32> -> vector<8x1024xf32>
    %8 = arith.addf %3, %7 : vector<8x1024xf32>
    %c0_6 = arith.constant 0 : index
    %c0_7 = arith.constant 0 : index
    %9 = vector.load %arg9[%c0_6, %c0_7] : memref<8x1024xf32, #tpu.memory_space<vmem>>, vector<8x1024xf32>
    tpu.vector_store %arg9[%c0_6, %c0_7], %8 {strides = array<i32>} : memref<8x1024xf32, #tpu.memory_space<vmem>>, vector<8x1024xf32>,
    %c3_i32 = arith.constant 3 : i32
    %10 = arith.cmpi eq, %arg0, %c3_i32 : i32
    %11 = arith.extui %10 : i1 to i32
    %c0_i32_8 = arith.constant 0 : i32
    %12 = arith.cmpi ne, %11, %c0_i32_8 : i32
    scf.if %12 {
      %c0_9 = arith.constant 0 : index
      %c0_10 = arith.constant 0 : index
      %13 = vector.load %arg9[%c0_9, %c0_10] : memref<8x1024xf32, #tpu.memory_space<vmem>>, vector<8x1024xf32>
      %c0_11 = arith.constant 0 : index
      %c0_12 = arith.constant 0 : index
      %14 = vector.load %arg3[%c0_11, %c0_12] : memref<1x1024xf32, #tpu.memory_space<vmem>>, vector<1x1024xf32>
      %15 = vector.broadcast %14 : vector<1x1024xf32> to vector<8x1024xf32>
      %16 = arith.addf %13, %15 : vector<8x1024xf32>
      %cst_13 = arith.constant 0.000000e+00 : f32
      %17 = vector.broadcast %cst_13 : f32 to vector<8x1024xf32>
      %18 = arith.maximumf %16, %17 : vector<8x1024xf32>
      %c0_14 = arith.constant 0 : index
      %c0_15 = arith.constant 0 : index
      %19 = vector.load %arg4[%c0_14, %c0_15] : memref<1024x256xf32, #tpu.memory_space<vmem>>, vector<1024x256xf32>
      %cst_16 = arith.constant dense<0.000000e+00> : vector<8x256xf32>
      %20 = tpu.matmul %18, %19, %cst_16 {dimension_numbers = #tpu.dot_dimension_numbers<[1], [0], [0], [1], [0, 0, 1, 1], [], []>} : vector<8x1024xf32>, vector<1024x256xf32>, vector<8x256xf32> -> vector<8x256xf32>
      %c0_17 = arith.constant 0 : index
      %c0_18 = arith.constant 0 : index
      %21 = vector.load %arg5[%c0_17, %c0_18] : memref<1x256xf32, #tpu.memory_space<vmem>>, vector<1x256xf32>
      %22 = vector.broadcast %21 : vector<1x256xf32> to vector<8x256xf32>
      %23 = arith.addf %20, %22 : vector<8x256xf32>
      %cst_19 = arith.constant 0.000000e+00 : f32
      %24 = vector.broadcast %cst_19 : f32 to vector<8x256xf32>
      %25 = arith.maximumf %23, %24 : vector<8x256xf32>
      %c0_20 = arith.constant 0 : index
      %c0_21 = arith.constant 0 : index
      %26 = vector.load %arg6[%c0_20, %c0_21] : memref<256x128xf32, #tpu.memory_space<vmem>>, vector<256x128xf32>
      %cst_22 = arith.constant dense<0.000000e+00> : vector<8x128xf32>
      %27 = tpu.matmul %25, %26, %cst_22 {dimension_numbers = #tpu.dot_dimension_numbers<[1], [0], [0], [1], [0, 0, 1, 1], [], []>} : vector<8x256xf32>, vector<256x128xf32>, vector<8x128xf32> -> vector<8x128xf32>
      %c0_23 = arith.constant 0 : index
      %c0_24 = arith.constant 0 : index
      %28 = vector.load %arg7[%c0_23, %c0_24] : memref<1x128xf32, #tpu.memory_space<vmem>>, vector<1x128xf32>
      %29 = vector.broadcast %28 : vector<1x128xf32> to vector<8x128xf32>
      %30 = arith.addf %27, %29 : vector<8x128xf32>
      %c0_25 = arith.constant 0 : index
      %c0_26 = arith.constant 0 : index
      %31 = vector.load %arg8[%c0_25, %c0_26] : memref<8x128xf32, #tpu.memory_space<vmem>>, vector<8x128xf32>
      tpu.vector_store %arg8[%c0_25, %c0_26], %30 {strides = array<i32>} : memref<8x128xf32, #tpu.memory_space<vmem>>, vector<8x128xf32>,
    } else {
    }
    return
  }
  func.func @transform_0(%arg0: i32) -> (i32, i32) {
    %c0_i32 = arith.constant 0 : i32
    %c0_i32_0 = arith.constant 0 : i32
    return %c0_i32, %arg0 : i32, i32
  }
  func.func @transform_1(%arg0: i32) -> (i32, i32) {
    %c0_i32 = arith.constant 0 : i32
    %c0_i32_0 = arith.constant 0 : i32
    return %arg0, %c0_i32 : i32, i32
  }
  func.func @transform_2(%arg0: i32) -> (i32, i32) {
    %c0_i32 = arith.constant 0 : i32
    %c0_i32_0 = arith.constant 0 : i32
    %c0_i32_1 = arith.constant 0 : i32
    return %c0_i32, %c0_i32_0 : i32, i32
  }
  func.func @transform_3(%arg0: i32) -> (i32, i32) {
    %c0_i32 = arith.constant 0 : i32
    %c0_i32_0 = arith.constant 0 : i32
    %c0_i32_1 = arith.constant 0 : i32
    return %c0_i32, %c0_i32_0 : i32, i32
  }
  func.func @transform_4(%arg0: i32) -> (i32, i32) {
    %c0_i32 = arith.constant 0 : i32
    %c0_i32_0 = arith.constant 0 : i32
    %c0_i32_1 = arith.constant 0 : i32
    return %c0_i32, %c0_i32_0 : i32, i32
  }
  func.func @transform_5(%arg0: i32) -> (i32, i32) {
    %c0_i32 = arith.constant 0 : i32
    %c0_i32_0 = arith.constant 0 : i32
    %c0_i32_1 = arith.constant 0 : i32
    return %c0_i32, %c0_i32_0 : i32, i32
  }
  func.func @transform_6(%arg0: i32) -> (i32, i32) {
    %c0_i32 = arith.constant 0 : i32
    %c0_i32_0 = arith.constant 0 : i32
    %c0_i32_1 = arith.constant 0 : i32
    return %c0_i32, %c0_i32_0 : i32, i32
  }
  func.func @transform_7(%arg0: i32) -> (i32, i32) {
    %c0_i32 = arith.constant 0 : i32
    %c0_i32_0 = arith.constant 0 : i32
    %c0_i32_1 = arith.constant 0 : i32
    return %c0_i32, %c0_i32_0 : i32, i32
  }
}

</mosaic_0001>

<bundles_post_ra>
// kernel: net_forward.1
= control target key start
LH: loop header
LB: loop body
LE: loop exit
PB: predicated region body
PF: predicated region fallthrough
CT: control target
= control target key end

     0   :  { %s15411_s0 = inlined_call_operand.hbm [shape: f32[8,7168], index: 0, kind: input, shape index: {}]   ;;  %s15412_s1 = inlined_call_operand.hbm [shape: bf16[7168,1024], index: 1, kind: input, shape index: {}]   ;;  %s15413_s2 = inlined_call_operand.hbm [shape: f32[1,1024], index: 2, kind: input, shape index: {}]   ;;  %s15414_s3 = inlined_call_operand.hbm [shape: f32[1024,256], index: 3, kind: input, shape index: {}]   ;;  %s15415_s4 = inlined_call_operand.hbm [shape: f32[1,256], index: 4, kind: input, shape index: {}]   ;;  %s15416_s5 = inlined_call_operand.hbm [shape: f32[256,128], index: 5, kind: input, shape index: {}]   ;;  %s15417_s6 = inlined_call_operand.hbm [shape: f32[1,128], index: 6, kind: input, shape index: {}]   ;;  %s15418_s7 = inlined_call_operand.vmem [shape: f32[8,128], index: 7, kind: output, shape index: {}]  }
   0x1   :  { %15419 = sst [smem:[#allocation19_spill]] %s15413_s2 }
   0x2   :  { %12 = vsyncpa [#allocation4], 0 }
   0x3   :  { %14 = vsyncpa [#allocation4 + $0x1], 0 }
   0x4   :  { %15 = vsyncpa [#allocation6], 0 }
   0x5   :  { %17 = vsyncpa [#allocation6 + $0x1], 0 }
   0x6   :  { %18 = vsyncpa [#allocation9], 0 }
   0x7   :  { %19 = vsyncpa [#allocation12], 0  ;;  %s13043_s24 = smov 0   ;;  %s13045_s25 = smov 0  }
   0x8   :  { %s13047_s26 = smov 0   ;;  %s13049_s27 = smov 0  }
   0x9 LB: > { %s15420_s2 = sld [smem:[#allocation19_spill]]  ;;  %s13067_s8 = sadd.s32 4294967295, %s12989_s27   ;;  %s12989_s27 = sphi %s13049_s27, %s15428_s27   ;;  %s12985_s26 = sphi %s13047_s26, %s15427_s26   ;;  %s12981_s25 = sphi %s13045_s25, %s15426_s25   ;;  %s12977_s24 = sphi %s13043_s24, %s15425_s24  }
   0xa   : > { %p8118_p0 = scmp.ge.s32.totalorder %s12989_s27, 1  ;;  %p46_p1 = scmp.eq.s32.totalorder %s13067_s8, 0 }
   0xb   : > { %p208_p2 = scmp.lt.s32.totalorder %s12989_s27, 5  ;;  %p8119_p3 = scmp.ne.s32.totalorder %s13067_s8, 0 }
   0xc   : > { %s12991_s10 = smov [#allocation7]   ;;  %s231_s14 = sshll.u32 %s15414_s3, 4  ;;  %s232_s14 = int_to_ptr.hbm [resolvable:$true] %s231_s14 }
   0xd   : > { %p13073_p4 = pnand %p8118_p0, %p208_p2  ;;  %s222_s11 = sshll.u32 %s12991_s10, 4  ;;  %s223_s11 = int_to_ptr.vmem [resolvable:$true] %s222_s11 }
   0xe   : > { %s12992_s16 = smov [#allocation8]   ;;  %s12993_s18 = smov 256  }
   0xf   : > { %s220_s30 = sshll.u32 %s15420_s2, 4  ;;  %p12650_p5 = pneg %p13073_p4  ;;  %s221_s30 = int_to_ptr.hbm [resolvable:$true] %s220_s30 }
  0x10   : > { %s233_s17 = sshll.u32 %s12992_s16, 4  ;;  %s12994_s19 = smov 16   ;;  %s234_s17 = int_to_ptr.vmem [resolvable:$true] %s233_s17 }
  0x11   : > { %p13084_p6 = pnand %p12650_p5, %p46_p1  ;;  %s257_s22 = sshll.u32 %s15416_s5, 4  ;;  %s258_s22 = int_to_ptr.hbm [resolvable:$true] %s257_s22 }
  0x12   : > { %s12995_s23 = smov [#allocation11]   ;;  %s246_s12 = sshll.u32 %s15415_s4, 4  ;;  %s247_s12 = int_to_ptr.hbm [resolvable:$true] %s246_s12 }
  0x13   : > { %12653 = dma.hbm_to_vmem [thread:$0]  (!%p13084_p6), %s221_s30, 128, %s223_s11, [#allocation6]  }
  0x14   : > { %12656 = dma.hbm_to_vmem [thread:$0]  (!%p13084_p6), %s232_s14, 32768, %s234_s17, [#allocation9], %s12993_s18, %s12993_s18, %s12994_s19  }
  0x15   : > { %s259_s28 = sshll.u32 %s12995_s23, 4  ;;  %s12996_s30 = smov 128   ;;  %s260_s28 = int_to_ptr.vmem [resolvable:$true] %s259_s28 }
  0x16   : > { %s12997_s11 = smov 8   ;;  %s12998_s13 = smov [#allocation10]  }
  0x17   : > { %12662 = dma.hbm_to_vmem [thread:$0]  (!%p13084_p6), %s258_s22, 4096, %s260_s28, [#allocation12], %s12996_s30, %s12996_s30, %s12997_s11  }
  0x18   : > { %s248_s14 = sshll.u32 %s12998_s13, 4  ;;  %s272_s18 = sshll.u32 %s15417_s6, 4  ;;  %s249_s14 = int_to_ptr.vmem [resolvable:$true] %s248_s14  ;;  %s273_s18 = int_to_ptr.hbm [resolvable:$true] %s272_s18 }
  0x19   : > { %12659 = dma.hbm_to_vmem [thread:$0]  (!%p13084_p6), %s247_s12, 32, %s249_s14, [#allocation9]  }
  0x1a   : > { %s12999_s19 = smov [#allocation13]   ;;  %s13108_s21 = sadd.s32 1, %s12989_s27  }
  0x1b   : > { %s274_s20 = sshll.u32 %s12999_s19, 4  ;;  %s29_s22 = ssub.s32 %s12989_s27, %s13108_s21  ;;  %s275_s20 = int_to_ptr.vmem [resolvable:$true] %s274_s20 }
  0x1c   : > { %12665 = dma.hbm_to_vmem [thread:$0]  (!%p13084_p6), %s273_s18, 16, %s275_s20, [#allocation12]  }
  0x1d   : > { %s32_s23 = sadd.s32 1, %s12985_s26  ;;  %p30_p7 = scmp.eq.s32.totalorder %s29_s22, 0 }
  0x1e   : > { %p39_p8 = scmp.ne.s32.totalorder %s12985_s26, %s12981_s25  ;;  %p40_p9 = scmp.eq.s32.totalorder %s12989_s27, 0 }
  0x1f   : > { %p45_p10 = scmp.ne.s32.totalorder %s12981_s25, %s12977_s24  ;;  %p12678_p13 = scmp.lt.s32.totalorder %s12989_s27, 4 }
  0x20   : > { %s13119_s28 = scalar_select %p30_p7, %s12985_s26, %s32_s23  }
  0x21   : > { %p41_p11 = por %p40_p9, %p39_p8  ;;  %p13123_p12 = por %p46_p1, %p45_p10 }
  0x22   : > { %s285_s15 = sand.u32 1, %s12985_s26   ;;  %s11722_s12 = smul.u32 112, %s12989_s27 }
  0x23   : > { %s12622_s10 = smul.u32 112, %s285_s15  ;;  %p13130_p0 = pnand %p12678_p13, %p41_p11 }
  0x24   : > { %s12623_s11 = smul.u32 7168, %s285_s15  ;;  %s294_s14 = scalar_lea.hbm %s15411_s0, %s11722_s12 }
  0x25   : > { %s289_s16 = scalar_lea.vmem [#allocation3], %s12622_s10  ;;  %s296_s18 = sshll.u32 %s294_s14, 4  ;;  %s297_s18 = int_to_ptr.hbm [resolvable:$true] %s296_s18 }
  0x26   : > { %s298_s17 = sshll.u32 %s289_s16, 4  ;;  %s286_s19 = scalar_lea.sflag [#allocation4], %s285_s15  ;;  %s299_s17 = int_to_ptr.vmem [resolvable:$true] %s298_s17 }
  0x27   : > { %s12879_s20 = sshra.s32 %s297_s18, 4  ;;  %p12883_p5 = pneg %p13130_p0  ;;  %s12880_s20 = int_to_ptr.hbm [resolvable:$true] %s12879_s20 }
  0x28   : > { %s12881_s22 = scalar_lea.hbm %s12880_s20, 112  ;;  %s12886_s12 = scalar_lea.hbm %s15411_s0, 448 }
  0x29   : > { %p12882_p2 = scmp.ne.s32.totalorder %s12880_s20, %s12881_s22  ;;  %p12887_p8 = scmp.lt.s32.totalorder %s12880_s20, %s15411_s0 }
  0x2a   : > { %p12888_p9 = scmp.lt.s32.totalorder %s12886_s12, %s12881_s22 }
  0x2b   : > { %p12884_p6 = pnand %p12883_p5, %p12882_p2 }
  0x2c   : > { %p12889_p10 = por %p12888_p9, %p12887_p8 }
  0x2d   : > { %p12885_p7 = pneg %p12884_p6 }
  0x2f   : > { %p12890_p11 = pnand %p12889_p10, %p12885_p7 }
  0x31   : > { %12893 = shalt.err (!%p12890_p11)
}
  0x32   : > { %12669 = dma.hbm_to_vmem [thread:$0]  (!%p13130_p0), %s297_s18, 1792, %s299_s17, %s286_s19  }
  0x33   : > { %s305_s15 = sand.u32 1, %s12989_s27   ;;  %s309_s13 = scalar_lea.vmem [#allocation5], %s12623_s11 }
  0x34   : > { %s318_s14 = sshll.u32 %s309_s13, 4  ;;  %s12621_s16 = smul.u32 7168, %s12989_s27  ;;  %s319_s14 = int_to_ptr.vmem [resolvable:$true] %s318_s14 }
  0x35   : > { %s306_s22 = scalar_lea.sflag [#allocation6], %s305_s15  ;;  %s12916_s27 = scalar_lea.hbm %s15412_s1, 28672 }
  0x36   : > { %s315_s10 = scalar_lea.hbm %s15412_s1, %s12621_s16 }
  0x37   : > { %s316_s20 = sshll.u32 %s315_s10, 4  ;;  %s317_s20 = int_to_ptr.hbm [resolvable:$true] %s316_s20 }
  0x38   : > { %s12909_s12 = sshra.s32 %s317_s20, 4  ;;  %s12910_s12 = int_to_ptr.hbm [resolvable:$true] %s12909_s12 }
  0x39   : > { %s12911_s24 = scalar_lea.hbm %s12910_s12, 7168  ;;  %p12917_p7 = scmp.lt.s32.totalorder %s12910_s12, %s15412_s1 }
  0x3a   : > { %p12912_p13 = scmp.ne.s32.totalorder %s12910_s12, %s12911_s24  ;;  %p12918_p8 = scmp.lt.s32.totalorder %s12916_s27, %s12911_s24 }
  0x3c   : > { %p12914_p2 = pnand %p12912_p13, %p12883_p5  ;;  %p12919_p9 = por %p12918_p8, %p12917_p7 }
  0x3e   : > { %p12915_p6 = pneg %p12914_p2 }
  0x40   : > { %p12920_p10 = pnand %p12919_p9, %p12915_p6 }
  0x42   : > { %12923 = shalt.err (!%p12920_p10)
}
  0x43   : > { %s13000_s15 = smov 512   ;;  %s13001_s13 = smov 32  }
  0x44   : > { %12672 = dma.hbm_to_vmem [thread:$0]  (!%p13130_p0), %s317_s20, 114688, %s319_s14, %s306_s22, %s13000_s15, %s13000_s15, %s13001_s13  }
  0x45   : > { %330 = sbr.rel (%p13073_p4) target bundleno = 2176 (0x880), region = 48  ;;  %s332_s16 = sand.u32 (!%p13073_p4), 1, %s12981_s25  }
  0x46   : > { %s12624_s2 = smul.u32 (!%p13073_p4), 112, %s332_s16  ;;  %s333_s23 = scalar_lea.sflag (!%p13073_p4), [#allocation4], %s332_s16 }
  0x48   : > { %s13169_s10 = scalar_lea.vmem (!%p13073_p4), [#allocation3], %s12624_s2 }
  0x4a   : > { %12956 = dma.done.wait (%p13123_p12), %s333_s23, 1792  }
  0x4b   : > { %12958 = vsyncadd (%p13123_p12), %s333_s23, 4294965504  ;;  %s342_s12 = sand.u32 1, %s13067_s8   ;;  %s12625_s30 = smul.u32 7168, %s332_s16 }
  0x4c   : > { %s343_s14 = scalar_lea.sflag [#allocation6], %s342_s12 }
  0x4d   : > { %s13176_s20 = scalar_lea.vmem [#allocation5], %s12625_s30 }
  0x4e   : > { %12960 = dma.done.wait (%p13123_p12), %s343_s14, 114688  }
  0x4f   : > { %12962 = vsyncadd (%p13123_p12), %s343_s14, 4294852608 }
  0x50   : > { %12964 = dma.done.wait (%p46_p1), [#allocation6], 128  }
  0x51   : > { %12966 = vsyncadd (%p46_p1), [#allocation6], 4294967168 }
  0x52   : > { %12968 = dma.done.wait (%p46_p1), [#allocation9], 32800  }
  0x53   : > { %12970 = vsyncadd (%p46_p1), [#allocation9], 4294934496 }
  0x54   : > { %12972 = dma.done.wait (%p46_p1), [#allocation12], 4112  }
  0x55   : > { %12974 = vsyncadd (%p46_p1), [#allocation12], 4294963184  ;;  %408 = sbr.rel (%p8119_p3) target bundleno = 99 (0x63), region = 80 }
  0x5a   : > { %v13002_v0 = vmov 0.0  }
  0x5b   : > { %409 = vst [vmem:[#allocation2 + $0x30] sm:$0xff] %v13002_v0 }
  0x5c   : > { %410 = vst [vmem:[#allocation2] sm:$0xff] %v13002_v0 }
  0x5d   : > { %411 = vst [vmem:[#allocation2 + $0x18] sm:$0xff] %v13002_v0 }
  0x5e   : > { %412 = vst [vmem:[#allocation2 + $0x10] sm:$0xff] %v13002_v0 }
  0x5f   : > { %413 = vst [vmem:[#allocation2 + $0x8] sm:$0xff] %v13002_v0 }
  0x60   : > { %414 = vst [vmem:[#allocation2 + $0x20] sm:$0xff] %v13002_v0 }
  0x61   : > { %415 = vst [vmem:[#allocation2 + $0x28] sm:$0xff] %v13002_v0 }
  0x62   : > { %416 = vst [vmem:[#allocation2 + $0x38] sm:$0xff] %v13002_v0 }
  0x63 PF: > { %v8361_v1 = vld [vmem:[%s13176_s20 + $0x1c0] sm:$0xf]  ;;  %p11719_p1 = scmp.ne.s32.totalorder %s13067_s8, 3 }
  0x64   : > { %v11785_v2 = vld [vmem:[%s13176_s20 + $0x1dc] sm:$0xf0] }
  0x65   : > { %v8617_v3 = vld [vmem:[%s13176_s20 + $0x3c0] sm:$0xf]  ;;  %v8362_v4 = vor.u32 %v11785_v2, %v8361_v1 }
  0x66   : > { %v11849_v5 = vld [vmem:[%s13176_s20 + $0x3dc] sm:$0xf0] }
  0x67   : > { %v8873_v6 = vld [vmem:[%s13176_s20 + $0x5c0] sm:$0xf]  ;;  %v8618_v8 = vor.u32 %v11849_v5, %v8617_v3  ;;  %5829 = vmatpush.bf16.msra.mxu0 %v8362_v4 }
  0x68   : > { %v11913_v7 = vld [vmem:[%s13176_s20 + $0x5dc] sm:$0xf0] }
  0x69   : > { %v8874_v9 = vor.u32 %v11913_v7, %v8873_v6  ;;  %v9129_v10 = vld [vmem:[%s13176_s20 + $0x7c0] sm:$0xf]  ;;  %5842 = vmatpush.bf16.msra.mxu1 %v8618_v8 }
  0x6a   : > { %v11977_v11 = vld [vmem:[%s13176_s20 + $0x7dc] sm:$0xf0] }
  0x6b   : > { %v8329_v12 = vld [vmem:[%s13176_s20 + $0x180] sm:$0xf]  ;;  %v9130_v13 = vor.u32 %v11977_v11, %v9129_v10  ;;  %5855 = vmatpush.bf16.msra.mxu2 %v8874_v9 }
  0x6c   : > { %v11777_v14 = vld [vmem:[%s13176_s20 + $0x19c] sm:$0xf0] }
  0x6d   : > { %v8585_v15 = vld [vmem:[%s13176_s20 + $0x380] sm:$0xf]  ;;  %v8330_v17 = vor.u32 %v11777_v14, %v8329_v12  ;;  %5868 = vmatpush.bf16.msra.mxu3 %v9130_v13 }
  0x6e   : > { %v11841_v16 = vld [vmem:[%s13176_s20 + $0x39c] sm:$0xf0] }
  0x6f   : > { %v8586_v18 = vor.u32 %v11841_v16, %v8585_v15  ;;  %v8841_v19 = vld [vmem:[%s13176_s20 + $0x580] sm:$0xf]  ;;  %5830 = vmatpush.bf16.msra.mxu0 %v8330_v17 }
  0x70   : > { %v11905_v20 = vld [vmem:[%s13176_s20 + $0x59c] sm:$0xf0] }
  0x71   : > { %v9097_v21 = vld [vmem:[%s13176_s20 + $0x780] sm:$0xf]  ;;  %v8842_v22 = vor.u32 %v11905_v20, %v8841_v19  ;;  %5843 = vmatpush.bf16.msra.mxu1 %v8586_v18 }
  0x72   : > { %v11969_v23 = vld [vmem:[%s13176_s20 + $0x79c] sm:$0xf0] }
  0x73   : > { %v8297_v24 = vld [vmem:[%s13176_s20 + $0x140] sm:$0xf]  ;;  %v9098_v26 = vor.u32 %v11969_v23, %v9097_v21  ;;  %5856 = vmatpush.bf16.msra.mxu2 %v8842_v22 }
  0x74   : > { %v11769_v25 = vld [vmem:[%s13176_s20 + $0x15c] sm:$0xf0] }
  0x75   : > { %v8553_v27 = vld [vmem:[%s13176_s20 + $0x340] sm:$0xf]  ;;  %v8298_v30 = vor.u32 %v11769_v25, %v8297_v24  ;;  %5869 = vmatpush.bf16.msra.mxu3 %v9098_v26 }
  0x76   : > { %v11833_v28 = vld [vmem:[%s13176_s20 + $0x35c] sm:$0xf0] }
  0x77   : > { %v8809_v29 = vld [vmem:[%s13176_s20 + $0x540] sm:$0xf]  ;;  %v8554_v34 = vor.u32 %v11833_v28, %v8553_v27  ;;  %5831 = vmatpush.bf16.msra.mxu0 %v8298_v30 }
  0x78   : > { %v11897_v31 = vld [vmem:[%s13176_s20 + $0x55c] sm:$0xf0] }
  0x79   : > { %v9065_v32 = vld [vmem:[%s13176_s20 + $0x740] sm:$0xf]  ;;  %v8810_v35 = vor.u32 %v11897_v31, %v8809_v29  ;;  %5844 = vmatpush.bf16.msra.mxu1 %v8554_v34 }
  0x7a   : > { %v11961_v33 = vld [vmem:[%s13176_s20 + $0x75c] sm:$0xf0] }
  0x7b   : > { %v8265_v36 = vld [vmem:[%s13176_s20 + $0x100] sm:$0xf]  ;;  %v9066_v39 = vor.u32 %v11961_v33, %v9065_v32  ;;  %5857 = vmatpush.bf16.msra.mxu2 %v8810_v35 }
  0x7c   : > { %v11761_v37 = vld [vmem:[%s13176_s20 + $0x11c] sm:$0xf0] }
  0x7d   : > { %v8521_v38 = vld [vmem:[%s13176_s20 + $0x300] sm:$0xf]  ;;  %v8266_v45 = vor.u32 %v11761_v37, %v8265_v36  ;;  %5870 = vmatpush.bf16.msra.mxu3 %v9066_v39 }
  0x7e   : > { %v11825_v40 = vld [vmem:[%s13176_s20 + $0x31c] sm:$0xf0] }
  0x7f   : > { %v8777_v41 = vld [vmem:[%s13176_s20 + $0x500] sm:$0xf]  ;;  %v8522_v46 = vor.u32 %v11825_v40, %v8521_v38  ;;  %5832 = vmatpush.bf16.msra.mxu0 %v8266_v45 }
  0x80   : > { %v11889_v42 = vld [vmem:[%s13176_s20 + $0x51c] sm:$0xf0] }
  0x81   : > { %v9033_v43 = vld [vmem:[%s13176_s20 + $0x700] sm:$0xf]  ;;  %v8778_v47 = vor.u32 %v11889_v42, %v8777_v41  ;;  %5845 = vmatpush.bf16.msra.mxu1 %v8522_v46 }
  0x82   : > { %v11953_v44 = vld [vmem:[%s13176_s20 + $0x71c] sm:$0xf0] }
  0x83   : > { %v8233_v48 = vld [vmem:[%s13176_s20 + $0xc0] sm:$0xf]  ;;  %v9034_v51 = vor.u32 %v11953_v44, %v9033_v43  ;;  %5858 = vmatpush.bf16.msra.mxu2 %v8778_v47 }
  0x84   : > { %v11753_v49 = vld [vmem:[%s13176_s20 + $0xdc] sm:$0xf0] }
  0x85   : > { %v8489_v50 = vld [vmem:[%s13176_s20 + $0x2c0] sm:$0xf]  ;;  %v8234_v57 = vor.u32 %v11753_v49, %v8233_v48  ;;  %5871 = vmatpush.bf16.msra.mxu3 %v9034_v51 }
  0x86   : > { %v11817_v52 = vld [vmem:[%s13176_s20 + $0x2dc] sm:$0xf0] }
  0x87   : > { %v8745_v53 = vld [vmem:[%s13176_s20 + $0x4c0] sm:$0xf]  ;;  %v8490_v58 = vor.u32 %v11817_v52, %v8489_v50  ;;  %5833 = vmatpush.bf16.msra.mxu0 %v8234_v57 }
  0x88   : > { %v11881_v54 = vld [vmem:[%s13176_s20 + $0x4dc] sm:$0xf0] }
  0x89   : > { %v9001_v55 = vld [vmem:[%s13176_s20 + $0x6c0] sm:$0xf]  ;;  %v8746_v59 = vor.u32 %v11881_v54, %v8745_v53  ;;  %5846 = vmatpush.bf16.msra.mxu1 %v8490_v58 }
  0x8a   : > { %v11945_v56 = vld [vmem:[%s13176_s20 + $0x6dc] sm:$0xf0] }
  0x8b   : > { %v8201_v60 = vld [vmem:[%s13176_s20 + $0x80] sm:$0xf]  ;;  %v9002_v63 = vor.u32 %v11945_v56, %v9001_v55  ;;  %5859 = vmatpush.bf16.msra.mxu2 %v8746_v59 }
  0x8c   : > { %v11745_v61 = vld [vmem:[%s13176_s20 + $0x9c] sm:$0xf0] }
  0x8d   : > { %v8457_v62 = vld [vmem:[%s13176_s20 + $0x280] sm:$0xf]  ;;  %v8202_v5 = vor.u32 %v11745_v61, %v8201_v60  ;;  %5872 = vmatpush.bf16.msra.mxu3 %v9002_v63 }
  0x8e   : > { %v11809_v0 = vld [vmem:[%s13176_s20 + $0x29c] sm:$0xf0] }
  0x8f   : > { %v8713_v1 = vld [vmem:[%s13176_s20 + $0x480] sm:$0xf]  ;;  %v8458_v6 = vor.u32 %v11809_v0, %v8457_v62  ;;  %5834 = vmatpush.bf16.msra.mxu0 %v8202_v5 }
  0x90   : > { %v11873_v2 = vld [vmem:[%s13176_s20 + $0x49c] sm:$0xf0] }
  0x91   : > { %v8969_v3 = vld [vmem:[%s13176_s20 + $0x680] sm:$0xf]  ;;  %v8714_v7 = vor.u32 %v11873_v2, %v8713_v1  ;;  %5847 = vmatpush.bf16.msra.mxu1 %v8458_v6 }
  0x92   : > { %v11937_v4 = vld [vmem:[%s13176_s20 + $0x69c] sm:$0xf0] }
  0x93   : > { %v8169_v8 = vld [vmem:[%s13176_s20 + $0x40] sm:$0xf]  ;;  %v8970_v11 = vor.u32 %v11937_v4, %v8969_v3  ;;  %5860 = vmatpush.bf16.msra.mxu2 %v8714_v7 }
  0x94   : > { %v11737_v9 = vld [vmem:[%s13176_s20 + $0x5c] sm:$0xf0] }
  0x95   : > { %v8425_v10 = vld [vmem:[%s13176_s20 + $0x240] sm:$0xf]  ;;  %v8170_v17 = vor.u32 %v11737_v9, %v8169_v8  ;;  %5873 = vmatpush.bf16.msra.mxu3 %v8970_v11  ;;  %v428_v11 = vld [vmem:[%s13169_s10 + $0x18] sm:$0xff] }
  0x96   : > { %v11801_v12 = vld [vmem:[%s13176_s20 + $0x25c] sm:$0xf0] }
  0x97   : > { %v8681_v13 = vld [vmem:[%s13176_s20 + $0x440] sm:$0xf]  ;;  %v8426_v20 = vor.u32 %v11801_v12, %v8425_v10  ;;  %5835 = vmatpush.bf16.msra.mxu0 %v8170_v17  ;;  %v426_v12 = vld [vmem:[%s13169_s10 + $0x8] sm:$0xff]  ;;  %v13299_v17 = vpack.c.bf16 %v428_v11, %v428_v11 }
  0x98   : > { %v11865_v14 = vld [vmem:[%s13176_s20 + $0x45c] sm:$0xf0] }
  0x99   : > { %v8937_v15 = vld [vmem:[%s13176_s20 + $0x640] sm:$0xf]  ;;  %v8682_v21 = vor.u32 %v11865_v14, %v8681_v13  ;;  %5848 = vmatpush.bf16.msra.mxu1 %v8426_v20 }
  0x9a   : > { %v11929_v16 = vld [vmem:[%s13176_s20 + $0x65c] sm:$0xf0] }
  0x9b   : > { %v8137_v18 = vld [vmem:[%s13176_s20] sm:$0xf]  ;;  %v8938_v25 = vor.u32 %v11929_v16, %v8937_v15  ;;  %5861 = vmatpush.bf16.msra.mxu2 %v8682_v21 }
  0x9c   : > { %v11729_v19 = vld [vmem:[%s13176_s20 + $0x1c] sm:$0xf0] }
  0x9d   : > { %v8393_v22 = vld [vmem:[%s13176_s20 + $0x200] sm:$0xf]  ;;  %v8138_v32 = vor.u32 %v11729_v19, %v8137_v18  ;;  %5874 = vmatpush.bf16.msra.mxu3 %v8938_v25  ;;  %v13301_v18 = vpack.c.bf16 %v426_v12, %v426_v12 }
  0x9e   : > { %v11793_v23 = vld [vmem:[%s13176_s20 + $0x21c] sm:$0xf0] }
  0x9f   : > { %v8649_v24 = vld [vmem:[%s13176_s20 + $0x400] sm:$0xf]  ;;  %v8394_v36 = vor.u32 %v11793_v23, %v8393_v22  ;;  %5836 = vmatpush.bf16.msra.mxu0 %v8138_v32 }
  0xa0   : > { %v11857_v26 = vld [vmem:[%s13176_s20 + $0x41c] sm:$0xf0] }
  0xa1   : > { %v8905_v27 = vld [vmem:[%s13176_s20 + $0x600] sm:$0xf]  ;;  %v8650_v37 = vor.u32 %v11857_v26, %v8649_v24  ;;  %5849 = vmatpush.bf16.msra.mxu1 %v8394_v36 }
  0xa2   : > { %v11921_v28 = vld [vmem:[%s13176_s20 + $0x61c] sm:$0xf0] }
  0xa3   : > { %v9385_v29 = vld [vmem:[%s13176_s20 + $0x9c0] sm:$0xf]  ;;  %v8906_v40 = vor.u32 %v11921_v28, %v8905_v27  ;;  %5862 = vmatpush.bf16.msra.mxu2 %v8650_v37 }
  0xa4   : > { %v12041_v30 = vld [vmem:[%s13176_s20 + $0x9dc] sm:$0xf0]  ;;  %5850 = vmatmul.bf16.vlgmr.msra.gmra.mxu1 %v13301_v18 }
  0xa5   : > { %v9641_v31 = vld [vmem:[%s13176_s20 + $0xbc0] sm:$0xf]  ;;  %v9386_v41 = vor.u32 %v12041_v30, %v9385_v29  ;;  %5875 = vmatpush.bf16.msra.mxu3 %v8906_v40 }
  0xa6   : > { %v12105_v33 = vld [vmem:[%s13176_s20 + $0xbdc] sm:$0xf0] }
  0xa7   : > { %v9897_v34 = vld [vmem:[%s13176_s20 + $0xdc0] sm:$0xf]  ;;  %v9642_v42 = vor.u32 %v12105_v33, %v9641_v31  ;;  %5881 = vmatpush.bf16.msrb.mxu0 %v9386_v41 }
  0xa8   : > { %v12169_v35 = vld [vmem:[%s13176_s20 + $0xddc] sm:$0xf0]  ;;  %5876 = vmatmul.bf16.vlgmr.msra.gmra.mxu3 %v13299_v17 }
  0xa9   : > { %v10153_v38 = vld [vmem:[%s13176_s20 + $0xfc0] sm:$0xf]  ;;  %v9898_v43 = vor.u32 %v12169_v35, %v9897_v34  ;;  %5894 = vmatpush.bf16.msrb.mxu1 %v9642_v42 }
  0xaa   : > { %v12233_v39 = vld [vmem:[%s13176_s20 + $0xfdc] sm:$0xf0] }
  0xab   : > { %v9353_v44 = vld [vmem:[%s13176_s20 + $0x980] sm:$0xf]  ;;  %v10154_v47 = vor.u32 %v12233_v39, %v10153_v38  ;;  %5907 = vmatpush.bf16.msrb.mxu2 %v9898_v43 }
  0xac   : > { %v12033_v45 = vld [vmem:[%s13176_s20 + $0x99c] sm:$0xf0] }
  0xad   : > { %v9609_v46 = vld [vmem:[%s13176_s20 + $0xb80] sm:$0xf]  ;;  %v9354_v53 = vor.u32 %v12033_v45, %v9353_v44  ;;  %5920 = vmatpush.bf16.msrb.mxu3 %v10154_v47 }
  0xae   : > { %v12097_v48 = vld [vmem:[%s13176_s20 + $0xb9c] sm:$0xf0] }
  0xaf   : > { %v9865_v49 = vld [vmem:[%s13176_s20 + $0xd80] sm:$0xf]  ;;  %v9610_v55 = vor.u32 %v12097_v48, %v9609_v46  ;;  %5882 = vmatpush.bf16.msrb.mxu0 %v9354_v53 }
  0xb0   : > { %v12161_v50 = vld [vmem:[%s13176_s20 + $0xd9c] sm:$0xf0] }
  0xb1   : > { %v10121_v51 = vld [vmem:[%s13176_s20 + $0xf80] sm:$0xf]  ;;  %v9866_v56 = vor.u32 %v12161_v50, %v9865_v49  ;;  %5895 = vmatpush.bf16.msrb.mxu1 %v9610_v55 }
  0xb2   : > { %v12225_v52 = vld [vmem:[%s13176_s20 + $0xf9c] sm:$0xf0] }
  0xb3   : > { %v9321_v54 = vld [vmem:[%s13176_s20 + $0x940] sm:$0xf]  ;;  %v10122_v60 = vor.u32 %v12225_v52, %v10121_v51  ;;  %5908 = vmatpush.bf16.msrb.mxu2 %v9866_v56 }
  0xb4   : > { %v12025_v57 = vld [vmem:[%s13176_s20 + $0x95c] sm:$0xf0] }
  0xb5   : > { %v9577_v58 = vld [vmem:[%s13176_s20 + $0xb40] sm:$0xf]  ;;  %v9322_v3 = vor.u32 %v12025_v57, %v9321_v54  ;;  %5921 = vmatpush.bf16.msrb.mxu3 %v10122_v60 }
  0xb6   : > { %v427_v59 = vld [vmem:[%s13169_s10 + $0x10] sm:$0xff]  ;;  %v425_v6 = vld [vmem:[%s13169_s10] sm:$0xff] }
  0xb7   : > { %v12089_v61 = vld [vmem:[%s13176_s20 + $0xb5c] sm:$0xf0]  ;;  %v13283_v0 = vpack.c.bf16 %v427_v59, %v427_v59  ;;  %v13292_v10 = vpack.c.bf16 %v425_v6, %v425_v6  ;;  %5883 = vmatpush.bf16.msrb.mxu0 %v9322_v3 }
  0xb8   : > { %v9833_v62 = vld [vmem:[%s13176_s20 + $0xd40] sm:$0xf]  ;;  %v9578_v7 = vor.u32 %v12089_v61, %v9577_v58 }
  0xb9   : > { %v12153_v63 = vld [vmem:[%s13176_s20 + $0xd5c] sm:$0xf0]  ;;  %5863 = vmatmul.bf16.vlgmr.msra.gmra.mxu2 %v13283_v0  ;;  %5837 = vmatmul.bf16.vlgmr.msra.gmra.mxu0 %v13292_v10 }
  0xba   : > { %v10089_v1 = vld [vmem:[%s13176_s20 + $0xf40] sm:$0xf]  ;;  %v9834_v8 = vor.u32 %v12153_v63, %v9833_v62  ;;  %5896 = vmatpush.bf16.msrb.mxu1 %v9578_v7 }
  0xbb   : > { %v12217_v2 = vld [vmem:[%s13176_s20 + $0xf5c] sm:$0xf0] }
  0xbc   : > { %v9289_v4 = vld [vmem:[%s13176_s20 + $0x900] sm:$0xf]  ;;  %v10090_v13 = vor.u32 %v12217_v2, %v10089_v1  ;;  %5909 = vmatpush.bf16.msrb.mxu2 %v9834_v8 }
  0xbd   : > { %v12017_v5 = vld [vmem:[%s13176_s20 + $0x91c] sm:$0xf0] }
  0xbe   : > { %v9545_v9 = vld [vmem:[%s13176_s20 + $0xb00] sm:$0xf]  ;;  %v9290_v21 = vor.u32 %v12017_v5, %v9289_v4  ;;  %5922 = vmatpush.bf16.msrb.mxu3 %v10090_v13 }
  0xbf   : > { %v12081_v14 = vld [vmem:[%s13176_s20 + $0xb1c] sm:$0xf0] }
  0xc0   : > { %v9801_v15 = vld [vmem:[%s13176_s20 + $0xd00] sm:$0xf]  ;;  %v9546_v22 = vor.u32 %v12081_v14, %v9545_v9  ;;  %5884 = vmatpush.bf16.msrb.mxu0 %v9290_v21 }
  0xc1   : > { %v12145_v16 = vld [vmem:[%s13176_s20 + $0xd1c] sm:$0xf0] }
  0xc2   : > { %v10057_v19 = vld [vmem:[%s13176_s20 + $0xf00] sm:$0xf]  ;;  %v9802_v23 = vor.u32 %v12145_v16, %v9801_v15  ;;  %5897 = vmatpush.bf16.msrb.mxu1 %v9546_v22 }
  0xc3   : > { %v12209_v20 = vld [vmem:[%s13176_s20 + $0xf1c] sm:$0xf0] }
  0xc4   : > { %v9257_v24 = vld [vmem:[%s13176_s20 + $0x8c0] sm:$0xf]  ;;  %v10058_v27 = vor.u32 %v12209_v20, %v10057_v19  ;;  %5910 = vmatpush.bf16.msrb.mxu2 %v9802_v23 }
  0xc5   : > { %v12009_v25 = vld [vmem:[%s13176_s20 + $0x8dc] sm:$0xf0] }
  0xc6   : > { %v9513_v26 = vld [vmem:[%s13176_s20 + $0xac0] sm:$0xf]  ;;  %v9258_v33 = vor.u32 %v12009_v25, %v9257_v24  ;;  %5923 = vmatpush.bf16.msrb.mxu3 %v10058_v27  ;;  %v432_v25 = vld [vmem:[%s13169_s10 + $0x38] sm:$0xff] }
  0xc7   : > { %v12073_v28 = vld [vmem:[%s13176_s20 + $0xadc] sm:$0xf0] }
  0xc8   : > { %v9769_v29 = vld [vmem:[%s13176_s20 + $0xcc0] sm:$0xf]  ;;  %v9514_v34 = vor.u32 %v12073_v28, %v9513_v26  ;;  %5885 = vmatpush.bf16.msrb.mxu0 %v9258_v33 }
  0xc9   : > { %v12137_v30 = vld [vmem:[%s13176_s20 + $0xcdc] sm:$0xf0] }
  0xca   : > { %v10025_v31 = vld [vmem:[%s13176_s20 + $0xec0] sm:$0xf]  ;;  %v9770_v35 = vor.u32 %v12137_v30, %v9769_v29  ;;  %5898 = vmatpush.bf16.msrb.mxu1 %v9514_v34  ;;  %v430_v30 = vld [vmem:[%s13169_s10 + $0x28] sm:$0xff] }
  0xcb   : > { %v12201_v32 = vld [vmem:[%s13176_s20 + $0xedc] sm:$0xf0] }
  0xcc   : > { %v9225_v36 = vld [vmem:[%s13176_s20 + $0x880] sm:$0xf]  ;;  %v10026_v39 = vor.u32 %v12201_v32, %v10025_v31  ;;  %5911 = vmatpush.bf16.msrb.mxu2 %v9770_v35 }
  0xcd   : > { %v12001_v37 = vld [vmem:[%s13176_s20 + $0x89c] sm:$0xf0] }
  0xce   : > { %v9481_v38 = vld [vmem:[%s13176_s20 + $0xa80] sm:$0xf]  ;;  %v9226_v45 = vor.u32 %v12001_v37, %v9225_v36  ;;  %5924 = vmatpush.bf16.msrb.mxu3 %v10026_v39  ;;  %v13364_v39 = vpack.c.bf16 %v432_v25, %v432_v25 }
  0xcf   : > { %v12065_v40 = vld [vmem:[%s13176_s20 + $0xa9c] sm:$0xf0] }
  0xd0   : > { %v9737_v41 = vld [vmem:[%s13176_s20 + $0xc80] sm:$0xf]  ;;  %v9482_v46 = vor.u32 %v12065_v40, %v9481_v38  ;;  %5886 = vmatpush.bf16.msrb.mxu0 %v9226_v45 }
  0xd1   : > { %v12129_v42 = vld [vmem:[%s13176_s20 + $0xc9c] sm:$0xf0] }
  0xd2   : > { %v9993_v43 = vld [vmem:[%s13176_s20 + $0xe80] sm:$0xf]  ;;  %v9738_v47 = vor.u32 %v12129_v42, %v9737_v41  ;;  %5899 = vmatpush.bf16.msrb.mxu1 %v9482_v46  ;;  %v13366_v41 = vpack.c.bf16 %v430_v30, %v430_v30 }
  0xd3   : > { %v12193_v44 = vld [vmem:[%s13176_s20 + $0xe9c] sm:$0xf0] }
  0xd4   : > { %v9193_v48 = vld [vmem:[%s13176_s20 + $0x840] sm:$0xf]  ;;  %v9994_v51 = vor.u32 %v12193_v44, %v9993_v43  ;;  %5912 = vmatpush.bf16.msrb.mxu2 %v9738_v47 }
  0xd5   : > { %v11993_v49 = vld [vmem:[%s13176_s20 + $0x85c] sm:$0xf0] }
  0xd6   : > { %v9449_v50 = vld [vmem:[%s13176_s20 + $0xa40] sm:$0xf]  ;;  %v9194_v57 = vor.u32 %v11993_v49, %v9193_v48  ;;  %5925 = vmatpush.bf16.msrb.mxu3 %v9994_v51 }
  0xd7   : > { %v12057_v52 = vld [vmem:[%s13176_s20 + $0xa5c] sm:$0xf0] }
  0xd8   : > { %v9705_v53 = vld [vmem:[%s13176_s20 + $0xc40] sm:$0xf]  ;;  %v9450_v60 = vor.u32 %v12057_v52, %v9449_v50  ;;  %5887 = vmatpush.bf16.msrb.mxu0 %v9194_v57 }
  0xd9   : > { %v12121_v54 = vld [vmem:[%s13176_s20 + $0xc5c] sm:$0xf0] }
  0xda   : > { %v9961_v55 = vld [vmem:[%s13176_s20 + $0xe40] sm:$0xf]  ;;  %v9706_v61 = vor.u32 %v12121_v54, %v9705_v53  ;;  %5900 = vmatpush.bf16.msrb.mxu1 %v9450_v60 }
  0xdb   : > { %v12185_v56 = vld [vmem:[%s13176_s20 + $0xe5c] sm:$0xf0] }
  0xdc   : > { %v9161_v58 = vld [vmem:[%s13176_s20 + $0x800] sm:$0xf]  ;;  %v9962_v2 = vor.u32 %v12185_v56, %v9961_v55  ;;  %5913 = vmatpush.bf16.msrb.mxu2 %v9706_v61 }
  0xdd   : > { %v11985_v59 = vld [vmem:[%s13176_s20 + $0x81c] sm:$0xf0] }
  0xde   : > { %v9417_v62 = vld [vmem:[%s13176_s20 + $0xa00] sm:$0xf]  ;;  %v9162_v9 = vor.u32 %v11985_v59, %v9161_v58  ;;  %5926 = vmatpush.bf16.msrb.mxu3 %v9962_v2 }
  0xdf   : > { %v12049_v63 = vld [vmem:[%s13176_s20 + $0xa1c] sm:$0xf0] }
  0xe0   : > { %v9673_v1 = vld [vmem:[%s13176_s20 + $0xc00] sm:$0xf]  ;;  %v9418_v14 = vor.u32 %v12049_v63, %v9417_v62  ;;  %5888 = vmatpush.bf16.msrb.mxu0 %v9162_v9 }
  0xe1   : > { %v12113_v3 = vld [vmem:[%s13176_s20 + $0xc1c] sm:$0xf0] }
  0xe2   : > { %v9929_v4 = vld [vmem:[%s13176_s20 + $0xe00] sm:$0xf]  ;;  %v9674_v15 = vor.u32 %v12113_v3, %v9673_v1  ;;  %5901 = vmatpush.bf16.msrb.mxu1 %v9418_v14 }
  0xe3   : > { %v12177_v5 = vld [vmem:[%s13176_s20 + $0xe1c] sm:$0xf0] }
  0xe4   : > { %v10409_v6 = vld [vmem:[%s13176_s20 + $0x11c0] sm:$0xf]  ;;  %v9930_v21 = vor.u32 %v12177_v5, %v9929_v4  ;;  %5914 = vmatpush.bf16.msrb.mxu2 %v9674_v15 }
  0xe5   : > { %v12297_v7 = vld [vmem:[%s13176_s20 + $0x11dc] sm:$0xf0]  ;;  %5902 = vmatmul.bf16.vlgmr.msrb.gmra.mxu1 %v13366_v41 }
  0xe6   : > { %v10665_v8 = vld [vmem:[%s13176_s20 + $0x13c0] sm:$0xf]  ;;  %v10410_v22 = vor.u32 %v12297_v7, %v10409_v6  ;;  %5927 = vmatpush.bf16.msrb.mxu3 %v9930_v21 }
  0xe7   : > { %v12361_v11 = vld [vmem:[%s13176_s20 + $0x13dc] sm:$0xf0] }
  0xe8   : > { %v10921_v12 = vld [vmem:[%s13176_s20 + $0x15c0] sm:$0xf]  ;;  %v10666_v26 = vor.u32 %v12361_v11, %v10665_v8  ;;  %5933 = vmatpush.bf16.msra.mxu0 %v10410_v22 }
  0xe9   : > { %v12425_v13 = vld [vmem:[%s13176_s20 + $0x15dc] sm:$0xf0]  ;;  %5928 = vmatmul.bf16.vlgmr.msrb.gmra.mxu3 %v13364_v39 }
  0xea   : > { %v11177_v16 = vld [vmem:[%s13176_s20 + $0x17c0] sm:$0xf]  ;;  %v10922_v27 = vor.u32 %v12425_v13, %v10921_v12  ;;  %5946 = vmatpush.bf16.msra.mxu1 %v10666_v26 }
  0xeb   : > { %v12489_v19 = vld [vmem:[%s13176_s20 + $0x17dc] sm:$0xf0] }
  0xec   : > { %v431_v20 = vld [vmem:[%s13169_s10 + $0x30] sm:$0xff]  ;;  %v429_v24 = vld [vmem:[%s13169_s10 + $0x20] sm:$0xff]  ;;  %v11178_v31 = vor.u32 %v12489_v19, %v11177_v16  ;;  %5959 = vmatpush.bf16.msra.mxu2 %v10922_v27 }
  0xed   : > { %v10377_v23 = vld [vmem:[%s13176_s20 + $0x1180] sm:$0xf]  ;;  %v13358_v35 = vpack.c.bf16 %v431_v20, %v431_v20  ;;  %v13362_v38 = vpack.c.bf16 %v429_v24, %v429_v24 }
  0xee   : > { %v12289_v28 = vld [vmem:[%s13176_s20 + $0x119c] sm:$0xf0]  ;;  %5972 = vmatpush.bf16.msra.mxu3 %v11178_v31 }
  0xef   : > { %v10633_v29 = vld [vmem:[%s13176_s20 + $0x1380] sm:$0xf]  ;;  %v10378_v40 = vor.u32 %v12289_v28, %v10377_v23  ;;  %5915 = vmatmul.bf16.vlgmr.msrb.gmra.mxu2 %v13358_v35  ;;  %5889 = vmatmul.bf16.vlgmr.msrb.gmra.mxu0 %v13362_v38 }
  0xf0   : > { %v12353_v32 = vld [vmem:[%s13176_s20 + $0x139c] sm:$0xf0] }
  0xf1   : > { %v10889_v33 = vld [vmem:[%s13176_s20 + $0x1580] sm:$0xf]  ;;  %v10634_v42 = vor.u32 %v12353_v32, %v10633_v29  ;;  %5934 = vmatpush.bf16.msra.mxu0 %v10378_v40 }
  0xf2   : > { %v12417_v34 = vld [vmem:[%s13176_s20 + $0x159c] sm:$0xf0] }
  0xf3   : > { %v11145_v36 = vld [vmem:[%s13176_s20 + $0x1780] sm:$0xf]  ;;  %v10890_v43 = vor.u32 %v12417_v34, %v10889_v33  ;;  %5947 = vmatpush.bf16.msra.mxu1 %v10634_v42 }
  0xf4   : > { %v12481_v37 = vld [vmem:[%s13176_s20 + $0x179c] sm:$0xf0] }
  0xf5   : > { %v10345_v44 = vld [vmem:[%s13176_s20 + $0x1140] sm:$0xf]  ;;  %v11146_v47 = vor.u32 %v12481_v37, %v11145_v36  ;;  %5960 = vmatpush.bf16.msra.mxu2 %v10890_v43 }
  0xf6   : > { %v12281_v45 = vld [vmem:[%s13176_s20 + $0x115c] sm:$0xf0] }
  0xf7   : > { %v10601_v46 = vld [vmem:[%s13176_s20 + $0x1340] sm:$0xf]  ;;  %v10346_v53 = vor.u32 %v12281_v45, %v10345_v44  ;;  %5973 = vmatpush.bf16.msra.mxu3 %v11146_v47 }
  0xf8   : > { %v12345_v48 = vld [vmem:[%s13176_s20 + $0x135c] sm:$0xf0] }
  0xf9   : > { %v10857_v49 = vld [vmem:[%s13176_s20 + $0x1540] sm:$0xf]  ;;  %v10602_v54 = vor.u32 %v12345_v48, %v10601_v46  ;;  %5935 = vmatpush.bf16.msra.mxu0 %v10346_v53 }
  0xfa   : > { %v12409_v50 = vld [vmem:[%s13176_s20 + $0x155c] sm:$0xf0] }
  0xfb   : > { %v11113_v51 = vld [vmem:[%s13176_s20 + $0x1740] sm:$0xf]  ;;  %v10858_v55 = vor.u32 %v12409_v50, %v10857_v49  ;;  %5948 = vmatpush.bf16.msra.mxu1 %v10602_v54 }
  0xfc   : > { %v12473_v52 = vld [vmem:[%s13176_s20 + $0x175c] sm:$0xf0] }
  0xfd   : > { %v10313_v56 = vld [vmem:[%s13176_s20 + $0x1100] sm:$0xf]  ;;  %v11114_v59 = vor.u32 %v12473_v52, %v11113_v51  ;;  %5961 = vmatpush.bf16.msra.mxu2 %v10858_v55 }
  0xfe   : > { %v12273_v57 = vld [vmem:[%s13176_s20 + $0x111c] sm:$0xf0] }
  0xff   : > { %v10569_v58 = vld [vmem:[%s13176_s20 + $0x1300] sm:$0xf]  ;;  %v10314_v2 = vor.u32 %v12273_v57, %v10313_v56  ;;  %5974 = vmatpush.bf16.msra.mxu3 %v11114_v59 }
 0x100   : > { %v12337_v60 = vld [vmem:[%s13176_s20 + $0x131c] sm:$0xf0] }
 0x101   : > { %v10825_v61 = vld [vmem:[%s13176_s20 + $0x1500] sm:$0xf]  ;;  %v10570_v3 = vor.u32 %v12337_v60, %v10569_v58  ;;  %5936 = vmatpush.bf16.msra.mxu0 %v10314_v2 }
 0x102   : > { %v12401_v62 = vld [vmem:[%s13176_s20 + $0x151c] sm:$0xf0] }
 0x103   : > { %v11081_v63 = vld [vmem:[%s13176_s20 + $0x1700] sm:$0xf]  ;;  %v10826_v4 = vor.u32 %v12401_v62, %v10825_v61  ;;  %5949 = vmatpush.bf16.msra.mxu1 %v10570_v3  ;;  %v11781_v62 = vld [vmem:[%s13176_s20 + $0x1c4] sm:$0xf] }
 0x104   : > { %v12465_v1 = vld [vmem:[%s13176_s20 + $0x171c] sm:$0xf0]  ;;  %v11845_v3 = vld [vmem:[%s13176_s20 + $0x3c4] sm:$0xf] }
 0x105   : > { %v10281_v5 = vld [vmem:[%s13176_s20 + $0x10c0] sm:$0xf]  ;;  %v11082_v8 = vor.u32 %v12465_v1, %v11081_v63  ;;  %5962 = vmatpush.bf16.msra.mxu2 %v10826_v4  ;;  %v8363_v63 = vld [vmem:[%s13176_s20 + $0x1e0] sm:$0xf0] }
 0x106   : > { %v12265_v6 = vld [vmem:[%s13176_s20 + $0x10dc] sm:$0xf0]  ;;  %v8619_v4 = vld [vmem:[%s13176_s20 + $0x3e0] sm:$0xf0] }
 0x107   : > { %v10537_v7 = vld [vmem:[%s13176_s20 + $0x12c0] sm:$0xf]  ;;  %v10282_v15 = vor.u32 %v12265_v6, %v10281_v5  ;;  %5975 = vmatpush.bf16.msra.mxu3 %v11082_v8 }
 0x108   : > { %v12329_v9 = vld [vmem:[%s13176_s20 + $0x12dc] sm:$0xf0] }
 0x109   : > { %v10793_v11 = vld [vmem:[%s13176_s20 + $0x14c0] sm:$0xf]  ;;  %v10538_v16 = vor.u32 %v12329_v9, %v10537_v7  ;;  %5937 = vmatpush.bf16.msra.mxu0 %v10282_v15  ;;  %v434_v9 = vld [vmem:[%s13169_s10 + $0x48] sm:$0xff] }
 0x10a   : > { %v12393_v12 = vld [vmem:[%s13176_s20 + $0x14dc] sm:$0xf0] }
 0x10b   : > { %v11049_v13 = vld [vmem:[%s13176_s20 + $0x16c0] sm:$0xf]  ;;  %v10794_v19 = vor.u32 %v12393_v12, %v10793_v11  ;;  %5950 = vmatpush.bf16.msra.mxu1 %v10538_v16  ;;  %v436_v11 = vld [vmem:[%s13169_s10 + $0x58] sm:$0xff] }
 0x10c   : > { %v12457_v14 = vld [vmem:[%s13176_s20 + $0x16dc] sm:$0xf0] }
 0x10d   : > { %v10249_v20 = vld [vmem:[%s13176_s20 + $0x1080] sm:$0xf]  ;;  %v11050_v23 = vor.u32 %v12457_v14, %v11049_v13  ;;  %5963 = vmatpush.bf16.msra.mxu2 %v10794_v19  ;;  %v8366_v13 = vor.u32 %v11781_v62, %v8363_v63  ;;  %v8622_v19 = vor.u32 %v11845_v3, %v8619_v4  ;;  %v8235_v3 = vld [vmem:[%s13176_s20 + $0xe0] sm:$0xf0] }
 0x10e   : > { %v12257_v21 = vld [vmem:[%s13176_s20 + $0x109c] sm:$0xf0]  ;;  %v11813_v4 = vld [vmem:[%s13176_s20 + $0x2c4] sm:$0xf] }
 0x10f   : > { %v10505_v22 = vld [vmem:[%s13176_s20 + $0x1280] sm:$0xf]  ;;  %v10250_v29 = vor.u32 %v12257_v21, %v10249_v20  ;;  %5976 = vmatpush.bf16.msra.mxu3 %v11050_v23  ;;  %v8331_v23 = vld [vmem:[%s13176_s20 + $0x1a0] sm:$0xf0] }
 0x110   : > { %v12321_v24 = vld [vmem:[%s13176_s20 + $0x129c] sm:$0xf0] }
 0x111   : > { %v10761_v25 = vld [vmem:[%s13176_s20 + $0x1480] sm:$0xf]  ;;  %v10506_v30 = vor.u32 %v12321_v24, %v10505_v22  ;;  %5938 = vmatpush.bf16.msra.mxu0 %v10250_v29  ;;  %v11773_v22 = vld [vmem:[%s13176_s20 + $0x184] sm:$0xf] }
 0x112   : > { %v12385_v26 = vld [vmem:[%s13176_s20 + $0x149c] sm:$0xf0] }
 0x113   : > { %v11017_v27 = vld [vmem:[%s13176_s20 + $0x1680] sm:$0xf]  ;;  %v10762_v31 = vor.u32 %v12385_v26, %v10761_v25  ;;  %5951 = vmatpush.bf16.msra.mxu1 %v10506_v30  ;;  %v13442_v25 = vpack.c.bf16 %v434_v9, %v434_v9  ;;  %v11837_v26 = vld [vmem:[%s13176_s20 + $0x384] sm:$0xf] }
 0x114   : > { %v12449_v28 = vld [vmem:[%s13176_s20 + $0x169c] sm:$0xf0] }
 0x115   : > { %v10217_v32 = vld [vmem:[%s13176_s20 + $0x1040] sm:$0xf]  ;;  %v11018_v36 = vor.u32 %v12449_v28, %v11017_v27  ;;  %5964 = vmatpush.bf16.msra.mxu2 %v10762_v31  ;;  %v8587_v27 = vld [vmem:[%s13176_s20 + $0x3a0] sm:$0xf0]  ;;  %v13446_v28 = vpack.c.bf16 %v436_v11, %v436_v11  ;;  %v8334_v31 = vor.u32 %v11773_v22, %v8331_v23 }
 0x116   : > { %v12249_v33 = vld [vmem:[%s13176_s20 + $0x105c] sm:$0xf0] }
 0x117   : > { %v10473_v34 = vld [vmem:[%s13176_s20 + $0x1240] sm:$0xf]  ;;  %v10218_v45 = vor.u32 %v12249_v33, %v10217_v32  ;;  %5977 = vmatpush.bf16.msra.mxu3 %v11018_v36  ;;  %v8590_v36 = vor.u32 %v11837_v26, %v8587_v27 }
 0x118   : > { %v12313_v37 = vld [vmem:[%s13176_s20 + $0x125c] sm:$0xf0] }
 0x119   : > { %v10729_v40 = vld [vmem:[%s13176_s20 + $0x1440] sm:$0xf]  ;;  %v10474_v48 = vor.u32 %v12313_v37, %v10473_v34  ;;  %5939 = vmatpush.bf16.msra.mxu0 %v10218_v45 }
 0x11a   : > { %v12377_v42 = vld [vmem:[%s13176_s20 + $0x145c] sm:$0xf0] }
 0x11b   : > { %v10985_v43 = vld [vmem:[%s13176_s20 + $0x1640] sm:$0xf]  ;;  %v10730_v49 = vor.u32 %v12377_v42, %v10729_v40  ;;  %5952 = vmatpush.bf16.msra.mxu1 %v10474_v48  ;;  %v11765_v40 = vld [vmem:[%s13176_s20 + $0x144] sm:$0xf] }
 0x11c   : > { %v12441_v44 = vld [vmem:[%s13176_s20 + $0x165c] sm:$0xf0]  ;;  %v8299_v42 = vld [vmem:[%s13176_s20 + $0x160] sm:$0xf0] }
 0x11d   : > { %v10185_v46 = vld [vmem:[%s13176_s20 + $0x1000] sm:$0xf]  ;;  %v10986_v53 = vor.u32 %v12441_v44, %v10985_v43  ;;  %5965 = vmatpush.bf16.msra.mxu2 %v10730_v49  ;;  %v11829_v43 = vld [vmem:[%s13176_s20 + $0x344] sm:$0xf] }
 0x11e   : > { %v12241_v47 = vld [vmem:[%s13176_s20 + $0x101c] sm:$0xf0]  ;;  %v8555_v44 = vld [vmem:[%s13176_s20 + $0x360] sm:$0xf0] }
 0x11f   : > { %v10441_v50 = vld [vmem:[%s13176_s20 + $0x1200] sm:$0xf]  ;;  %v10186_v60 = vor.u32 %v12241_v47, %v10185_v46  ;;  %5978 = vmatpush.bf16.msra.mxu3 %v10986_v53  ;;  %v8302_v47 = vor.u32 %v11765_v40, %v8299_v42  ;;  %v11757_v53 = vld [vmem:[%s13176_s20 + $0x104] sm:$0xf] }
 0x120   : > { %v12305_v51 = vld [vmem:[%s13176_s20 + $0x121c] sm:$0xf0] }
 0x121   : > { %v10697_v52 = vld [vmem:[%s13176_s20 + $0x1400] sm:$0xf]  ;;  %v10442_v1 = vor.u32 %v12305_v51, %v10441_v50  ;;  %5940 = vmatpush.bf16.msra.mxu0 %v10186_v60  ;;  %v8558_v51 = vor.u32 %v11829_v43, %v8555_v44 }
 0x122   : > { %v12369_v54 = vld [vmem:[%s13176_s20 + $0x141c] sm:$0xf0] }
 0x123   : > { %v10953_v55 = vld [vmem:[%s13176_s20 + $0x1600] sm:$0xf]  ;;  %v10698_v2 = vor.u32 %v12369_v54, %v10697_v52  ;;  %5953 = vmatpush.bf16.msra.mxu1 %v10442_v1  ;;  %v8267_v54 = vld [vmem:[%s13176_s20 + $0x120] sm:$0xf0] }
 0x124   : > { %v12433_v56 = vld [vmem:[%s13176_s20 + $0x161c] sm:$0xf0] }
 0x125   : > { %v11433_v57 = vld [vmem:[%s13176_s20 + $0x19c0] sm:$0xf]  ;;  %v10954_v6 = vor.u32 %v12433_v56, %v10953_v55  ;;  %5966 = vmatpush.bf16.msra.mxu2 %v10698_v2  ;;  %v11821_v55 = vld [vmem:[%s13176_s20 + $0x304] sm:$0xf] }
 0x126   : > { %v12553_v58 = vld [vmem:[%s13176_s20 + $0x19dc] sm:$0xf0]  ;;  %5954 = vmatmul.bf16.vlgmr.msra.gmra.mxu1 %v13442_v25  ;;  %v8523_v56 = vld [vmem:[%s13176_s20 + $0x320] sm:$0xf0] }
 0x127   : > { %v11689_v59 = vld [vmem:[%s13176_s20 + $0x1bc0] sm:$0xf]  ;;  %v11434_v7 = vor.u32 %v12553_v58, %v11433_v57  ;;  %5979 = vmatpush.bf16.msra.mxu3 %v10954_v6  ;;  %v8526_v63 = vor.u32 %v11821_v55, %v8523_v56  ;;  %v11749_v2 = vld [vmem:[%s13176_s20 + $0xc4] sm:$0xf] }
 0x128   : > { %v12617_v61 = vld [vmem:[%s13176_s20 + $0x1bdc] sm:$0xf0]  ;;  %v11973_v55 = vld [vmem:[%s13176_s20 + $0x7c4] sm:$0xf] }
 0x129   : > { %v433_v5 = vld [vmem:[%s13169_s10 + $0x40] sm:$0xff]  ;;  %v435_v8 = vld [vmem:[%s13169_s10 + $0x50] sm:$0xff]  ;;  %v11690_v12 = vor.u32 %v12617_v61, %v11689_v59  ;;  %5985 = vmatpush.bf16.msrb.mxu0 %v11434_v7  ;;  %6011 = vmatpush.bf16.msrb.mxu2 %v8366_v13  ;;  %v8270_v59 = vor.u32 %v11757_v53, %v8267_v54 }
 0x12a   : > { %v11401_v14 = vld [vmem:[%s13176_s20 + $0x1980] sm:$0xf]  ;;  %v13435_v20 = vpack.c.bf16 %v433_v5, %v433_v5  ;;  %v13440_v24 = vpack.c.bf16 %v435_v8, %v435_v8  ;;  %5980 = vmatmul.bf16.vlgmr.msra.gmra.mxu3 %v13446_v28  ;;  %v8491_v5 = vld [vmem:[%s13176_s20 + $0x2e0] sm:$0xf0]  ;;  %v8238_v8 = vor.u32 %v11749_v2, %v8235_v3 }
 0x12b   : > { %v12545_v15 = vld [vmem:[%s13176_s20 + $0x199c] sm:$0xf0]  ;;  %5998 = vmatpush.bf16.msrb.mxu1 %v11690_v12  ;;  %6024 = vmatpush.bf16.msrb.mxu3 %v8622_v19  ;;  %v8494_v13 = vor.u32 %v11813_v4, %v8491_v5  ;;  %v11805_v19 = vld [vmem:[%s13176_s20 + $0x284] sm:$0xf]  ;;  %v438_v4 = vld [vmem:[%s13169_s10 + $0x68] sm:$0xff] }
 0x12c   : > { %v11657_v16 = vld [vmem:[%s13176_s20 + $0x1b80] sm:$0xf]  ;;  %v11402_v29 = vor.u32 %v12545_v15, %v11401_v14  ;;  %5941 = vmatmul.bf16.vlgmr.msra.gmra.mxu0 %v13435_v20  ;;  %5967 = vmatmul.bf16.vlgmr.msra.gmra.mxu2 %v13440_v24  ;;  %v11741_v15 = vld [vmem:[%s13176_s20 + $0x84] sm:$0xf] }
 0x12d   : > { %v12609_v21 = vld [vmem:[%s13176_s20 + $0x1b9c] sm:$0xf0]  ;;  %6012 = vmatpush.bf16.msrb.mxu2 %v8334_v31  ;;  %v11909_v53 = vld [vmem:[%s13176_s20 + $0x5c4] sm:$0xf] }
 0x12e   : > { %v11658_v30 = vor.u32 %v12609_v21, %v11657_v16  ;;  %v11369_v32 = vld [vmem:[%s13176_s20 + $0x1940] sm:$0xf]  ;;  %5986 = vmatpush.bf16.msrb.mxu0 %v11402_v29  ;;  %v8203_v16 = vld [vmem:[%s13176_s20 + $0xa0] sm:$0xf0] }
 0x12f   : > { %v12537_v33 = vld [vmem:[%s13176_s20 + $0x195c] sm:$0xf0]  ;;  %6025 = vmatpush.bf16.msrb.mxu3 %v8590_v36  ;;  %v8459_v21 = vld [vmem:[%s13176_s20 + $0x2a0] sm:$0xf0]  ;;  %v8206_v26 = vor.u32 %v11741_v15, %v8203_v16  ;;  %v13518_v16 = vpack.c.bf16 %v438_v4, %v438_v4 }
 0x130   : > { %v11625_v34 = vld [vmem:[%s13176_s20 + $0x1b40] sm:$0xf]  ;;  %v11370_v45 = vor.u32 %v12537_v33, %v11369_v32  ;;  %5999 = vmatpush.bf16.msrb.mxu1 %v11658_v30  ;;  %v8462_v31 = vor.u32 %v11805_v19, %v8459_v21  ;;  %v11733_v33 = vld [vmem:[%s13176_s20 + $0x44] sm:$0xf] }
 0x131   : > { %v12601_v37 = vld [vmem:[%s13176_s20 + $0x1b5c] sm:$0xf0]  ;;  %6013 = vmatpush.bf16.msrb.mxu2 %v8302_v47  ;;  %v11797_v36 = vld [vmem:[%s13176_s20 + $0x244] sm:$0xf] }
 0x132   : > { %v11626_v46 = vor.u32 %v12601_v37, %v11625_v34  ;;  %v11337_v48 = vld [vmem:[%s13176_s20 + $0x1900] sm:$0xf]  ;;  %5987 = vmatpush.bf16.msrb.mxu0 %v11370_v45  ;;  %v8171_v34 = vld [vmem:[%s13176_s20 + $0x60] sm:$0xf0] }
 0x133   : > { %v12529_v49 = vld [vmem:[%s13176_s20 + $0x191c] sm:$0xf0]  ;;  %6026 = vmatpush.bf16.msrb.mxu3 %v8558_v51  ;;  %v8427_v37 = vld [vmem:[%s13176_s20 + $0x260] sm:$0xf0]  ;;  %v8174_v45 = vor.u32 %v11733_v33, %v8171_v34 }
 0x134   : > { %v11593_v50 = vld [vmem:[%s13176_s20 + $0x1b00] sm:$0xf]  ;;  %v11338_v57 = vor.u32 %v12529_v49, %v11337_v48  ;;  %6000 = vmatpush.bf16.msrb.mxu1 %v11626_v46  ;;  %v11725_v48 = vld [vmem:[%s13176_s20 + $0x4] sm:$0xf]  ;;  %v8430_v49 = vor.u32 %v11797_v36, %v8427_v37 }
 0x135   : > { %v12593_v52 = vld [vmem:[%s13176_s20 + $0x1b1c] sm:$0xf0]  ;;  %6014 = vmatpush.bf16.msrb.mxu2 %v8270_v59  ;;  %v11789_v51 = vld [vmem:[%s13176_s20 + $0x204] sm:$0xf] }
 0x136   : > { %v11594_v58 = vor.u32 %v12593_v52, %v11593_v50  ;;  %v11305_v60 = vld [vmem:[%s13176_s20 + $0x18c0] sm:$0xf]  ;;  %5988 = vmatpush.bf16.msrb.mxu0 %v11338_v57  ;;  %v8139_v50 = vld [vmem:[%s13176_s20 + $0x20] sm:$0xf0] }
 0x137   : > { %v12521_v61 = vld [vmem:[%s13176_s20 + $0x18dc] sm:$0xf0]  ;;  %6027 = vmatpush.bf16.msrb.mxu3 %v8526_v63  ;;  %v8395_v52 = vld [vmem:[%s13176_s20 + $0x220] sm:$0xf0] }
 0x138   : > { %v11561_v62 = vld [vmem:[%s13176_s20 + $0x1ac0] sm:$0xf]  ;;  %v11306_v6 = vor.u32 %v12521_v61, %v11305_v60  ;;  %6001 = vmatpush.bf16.msrb.mxu1 %v11594_v58  ;;  %v8875_v54 = vld [vmem:[%s13176_s20 + $0x5e0] sm:$0xf0]  ;;  %v8142_v61 = vor.u32 %v11725_v48, %v8139_v50  ;;  %v8398_v2 = vor.u32 %v11789_v51, %v8395_v52 }
 0x139   : > { %v12585_v1 = vld [vmem:[%s13176_s20 + $0x1adc] sm:$0xf0]  ;;  %6015 = vmatpush.bf16.msrb.mxu2 %v8238_v8  ;;  %v9131_v57 = vld [vmem:[%s13176_s20 + $0x7e0] sm:$0xf0]  ;;  %v8878_v3 = vor.u32 %v11909_v53, %v8875_v54 }
 0x13a   : > { %v11562_v7 = vor.u32 %v12585_v1, %v11561_v62  ;;  %v11273_v9 = vld [vmem:[%s13176_s20 + $0x1880] sm:$0xf]  ;;  %5989 = vmatpush.bf16.msrb.mxu0 %v11306_v6  ;;  %v12037_v58 = vld [vmem:[%s13176_s20 + $0x9c4] sm:$0xf]  ;;  %v9134_v5 = vor.u32 %v11973_v55, %v9131_v57 }
 0x13b   : > { %v12513_v11 = vld [vmem:[%s13176_s20 + $0x189c] sm:$0xf0]  ;;  %6028 = vmatpush.bf16.msrb.mxu3 %v8494_v13  ;;  %v9387_v59 = vld [vmem:[%s13176_s20 + $0x9e0] sm:$0xf0] }
 0x13c   : > { %v11529_v12 = vld [vmem:[%s13176_s20 + $0x1a80] sm:$0xf]  ;;  %v11274_v22 = vor.u32 %v12513_v11, %v11273_v9  ;;  %6002 = vmatpush.bf16.msrb.mxu1 %v11562_v7  ;;  %v12101_v62 = vld [vmem:[%s13176_s20 + $0xbc4] sm:$0xf]  ;;  %v9390_v6 = vor.u32 %v12037_v58, %v9387_v59 }
 0x13d   : > { %v12577_v14 = vld [vmem:[%s13176_s20 + $0x1a9c] sm:$0xf0]  ;;  %6016 = vmatpush.bf16.msrb.mxu2 %v8206_v26  ;;  %v9643_v63 = vld [vmem:[%s13176_s20 + $0xbe0] sm:$0xf0] }
 0x13e   : > { %v11530_v23 = vor.u32 %v12577_v14, %v11529_v12  ;;  %v11241_v27 = vld [vmem:[%s13176_s20 + $0x1840] sm:$0xf]  ;;  %5990 = vmatpush.bf16.msrb.mxu0 %v11274_v22  ;;  %v11901_v7 = vld [vmem:[%s13176_s20 + $0x584] sm:$0xf]  ;;  %v9646_v11 = vor.u32 %v12101_v62, %v9643_v63 }
 0x13f   : > { %v12505_v29 = vld [vmem:[%s13176_s20 + $0x185c] sm:$0xf0]  ;;  %6029 = vmatpush.bf16.msrb.mxu3 %v8462_v31  ;;  %v8843_v8 = vld [vmem:[%s13176_s20 + $0x5a0] sm:$0xf0] }
 0x140   : > { %v11497_v30 = vld [vmem:[%s13176_s20 + $0x1a40] sm:$0xf]  ;;  %v11242_v40 = vor.u32 %v12505_v29, %v11241_v27  ;;  %6003 = vmatpush.bf16.msrb.mxu1 %v11530_v23  ;;  %v11965_v9 = vld [vmem:[%s13176_s20 + $0x784] sm:$0xf]  ;;  %v8846_v22 = vor.u32 %v11901_v7, %v8843_v8 }
 0x141   : > { %v12569_v32 = vld [vmem:[%s13176_s20 + $0x1a5c] sm:$0xf0]  ;;  %6017 = vmatpush.bf16.msrb.mxu2 %v8174_v45  ;;  %v9099_v13 = vld [vmem:[%s13176_s20 + $0x7a0] sm:$0xf0] }
 0x142   : > { %v11209_v42 = vld [vmem:[%s13176_s20 + $0x1800] sm:$0xf]  ;;  %v11498_v44 = vor.u32 %v12569_v32, %v11497_v30  ;;  %5991 = vmatpush.bf16.msrb.mxu0 %v11242_v40  ;;  %v12029_v14 = vld [vmem:[%s13176_s20 + $0x984] sm:$0xf]  ;;  %v9102_v23 = vor.u32 %v11965_v9, %v9099_v13 }
 0x143   : > { %v12497_v43 = vld [vmem:[%s13176_s20 + $0x181c] sm:$0xf0]  ;;  %6030 = vmatpush.bf16.msrb.mxu3 %v8430_v49  ;;  %v9355_v15 = vld [vmem:[%s13176_s20 + $0x9a0] sm:$0xf0] }
 0x144   : > { %v11465_v46 = vld [vmem:[%s13176_s20 + $0x1a00] sm:$0xf]  ;;  %v11210_v56 = vor.u32 %v12497_v43, %v11209_v42  ;;  %6004 = vmatpush.bf16.msrb.mxu1 %v11498_v44  ;;  %v12093_v19 = vld [vmem:[%s13176_s20 + $0xb84] sm:$0xf]  ;;  %v9358_v26 = vor.u32 %v12029_v14, %v9355_v15 }
 0x145   : > { %v12561_v47 = vld [vmem:[%s13176_s20 + $0x1a1c] sm:$0xf0]  ;;  %6018 = vmatpush.bf16.msrb.mxu2 %v8142_v61  ;;  %v9611_v21 = vld [vmem:[%s13176_s20 + $0xba0] sm:$0xf0] }
 0x146   : > { %v11466_v60 = vor.u32 %v12561_v47, %v11465_v46  ;;  %v437_v1 = vld [vmem:[%s13169_s10 + $0x60] sm:$0xff]  ;;  %5992 = vmatpush.bf16.msrb.mxu0 %v11210_v56  ;;  %v9614_v31 = vor.u32 %v12093_v19, %v9611_v21 }
 0x147   : > { %v13513_v12 = vpack.c.bf16 %v437_v1, %v437_v1  ;;  %6031 = vmatpush.bf16.msrb.mxu3 %v8398_v2  ;;  %v11893_v27 = vld [vmem:[%s13176_s20 + $0x544] sm:$0xf] }
 0x148   : > { %6005 = vmatpush.bf16.msrb.mxu1 %v11466_v60  ;;  %v8811_v29 = vld [vmem:[%s13176_s20 + $0x560] sm:$0xf0]  ;;  %6019 = vmatmul.bf16.vlgmr.msrb.gmra.mxu2 %v13292_v10 }
 0x149   : > { %6063 = vmatpush.bf16.msra.mxu2 %v9390_v6  ;;  %v11957_v30 = vld [vmem:[%s13176_s20 + $0x744] sm:$0xf]  ;;  %5993 = vmatmul.bf16.vlgmr.msrb.gmra.mxu0 %v13513_v12  ;;  %v8814_v40 = vor.u32 %v11893_v27, %v8811_v29 }
 0x14a   : > { %6037 = vmatpush.bf16.msra.mxu0 %v8878_v3  ;;  %v9067_v32 = vld [vmem:[%s13176_s20 + $0x760] sm:$0xf0]  ;;  %6032 = vmatmul.bf16.vlgmr.msrb.gmra.mxu3 %v13301_v18 }
 0x14b   : > { %6076 = vmatpush.bf16.msra.mxu3 %v9646_v11  ;;  %v12021_v33 = vld [vmem:[%s13176_s20 + $0x944] sm:$0xf]  ;;  %6006 = vmatmul.bf16.vlgmr.msrb.gmra.mxu1 %v13518_v16  ;;  %v9070_v42 = vor.u32 %v11957_v30, %v9067_v32 }
 0x14c   : > { %6050 = vmatpush.bf16.msra.mxu1 %v9134_v5  ;;  %v9323_v34 = vld [vmem:[%s13176_s20 + $0x960] sm:$0xf0] }
 0x14d   : > { %v12085_v36 = vld [vmem:[%s13176_s20 + $0xb44] sm:$0xf]  ;;  %6064 = vmatpush.bf16.msra.mxu2 %v9358_v26  ;;  %v9326_v43 = vor.u32 %v12021_v33, %v9323_v34 }
 0x14e   : > { %v9579_v37 = vld [vmem:[%s13176_s20 + $0xb60] sm:$0xf0]  ;;  %6038 = vmatpush.bf16.msra.mxu0 %v8846_v22 }
 0x14f   : > { %v11885_v44 = vld [vmem:[%s13176_s20 + $0x504] sm:$0xf]  ;;  %6077 = vmatpush.bf16.msra.mxu3 %v9614_v31  ;;  %v9582_v47 = vor.u32 %v12085_v36, %v9579_v37 }
 0x150   : > { %6051 = vmatpush.bf16.msra.mxu1 %v9102_v23  ;;  %v8779_v45 = vld [vmem:[%s13176_s20 + $0x520] sm:$0xf0] }
 0x151   : > { %v11949_v46 = vld [vmem:[%s13176_s20 + $0x704] sm:$0xf]  ;;  %v8782_v53 = vor.u32 %v11885_v44, %v8779_v45  ;;  %6065 = vmatpush.bf16.msra.mxu2 %v9326_v43 }
 0x152   : > { %v9035_v48 = vld [vmem:[%s13176_s20 + $0x720] sm:$0xf0]  ;;  %6039 = vmatpush.bf16.msra.mxu0 %v8814_v40 }
 0x153   : > { %v12013_v49 = vld [vmem:[%s13176_s20 + $0x904] sm:$0xf]  ;;  %v9038_v54 = vor.u32 %v11949_v46, %v9035_v48  ;;  %6078 = vmatpush.bf16.msra.mxu3 %v9582_v47 }
 0x154   : > { %v9291_v50 = vld [vmem:[%s13176_s20 + $0x920] sm:$0xf0]  ;;  %6052 = vmatpush.bf16.msra.mxu1 %v9070_v42 }
 0x155   : > { %v12077_v51 = vld [vmem:[%s13176_s20 + $0xb04] sm:$0xf]  ;;  %v9294_v55 = vor.u32 %v12013_v49, %v9291_v50 }
 0x156   : > { %v9547_v52 = vld [vmem:[%s13176_s20 + $0xb20] sm:$0xf0]  ;;  %6040 = vmatpush.bf16.msra.mxu0 %v8782_v53 }
 0x157   : > { %v11877_v56 = vld [vmem:[%s13176_s20 + $0x4c4] sm:$0xf]  ;;  %v9550_v59 = vor.u32 %v12077_v51, %v9547_v52  ;;  %6066 = vmatpush.bf16.msra.mxu2 %v9294_v55 }
 0x158   : > { %v8747_v57 = vld [vmem:[%s13176_s20 + $0x4e0] sm:$0xf0]  ;;  %6053 = vmatpush.bf16.msra.mxu1 %v9038_v54 }
 0x159   : > { %v11941_v58 = vld [vmem:[%s13176_s20 + $0x6c4] sm:$0xf]  ;;  %v8750_v2 = vor.u32 %v11877_v56, %v8747_v57  ;;  %6079 = vmatpush.bf16.msra.mxu3 %v9550_v59 }
 0x15a   : > { %v9003_v60 = vld [vmem:[%s13176_s20 + $0x6e0] sm:$0xf0] }
 0x15b   : > { %v12005_v61 = vld [vmem:[%s13176_s20 + $0x8c4] sm:$0xf]  ;;  %v9006_v3 = vor.u32 %v11941_v58, %v9003_v60  ;;  %6041 = vmatpush.bf16.msra.mxu0 %v8750_v2 }
 0x15c   : > { %v9259_v62 = vld [vmem:[%s13176_s20 + $0x8e0] sm:$0xf0] }
 0x15d   : > { %v12069_v63 = vld [vmem:[%s13176_s20 + $0xac4] sm:$0xf]  ;;  %v9262_v4 = vor.u32 %v12005_v61, %v9259_v62  ;;  %6054 = vmatpush.bf16.msra.mxu1 %v9006_v3 }
 0x15e   : > { %v9515_v1 = vld [vmem:[%s13176_s20 + $0xae0] sm:$0xf0] }
 0x15f   : > { %v11869_v5 = vld [vmem:[%s13176_s20 + $0x484] sm:$0xf]  ;;  %v9518_v8 = vor.u32 %v12069_v63, %v9515_v1  ;;  %6067 = vmatpush.bf16.msra.mxu2 %v9262_v4 }
 0x160   : > { %v8715_v6 = vld [vmem:[%s13176_s20 + $0x4a0] sm:$0xf0] }
 0x161   : > { %v11933_v7 = vld [vmem:[%s13176_s20 + $0x684] sm:$0xf]  ;;  %v8718_v19 = vor.u32 %v11869_v5, %v8715_v6  ;;  %6080 = vmatpush.bf16.msra.mxu3 %v9518_v8 }
 0x162   : > { %v8971_v9 = vld [vmem:[%s13176_s20 + $0x6a0] sm:$0xf0] }
 0x163   : > { %v11997_v11 = vld [vmem:[%s13176_s20 + $0x884] sm:$0xf]  ;;  %v8974_v21 = vor.u32 %v11933_v7, %v8971_v9  ;;  %6042 = vmatpush.bf16.msra.mxu0 %v8718_v19 }
 0x164   : > { %v9227_v13 = vld [vmem:[%s13176_s20 + $0x8a0] sm:$0xf0] }
 0x165   : > { %v12061_v14 = vld [vmem:[%s13176_s20 + $0xa84] sm:$0xf]  ;;  %v9230_v22 = vor.u32 %v11997_v11, %v9227_v13  ;;  %6055 = vmatpush.bf16.msra.mxu1 %v8974_v21 }
 0x166   : > { %v9483_v15 = vld [vmem:[%s13176_s20 + $0xaa0] sm:$0xf0] }
 0x167   : > { %v11861_v23 = vld [vmem:[%s13176_s20 + $0x444] sm:$0xf]  ;;  %v9486_v29 = vor.u32 %v12061_v14, %v9483_v15  ;;  %6068 = vmatpush.bf16.msra.mxu2 %v9230_v22 }
 0x168   : > { %v8683_v26 = vld [vmem:[%s13176_s20 + $0x460] sm:$0xf0] }
 0x169   : > { %v11925_v27 = vld [vmem:[%s13176_s20 + $0x644] sm:$0xf]  ;;  %v8686_v36 = vor.u32 %v11861_v23, %v8683_v26  ;;  %6081 = vmatpush.bf16.msra.mxu3 %v9486_v29 }
 0x16a   : > { %v8939_v30 = vld [vmem:[%s13176_s20 + $0x660] sm:$0xf0] }
 0x16b   : > { %v11989_v31 = vld [vmem:[%s13176_s20 + $0x844] sm:$0xf]  ;;  %v8942_v42 = vor.u32 %v11925_v27, %v8939_v30  ;;  %6043 = vmatpush.bf16.msra.mxu0 %v8686_v36 }
 0x16c   : > { %v9195_v32 = vld [vmem:[%s13176_s20 + $0x860] sm:$0xf0] }
 0x16d   : > { %v12053_v33 = vld [vmem:[%s13176_s20 + $0xa44] sm:$0xf]  ;;  %v9198_v43 = vor.u32 %v11989_v31, %v9195_v32  ;;  %6056 = vmatpush.bf16.msra.mxu1 %v8942_v42 }
 0x16e   : > { %v9451_v34 = vld [vmem:[%s13176_s20 + $0xa60] sm:$0xf0] }
 0x16f   : > { %v11853_v37 = vld [vmem:[%s13176_s20 + $0x404] sm:$0xf]  ;;  %v9454_v47 = vor.u32 %v12053_v33, %v9451_v34  ;;  %6069 = vmatpush.bf16.msra.mxu2 %v9198_v43 }
 0x170   : > { %v8651_v40 = vld [vmem:[%s13176_s20 + $0x420] sm:$0xf0] }
 0x171   : > { %v11917_v44 = vld [vmem:[%s13176_s20 + $0x604] sm:$0xf]  ;;  %v8654_v54 = vor.u32 %v11853_v37, %v8651_v40  ;;  %6082 = vmatpush.bf16.msra.mxu3 %v9454_v47 }
 0x172   : > { %v8907_v45 = vld [vmem:[%s13176_s20 + $0x620] sm:$0xf0] }
 0x173   : > { %v11981_v46 = vld [vmem:[%s13176_s20 + $0x804] sm:$0xf]  ;;  %v8910_v58 = vor.u32 %v11917_v44, %v8907_v45  ;;  %6044 = vmatpush.bf16.msra.mxu0 %v8654_v54 }
 0x174   : > { %v9163_v48 = vld [vmem:[%s13176_s20 + $0x820] sm:$0xf0] }
 0x175   : > { %v12045_v49 = vld [vmem:[%s13176_s20 + $0xa04] sm:$0xf]  ;;  %v9166_v59 = vor.u32 %v11981_v46, %v9163_v48  ;;  %6057 = vmatpush.bf16.msra.mxu1 %v8910_v58 }
 0x176   : > { %v9419_v50 = vld [vmem:[%s13176_s20 + $0xa20] sm:$0xf0]  ;;  %6045 = vmatmul.bf16.vlgmr.msra.gmra.mxu0 %v13283_v0 }
 0x177   : > { %v12165_v51 = vld [vmem:[%s13176_s20 + $0xdc4] sm:$0xf]  ;;  %v9422_v62 = vor.u32 %v12045_v49, %v9419_v50  ;;  %6070 = vmatpush.bf16.msra.mxu2 %v9166_v59 }
 0x178   : > { %v9899_v52 = vld [vmem:[%s13176_s20 + $0xde0] sm:$0xf0]  ;;  %6058 = vmatmul.bf16.vlgmr.msra.gmra.mxu1 %v13299_v17 }
 0x179   : > { %v12229_v53 = vld [vmem:[%s13176_s20 + $0xfc4] sm:$0xf]  ;;  %v9902_v63 = vor.u32 %v12165_v51, %v9899_v52  ;;  %6083 = vmatpush.bf16.msra.mxu3 %v9422_v62  ;;  %v13618_v62 = vpop.f32.mrf.mxu0 }
 0x17a   : > { %v10155_v55 = vld [vmem:[%s13176_s20 + $0xfe0] sm:$0xf0]  ;;  %6071 = vmatmul.bf16.vlgmr.msra.gmra.mxu2 %v13362_v38 }
 0x17b   : > { %v12293_v56 = vld [vmem:[%s13176_s20 + $0x11c4] sm:$0xf]  ;;  %v10158_v1 = vor.u32 %v12229_v53, %v10155_v55  ;;  %6089 = vmatpush.bf16.msrb.mxu0 %v9902_v63 }
 0x17c   : > { %v10411_v57 = vld [vmem:[%s13176_s20 + $0x11e0] sm:$0xf0]  ;;  %6084 = vmatmul.bf16.vlgmr.msra.gmra.mxu3 %v13366_v41 }
 0x17d   : > { %v12357_v60 = vld [vmem:[%s13176_s20 + $0x13c4] sm:$0xf]  ;;  %v10414_v2 = vor.u32 %v12293_v56, %v10411_v57  ;;  %6102 = vmatpush.bf16.msrb.mxu1 %v10158_v1 }
 0x17e   : > { %v10667_v61 = vld [vmem:[%s13176_s20 + $0x13e0] sm:$0xf0] }
 0x17f   : > { %v12157_v3 = vld [vmem:[%s13176_s20 + $0xd84] sm:$0xf]  ;;  %v10670_v6 = vor.u32 %v12357_v60, %v10667_v61  ;;  %6115 = vmatpush.bf16.msrb.mxu2 %v10414_v2 }
 0x180   : > { %v9867_v4 = vld [vmem:[%s13176_s20 + $0xda0] sm:$0xf0] }
 0x181   : > { %v12221_v5 = vld [vmem:[%s13176_s20 + $0xf84] sm:$0xf]  ;;  %v9870_v14 = vor.u32 %v12157_v3, %v9867_v4  ;;  %6128 = vmatpush.bf16.msrb.mxu3 %v10670_v6 }
 0x182   : > { %v10123_v7 = vld [vmem:[%s13176_s20 + $0xfa0] sm:$0xf0] }
 0x183   : > { %v12285_v8 = vld [vmem:[%s13176_s20 + $0x1184] sm:$0xf]  ;;  %v10126_v15 = vor.u32 %v12221_v5, %v10123_v7  ;;  %6090 = vmatpush.bf16.msrb.mxu0 %v9870_v14  ;;  %v13630_v14 = vpop.f32.mrf.mxu2 }
 0x184   : > { %v10379_v9 = vld [vmem:[%s13176_s20 + $0x11a0] sm:$0xf0] }
 0x185   : > { %v12349_v11 = vld [vmem:[%s13176_s20 + $0x1384] sm:$0xf]  ;;  %v10382_v19 = vor.u32 %v12285_v8, %v10379_v9  ;;  %6103 = vmatpush.bf16.msrb.mxu1 %v10126_v15 }
 0x186   : > { %v10635_v13 = vld [vmem:[%s13176_s20 + $0x13a0] sm:$0xf0] }
 0x187   : > { %v12149_v21 = vld [vmem:[%s13176_s20 + $0xd44] sm:$0xf]  ;;  %v10638_v26 = vor.u32 %v12349_v11, %v10635_v13  ;;  %6116 = vmatpush.bf16.msrb.mxu2 %v10382_v19  ;;  %v13628_v13 = vpop.f32.mrf.mxu1 }
 0x188   : > { %v9835_v22 = vld [vmem:[%s13176_s20 + $0xd60] sm:$0xf0] }
 0x189   : > { %v12213_v23 = vld [vmem:[%s13176_s20 + $0xf44] sm:$0xf]  ;;  %v9838_v33 = vor.u32 %v12149_v21, %v9835_v22  ;;  %6129 = vmatpush.bf16.msrb.mxu3 %v10638_v26 }
 0x18a   : > { %v10091_v27 = vld [vmem:[%s13176_s20 + $0xf60] sm:$0xf0] }
 0x18b   : > { %v12277_v29 = vld [vmem:[%s13176_s20 + $0x1144] sm:$0xf]  ;;  %v10094_v34 = vor.u32 %v12213_v23, %v10091_v27  ;;  %6091 = vmatpush.bf16.msrb.mxu0 %v9838_v33 }
 0x18c   : > { %v10347_v30 = vld [vmem:[%s13176_s20 + $0x1160] sm:$0xf0] }
 0x18d   : > { %v12341_v31 = vld [vmem:[%s13176_s20 + $0x1344] sm:$0xf]  ;;  %v10350_v36 = vor.u32 %v12277_v29, %v10347_v30  ;;  %6104 = vmatpush.bf16.msrb.mxu1 %v10094_v34  ;;  %v13640_v34 = vpop.f32.mrf.mxu3 }
 0x18e   : > { %v10603_v32 = vld [vmem:[%s13176_s20 + $0x1360] sm:$0xf0] }
 0x18f   : > { %v12141_v37 = vld [vmem:[%s13176_s20 + $0xd04] sm:$0xf]  ;;  %v10606_v43 = vor.u32 %v12341_v31, %v10603_v32  ;;  %6117 = vmatpush.bf16.msrb.mxu2 %v10350_v36 }
 0x190   : > { %v9803_v40 = vld [vmem:[%s13176_s20 + $0xd20] sm:$0xf0] }
 0x191   : > { %v12205_v42 = vld [vmem:[%s13176_s20 + $0xf04] sm:$0xf]  ;;  %v9806_v49 = vor.u32 %v12141_v37, %v9803_v40  ;;  %6130 = vmatpush.bf16.msrb.mxu3 %v10606_v43 }
 0x192   : > { %v10059_v44 = vld [vmem:[%s13176_s20 + $0xf20] sm:$0xf0] }
 0x193   : > { %v12269_v45 = vld [vmem:[%s13176_s20 + $0x1104] sm:$0xf]  ;;  %v10062_v50 = vor.u32 %v12205_v42, %v10059_v44  ;;  %6092 = vmatpush.bf16.msrb.mxu0 %v9806_v49  ;;  %v5840_v42 = vpop.f32.mrf.mxu0 }
 0x194   : > { %v10315_v46 = vld [vmem:[%s13176_s20 + $0x1120] sm:$0xf0] }
 0x195   : > { %v12333_v47 = vld [vmem:[%s13176_s20 + $0x1304] sm:$0xf]  ;;  %v10318_v51 = vor.u32 %v12269_v45, %v10315_v46  ;;  %6105 = vmatpush.bf16.msrb.mxu1 %v10062_v50 }
 0x196   : > { %v10571_v48 = vld [vmem:[%s13176_s20 + $0x1320] sm:$0xf0] }
 0x197   : > { %v12133_v52 = vld [vmem:[%s13176_s20 + $0xcc4] sm:$0xf]  ;;  %v10574_v55 = vor.u32 %v12333_v47, %v10571_v48  ;;  %6118 = vmatpush.bf16.msrb.mxu2 %v10318_v51 }
 0x198   : > { %v9771_v53 = vld [vmem:[%s13176_s20 + $0xce0] sm:$0xf0] }
 0x199   : > { %v12197_v54 = vld [vmem:[%s13176_s20 + $0xec4] sm:$0xf]  ;;  %v9774_v61 = vor.u32 %v12133_v52, %v9771_v53  ;;  %6131 = vmatpush.bf16.msrb.mxu3 %v10574_v55  ;;  %v5853_v55 = vpop.f32.mrf.mxu1 }
 0x19a   : > { %v10027_v56 = vld [vmem:[%s13176_s20 + $0xee0] sm:$0xf0] }
 0x19b   : > { %v12261_v57 = vld [vmem:[%s13176_s20 + $0x10c4] sm:$0xf]  ;;  %v10030_v63 = vor.u32 %v12197_v54, %v10027_v56  ;;  %6093 = vmatpush.bf16.msrb.mxu0 %v9774_v61  ;;  %v5866_v56 = vpop.f32.mrf.mxu2 }
 0x19c   : > { %v10283_v58 = vld [vmem:[%s13176_s20 + $0x10e0] sm:$0xf0] }
 0x19d   : > { %v12325_v59 = vld [vmem:[%s13176_s20 + $0x12c4] sm:$0xf]  ;;  %v10286_v1 = vor.u32 %v12261_v57, %v10283_v58  ;;  %6106 = vmatpush.bf16.msrb.mxu1 %v10030_v63 }
 0x19e   : > { %v10539_v60 = vld [vmem:[%s13176_s20 + $0x12e0] sm:$0xf0] }
 0x19f   : > { %v12125_v2 = vld [vmem:[%s13176_s20 + $0xc84] sm:$0xf]  ;;  %v10542_v5 = vor.u32 %v12325_v59, %v10539_v60  ;;  %6119 = vmatpush.bf16.msrb.mxu2 %v10286_v1 }
 0x1a0   : > { %v9739_v3 = vld [vmem:[%s13176_s20 + $0xca0] sm:$0xf0] }
 0x1a1   : > { %v12189_v4 = vld [vmem:[%s13176_s20 + $0xe84] sm:$0xf]  ;;  %v9742_v15 = vor.u32 %v12125_v2, %v9739_v3  ;;  %6132 = vmatpush.bf16.msrb.mxu3 %v10542_v5 }
 0x1a2   : > { %v9995_v6 = vld [vmem:[%s13176_s20 + $0xea0] sm:$0xf0] }
 0x1a3   : > { %v12253_v7 = vld [vmem:[%s13176_s20 + $0x1084] sm:$0xf]  ;;  %v9998_v19 = vor.u32 %v12189_v4, %v9995_v6  ;;  %6094 = vmatpush.bf16.msrb.mxu0 %v9742_v15 }
 0x1a4   : > { %v10251_v8 = vld [vmem:[%s13176_s20 + $0x10a0] sm:$0xf0] }
 0x1a5   : > { %v12317_v9 = vld [vmem:[%s13176_s20 + $0x1284] sm:$0xf]  ;;  %v10254_v21 = vor.u32 %v12253_v7, %v10251_v8  ;;  %6107 = vmatpush.bf16.msrb.mxu1 %v9998_v19 }
 0x1a6   : > { %v10507_v11 = vld [vmem:[%s13176_s20 + $0x12a0] sm:$0xf0] }
 0x1a7   : > { %v12117_v22 = vld [vmem:[%s13176_s20 + $0xc44] sm:$0xf]  ;;  %v10510_v27 = vor.u32 %v12317_v9, %v10507_v11  ;;  %6120 = vmatpush.bf16.msrb.mxu2 %v10254_v21  ;;  %v5879_v11 = vpop.f32.mrf.mxu3 }
 0x1a8   : > { %v9707_v23 = vld [vmem:[%s13176_s20 + $0xc60] sm:$0xf0] }
 0x1a9   : > { %v12181_v26 = vld [vmem:[%s13176_s20 + $0xe44] sm:$0xf]  ;;  %v9710_v36 = vor.u32 %v12117_v22, %v9707_v23  ;;  %6133 = vmatpush.bf16.msrb.mxu3 %v10510_v27 }
 0x1aa   : > { %v9963_v29 = vld [vmem:[%s13176_s20 + $0xe60] sm:$0xf0] }
 0x1ab   : > { %v12245_v30 = vld [vmem:[%s13176_s20 + $0x1044] sm:$0xf]  ;;  %v9966_v43 = vor.u32 %v12181_v26, %v9963_v29  ;;  %6095 = vmatpush.bf16.msrb.mxu0 %v9710_v36 }
 0x1ac   : > { %v10219_v31 = vld [vmem:[%s13176_s20 + $0x1060] sm:$0xf0] }
 0x1ad   : > { %v12309_v32 = vld [vmem:[%s13176_s20 + $0x1244] sm:$0xf]  ;;  %v10222_v44 = vor.u32 %v12245_v30, %v10219_v31  ;;  %6108 = vmatpush.bf16.msrb.mxu1 %v9966_v43 }
 0x1ae   : > { %v10475_v33 = vld [vmem:[%s13176_s20 + $0x1260] sm:$0xf0] }
 0x1af   : > { %v12109_v37 = vld [vmem:[%s13176_s20 + $0xc04] sm:$0xf]  ;;  %v10478_v48 = vor.u32 %v12309_v32, %v10475_v33  ;;  %6121 = vmatpush.bf16.msrb.mxu2 %v10222_v44 }
 0x1b0   : > { %v9675_v40 = vld [vmem:[%s13176_s20 + $0xc20] sm:$0xf0] }
 0x1b1   : > { %v12173_v45 = vld [vmem:[%s13176_s20 + $0xe04] sm:$0xf]  ;;  %v9678_v57 = vor.u32 %v12109_v37, %v9675_v40  ;;  %6134 = vmatpush.bf16.msrb.mxu3 %v10478_v48 }
 0x1b2   : > { %v9931_v46 = vld [vmem:[%s13176_s20 + $0xe20] sm:$0xf0] }
 0x1b3   : > { %v12237_v47 = vld [vmem:[%s13176_s20 + $0x1004] sm:$0xf]  ;;  %v9934_v61 = vor.u32 %v12173_v45, %v9931_v46  ;;  %6096 = vmatpush.bf16.msrb.mxu0 %v9678_v57 }
 0x1b4   : > { %v10187_v49 = vld [vmem:[%s13176_s20 + $0x1020] sm:$0xf0] }
 0x1b5   : > { %v12301_v50 = vld [vmem:[%s13176_s20 + $0x1204] sm:$0xf]  ;;  %v10190_v63 = vor.u32 %v12237_v47, %v10187_v49  ;;  %6109 = vmatpush.bf16.msrb.mxu1 %v9934_v61 }
 0x1b6   : > { %v10443_v51 = vld [vmem:[%s13176_s20 + $0x1220] sm:$0xf0]  ;;  %6097 = vmatmul.bf16.vlgmr.msrb.gmra.mxu0 %v13358_v35 }
 0x1b7   : > { %v12421_v52 = vld [vmem:[%s13176_s20 + $0x15c4] sm:$0xf]  ;;  %v10446_v3 = vor.u32 %v12301_v50, %v10443_v51  ;;  %6122 = vmatpush.bf16.msrb.mxu2 %v10190_v63 }
 0x1b8   : > { %v10923_v53 = vld [vmem:[%s13176_s20 + $0x15e0] sm:$0xf0]  ;;  %6110 = vmatmul.bf16.vlgmr.msrb.gmra.mxu1 %v13364_v39 }
 0x1b9   : > { %v12485_v54 = vld [vmem:[%s13176_s20 + $0x17c4] sm:$0xf]  ;;  %v10926_v4 = vor.u32 %v12421_v52, %v10923_v53  ;;  %6135 = vmatpush.bf16.msrb.mxu3 %v10446_v3 }
 0x1ba   : > { %v11179_v58 = vld [vmem:[%s13176_s20 + $0x17e0] sm:$0xf0]  ;;  %6123 = vmatmul.bf16.vlgmr.msrb.gmra.mxu2 %v13435_v20 }
 0x1bb   : > { %v12549_v59 = vld [vmem:[%s13176_s20 + $0x19c4] sm:$0xf]  ;;  %v11182_v5 = vor.u32 %v12485_v54, %v11179_v58  ;;  %6141 = vmatpush.bf16.msra.mxu0 %v10926_v4  ;;  %v13686_v58 = vpop.f32.mrf.mxu0 }
 0x1bc   : > { %v11435_v60 = vld [vmem:[%s13176_s20 + $0x19e0] sm:$0xf0]  ;;  %6136 = vmatmul.bf16.vlgmr.msrb.gmra.mxu3 %v13442_v25 }
 0x1bd   : > { %v12613_v1 = vld [vmem:[%s13176_s20 + $0x1bc4] sm:$0xf]  ;;  %v11438_v6 = vor.u32 %v12549_v59, %v11435_v60  ;;  %6154 = vmatpush.bf16.msra.mxu1 %v11182_v5 }
 0x1be   : > { %v11691_v2 = vld [vmem:[%s13176_s20 + $0x1be0] sm:$0xf0] }
 0x1bf   : > { %v12413_v7 = vld [vmem:[%s13176_s20 + $0x1584] sm:$0xf]  ;;  %v11694_v15 = vor.u32 %v12613_v1, %v11691_v2  ;;  %6167 = vmatpush.bf16.msra.mxu2 %v11438_v6  ;;  %v13691_v2 = vpop.f32.mrf.mxu1 }
 0x1c0   : > { %v10891_v8 = vld [vmem:[%s13176_s20 + $0x15a0] sm:$0xf0] }
 0x1c1   : > { %v12477_v9 = vld [vmem:[%s13176_s20 + $0x1784] sm:$0xf]  ;;  %v10894_v27 = vor.u32 %v12413_v7, %v10891_v8  ;;  %6180 = vmatpush.bf16.msra.mxu3 %v11694_v15 }
 0x1c2   : > { %v11147_v19 = vld [vmem:[%s13176_s20 + $0x17a0] sm:$0xf0] }
 0x1c3   : > { %v12541_v21 = vld [vmem:[%s13176_s20 + $0x1984] sm:$0xf]  ;;  %v11150_v29 = vor.u32 %v12477_v9, %v11147_v19  ;;  %6142 = vmatpush.bf16.msra.mxu0 %v10894_v27 }
 0x1c4   : > { %v11403_v22 = vld [vmem:[%s13176_s20 + $0x19a0] sm:$0xf0] }
 0x1c5   : > { %v12605_v23 = vld [vmem:[%s13176_s20 + $0x1b84] sm:$0xf]  ;;  %v11406_v30 = vor.u32 %v12541_v21, %v11403_v22  ;;  %6155 = vmatpush.bf16.msra.mxu1 %v11150_v29 }
 0x1c6   : > { %v11659_v26 = vld [vmem:[%s13176_s20 + $0x1ba0] sm:$0xf0] }
 0x1c7   : > { %v12405_v31 = vld [vmem:[%s13176_s20 + $0x1544] sm:$0xf]  ;;  %v11662_v36 = vor.u32 %v12605_v23, %v11659_v26  ;;  %6168 = vmatpush.bf16.msra.mxu2 %v11406_v30  ;;  %v13701_v23 = vpop.f32.mrf.mxu2 }
 0x1c8   : > { %v10859_v32 = vld [vmem:[%s13176_s20 + $0x1560] sm:$0xf0] }
 0x1c9   : > { %v12469_v33 = vld [vmem:[%s13176_s20 + $0x1744] sm:$0xf]  ;;  %v10862_v45 = vor.u32 %v12405_v31, %v10859_v32  ;;  %6181 = vmatpush.bf16.msra.mxu3 %v11662_v36  ;;  %v13706_v31 = vpop.f32.mrf.mxu3 }
 0x1ca   : > { %v11115_v37 = vld [vmem:[%s13176_s20 + $0x1760] sm:$0xf0] }
 0x1cb   : > { %v12533_v40 = vld [vmem:[%s13176_s20 + $0x1944] sm:$0xf]  ;;  %v11118_v46 = vor.u32 %v12469_v33, %v11115_v37  ;;  %6143 = vmatpush.bf16.msra.mxu0 %v10862_v45  ;;  %v5892_v37 = vpop.f32.mrf.mxu0 }
 0x1cc   : > { %v11371_v42 = vld [vmem:[%s13176_s20 + $0x1960] sm:$0xf0]  ;;  %v8337_v37 = vld [vmem:[%s13176_s20 + $0x188] sm:$0xf] }
 0x1cd   : > { %v12597_v43 = vld [vmem:[%s13176_s20 + $0x1b44] sm:$0xf]  ;;  %v11374_v47 = vor.u32 %v12533_v40, %v11371_v42  ;;  %6156 = vmatpush.bf16.msra.mxu1 %v11118_v46  ;;  %v5905_v46 = vpop.f32.mrf.mxu1 }
 0x1ce   : > { %v11627_v44 = vld [vmem:[%s13176_s20 + $0x1b60] sm:$0xf0]  ;;  %v11906_v46 = vld [vmem:[%s13176_s20 + $0x5a4] sm:$0xf0] }
 0x1cf   : > { %v12397_v48 = vld [vmem:[%s13176_s20 + $0x1504] sm:$0xf]  ;;  %v11630_v51 = vor.u32 %v12597_v43, %v11627_v44  ;;  %6169 = vmatpush.bf16.msra.mxu2 %v11374_v47 }
 0x1d0   : > { %v10827_v49 = vld [vmem:[%s13176_s20 + $0x1520] sm:$0xf0] }
 0x1d1   : > { %v12461_v50 = vld [vmem:[%s13176_s20 + $0x1704] sm:$0xf]  ;;  %v10830_v57 = vor.u32 %v12397_v48, %v10827_v49  ;;  %6182 = vmatpush.bf16.msra.mxu3 %v11630_v51 }
 0x1d2   : > { %v11083_v52 = vld [vmem:[%s13176_s20 + $0x1720] sm:$0xf0] }
 0x1d3   : > { %v12525_v53 = vld [vmem:[%s13176_s20 + $0x1904] sm:$0xf]  ;;  %v11086_v59 = vor.u32 %v12461_v50, %v11083_v52  ;;  %6144 = vmatpush.bf16.msra.mxu0 %v10830_v57 }
 0x1d4   : > { %v11339_v54 = vld [vmem:[%s13176_s20 + $0x1920] sm:$0xf0] }
 0x1d5   : > { %v12589_v55 = vld [vmem:[%s13176_s20 + $0x1b04] sm:$0xf]  ;;  %v11342_v60 = vor.u32 %v12525_v53, %v11339_v54  ;;  %6157 = vmatpush.bf16.msra.mxu1 %v11086_v59 }
 0x1d6   : > { %v11595_v56 = vld [vmem:[%s13176_s20 + $0x1b20] sm:$0xf0] }
 0x1d7   : > { %v12389_v61 = vld [vmem:[%s13176_s20 + $0x14c4] sm:$0xf]  ;;  %v11598_v3 = vor.u32 %v12589_v55, %v11595_v56  ;;  %6170 = vmatpush.bf16.msra.mxu2 %v11342_v60 }
 0x1d8   : > { %v10795_v63 = vld [vmem:[%s13176_s20 + $0x14e0] sm:$0xf0] }
 0x1d9   : > { %v12453_v1 = vld [vmem:[%s13176_s20 + $0x16c4] sm:$0xf]  ;;  %v10798_v9 = vor.u32 %v12389_v61, %v10795_v63  ;;  %6183 = vmatpush.bf16.msra.mxu3 %v11598_v3  ;;  %v5918_v63 = vpop.f32.mrf.mxu2 }
 0x1da   : > { %v11051_v4 = vld [vmem:[%s13176_s20 + $0x16e0] sm:$0xf0] }
 0x1db   : > { %v12517_v5 = vld [vmem:[%s13176_s20 + $0x18c4] sm:$0xf]  ;;  %v11054_v11 = vor.u32 %v12453_v1, %v11051_v4  ;;  %6145 = vmatpush.bf16.msra.mxu0 %v10798_v9  ;;  %v8625_v9 = vld [vmem:[%s13176_s20 + $0x3c8] sm:$0xf] }
 0x1dc   : > { %v11307_v6 = vld [vmem:[%s13176_s20 + $0x18e0] sm:$0xf0] }
 0x1dd   : > { %v12581_v7 = vld [vmem:[%s13176_s20 + $0x1ac4] sm:$0xf]  ;;  %v11310_v15 = vor.u32 %v12517_v5, %v11307_v6  ;;  %6158 = vmatpush.bf16.msra.mxu1 %v11054_v11  ;;  %v5931_v6 = vpop.f32.mrf.mxu3 }
 0x1de   : > { %v11563_v8 = vld [vmem:[%s13176_s20 + $0x1ae0] sm:$0xf0]  ;;  %v8529_v6 = vld [vmem:[%s13176_s20 + $0x308] sm:$0xf] }
 0x1df   : > { %v12381_v19 = vld [vmem:[%s13176_s20 + $0x1484] sm:$0xf]  ;;  %v11566_v26 = vor.u32 %v12581_v7, %v11563_v8  ;;  %6171 = vmatpush.bf16.msra.mxu2 %v11310_v15  ;;  %v8369_v7 = vld [vmem:[%s13176_s20 + $0x1c8] sm:$0xf] }
 0x1e0   : > { %v10763_v21 = vld [vmem:[%s13176_s20 + $0x14a0] sm:$0xf0]  ;;  %v11786_v8 = vld [vmem:[%s13176_s20 + $0x1e4] sm:$0xf0] }
 0x1e1   : > { %v12445_v22 = vld [vmem:[%s13176_s20 + $0x1684] sm:$0xf]  ;;  %v10766_v36 = vor.u32 %v12381_v19, %v10763_v21  ;;  %6184 = vmatpush.bf16.msra.mxu3 %v11566_v26  ;;  %v11850_v15 = vld [vmem:[%s13176_s20 + $0x3e4] sm:$0xf0] }
 0x1e2   : > { %v11019_v27 = vld [vmem:[%s13176_s20 + $0x16a0] sm:$0xf0]  ;;  %v8881_v19 = vld [vmem:[%s13176_s20 + $0x5c8] sm:$0xf] }
 0x1e3   : > { %v12509_v29 = vld [vmem:[%s13176_s20 + $0x1884] sm:$0xf]  ;;  %v11022_v40 = vor.u32 %v12445_v22, %v11019_v27  ;;  %6146 = vmatpush.bf16.msra.mxu0 %v10766_v36  ;;  %v11914_v21 = vld [vmem:[%s13176_s20 + $0x5e4] sm:$0xf0] }
 0x1e4   : > { %v11275_v30 = vld [vmem:[%s13176_s20 + $0x18a0] sm:$0xf0]  ;;  %v9137_v27 = vld [vmem:[%s13176_s20 + $0x7c8] sm:$0xf]  ;;  %v8882_v36 = vor.u32 %v11914_v21, %v8881_v19 }
 0x1e5   : > { %v12573_v32 = vld [vmem:[%s13176_s20 + $0x1a84] sm:$0xf]  ;;  %v11278_v42 = vor.u32 %v12509_v29, %v11275_v30  ;;  %6159 = vmatpush.bf16.msra.mxu1 %v11022_v40  ;;  %v11978_v29 = vld [vmem:[%s13176_s20 + $0x7e4] sm:$0xf0] }
 0x1e6   : > { %v11531_v33 = vld [vmem:[%s13176_s20 + $0x1aa0] sm:$0xf0]  ;;  %v11778_v40 = vld [vmem:[%s13176_s20 + $0x1a4] sm:$0xf0] }
 0x1e7   : > { %v12373_v43 = vld [vmem:[%s13176_s20 + $0x1444] sm:$0xf]  ;;  %v11534_v47 = vor.u32 %v12573_v32, %v11531_v33  ;;  %6172 = vmatpush.bf16.msra.mxu2 %v11278_v42  ;;  %v8370_v32 = vor.u32 %v11786_v8, %v8369_v7  ;;  %v8626_v33 = vor.u32 %v11850_v15, %v8625_v9  ;;  %v8593_v42 = vld [vmem:[%s13176_s20 + $0x388] sm:$0xf] }
 0x1e8   : > { %v10731_v44 = vld [vmem:[%s13176_s20 + $0x1460] sm:$0xf0]  ;;  %v11826_v8 = vld [vmem:[%s13176_s20 + $0x324] sm:$0xf0] }
 0x1e9   : > { %v12437_v45 = vld [vmem:[%s13176_s20 + $0x1644] sm:$0xf]  ;;  %v10734_v53 = vor.u32 %v12373_v43, %v10731_v44  ;;  %6185 = vmatpush.bf16.msra.mxu3 %v11534_v47  ;;  %v9138_v43 = vor.u32 %v11978_v29, %v9137_v27  ;;  %v11842_v44 = vld [vmem:[%s13176_s20 + $0x3a4] sm:$0xf0]  ;;  %v8530_v27 = vor.u32 %v11826_v8, %v8529_v6 }
 0x1ea   : > { %v10987_v48 = vld [vmem:[%s13176_s20 + $0x1660] sm:$0xf0]  ;;  %v9105_v47 = vld [vmem:[%s13176_s20 + $0x788] sm:$0xf] }
 0x1eb   : > { %v12501_v49 = vld [vmem:[%s13176_s20 + $0x1844] sm:$0xf]  ;;  %v10990_v56 = vor.u32 %v12437_v45, %v10987_v48  ;;  %6147 = vmatpush.bf16.msra.mxu0 %v10734_v53  ;;  %v8849_v45 = vld [vmem:[%s13176_s20 + $0x588] sm:$0xf] }
 0x1ec   : > { %v11243_v50 = vld [vmem:[%s13176_s20 + $0x1860] sm:$0xf0]  ;;  %v11970_v48 = vld [vmem:[%s13176_s20 + $0x7a4] sm:$0xf0] }
 0x1ed   : > { %v12565_v51 = vld [vmem:[%s13176_s20 + $0x1a44] sm:$0xf]  ;;  %v11246_v57 = vor.u32 %v12501_v49, %v11243_v50  ;;  %6160 = vmatpush.bf16.msra.mxu1 %v10990_v56  ;;  %v5852_v49 = vadd.f32 %v13628_v13, %v13618_v62  ;;  %v8338_v50 = vor.u32 %v11778_v40, %v8337_v37  ;;  %v8305_v53 = vld [vmem:[%s13176_s20 + $0x148] sm:$0xf]  ;;  %v9106_v56 = vor.u32 %v11970_v48, %v9105_v47 }
 0x1ee   : > { %v11499_v52 = vld [vmem:[%s13176_s20 + $0x1a60] sm:$0xf0]  ;;  %v8817_v62 = vld [vmem:[%s13176_s20 + $0x548] sm:$0xf] }
 0x1ef   : > { %v12365_v54 = vld [vmem:[%s13176_s20 + $0x1404] sm:$0xf]  ;;  %v11502_v1 = vor.u32 %v12565_v51, %v11499_v52  ;;  %6173 = vmatpush.bf16.msra.mxu2 %v11246_v57  ;;  %v8594_v51 = vor.u32 %v11842_v44, %v8593_v42  ;;  %v8850_v52 = vor.u32 %v11906_v46, %v8849_v45  ;;  %v11834_v57 = vld [vmem:[%s13176_s20 + $0x364] sm:$0xf0] }
 0x1f0   : > { %v10699_v55 = vld [vmem:[%s13176_s20 + $0x1420] sm:$0xf0]  ;;  %v11898_v13 = vld [vmem:[%s13176_s20 + $0x564] sm:$0xf0] }
 0x1f1   : > { %v12429_v59 = vld [vmem:[%s13176_s20 + $0x1604] sm:$0xf]  ;;  %v10702_v11 = vor.u32 %v12365_v54, %v10699_v55  ;;  %6186 = vmatpush.bf16.msra.mxu3 %v11502_v1  ;;  %v11770_v54 = vld [vmem:[%s13176_s20 + $0x164] sm:$0xf0] }
 0x1f2   : > { %v10955_v60 = vld [vmem:[%s13176_s20 + $0x1620] sm:$0xf0]  ;;  %v8561_v55 = vld [vmem:[%s13176_s20 + $0x348] sm:$0xf]  ;;  %v8306_v63 = vor.u32 %v11770_v54, %v8305_v53 }
 0x1f3   : > { %v12493_v61 = vld [vmem:[%s13176_s20 + $0x1804] sm:$0xf]  ;;  %v10958_v22 = vor.u32 %v12429_v59, %v10955_v60  ;;  %6148 = vmatpush.bf16.msra.mxu0 %v10702_v11  ;;  %v9073_v59 = vld [vmem:[%s13176_s20 + $0x748] sm:$0xf]  ;;  %v8562_v1 = vor.u32 %v11834_v57, %v8561_v55  ;;  %v13763_v11 = vpop.f32.mrf.mxu0  ;;  %v13787_v55 = vpop.f32.mrf.mxu3 }
 0x1f4   : > { %v11211_v3 = vld [vmem:[%s13176_s20 + $0x1820] sm:$0xf0]  ;;  %v11962_v60 = vld [vmem:[%s13176_s20 + $0x764] sm:$0xf0] }
 0x1f5   : > { %v12557_v4 = vld [vmem:[%s13176_s20 + $0x1a04] sm:$0xf]  ;;  %v11214_v26 = vor.u32 %v12493_v61, %v11211_v3  ;;  %6161 = vmatpush.bf16.msra.mxu1 %v10958_v22  ;;  %v5865_v61 = vadd.f32 %v13630_v14, %v5852_v49  ;;  %v8818_v3 = vor.u32 %v11898_v13, %v8817_v62  ;;  %v9074_v7 = vor.u32 %v11962_v60, %v9073_v59  ;;  %v8785_v14 = vld [vmem:[%s13176_s20 + $0x508] sm:$0xf] }
 0x1f6   : > { %v11467_v5 = vld [vmem:[%s13176_s20 + $0x1a20] sm:$0xf0]  ;;  %6149 = vmatmul.bf16.vlgmr.msra.gmra.mxu0 %v13440_v24  ;;  %v11890_v9 = vld [vmem:[%s13176_s20 + $0x524] sm:$0xf0] }
 0x1f7   : > { %v11470_v30 = vor.u32 %v12557_v4, %v11467_v5  ;;  %6174 = vmatpush.bf16.msra.mxu2 %v11214_v26  ;;  %6193 = vmatpush.bf16.msrb.mxu0 %v8370_v32  ;;  %v8273_v4 = vld [vmem:[%s13176_s20 + $0x108] sm:$0xf]  ;;  %v5878_v21 = vadd.f32 %v13640_v34, %v5865_v61  ;;  %v13768_v26 = vpop.f32.mrf.mxu1  ;;  %v8786_v29 = vor.u32 %v11890_v9, %v8785_v14 }
 0x1f8   : > { %6162 = vmatmul.bf16.vlgmr.msra.gmra.mxu1 %v13446_v28  ;;  %v11762_v5 = vld [vmem:[%s13176_s20 + $0x124] sm:$0xf0] }
 0x1f9   : > { %6187 = vmatpush.bf16.msra.mxu3 %v11470_v30  ;;  %6206 = vmatpush.bf16.msrb.mxu1 %v8626_v33  ;;  %v9041_v15 = vld [vmem:[%s13176_s20 + $0x708] sm:$0xf]  ;;  %v8274_v22 = vor.u32 %v11762_v5, %v8273_v4  ;;  %v5891_v44 = vadd.f32 %v13686_v58, %v5878_v21 }
 0x1fa   : > { %6175 = vmatmul.bf16.vlgmr.msra.gmra.mxu2 %v13513_v12  ;;  %v11954_v19 = vld [vmem:[%s13176_s20 + $0x724] sm:$0xf0] }
 0x1fb   : > { %6219 = vmatpush.bf16.msrb.mxu2 %v8882_v36  ;;  %6194 = vmatpush.bf16.msrb.mxu0 %v8338_v50  ;;  %v8241_v30 = vld [vmem:[%s13176_s20 + $0xc8] sm:$0xf]  ;;  %v9042_v36 = vor.u32 %v11954_v19, %v9041_v15  ;;  %v5944_v62 = vpop.f32.mrf.mxu0  ;;  %v5904_v13 = vadd.f32 %v13691_v2, %v5891_v44  ;;  %v5983_v44 = vpop.f32.mrf.mxu3 }
 0x1fc   : > { %6188 = vmatmul.bf16.vlgmr.msra.gmra.mxu3 %v13518_v16  ;;  %v11754_v32 = vld [vmem:[%s13176_s20 + $0xe4] sm:$0xf0] }
 0x1fd   : > { %6232 = vmatpush.bf16.msrb.mxu3 %v9138_v43  ;;  %6207 = vmatpush.bf16.msrb.mxu1 %v8594_v51  ;;  %v8497_v33 = vld [vmem:[%s13176_s20 + $0x2c8] sm:$0xf]  ;;  %v8242_v45 = vor.u32 %v11754_v32, %v8241_v30  ;;  %v5917_v9 = vadd.f32 %v13701_v23, %v5904_v13 }
 0x1fe   : > { %v11818_v37 = vld [vmem:[%s13176_s20 + $0x2e4] sm:$0xf0] }
 0x1ff   : > { %6220 = vmatpush.bf16.msrb.mxu2 %v8850_v52  ;;  %6195 = vmatpush.bf16.msrb.mxu0 %v8306_v63  ;;  %v8753_v34 = vld [vmem:[%s13176_s20 + $0x4c8] sm:$0xf]  ;;  %v8498_v46 = vor.u32 %v11818_v37, %v8497_v33  ;;  %v13782_v52 = vpop.f32.mrf.mxu2  ;;  %v5957_v60 = vpop.f32.mrf.mxu1 }
 0x200   : > { %v11882_v40 = vld [vmem:[%s13176_s20 + $0x4e4] sm:$0xf0] }
 0x201   : > { %6233 = vmatpush.bf16.msrb.mxu3 %v9106_v56  ;;  %6208 = vmatpush.bf16.msrb.mxu1 %v8562_v1  ;;  %v9009_v42 = vld [vmem:[%s13176_s20 + $0x6c8] sm:$0xf]  ;;  %v8754_v47 = vor.u32 %v11882_v40, %v8753_v34 }
 0x202   : > { %v11946_v43 = vld [vmem:[%s13176_s20 + $0x6e4] sm:$0xf0] }
 0x203   : > { %6221 = vmatpush.bf16.msrb.mxu2 %v8818_v3  ;;  %6196 = vmatpush.bf16.msrb.mxu0 %v8274_v22  ;;  %v8209_v48 = vld [vmem:[%s13176_s20 + $0x88] sm:$0xf]  ;;  %v9010_v51 = vor.u32 %v11946_v43, %v9009_v42  ;;  %v5994_v44 = vpop.f32.mrf.mxu0 }
 0x204   : > { %v11746_v49 = vld [vmem:[%s13176_s20 + $0xa4] sm:$0xf0] }
 0x205   : > { %6234 = vmatpush.bf16.msrb.mxu3 %v9074_v7  ;;  %6209 = vmatpush.bf16.msrb.mxu1 %v8530_v27  ;;  %v8465_v50 = vld [vmem:[%s13176_s20 + $0x288] sm:$0xf]  ;;  %v8210_v59 = vor.u32 %v11746_v49, %v8209_v48 }
 0x206   : > { %v11810_v53 = vld [vmem:[%s13176_s20 + $0x2a4] sm:$0xf0] }
 0x207   : > { %6222 = vmatpush.bf16.msrb.mxu2 %v8786_v29  ;;  %v8721_v54 = vld [vmem:[%s13176_s20 + $0x488] sm:$0xf]  ;;  %6197 = vmatpush.bf16.msrb.mxu0 %v8242_v45  ;;  %v8466_v61 = vor.u32 %v11810_v53, %v8465_v50  ;;  %v5970_v34 = vpop.f32.mrf.mxu2  ;;  %v5930_v45 = vadd.f32 %v13706_v31, %v5917_v9 }
 0x208   : > { %v11874_v58 = vld [vmem:[%s13176_s20 + $0x4a4] sm:$0xf0] }
 0x209   : > { %6235 = vmatpush.bf16.msrb.mxu3 %v9042_v36  ;;  %v8977_v56 = vld [vmem:[%s13176_s20 + $0x688] sm:$0xf]  ;;  %6210 = vmatpush.bf16.msrb.mxu1 %v8498_v46  ;;  %v8722_v63 = vor.u32 %v11874_v58, %v8721_v54  ;;  %v5943_v58 = vadd.f32 %v13763_v11, %v5930_v45 }
 0x20a   : > { %v11938_v57 = vld [vmem:[%s13176_s20 + $0x6a4] sm:$0xf0] }
 0x20b   : > { %6223 = vmatpush.bf16.msrb.mxu2 %v8754_v47  ;;  %v8177_v1 = vld [vmem:[%s13176_s20 + $0x48] sm:$0xf]  ;;  %v8978_v5 = vor.u32 %v11938_v57, %v8977_v56  ;;  %6198 = vmatpush.bf16.msrb.mxu0 %v8210_v59 }
 0x20c   : > { %v11738_v3 = vld [vmem:[%s13176_s20 + $0x64] sm:$0xf0] }
 0x20d   : > { %v8433_v4 = vld [vmem:[%s13176_s20 + $0x248] sm:$0xf]  ;;  %6236 = vmatpush.bf16.msrb.mxu3 %v9010_v51  ;;  %v8178_v15 = vor.u32 %v11738_v3, %v8177_v1  ;;  %6211 = vmatpush.bf16.msrb.mxu1 %v8466_v61 }
 0x20e   : > { %v11802_v6 = vld [vmem:[%s13176_s20 + $0x264] sm:$0xf0] }
 0x20f   : > { %v8689_v2 = vld [vmem:[%s13176_s20 + $0x448] sm:$0xf]  ;;  %6224 = vmatpush.bf16.msrb.mxu2 %v8722_v63  ;;  %v8434_v22 = vor.u32 %v11802_v6, %v8433_v4  ;;  %6199 = vmatpush.bf16.msrb.mxu0 %v8178_v15 }
 0x210   : > { %v11866_v7 = vld [vmem:[%s13176_s20 + $0x464] sm:$0xf0] }
 0x211   : > { %v8945_v8 = vld [vmem:[%s13176_s20 + $0x648] sm:$0xf]  ;;  %v8690_v27 = vor.u32 %v11866_v7, %v8689_v2  ;;  %6237 = vmatpush.bf16.msrb.mxu3 %v8978_v5  ;;  %6212 = vmatpush.bf16.msrb.mxu1 %v8434_v22  ;;  %v5956_v5 = vadd.f32 %v13768_v26, %v5943_v58 }
 0x212   : > { %v11930_v14 = vld [vmem:[%s13176_s20 + $0x664] sm:$0xf0] }
 0x213   : > { %v8145_v19 = vld [vmem:[%s13176_s20 + $0x8] sm:$0xf]  ;;  %v8946_v23 = vor.u32 %v11930_v14, %v8945_v8  ;;  %6225 = vmatpush.bf16.msrb.mxu2 %v8690_v27  ;;  %v5969_v15 = vadd.f32 %v13782_v52, %v5956_v5 }
 0x214   : > { %v11730_v21 = vld [vmem:[%s13176_s20 + $0x24] sm:$0xf0] }
 0x215   : > { %v8401_v29 = vld [vmem:[%s13176_s20 + $0x208] sm:$0xf]  ;;  %v8146_v46 = vor.u32 %v11730_v21, %v8145_v19  ;;  %6238 = vmatpush.bf16.msrb.mxu3 %v8946_v23 }
 0x216   : > { %v11794_v30 = vld [vmem:[%s13176_s20 + $0x224] sm:$0xf0] }
 0x217   : > { %v8657_v32 = vld [vmem:[%s13176_s20 + $0x408] sm:$0xf]  ;;  %v8402_v50 = vor.u32 %v11794_v30, %v8401_v29  ;;  %6200 = vmatpush.bf16.msrb.mxu0 %v8146_v46 }
 0x218   : > { %v11858_v33 = vld [vmem:[%s13176_s20 + $0x424] sm:$0xf0] }
 0x219   : > { %v8913_v36 = vld [vmem:[%s13176_s20 + $0x608] sm:$0xf]  ;;  %v8658_v51 = vor.u32 %v11858_v33, %v8657_v32  ;;  %6213 = vmatpush.bf16.msrb.mxu1 %v8402_v50 }
 0x21a   : > { %v11922_v37 = vld [vmem:[%s13176_s20 + $0x624] sm:$0xf0]  ;;  %6201 = vmatmul.bf16.vlgmr.msrb.gmra.mxu0 %v13292_v10 }
 0x21b   : > { %v9393_v40 = vld [vmem:[%s13176_s20 + $0x9c8] sm:$0xf]  ;;  %v8914_v31 = vor.u32 %v11922_v37, %v8913_v36  ;;  %6226 = vmatpush.bf16.msrb.mxu2 %v8658_v51  ;;  %v5982_v37 = vadd.f32 %v13787_v55, %v5969_v15  ;;  %v6007_v55 = vpop.f32.mrf.mxu1 }
 0x21c   : > { %v12042_v42 = vld [vmem:[%s13176_s20 + $0x9e4] sm:$0xf0]  ;;  %6214 = vmatmul.bf16.vlgmr.msrb.gmra.mxu1 %v13301_v18 }
 0x21d   : > { %v9649_v43 = vld [vmem:[%s13176_s20 + $0xbc8] sm:$0xf]  ;;  %v9394_v56 = vor.u32 %v12042_v42, %v9393_v40  ;;  %6239 = vmatpush.bf16.msrb.mxu3 %v8914_v31 }
 0x21e   : > { %v12106_v47 = vld [vmem:[%s13176_s20 + $0xbe4] sm:$0xf0]  ;;  %6227 = vmatmul.bf16.vlgmr.msrb.gmra.mxu2 %v13283_v0 }
 0x21f   : > { %v9905_v48 = vld [vmem:[%s13176_s20 + $0xdc8] sm:$0xf]  ;;  %v9650_v57 = vor.u32 %v12106_v47, %v9649_v43  ;;  %6245 = vmatpush.bf16.msra.mxu0 %v9394_v56  ;;  %v5995_v47 = vadd.f32 %v5994_v44, %v5982_v37 }
 0x220   : > { %v12170_v49 = vld [vmem:[%s13176_s20 + $0xde4] sm:$0xf0]  ;;  %6240 = vmatmul.bf16.vlgmr.msrb.gmra.mxu3 %v13299_v17 }
 0x221   : > { %v10161_v53 = vld [vmem:[%s13176_s20 + $0xfc8] sm:$0xf]  ;;  %v9906_v62 = vor.u32 %v12170_v49, %v9905_v48  ;;  %6258 = vmatpush.bf16.msra.mxu1 %v9650_v57  ;;  %v417_v49 = vld [vmem:[#allocation2 + $0x30] sm:$0xff]  ;;  %v6008_v56 = vadd.f32 %v6007_v55, %v5995_v47 }
 0x222   : > { %v12234_v54 = vld [vmem:[%s13176_s20 + $0xfe4] sm:$0xf0] }
 0x223   : > { %v9361_v13 = vld [vmem:[%s13176_s20 + $0x988] sm:$0xf]  ;;  %v10162_v61 = vor.u32 %v12234_v54, %v10161_v53  ;;  %6271 = vmatpush.bf16.msra.mxu2 %v9906_v62 }
 0x224   : > { %v12034_v59 = vld [vmem:[%s13176_s20 + $0x9a4] sm:$0xf0] }
 0x225   : > { %v9617_v60 = vld [vmem:[%s13176_s20 + $0xb88] sm:$0xf]  ;;  %v9362_v6 = vor.u32 %v12034_v59, %v9361_v13  ;;  %6284 = vmatpush.bf16.msra.mxu3 %v10162_v61  ;;  %v7285_v61 = vadd.f32 %v6008_v56, %v417_v49 }
 0x226   : > { %v12098_v63 = vld [vmem:[%s13176_s20 + $0xba4] sm:$0xf0] }
 0x227   : > { %v9873_v1 = vld [vmem:[%s13176_s20 + $0xd88] sm:$0xf]  ;;  %v9618_v2 = vor.u32 %v12098_v63, %v9617_v60  ;;  %6246 = vmatpush.bf16.msra.mxu0 %v9362_v6  ;;  %7293 = vst [vmem:[#allocation2 + $0x30] sm:$0xff] %v7285_v61 }
 0x228   : > { %v12162_v3 = vld [vmem:[%s13176_s20 + $0xda4] sm:$0xf0] }
 0x229   : > { %v10129_v11 = vld [vmem:[%s13176_s20 + $0xf88] sm:$0xf]  ;;  %v9874_v7 = vor.u32 %v12162_v3, %v9873_v1  ;;  %6259 = vmatpush.bf16.msra.mxu1 %v9618_v2 }
 0x22a   : > { %v12226_v4 = vld [vmem:[%s13176_s20 + $0xfa4] sm:$0xf0] }
 0x22b   : > { %v9329_v8 = vld [vmem:[%s13176_s20 + $0x948] sm:$0xf]  ;;  %v10130_v19 = vor.u32 %v12226_v4, %v10129_v11  ;;  %6272 = vmatpush.bf16.msra.mxu2 %v9874_v7 }
 0x22c   : > { %v12026_v14 = vld [vmem:[%s13176_s20 + $0x964] sm:$0xf0] }
 0x22d   : > { %v9585_v9 = vld [vmem:[%s13176_s20 + $0xb48] sm:$0xf]  ;;  %v9330_v52 = vor.u32 %v12026_v14, %v9329_v8  ;;  %6285 = vmatpush.bf16.msra.mxu3 %v10130_v19  ;;  %v6020_v14 = vpop.f32.mrf.mxu2  ;;  %v6033_v19 = vpop.f32.mrf.mxu3 }
 0x22e   : > { %v12090_v21 = vld [vmem:[%s13176_s20 + $0xb64] sm:$0xf0] }
 0x22f   : > { %v9841_v26 = vld [vmem:[%s13176_s20 + $0xd48] sm:$0xf]  ;;  %v9586_v30 = vor.u32 %v12090_v21, %v9585_v9  ;;  %6247 = vmatpush.bf16.msra.mxu0 %v9330_v52  ;;  %v5996_v21 = vpop.f32.mrf.mxu0 }
 0x230   : > { %v12154_v22 = vld [vmem:[%s13176_s20 + $0xd64] sm:$0xf0] }
 0x231   : > { %v10097_v27 = vld [vmem:[%s13176_s20 + $0xf48] sm:$0xf]  ;;  %v9842_v32 = vor.u32 %v12154_v22, %v9841_v26  ;;  %6260 = vmatpush.bf16.msra.mxu1 %v9586_v30  ;;  %v13866_v22 = vadd.f32 %v6033_v19, %v6020_v14 }
 0x232   : > { %v12218_v29 = vld [vmem:[%s13176_s20 + $0xf64] sm:$0xf0] }
 0x233   : > { %v9297_v23 = vld [vmem:[%s13176_s20 + $0x908] sm:$0xf]  ;;  %v10098_v34 = vor.u32 %v12218_v29, %v10097_v27  ;;  %6273 = vmatpush.bf16.msra.mxu2 %v9842_v32  ;;  %v6009_v27 = vpop.f32.mrf.mxu1 }
 0x234   : > { %v12018_v33 = vld [vmem:[%s13176_s20 + $0x924] sm:$0xf0] }
 0x235   : > { %v9553_v36 = vld [vmem:[%s13176_s20 + $0xb08] sm:$0xf]  ;;  %v9298_v48 = vor.u32 %v12018_v33, %v9297_v23  ;;  %6286 = vmatpush.bf16.msra.mxu3 %v10098_v34 }
 0x236   : > { %v12082_v40 = vld [vmem:[%s13176_s20 + $0xb24] sm:$0xf0] }
 0x237   : > { %v9809_v42 = vld [vmem:[%s13176_s20 + $0xd08] sm:$0xf]  ;;  %v9554_v50 = vor.u32 %v12082_v40, %v9553_v36  ;;  %6248 = vmatpush.bf16.msra.mxu0 %v9298_v48 }
 0x238   : > { %v12146_v43 = vld [vmem:[%s13176_s20 + $0xd24] sm:$0xf0] }
 0x239   : > { %v10065_v45 = vld [vmem:[%s13176_s20 + $0xf08] sm:$0xf]  ;;  %v9810_v51 = vor.u32 %v12146_v43, %v9809_v42  ;;  %6261 = vmatpush.bf16.msra.mxu1 %v9554_v50 }
 0x23a   : > { %v12210_v46 = vld [vmem:[%s13176_s20 + $0xf24] sm:$0xf0] }
 0x23b   : > { %v9265_v53 = vld [vmem:[%s13176_s20 + $0x8c8] sm:$0xf]  ;;  %v10066_v31 = vor.u32 %v12210_v46, %v10065_v45  ;;  %6274 = vmatpush.bf16.msra.mxu2 %v9810_v51 }
 0x23c   : > { %v12010_v54 = vld [vmem:[%s13176_s20 + $0x8e4] sm:$0xf0] }
 0x23d   : > { %v9521_v58 = vld [vmem:[%s13176_s20 + $0xac8] sm:$0xf]  ;;  %v9266_v63 = vor.u32 %v12010_v54, %v9265_v53  ;;  %6287 = vmatpush.bf16.msra.mxu3 %v10066_v31 }
 0x23e   : > { %v12074_v57 = vld [vmem:[%s13176_s20 + $0xae4] sm:$0xf0] }
 0x23f   : > { %v9777_v62 = vld [vmem:[%s13176_s20 + $0xcc8] sm:$0xf]  ;;  %v9522_v3 = vor.u32 %v12074_v57, %v9521_v58  ;;  %6249 = vmatpush.bf16.msra.mxu0 %v9266_v63  ;;  %v6022_v58 = vpop.f32.mrf.mxu2 }
 0x240   : > { %v12138_v13 = vld [vmem:[%s13176_s20 + $0xce4] sm:$0xf0] }
 0x241   : > { %v10033_v59 = vld [vmem:[%s13176_s20 + $0xec8] sm:$0xf]  ;;  %v9778_v11 = vor.u32 %v12138_v13, %v9777_v62  ;;  %6262 = vmatpush.bf16.msra.mxu1 %v9522_v3  ;;  %v6035_v62 = vpop.f32.mrf.mxu3 }
 0x242   : > { %v12202_v60 = vld [vmem:[%s13176_s20 + $0xee4] sm:$0xf0] }
 0x243   : > { %v9233_v1 = vld [vmem:[%s13176_s20 + $0x888] sm:$0xf]  ;;  %v10034_v2 = vor.u32 %v12202_v60, %v10033_v59  ;;  %6275 = vmatpush.bf16.msra.mxu2 %v9778_v11 }
 0x244   : > { %v12002_v4 = vld [vmem:[%s13176_s20 + $0x8a4] sm:$0xf0] }
 0x245   : > { %v9489_v5 = vld [vmem:[%s13176_s20 + $0xa88] sm:$0xf]  ;;  %v9234_v26 = vor.u32 %v12002_v4, %v9233_v1  ;;  %6288 = vmatpush.bf16.msra.mxu3 %v10034_v2 }
 0x246   : > { %v12066_v6 = vld [vmem:[%s13176_s20 + $0xaa4] sm:$0xf0] }
 0x247   : > { %v9745_v7 = vld [vmem:[%s13176_s20 + $0xc88] sm:$0xf]  ;;  %v9490_v29 = vor.u32 %v12066_v6, %v9489_v5  ;;  %6250 = vmatpush.bf16.msra.mxu0 %v9234_v26 }
 0x248   : > { %v12130_v8 = vld [vmem:[%s13176_s20 + $0xca4] sm:$0xf0] }
 0x249   : > { %v10001_v9 = vld [vmem:[%s13176_s20 + $0xe88] sm:$0xf]  ;;  %v9746_v52 = vor.u32 %v12130_v8, %v9745_v7  ;;  %6263 = vmatpush.bf16.msra.mxu1 %v9490_v29 }
 0x24a   : > { %v12194_v15 = vld [vmem:[%s13176_s20 + $0xea4] sm:$0xf0] }
 0x24b   : > { %v9201_v30 = vld [vmem:[%s13176_s20 + $0x848] sm:$0xf]  ;;  %v10002_v33 = vor.u32 %v12194_v15, %v10001_v9  ;;  %6276 = vmatpush.bf16.msra.mxu2 %v9746_v52 }
 0x24c   : > { %v11994_v32 = vld [vmem:[%s13176_s20 + $0x864] sm:$0xf0] }
 0x24d   : > { %v9457_v23 = vld [vmem:[%s13176_s20 + $0xa48] sm:$0xf]  ;;  %v9202_v43 = vor.u32 %v11994_v32, %v9201_v30  ;;  %6289 = vmatpush.bf16.msra.mxu3 %v10002_v33 }
 0x24e   : > { %v12058_v36 = vld [vmem:[%s13176_s20 + $0xa64] sm:$0xf0] }
 0x24f   : > { %v9713_v37 = vld [vmem:[%s13176_s20 + $0xc48] sm:$0xf]  ;;  %v9458_v46 = vor.u32 %v12058_v36, %v9457_v23  ;;  %6251 = vmatpush.bf16.msra.mxu0 %v9202_v43 }
 0x250   : > { %v12122_v34 = vld [vmem:[%s13176_s20 + $0xc64] sm:$0xf0] }
 0x251   : > { %v9969_v40 = vld [vmem:[%s13176_s20 + $0xe48] sm:$0xf]  ;;  %v9714_v47 = vor.u32 %v12122_v34, %v9713_v37  ;;  %6264 = vmatpush.bf16.msra.mxu1 %v9458_v46 }
 0x252   : > { %v12186_v42 = vld [vmem:[%s13176_s20 + $0xe64] sm:$0xf0] }
 0x253   : > { %v9169_v44 = vld [vmem:[%s13176_s20 + $0x808] sm:$0xf]  ;;  %v9970_v50 = vor.u32 %v12186_v42, %v9969_v40  ;;  %6277 = vmatpush.bf16.msra.mxu2 %v9714_v47 }
 0x254   : > { %v11986_v45 = vld [vmem:[%s13176_s20 + $0x824] sm:$0xf0] }
 0x255   : > { %v9425_v48 = vld [vmem:[%s13176_s20 + $0xa08] sm:$0xf]  ;;  %v9170_v13 = vor.u32 %v11986_v45, %v9169_v44  ;;  %6290 = vmatpush.bf16.msra.mxu3 %v9970_v50 }
 0x256   : > { %v12050_v49 = vld [vmem:[%s13176_s20 + $0xa24] sm:$0xf0] }
 0x257   : > { %v9681_v55 = vld [vmem:[%s13176_s20 + $0xc08] sm:$0xf]  ;;  %v9426_v63 = vor.u32 %v12050_v49, %v9425_v48  ;;  %6252 = vmatpush.bf16.msra.mxu0 %v9170_v13 }
 0x258   : > { %v12114_v51 = vld [vmem:[%s13176_s20 + $0xc24] sm:$0xf0] }
 0x259   : > { %v9937_v53 = vld [vmem:[%s13176_s20 + $0xe08] sm:$0xf]  ;;  %v9682_v1 = vor.u32 %v12114_v51, %v9681_v55  ;;  %6265 = vmatpush.bf16.msra.mxu1 %v9426_v63 }
 0x25a   : > { %v12178_v54 = vld [vmem:[%s13176_s20 + $0xe24] sm:$0xf0]  ;;  %6253 = vmatmul.bf16.vlgmr.msra.gmra.mxu0 %v13362_v38 }
 0x25b   : > { %v10417_v31 = vld [vmem:[%s13176_s20 + $0x11c8] sm:$0xf]  ;;  %v9938_v4 = vor.u32 %v12178_v54, %v9937_v53  ;;  %6278 = vmatpush.bf16.msra.mxu2 %v9682_v1 }
 0x25c   : > { %v12298_v56 = vld [vmem:[%s13176_s20 + $0x11e4] sm:$0xf0]  ;;  %6266 = vmatmul.bf16.vlgmr.msra.gmra.mxu1 %v13366_v41 }
 0x25d   : > { %v10673_v57 = vld [vmem:[%s13176_s20 + $0x13c8] sm:$0xf]  ;;  %v10418_v5 = vor.u32 %v12298_v56, %v10417_v31  ;;  %6291 = vmatpush.bf16.msra.mxu3 %v9938_v4  ;;  %v13920_v56 = vpop.f32.mrf.mxu0 }
 0x25e   : > { %v12362_v59 = vld [vmem:[%s13176_s20 + $0x13e4] sm:$0xf0]  ;;  %6279 = vmatmul.bf16.vlgmr.msra.gmra.mxu2 %v13358_v35 }
 0x25f   : > { %v10929_v60 = vld [vmem:[%s13176_s20 + $0x15c8] sm:$0xf]  ;;  %v10674_v6 = vor.u32 %v12362_v59, %v10673_v57  ;;  %6297 = vmatpush.bf16.msrb.mxu0 %v10418_v5 }
 0x260   : > { %v12426_v61 = vld [vmem:[%s13176_s20 + $0x15e4] sm:$0xf0]  ;;  %6292 = vmatmul.bf16.vlgmr.msra.gmra.mxu3 %v13364_v39 }
 0x261   : > { %v11185_v3 = vld [vmem:[%s13176_s20 + $0x17c8] sm:$0xf]  ;;  %v10930_v2 = vor.u32 %v12426_v61, %v10929_v60  ;;  %6310 = vmatpush.bf16.msrb.mxu1 %v10674_v6  ;;  %v13925_v61 = vpop.f32.mrf.mxu1 }
 0x262   : > { %v12490_v11 = vld [vmem:[%s13176_s20 + $0x17e4] sm:$0xf0] }
 0x263   : > { %v10385_v7 = vld [vmem:[%s13176_s20 + $0x1188] sm:$0xf]  ;;  %v11186_v9 = vor.u32 %v12490_v11, %v11185_v3  ;;  %6323 = vmatpush.bf16.msrb.mxu2 %v10930_v2 }
 0x264   : > { %v12290_v8 = vld [vmem:[%s13176_s20 + $0x11a4] sm:$0xf0] }
 0x265   : > { %v10641_v14 = vld [vmem:[%s13176_s20 + $0x1388] sm:$0xf]  ;;  %v10386_v29 = vor.u32 %v12290_v8, %v10385_v7  ;;  %6336 = vmatpush.bf16.msrb.mxu3 %v11186_v9 }
 0x266   : > { %v12354_v15 = vld [vmem:[%s13176_s20 + $0x13a4] sm:$0xf0] }
 0x267   : > { %v10897_v19 = vld [vmem:[%s13176_s20 + $0x1588] sm:$0xf]  ;;  %v10642_v52 = vor.u32 %v12354_v15, %v10641_v14  ;;  %6298 = vmatpush.bf16.msrb.mxu0 %v10386_v29  ;;  %v13935_v15 = vpop.f32.mrf.mxu2  ;;  %v13940_v29 = vpop.f32.mrf.mxu3 }
 0x268   : > { %v12418_v21 = vld [vmem:[%s13176_s20 + $0x15a4] sm:$0xf0] }
 0x269   : > { %v11153_v26 = vld [vmem:[%s13176_s20 + $0x1788] sm:$0xf]  ;;  %v10898_v30 = vor.u32 %v12418_v21, %v10897_v19  ;;  %6311 = vmatpush.bf16.msrb.mxu1 %v10642_v52 }
 0x26a   : > { %v12482_v27 = vld [vmem:[%s13176_s20 + $0x17a4] sm:$0xf0] }
 0x26b   : > { %v10353_v32 = vld [vmem:[%s13176_s20 + $0x1148] sm:$0xf]  ;;  %v11154_v36 = vor.u32 %v12482_v27, %v11153_v26  ;;  %6324 = vmatpush.bf16.msrb.mxu2 %v10898_v30 }
 0x26c   : > { %v12282_v23 = vld [vmem:[%s13176_s20 + $0x1164] sm:$0xf0] }
 0x26d   : > { %v10609_v33 = vld [vmem:[%s13176_s20 + $0x1348] sm:$0xf]  ;;  %v10354_v44 = vor.u32 %v12282_v23, %v10353_v32  ;;  %6337 = vmatpush.bf16.msrb.mxu3 %v11154_v36  ;;  %v6048_v23 = vpop.f32.mrf.mxu0 }
 0x26e   : > { %v12346_v37 = vld [vmem:[%s13176_s20 + $0x1364] sm:$0xf0] }
 0x26f   : > { %v10865_v34 = vld [vmem:[%s13176_s20 + $0x1548] sm:$0xf]  ;;  %v10610_v45 = vor.u32 %v12346_v37, %v10609_v33  ;;  %6299 = vmatpush.bf16.msrb.mxu0 %v10354_v44 }
 0x270   : > { %v12410_v40 = vld [vmem:[%s13176_s20 + $0x1564] sm:$0xf0] }
 0x271   : > { %v11121_v42 = vld [vmem:[%s13176_s20 + $0x1748] sm:$0xf]  ;;  %v10866_v46 = vor.u32 %v12410_v40, %v10865_v34  ;;  %6312 = vmatpush.bf16.msrb.mxu1 %v10610_v45 }
 0x272   : > { %v12474_v43 = vld [vmem:[%s13176_s20 + $0x1764] sm:$0xf0] }
 0x273   : > { %v10321_v47 = vld [vmem:[%s13176_s20 + $0x1108] sm:$0xf]  ;;  %v11122_v55 = vor.u32 %v12474_v43, %v11121_v42  ;;  %6325 = vmatpush.bf16.msrb.mxu2 %v10866_v46  ;;  %v6061_v42 = vpop.f32.mrf.mxu1 }
 0x274   : > { %v12274_v48 = vld [vmem:[%s13176_s20 + $0x1124] sm:$0xf0] }
 0x275   : > { %v10577_v49 = vld [vmem:[%s13176_s20 + $0x1308] sm:$0xf]  ;;  %v10322_v31 = vor.u32 %v12274_v48, %v10321_v47  ;;  %6338 = vmatpush.bf16.msrb.mxu3 %v11122_v55 }
 0x276   : > { %v12338_v50 = vld [vmem:[%s13176_s20 + $0x1324] sm:$0xf0] }
 0x277   : > { %v10833_v51 = vld [vmem:[%s13176_s20 + $0x1508] sm:$0xf]  ;;  %v10578_v57 = vor.u32 %v12338_v50, %v10577_v49  ;;  %6300 = vmatpush.bf16.msrb.mxu0 %v10322_v31 }
 0x278   : > { %v12402_v53 = vld [vmem:[%s13176_s20 + $0x1524] sm:$0xf0] }
 0x279   : > { %v11089_v54 = vld [vmem:[%s13176_s20 + $0x1708] sm:$0xf]  ;;  %v10834_v62 = vor.u32 %v12402_v53, %v10833_v51  ;;  %6313 = vmatpush.bf16.msrb.mxu1 %v10578_v57  ;;  %v6074_v57 = vpop.f32.mrf.mxu2 }
 0x27a   : > { %v12466_v58 = vld [vmem:[%s13176_s20 + $0x1724] sm:$0xf0] }
 0x27b   : > { %v10289_v13 = vld [vmem:[%s13176_s20 + $0x10c8] sm:$0xf]  ;;  %v11090_v63 = vor.u32 %v12466_v58, %v11089_v54  ;;  %6326 = vmatpush.bf16.msrb.mxu2 %v10834_v62 }
 0x27c   : > { %v12266_v59 = vld [vmem:[%s13176_s20 + $0x10e4] sm:$0xf0] }
 0x27d   : > { %v10545_v60 = vld [vmem:[%s13176_s20 + $0x12c8] sm:$0xf]  ;;  %v10290_v6 = vor.u32 %v12266_v59, %v10289_v13  ;;  %6339 = vmatpush.bf16.msrb.mxu3 %v11090_v63  ;;  %v6087_v63 = vpop.f32.mrf.mxu3 }
 0x27e   : > { %v12330_v1 = vld [vmem:[%s13176_s20 + $0x12e4] sm:$0xf0]  ;;  %v11758_v63 = vld [vmem:[%s13176_s20 + $0x10c] sm:$0xf] }
 0x27f   : > { %v10801_v3 = vld [vmem:[%s13176_s20 + $0x14c8] sm:$0xf]  ;;  %v10546_v2 = vor.u32 %v12330_v1, %v10545_v60  ;;  %6301 = vmatpush.bf16.msrb.mxu0 %v10290_v6  ;;  %v11782_v6 = vld [vmem:[%s13176_s20 + $0x1cc] sm:$0xf] }
 0x280   : > { %v12394_v11 = vld [vmem:[%s13176_s20 + $0x14e4] sm:$0xf0] }
 0x281   : > { %v11057_v4 = vld [vmem:[%s13176_s20 + $0x16c8] sm:$0xf]  ;;  %v10802_v7 = vor.u32 %v12394_v11, %v10801_v3  ;;  %6314 = vmatpush.bf16.msrb.mxu1 %v10546_v2  ;;  %v8371_v2 = vld [vmem:[%s13176_s20 + $0x1e8] sm:$0xf0] }
 0x282   : > { %v12458_v5 = vld [vmem:[%s13176_s20 + $0x16e4] sm:$0xf0] }
 0x283   : > { %v10257_v8 = vld [vmem:[%s13176_s20 + $0x1088] sm:$0xf]  ;;  %v11058_v19 = vor.u32 %v12458_v5, %v11057_v4  ;;  %6327 = vmatpush.bf16.msrb.mxu2 %v10802_v7 }
 0x284   : > { %v12258_v14 = vld [vmem:[%s13176_s20 + $0x10a4] sm:$0xf0] }
 0x285   : > { %v10513_v9 = vld [vmem:[%s13176_s20 + $0x1288] sm:$0xf]  ;;  %v10258_v32 = vor.u32 %v12258_v14, %v10257_v8  ;;  %6340 = vmatpush.bf16.msrb.mxu3 %v11058_v19  ;;  %v11846_v14 = vld [vmem:[%s13176_s20 + $0x3cc] sm:$0xf] }
 0x286   : > { %v12322_v21 = vld [vmem:[%s13176_s20 + $0x12a4] sm:$0xf0] }
 0x287   : > { %v10769_v26 = vld [vmem:[%s13176_s20 + $0x1488] sm:$0xf]  ;;  %v10514_v33 = vor.u32 %v12322_v21, %v10513_v9  ;;  %6302 = vmatpush.bf16.msrb.mxu0 %v10258_v32  ;;  %v8627_v9 = vld [vmem:[%s13176_s20 + $0x3e8] sm:$0xf0] }
 0x288   : > { %v12386_v27 = vld [vmem:[%s13176_s20 + $0x14a4] sm:$0xf0]  ;;  %v8630_v23 = vor.u32 %v11846_v14, %v8627_v9 }
 0x289   : > { %v11025_v52 = vld [vmem:[%s13176_s20 + $0x1688] sm:$0xf]  ;;  %v10770_v36 = vor.u32 %v12386_v27, %v10769_v26  ;;  %6315 = vmatpush.bf16.msrb.mxu1 %v10514_v33  ;;  %v8374_v27 = vor.u32 %v11782_v6, %v8371_v2  ;;  %v13998_v6 = vpop.f32.mrf.mxu1 }
 0x28a   : > { %v12450_v30 = vld [vmem:[%s13176_s20 + $0x16a4] sm:$0xf0] }
 0x28b   : > { %v10225_v37 = vld [vmem:[%s13176_s20 + $0x1048] sm:$0xf]  ;;  %v11026_v43 = vor.u32 %v12450_v30, %v11025_v52  ;;  %6328 = vmatpush.bf16.msrb.mxu2 %v10770_v36  ;;  %v11774_v36 = vld [vmem:[%s13176_s20 + $0x18c] sm:$0xf] }
 0x28c   : > { %v12250_v34 = vld [vmem:[%s13176_s20 + $0x1064] sm:$0xf0] }
 0x28d   : > { %v10481_v40 = vld [vmem:[%s13176_s20 + $0x1248] sm:$0xf]  ;;  %v10226_v49 = vor.u32 %v12250_v34, %v10225_v37  ;;  %6341 = vmatpush.bf16.msrb.mxu3 %v11026_v43  ;;  %v8339_v37 = vld [vmem:[%s13176_s20 + $0x1a8] sm:$0xf0] }
 0x28e   : > { %v12314_v44 = vld [vmem:[%s13176_s20 + $0x1264] sm:$0xf0]  ;;  %v11838_v34 = vld [vmem:[%s13176_s20 + $0x38c] sm:$0xf] }
 0x28f   : > { %v10737_v45 = vld [vmem:[%s13176_s20 + $0x1448] sm:$0xf]  ;;  %v10482_v51 = vor.u32 %v12314_v44, %v10481_v40  ;;  %6303 = vmatpush.bf16.msrb.mxu0 %v10226_v49  ;;  %v8595_v40 = vld [vmem:[%s13176_s20 + $0x3a8] sm:$0xf0]  ;;  %v8342_v44 = vor.u32 %v11774_v36, %v8339_v37 }
 0x290   : > { %v12378_v46 = vld [vmem:[%s13176_s20 + $0x1464] sm:$0xf0] }
 0x291   : > { %v10993_v47 = vld [vmem:[%s13176_s20 + $0x1648] sm:$0xf]  ;;  %v10738_v53 = vor.u32 %v12378_v46, %v10737_v45  ;;  %6316 = vmatpush.bf16.msrb.mxu1 %v10482_v51  ;;  %v11830_v51 = vld [vmem:[%s13176_s20 + $0x34c] sm:$0xf] }
 0x292   : > { %v12442_v48 = vld [vmem:[%s13176_s20 + $0x1664] sm:$0xf0] }
 0x293   : > { %v10193_v55 = vld [vmem:[%s13176_s20 + $0x1008] sm:$0xf]  ;;  %v10994_v62 = vor.u32 %v12442_v48, %v10993_v47  ;;  %6329 = vmatpush.bf16.msrb.mxu2 %v10738_v53  ;;  %v8598_v48 = vor.u32 %v11838_v34, %v8595_v40  ;;  %v8563_v53 = vld [vmem:[%s13176_s20 + $0x368] sm:$0xf0] }
 0x294   : > { %v12242_v50 = vld [vmem:[%s13176_s20 + $0x1024] sm:$0xf0] }
 0x295   : > { %v10449_v54 = vld [vmem:[%s13176_s20 + $0x1208] sm:$0xf]  ;;  %v10194_v4 = vor.u32 %v12242_v50, %v10193_v55  ;;  %6342 = vmatpush.bf16.msrb.mxu3 %v10994_v62  ;;  %v11766_v55 = vld [vmem:[%s13176_s20 + $0x14c] sm:$0xf] }
 0x296   : > { %v12306_v58 = vld [vmem:[%s13176_s20 + $0x1224] sm:$0xf0]  ;;  %v8307_v50 = vld [vmem:[%s13176_s20 + $0x168] sm:$0xf0] }
 0x297   : > { %v10705_v31 = vld [vmem:[%s13176_s20 + $0x1408] sm:$0xf]  ;;  %v10450_v7 = vor.u32 %v12306_v58, %v10449_v54  ;;  %6304 = vmatpush.bf16.msrb.mxu0 %v10194_v4  ;;  %v8531_v4 = vld [vmem:[%s13176_s20 + $0x328] sm:$0xf0] }
 0x298   : > { %v12370_v13 = vld [vmem:[%s13176_s20 + $0x1424] sm:$0xf0] }
 0x299   : > { %v10961_v59 = vld [vmem:[%s13176_s20 + $0x1608] sm:$0xf]  ;;  %v10706_v8 = vor.u32 %v12370_v13, %v10705_v31  ;;  %6317 = vmatpush.bf16.msrb.mxu1 %v10450_v7  ;;  %v8310_v31 = vor.u32 %v11766_v55, %v8307_v50  ;;  %v6113_v55 = vpop.f32.mrf.mxu1 }
 0x29a   : > { %v12434_v60 = vld [vmem:[%s13176_s20 + $0x1624] sm:$0xf0]  ;;  %6305 = vmatmul.bf16.vlgmr.msrb.gmra.mxu0 %v13435_v20  ;;  %v11902_v55 = vld [vmem:[%s13176_s20 + $0x58c] sm:$0xf] }
 0x29b   : > { %v11441_v1 = vld [vmem:[%s13176_s20 + $0x19c8] sm:$0xf]  ;;  %v10962_v19 = vor.u32 %v12434_v60, %v10961_v59  ;;  %6330 = vmatpush.bf16.msrb.mxu2 %v10706_v8  ;;  %v8566_v59 = vor.u32 %v11830_v51, %v8563_v53 }
 0x29c   : > { %v12554_v3 = vld [vmem:[%s13176_s20 + $0x19e4] sm:$0xf0]  ;;  %6318 = vmatmul.bf16.vlgmr.msrb.gmra.mxu1 %v13442_v25 }
 0x29d   : > { %v11697_v11 = vld [vmem:[%s13176_s20 + $0x1bc8] sm:$0xf]  ;;  %v11442_v21 = vor.u32 %v12554_v3, %v11441_v1  ;;  %6343 = vmatpush.bf16.msrb.mxu3 %v10962_v19  ;;  %v8275_v1 = vld [vmem:[%s13176_s20 + $0x128] sm:$0xf0]  ;;  %v13994_v3 = vpop.f32.mrf.mxu0 }
 0x29e   : > { %v12618_v5 = vld [vmem:[%s13176_s20 + $0x1be4] sm:$0xf0]  ;;  %6331 = vmatmul.bf16.vlgmr.msrb.gmra.mxu2 %v13440_v24  ;;  %v8278_v7 = vor.u32 %v11758_v63, %v8275_v1 }
 0x29f   : > { %v11698_v26 = vor.u32 %v12618_v5, %v11697_v11  ;;  %v11409_v52 = vld [vmem:[%s13176_s20 + $0x1988] sm:$0xf]  ;;  %6349 = vmatpush.bf16.msra.mxu0 %v11442_v21  ;;  %6375 = vmatpush.bf16.msra.mxu2 %v8374_v27  ;;  %v11822_v11 = vld [vmem:[%s13176_s20 + $0x30c] sm:$0xf] }
 0x2a0   : > { %v12546_v30 = vld [vmem:[%s13176_s20 + $0x19a4] sm:$0xf0]  ;;  %6344 = vmatmul.bf16.vlgmr.msrb.gmra.mxu3 %v13446_v28  ;;  %v8534_v19 = vor.u32 %v11822_v11, %v8531_v4  ;;  %v8243_v27 = vld [vmem:[%s13176_s20 + $0xe8] sm:$0xf0] }
 0x2a1   : > { %v11665_v32 = vld [vmem:[%s13176_s20 + $0x1b88] sm:$0xf]  ;;  %v11410_v42 = vor.u32 %v12546_v30, %v11409_v52  ;;  %6362 = vmatpush.bf16.msra.mxu1 %v11698_v26  ;;  %6388 = vmatpush.bf16.msra.mxu3 %v8630_v23  ;;  %v11750_v26 = vld [vmem:[%s13176_s20 + $0xcc] sm:$0xf]  ;;  %v6047_v23 = vadd.f32 %v13920_v56, %v13866_v22 }
 0x2a2   : > { %v12610_v33 = vld [vmem:[%s13176_s20 + $0x1ba4] sm:$0xf0]  ;;  %v11814_v52 = vld [vmem:[%s13176_s20 + $0x2cc] sm:$0xf]  ;;  %v8246_v36 = vor.u32 %v11750_v26, %v8243_v27 }
 0x2a3   : > { %v11666_v43 = vor.u32 %v12610_v33, %v11665_v32  ;;  %v11377_v45 = vld [vmem:[%s13176_s20 + $0x1948] sm:$0xf]  ;;  %6350 = vmatpush.bf16.msra.mxu0 %v11410_v42  ;;  %6376 = vmatpush.bf16.msra.mxu2 %v8342_v44  ;;  %v8499_v30 = vld [vmem:[%s13176_s20 + $0x2e8] sm:$0xf0]  ;;  %v6060_v50 = vadd.f32 %v13925_v61, %v6047_v23 }
 0x2a4   : > { %v12538_v46 = vld [vmem:[%s13176_s20 + $0x1964] sm:$0xf0]  ;;  %v8502_v42 = vor.u32 %v11814_v52, %v8499_v30  ;;  %v11806_v22 = vld [vmem:[%s13176_s20 + $0x28c] sm:$0xf] }
 0x2a5   : > { %v11633_v47 = vld [vmem:[%s13176_s20 + $0x1b48] sm:$0xf]  ;;  %v11378_v54 = vor.u32 %v12538_v46, %v11377_v45  ;;  %6363 = vmatpush.bf16.msra.mxu1 %v11666_v43  ;;  %6389 = vmatpush.bf16.msra.mxu3 %v8598_v48  ;;  %v14013_v43 = vpop.f32.mrf.mxu2  ;;  %v11742_v45 = vld [vmem:[%s13176_s20 + $0x8c] sm:$0xf]  ;;  %v6100_v48 = vpop.f32.mrf.mxu0  ;;  %v6073_v4 = vadd.f32 %v13935_v15, %v6060_v50 }
 0x2a6   : > { %v12602_v49 = vld [vmem:[%s13176_s20 + $0x1b64] sm:$0xf0]  ;;  %v8211_v46 = vld [vmem:[%s13176_s20 + $0xa8] sm:$0xf0] }
 0x2a7   : > { %v11634_v58 = vor.u32 %v12602_v49, %v11633_v47  ;;  %v11345_v57 = vld [vmem:[%s13176_s20 + $0x1908] sm:$0xf]  ;;  %6351 = vmatpush.bf16.msra.mxu0 %v11378_v54  ;;  %6377 = vmatpush.bf16.msra.mxu2 %v8310_v31  ;;  %v14018_v47 = vpop.f32.mrf.mxu3  ;;  %v8467_v56 = vld [vmem:[%s13176_s20 + $0x2a8] sm:$0xf0]  ;;  %v8214_v53 = vor.u32 %v11742_v45, %v8211_v46 }
 0x2a8   : > { %v12530_v62 = vld [vmem:[%s13176_s20 + $0x1924] sm:$0xf0]  ;;  %v8435_v61 = vld [vmem:[%s13176_s20 + $0x268] sm:$0xf0] }
 0x2a9   : > { %v11601_v13 = vld [vmem:[%s13176_s20 + $0x1b08] sm:$0xf]  ;;  %v11346_v5 = vor.u32 %v12530_v62, %v11345_v57  ;;  %6364 = vmatpush.bf16.msra.mxu1 %v11634_v58  ;;  %6390 = vmatpush.bf16.msra.mxu3 %v8566_v59  ;;  %v8470_v57 = vor.u32 %v11806_v22, %v8467_v56  ;;  %v8179_v59 = vld [vmem:[%s13176_s20 + $0x68] sm:$0xf0] }
 0x2aa   : > { %v12594_v60 = vld [vmem:[%s13176_s20 + $0x1b24] sm:$0xf0]  ;;  %v8403_v26 = vld [vmem:[%s13176_s20 + $0x228] sm:$0xf0] }
 0x2ab   : > { %v11602_v2 = vor.u32 %v12594_v60, %v11601_v13  ;;  %v11313_v8 = vld [vmem:[%s13176_s20 + $0x18c8] sm:$0xf]  ;;  %6352 = vmatpush.bf16.msra.mxu0 %v11346_v5  ;;  %6378 = vmatpush.bf16.msra.mxu2 %v8278_v7  ;;  %v11734_v13 = vld [vmem:[%s13176_s20 + $0x4c] sm:$0xf] }
 0x2ac   : > { %v12522_v14 = vld [vmem:[%s13176_s20 + $0x18e4] sm:$0xf0]  ;;  %v11798_v60 = vld [vmem:[%s13176_s20 + $0x24c] sm:$0xf] }
 0x2ad   : > { %v11569_v9 = vld [vmem:[%s13176_s20 + $0x1ac8] sm:$0xf]  ;;  %v11314_v32 = vor.u32 %v12522_v14, %v11313_v8  ;;  %6365 = vmatpush.bf16.msra.mxu1 %v11602_v2  ;;  %6391 = vmatpush.bf16.msra.mxu3 %v8534_v19  ;;  %v8182_v2 = vor.u32 %v11734_v13, %v8179_v59  ;;  %v11726_v14 = vld [vmem:[%s13176_s20 + $0xc] sm:$0xf]  ;;  %v6126_v27 = vpop.f32.mrf.mxu2 }
 0x2ae   : > { %v12586_v21 = vld [vmem:[%s13176_s20 + $0x1ae4] sm:$0xf0]  ;;  %v8147_v19 = vld [vmem:[%s13176_s20 + $0x28] sm:$0xf0] }
 0x2af   : > { %v11570_v33 = vor.u32 %v12586_v21, %v11569_v9  ;;  %v11281_v37 = vld [vmem:[%s13176_s20 + $0x1888] sm:$0xf]  ;;  %6353 = vmatpush.bf16.msra.mxu0 %v11314_v32  ;;  %6379 = vmatpush.bf16.msra.mxu2 %v8246_v36  ;;  %v8438_v9 = vor.u32 %v11798_v60, %v8435_v61  ;;  %v11790_v21 = vld [vmem:[%s13176_s20 + $0x20c] sm:$0xf]  ;;  %v6139_v32 = vpop.f32.mrf.mxu3 }
 0x2b0   : > { %v12514_v34 = vld [vmem:[%s13176_s20 + $0x18a4] sm:$0xf0]  ;;  %v11910_v15 = vld [vmem:[%s13176_s20 + $0x5cc] sm:$0xf]  ;;  %v8406_v46 = vor.u32 %v11790_v21, %v8403_v26  ;;  %v6150_v32 = vpop.f32.mrf.mxu0 }
 0x2b1   : > { %v11537_v40 = vld [vmem:[%s13176_s20 + $0x1a88] sm:$0xf]  ;;  %v11282_v49 = vor.u32 %v12514_v34, %v11281_v37  ;;  %6366 = vmatpush.bf16.msra.mxu1 %v11570_v33  ;;  %6392 = vmatpush.bf16.msra.mxu3 %v8502_v42  ;;  %v8883_v52 = vld [vmem:[%s13176_s20 + $0x5e8] sm:$0xf0]  ;;  %v6086_v34 = vadd.f32 %v13940_v29, %v6073_v4  ;;  %v8150_v42 = vor.u32 %v11726_v14, %v8147_v19 }
 0x2b2   : > { %v12578_v44 = vld [vmem:[%s13176_s20 + $0x1aa4] sm:$0xf0]  ;;  %v11974_v30 = vld [vmem:[%s13176_s20 + $0x7cc] sm:$0xf]  ;;  %v8886_v22 = vor.u32 %v11910_v15, %v8883_v52 }
 0x2b3   : > { %v11538_v51 = vor.u32 %v12578_v44, %v11537_v40  ;;  %v11249_v54 = vld [vmem:[%s13176_s20 + $0x1848] sm:$0xf]  ;;  %6354 = vmatpush.bf16.msra.mxu0 %v11282_v49  ;;  %6380 = vmatpush.bf16.msra.mxu2 %v8214_v53  ;;  %v9139_v33 = vld [vmem:[%s13176_s20 + $0x7e8] sm:$0xf0]  ;;  %v6099_v56 = vadd.f32 %v13994_v3, %v6086_v34 }
 0x2b4   : > { %v12506_v58 = vld [vmem:[%s13176_s20 + $0x1864] sm:$0xf0]  ;;  %v12038_v36 = vld [vmem:[%s13176_s20 + $0x9cc] sm:$0xf]  ;;  %v9142_v48 = vor.u32 %v11974_v30, %v9139_v33 }
 0x2b5   : > { %v11505_v31 = vld [vmem:[%s13176_s20 + $0x1a48] sm:$0xf]  ;;  %v11250_v63 = vor.u32 %v12506_v58, %v11249_v54  ;;  %6367 = vmatpush.bf16.msra.mxu1 %v11538_v51  ;;  %6393 = vmatpush.bf16.msra.mxu3 %v8470_v57  ;;  %v9395_v37 = vld [vmem:[%s13176_s20 + $0x9e8] sm:$0xf0] }
 0x2b6   : > { %v12570_v62 = vld [vmem:[%s13176_s20 + $0x1a64] sm:$0xf0]  ;;  %v12102_v44 = vld [vmem:[%s13176_s20 + $0xbcc] sm:$0xf]  ;;  %v9398_v49 = vor.u32 %v12038_v36, %v9395_v37  ;;  %v6163_v37 = vpop.f32.mrf.mxu1 }
 0x2b7   : > { %v11217_v1 = vld [vmem:[%s13176_s20 + $0x1808] sm:$0xf]  ;;  %v11506_v5 = vor.u32 %v12570_v62, %v11505_v31  ;;  %6355 = vmatpush.bf16.msra.mxu0 %v11250_v63  ;;  %6381 = vmatpush.bf16.msra.mxu2 %v8182_v2  ;;  %v9651_v45 = vld [vmem:[%s13176_s20 + $0xbe8] sm:$0xf0]  ;;  %v6112_v62 = vadd.f32 %v13998_v6, %v6099_v56 }
 0x2b8   : > { %v12498_v11 = vld [vmem:[%s13176_s20 + $0x1824] sm:$0xf0]  ;;  %v8851_v29 = vld [vmem:[%s13176_s20 + $0x5a8] sm:$0xf0]  ;;  %v9654_v51 = vor.u32 %v12102_v44, %v9651_v45 }
 0x2b9   : > { %v11473_v7 = vld [vmem:[%s13176_s20 + $0x1a08] sm:$0xf]  ;;  %v11218_v23 = vor.u32 %v12498_v11, %v11217_v1  ;;  %6368 = vmatpush.bf16.msra.mxu1 %v11506_v5  ;;  %6394 = vmatpush.bf16.msra.mxu3 %v8438_v9  ;;  %v11966_v50 = vld [vmem:[%s13176_s20 + $0x78c] sm:$0xf]  ;;  %v8854_v3 = vor.u32 %v11902_v55, %v8851_v29  ;;  %v6125_v6 = vadd.f32 %v14013_v43, %v6112_v62 }
 0x2ba   : > { %v12562_v8 = vld [vmem:[%s13176_s20 + $0x1a24] sm:$0xf0]  ;;  %v9107_v53 = vld [vmem:[%s13176_s20 + $0x7a8] sm:$0xf0] }
 0x2bb   : > { %v11474_v40 = vor.u32 %v12562_v8, %v11473_v7  ;;  %6356 = vmatpush.bf16.msra.mxu0 %v11218_v23  ;;  %v12030_v54 = vld [vmem:[%s13176_s20 + $0x98c] sm:$0xf]  ;;  %6382 = vmatpush.bf16.msra.mxu2 %v8150_v42  ;;  %v9110_v13 = vor.u32 %v11966_v50, %v9107_v53  ;;  %v6138_v30 = vadd.f32 %v14018_v47, %v6125_v6 }
 0x2bc   : > { %v9363_v58 = vld [vmem:[%s13176_s20 + $0x9a8] sm:$0xf0] }
 0x2bd   : > { %6369 = vmatpush.bf16.msra.mxu1 %v11474_v40  ;;  %v12094_v31 = vld [vmem:[%s13176_s20 + $0xb8c] sm:$0xf]  ;;  %6395 = vmatpush.bf16.msra.mxu3 %v8406_v46  ;;  %v9366_v59 = vor.u32 %v12030_v54, %v9363_v58  ;;  %v6151_v34 = vadd.f32 %v6150_v32, %v6138_v30 }
 0x2be   : > { %v9619_v57 = vld [vmem:[%s13176_s20 + $0xba8] sm:$0xf0]  ;;  %6357 = vmatmul.bf16.vlgmr.msra.gmra.mxu0 %v13513_v12  ;;  %6383 = vmatmul.bf16.vlgmr.msra.gmra.mxu2 %v13292_v10  ;;  %v6165_v6 = vpop.f32.mrf.mxu1 }
 0x2bf   : > { %6401 = vmatpush.bf16.msrb.mxu0 %v8886_v22  ;;  %6427 = vmatpush.bf16.msrb.mxu2 %v9398_v49  ;;  %v11894_v60 = vld [vmem:[%s13176_s20 + $0x54c] sm:$0xf]  ;;  %v9622_v1 = vor.u32 %v12094_v31, %v9619_v57  ;;  %v6164_v50 = vadd.f32 %v6163_v37, %v6151_v34 }
 0x2c0   : > { %v8819_v61 = vld [vmem:[%s13176_s20 + $0x568] sm:$0xf0]  ;;  %6370 = vmatmul.bf16.vlgmr.msra.gmra.mxu1 %v13518_v16  ;;  %6396 = vmatmul.bf16.vlgmr.msra.gmra.mxu3 %v13301_v18 }
 0x2c1   : > { %6414 = vmatpush.bf16.msrb.mxu1 %v9142_v48  ;;  %v11958_v63 = vld [vmem:[%s13176_s20 + $0x74c] sm:$0xf]  ;;  %6440 = vmatpush.bf16.msrb.mxu3 %v9654_v51  ;;  %v8822_v8 = vor.u32 %v11894_v60, %v8819_v61  ;;  %v6189_v61 = vpop.f32.mrf.mxu3 }
 0x2c2   : > { %v9075_v11 = vld [vmem:[%s13176_s20 + $0x768] sm:$0xf0] }
 0x2c3   : > { %v12022_v4 = vld [vmem:[%s13176_s20 + $0x94c] sm:$0xf]  ;;  %6402 = vmatpush.bf16.msrb.mxu0 %v8854_v3  ;;  %6428 = vmatpush.bf16.msrb.mxu2 %v9366_v59  ;;  %v9078_v14 = vor.u32 %v11958_v63, %v9075_v11  ;;  %v6176_v3 = vpop.f32.mrf.mxu2  ;;  %v6152_v11 = vpop.f32.mrf.mxu0 }
 0x2c4   : > { %v9331_v5 = vld [vmem:[%s13176_s20 + $0x968] sm:$0xf0]  ;;  %v6177_v60 = vadd.f32 %v6176_v3, %v6164_v50 }
 0x2c5   : > { %v12086_v2 = vld [vmem:[%s13176_s20 + $0xb4c] sm:$0xf]  ;;  %6415 = vmatpush.bf16.msrb.mxu1 %v9110_v13  ;;  %v9334_v9 = vor.u32 %v12022_v4, %v9331_v5  ;;  %6441 = vmatpush.bf16.msrb.mxu3 %v9622_v1  ;;  %v418_v4 = vld [vmem:[#allocation2] sm:$0xff] }
 0x2c6   : > { %v9587_v7 = vld [vmem:[%s13176_s20 + $0xb68] sm:$0xf0] }
 0x2c7   : > { %v11886_v43 = vld [vmem:[%s13176_s20 + $0x50c] sm:$0xf]  ;;  %v9590_v26 = vor.u32 %v12086_v2, %v9587_v7  ;;  %6403 = vmatpush.bf16.msrb.mxu0 %v8822_v8  ;;  %6429 = vmatpush.bf16.msrb.mxu2 %v9334_v9  ;;  %v6190_v2 = vadd.f32 %v6189_v61, %v6177_v60 }
 0x2c8   : > { %v8787_v19 = vld [vmem:[%s13176_s20 + $0x528] sm:$0xf0] }
 0x2c9   : > { %v11950_v21 = vld [vmem:[%s13176_s20 + $0x70c] sm:$0xf]  ;;  %v8790_v36 = vor.u32 %v11886_v43, %v8787_v19  ;;  %6416 = vmatpush.bf16.msrb.mxu1 %v9078_v14  ;;  %6442 = vmatpush.bf16.msrb.mxu3 %v9590_v26 }
 0x2ca   : > { %v9043_v27 = vld [vmem:[%s13176_s20 + $0x728] sm:$0xf0] }
 0x2cb   : > { %v12014_v15 = vld [vmem:[%s13176_s20 + $0x90c] sm:$0xf]  ;;  %v9046_v40 = vor.u32 %v11950_v21, %v9043_v27  ;;  %6404 = vmatpush.bf16.msrb.mxu0 %v8790_v36 }
 0x2cc   : > { %v9299_v52 = vld [vmem:[%s13176_s20 + $0x928] sm:$0xf0] }
 0x2cd   : > { %v12078_v23 = vld [vmem:[%s13176_s20 + $0xb0c] sm:$0xf]  ;;  %v9302_v42 = vor.u32 %v12014_v15, %v9299_v52  ;;  %6417 = vmatpush.bf16.msrb.mxu1 %v9046_v40  ;;  %v7286_v15 = vadd.f32 %v6190_v2, %v418_v4 }
 0x2ce   : > { %v9555_v33 = vld [vmem:[%s13176_s20 + $0xb28] sm:$0xf0] }
 0x2cf   : > { %v11878_v44 = vld [vmem:[%s13176_s20 + $0x4cc] sm:$0xf]  ;;  %v9558_v46 = vor.u32 %v12078_v23, %v9555_v33  ;;  %6430 = vmatpush.bf16.msrb.mxu2 %v9302_v42  ;;  %7294 = vst [vmem:[#allocation2] sm:$0xff] %v7286_v15 }
 0x2d0   : > { %v8755_v45 = vld [vmem:[%s13176_s20 + $0x4e8] sm:$0xf0] }
 0x2d1   : > { %v11942_v47 = vld [vmem:[%s13176_s20 + $0x6cc] sm:$0xf]  ;;  %v8758_v29 = vor.u32 %v11878_v44, %v8755_v45  ;;  %6443 = vmatpush.bf16.msrb.mxu3 %v9558_v46 }
 0x2d2   : > { %v9011_v22 = vld [vmem:[%s13176_s20 + $0x6e8] sm:$0xf0] }
 0x2d3   : > { %v12006_v56 = vld [vmem:[%s13176_s20 + $0x8cc] sm:$0xf]  ;;  %v9014_v51 = vor.u32 %v11942_v47, %v9011_v22  ;;  %6405 = vmatpush.bf16.msrb.mxu0 %v8758_v29  ;;  %v6178_v22 = vpop.f32.mrf.mxu2 }
 0x2d4   : > { %v9267_v48 = vld [vmem:[%s13176_s20 + $0x8e8] sm:$0xf0] }
 0x2d5   : > { %v12070_v49 = vld [vmem:[%s13176_s20 + $0xacc] sm:$0xf]  ;;  %v9270_v53 = vor.u32 %v12006_v56, %v9267_v48  ;;  %6418 = vmatpush.bf16.msrb.mxu1 %v9014_v51 }
 0x2d6   : > { %v9523_v55 = vld [vmem:[%s13176_s20 + $0xae8] sm:$0xf0] }
 0x2d7   : > { %v11870_v54 = vld [vmem:[%s13176_s20 + $0x48c] sm:$0xf]  ;;  %v9526_v57 = vor.u32 %v12070_v49, %v9523_v55  ;;  %6431 = vmatpush.bf16.msrb.mxu2 %v9270_v53  ;;  %v6191_v55 = vpop.f32.mrf.mxu3 }
 0x2d8   : > { %v8723_v58 = vld [vmem:[%s13176_s20 + $0x4a8] sm:$0xf0] }
 0x2d9   : > { %v11934_v31 = vld [vmem:[%s13176_s20 + $0x68c] sm:$0xf]  ;;  %v8726_v5 = vor.u32 %v11870_v54, %v8723_v58  ;;  %6444 = vmatpush.bf16.msrb.mxu3 %v9526_v57 }
 0x2da   : > { %v8979_v62 = vld [vmem:[%s13176_s20 + $0x6a8] sm:$0xf0] }
 0x2db   : > { %v11998_v13 = vld [vmem:[%s13176_s20 + $0x88c] sm:$0xf]  ;;  %v8982_v7 = vor.u32 %v11934_v31, %v8979_v62  ;;  %6406 = vmatpush.bf16.msrb.mxu0 %v8726_v5 }
 0x2dc   : > { %v9235_v59 = vld [vmem:[%s13176_s20 + $0x8a8] sm:$0xf0] }
 0x2dd   : > { %v12062_v63 = vld [vmem:[%s13176_s20 + $0xa8c] sm:$0xf]  ;;  %v9238_v8 = vor.u32 %v11998_v13, %v9235_v59  ;;  %6419 = vmatpush.bf16.msrb.mxu1 %v8982_v7 }
 0x2de   : > { %v9491_v1 = vld [vmem:[%s13176_s20 + $0xaa8] sm:$0xf0] }
 0x2df   : > { %v11862_v14 = vld [vmem:[%s13176_s20 + $0x44c] sm:$0xf]  ;;  %v9494_v19 = vor.u32 %v12062_v63, %v9491_v1  ;;  %6432 = vmatpush.bf16.msrb.mxu2 %v9238_v8 }
 0x2e0   : > { %v8691_v9 = vld [vmem:[%s13176_s20 + $0x468] sm:$0xf0] }
 0x2e1   : > { %v11926_v43 = vld [vmem:[%s13176_s20 + $0x64c] sm:$0xf]  ;;  %v8694_v32 = vor.u32 %v11862_v14, %v8691_v9  ;;  %6445 = vmatpush.bf16.msrb.mxu3 %v9494_v19 }
 0x2e2   : > { %v8947_v21 = vld [vmem:[%s13176_s20 + $0x668] sm:$0xf0] }
 0x2e3   : > { %v11990_v26 = vld [vmem:[%s13176_s20 + $0x84c] sm:$0xf]  ;;  %v8950_v37 = vor.u32 %v11926_v43, %v8947_v21  ;;  %6407 = vmatpush.bf16.msrb.mxu0 %v8694_v32 }
 0x2e4   : > { %v9203_v27 = vld [vmem:[%s13176_s20 + $0x868] sm:$0xf0] }
 0x2e5   : > { %v12054_v52 = vld [vmem:[%s13176_s20 + $0xa4c] sm:$0xf]  ;;  %v9206_v34 = vor.u32 %v11990_v26, %v9203_v27  ;;  %6420 = vmatpush.bf16.msrb.mxu1 %v8950_v37 }
 0x2e6   : > { %v9459_v30 = vld [vmem:[%s13176_s20 + $0xa68] sm:$0xf0] }
 0x2e7   : > { %v11854_v23 = vld [vmem:[%s13176_s20 + $0x40c] sm:$0xf]  ;;  %v9462_v44 = vor.u32 %v12054_v52, %v9459_v30  ;;  %6433 = vmatpush.bf16.msrb.mxu2 %v9206_v34 }
 0x2e8   : > { %v8659_v33 = vld [vmem:[%s13176_s20 + $0x428] sm:$0xf0] }
 0x2e9   : > { %v11918_v36 = vld [vmem:[%s13176_s20 + $0x60c] sm:$0xf]  ;;  %v8662_v29 = vor.u32 %v11854_v23, %v8659_v33  ;;  %6446 = vmatpush.bf16.msrb.mxu3 %v9462_v44 }
 0x2ea   : > { %v8915_v40 = vld [vmem:[%s13176_s20 + $0x628] sm:$0xf0] }
 0x2eb   : > { %v11982_v42 = vld [vmem:[%s13176_s20 + $0x80c] sm:$0xf]  ;;  %v8918_v54 = vor.u32 %v11918_v36, %v8915_v40  ;;  %6408 = vmatpush.bf16.msrb.mxu0 %v8662_v29 }
 0x2ec   : > { %v9171_v45 = vld [vmem:[%s13176_s20 + $0x828] sm:$0xf0] }
 0x2ed   : > { %v12046_v47 = vld [vmem:[%s13176_s20 + $0xa0c] sm:$0xf]  ;;  %v9174_v58 = vor.u32 %v11982_v42, %v9171_v45  ;;  %6421 = vmatpush.bf16.msrb.mxu1 %v8918_v54 }
 0x2ee   : > { %v9427_v46 = vld [vmem:[%s13176_s20 + $0xa28] sm:$0xf0]  ;;  %6409 = vmatmul.bf16.vlgmr.msrb.gmra.mxu0 %v13283_v0 }
 0x2ef   : > { %v12166_v56 = vld [vmem:[%s13176_s20 + $0xdcc] sm:$0xf]  ;;  %v9430_v3 = vor.u32 %v12046_v47, %v9427_v46  ;;  %6434 = vmatpush.bf16.msrb.mxu2 %v9174_v58 }
 0x2f0   : > { %v9907_v48 = vld [vmem:[%s13176_s20 + $0xde8] sm:$0xf0]  ;;  %6422 = vmatmul.bf16.vlgmr.msrb.gmra.mxu1 %v13299_v17 }
 0x2f1   : > { %v12230_v49 = vld [vmem:[%s13176_s20 + $0xfcc] sm:$0xf]  ;;  %v9910_v62 = vor.u32 %v12166_v56, %v9907_v48  ;;  %6447 = vmatpush.bf16.msrb.mxu3 %v9430_v3  ;;  %v6202_v56 = vpop.f32.mrf.mxu0 }
 0x2f2   : > { %v10163_v50 = vld [vmem:[%s13176_s20 + $0xfe8] sm:$0xf0]  ;;  %6435 = vmatmul.bf16.vlgmr.msrb.gmra.mxu2 %v13362_v38 }
 0x2f3   : > { %v12294_v51 = vld [vmem:[%s13176_s20 + $0x11cc] sm:$0xf]  ;;  %v10166_v13 = vor.u32 %v12230_v49, %v10163_v50  ;;  %6453 = vmatpush.bf16.msra.mxu0 %v9910_v62 }
 0x2f4   : > { %v10419_v53 = vld [vmem:[%s13176_s20 + $0x11e8] sm:$0xf0]  ;;  %6448 = vmatmul.bf16.vlgmr.msrb.gmra.mxu3 %v13366_v41 }
 0x2f5   : > { %v12358_v31 = vld [vmem:[%s13176_s20 + $0x13cc] sm:$0xf]  ;;  %v10422_v59 = vor.u32 %v12294_v51, %v10419_v53  ;;  %6466 = vmatpush.bf16.msra.mxu1 %v10166_v13  ;;  %v6215_v51 = vpop.f32.mrf.mxu1 }
 0x2f6   : > { %v10675_v57 = vld [vmem:[%s13176_s20 + $0x13e8] sm:$0xf0] }
 0x2f7   : > { %v12158_v60 = vld [vmem:[%s13176_s20 + $0xd8c] sm:$0xf]  ;;  %v10678_v1 = vor.u32 %v12358_v31, %v10675_v57  ;;  %6479 = vmatpush.bf16.msra.mxu2 %v10422_v59  ;;  %v6216_v57 = vadd.f32 %v6215_v51, %v6202_v56 }
 0x2f8   : > { %v9875_v61 = vld [vmem:[%s13176_s20 + $0xda8] sm:$0xf0] }
 0x2f9   : > { %v12222_v63 = vld [vmem:[%s13176_s20 + $0xf8c] sm:$0xf]  ;;  %v9878_v7 = vor.u32 %v12158_v60, %v9875_v61  ;;  %6492 = vmatpush.bf16.msra.mxu3 %v10678_v1 }
 0x2fa   : > { %v10131_v11 = vld [vmem:[%s13176_s20 + $0xfa8] sm:$0xf0] }
 0x2fb   : > { %v12286_v4 = vld [vmem:[%s13176_s20 + $0x118c] sm:$0xf]  ;;  %v10134_v8 = vor.u32 %v12222_v63, %v10131_v11  ;;  %6454 = vmatpush.bf16.msra.mxu0 %v9878_v7  ;;  %v6228_v11 = vpop.f32.mrf.mxu2 }
 0x2fc   : > { %v10387_v5 = vld [vmem:[%s13176_s20 + $0x11a8] sm:$0xf0]  ;;  %v6229_v7 = vadd.f32 %v6228_v11, %v6216_v57 }
 0x2fd   : > { %v12350_v6 = vld [vmem:[%s13176_s20 + $0x138c] sm:$0xf]  ;;  %v10390_v14 = vor.u32 %v12286_v4, %v10387_v5  ;;  %6467 = vmatpush.bf16.msra.mxu1 %v10134_v8  ;;  %v6241_v8 = vpop.f32.mrf.mxu3 }
 0x2fe   : > { %v10643_v2 = vld [vmem:[%s13176_s20 + $0x13a8] sm:$0xf0] }
 0x2ff   : > { %v12150_v9 = vld [vmem:[%s13176_s20 + $0xd4c] sm:$0xf]  ;;  %v10646_v21 = vor.u32 %v12350_v6, %v10643_v2  ;;  %6480 = vmatpush.bf16.msra.mxu2 %v10390_v14 }
 0x300   : > { %v9843_v43 = vld [vmem:[%s13176_s20 + $0xd68] sm:$0xf0] }
 0x301   : > { %v12214_v19 = vld [vmem:[%s13176_s20 + $0xf4c] sm:$0xf]  ;;  %v9846_v32 = vor.u32 %v12150_v9, %v9843_v43  ;;  %6493 = vmatpush.bf16.msra.mxu3 %v10646_v21  ;;  %v6204_v21 = vpop.f32.mrf.mxu0 }
 0x302   : > { %v10099_v26 = vld [vmem:[%s13176_s20 + $0xf68] sm:$0xf0] }
 0x303   : > { %v12278_v27 = vld [vmem:[%s13176_s20 + $0x114c] sm:$0xf]  ;;  %v10102_v23 = vor.u32 %v12214_v19, %v10099_v26  ;;  %6455 = vmatpush.bf16.msra.mxu0 %v9846_v32  ;;  %v14165_v19 = vadd.f32 %v6241_v8, %v6229_v7  ;;  %v6217_v32 = vpop.f32.mrf.mxu1 }
 0x304   : > { %v10355_v15 = vld [vmem:[%s13176_s20 + $0x1168] sm:$0xf0] }
 0x305   : > { %v12342_v52 = vld [vmem:[%s13176_s20 + $0x134c] sm:$0xf]  ;;  %v10358_v33 = vor.u32 %v12278_v27, %v10355_v15  ;;  %6468 = vmatpush.bf16.msra.mxu1 %v10102_v23 }
 0x306   : > { %v10611_v30 = vld [vmem:[%s13176_s20 + $0x1368] sm:$0xf0] }
 0x307   : > { %v12142_v36 = vld [vmem:[%s13176_s20 + $0xd0c] sm:$0xf]  ;;  %v10614_v40 = vor.u32 %v12342_v52, %v10611_v30  ;;  %6481 = vmatpush.bf16.msra.mxu2 %v10358_v33 }
 0x308   : > { %v9811_v37 = vld [vmem:[%s13176_s20 + $0xd28] sm:$0xf0] }
 0x309   : > { %v12206_v34 = vld [vmem:[%s13176_s20 + $0xf0c] sm:$0xf]  ;;  %v9814_v22 = vor.u32 %v12142_v36, %v9811_v37  ;;  %6494 = vmatpush.bf16.msra.mxu3 %v10614_v40 }
 0x30a   : > { %v10067_v42 = vld [vmem:[%s13176_s20 + $0xf28] sm:$0xf0] }
 0x30b   : > { %v12270_v44 = vld [vmem:[%s13176_s20 + $0x110c] sm:$0xf]  ;;  %v10070_v48 = vor.u32 %v12206_v34, %v10067_v42  ;;  %6456 = vmatpush.bf16.msra.mxu0 %v9814_v22 }
 0x30c   : > { %v10323_v45 = vld [vmem:[%s13176_s20 + $0x1128] sm:$0xf0] }
 0x30d   : > { %v12334_v47 = vld [vmem:[%s13176_s20 + $0x130c] sm:$0xf]  ;;  %v10326_v49 = vor.u32 %v12270_v44, %v10323_v45  ;;  %6469 = vmatpush.bf16.msra.mxu1 %v10070_v48 }
 0x30e   : > { %v10579_v46 = vld [vmem:[%s13176_s20 + $0x1328] sm:$0xf0] }
 0x30f   : > { %v12134_v55 = vld [vmem:[%s13176_s20 + $0xccc] sm:$0xf]  ;;  %v10582_v53 = vor.u32 %v12334_v47, %v10579_v46  ;;  %6482 = vmatpush.bf16.msra.mxu2 %v10326_v49  ;;  %v6230_v49 = vpop.f32.mrf.mxu2 }
 0x310   : > { %v9779_v29 = vld [vmem:[%s13176_s20 + $0xce8] sm:$0xf0] }
 0x311   : > { %v12198_v50 = vld [vmem:[%s13176_s20 + $0xecc] sm:$0xf]  ;;  %v9782_v13 = vor.u32 %v12134_v55, %v9779_v29  ;;  %6495 = vmatpush.bf16.msra.mxu3 %v10582_v53  ;;  %v6243_v53 = vpop.f32.mrf.mxu3 }
 0x312   : > { %v10035_v54 = vld [vmem:[%s13176_s20 + $0xee8] sm:$0xf0] }
 0x313   : > { %v12262_v58 = vld [vmem:[%s13176_s20 + $0x10cc] sm:$0xf]  ;;  %v10038_v59 = vor.u32 %v12198_v50, %v10035_v54  ;;  %6457 = vmatpush.bf16.msra.mxu0 %v9782_v13 }
 0x314   : > { %v10291_v31 = vld [vmem:[%s13176_s20 + $0x10e8] sm:$0xf0] }
 0x315   : > { %v12326_v3 = vld [vmem:[%s13176_s20 + $0x12cc] sm:$0xf]  ;;  %v10294_v60 = vor.u32 %v12262_v58, %v10291_v31  ;;  %6470 = vmatpush.bf16.msra.mxu1 %v10038_v59 }
 0x316   : > { %v10547_v62 = vld [vmem:[%s13176_s20 + $0x12e8] sm:$0xf0] }
 0x317   : > { %v12126_v61 = vld [vmem:[%s13176_s20 + $0xc8c] sm:$0xf]  ;;  %v10550_v4 = vor.u32 %v12326_v3, %v10547_v62  ;;  %6483 = vmatpush.bf16.msra.mxu2 %v10294_v60 }
 0x318   : > { %v9747_v63 = vld [vmem:[%s13176_s20 + $0xca8] sm:$0xf0] }
 0x319   : > { %v12190_v1 = vld [vmem:[%s13176_s20 + $0xe8c] sm:$0xf]  ;;  %v9750_v43 = vor.u32 %v12126_v61, %v9747_v63  ;;  %6496 = vmatpush.bf16.msra.mxu3 %v10550_v4 }
 0x31a   : > { %v10003_v5 = vld [vmem:[%s13176_s20 + $0xea8] sm:$0xf0] }
 0x31b   : > { %v12254_v6 = vld [vmem:[%s13176_s20 + $0x108c] sm:$0xf]  ;;  %v10006_v26 = vor.u32 %v12190_v1, %v10003_v5  ;;  %6458 = vmatpush.bf16.msra.mxu0 %v9750_v43 }
 0x31c   : > { %v10259_v2 = vld [vmem:[%s13176_s20 + $0x10a8] sm:$0xf0] }
 0x31d   : > { %v12318_v14 = vld [vmem:[%s13176_s20 + $0x128c] sm:$0xf]  ;;  %v10262_v27 = vor.u32 %v12254_v6, %v10259_v2  ;;  %6471 = vmatpush.bf16.msra.mxu1 %v10006_v26 }
 0x31e   : > { %v10515_v9 = vld [vmem:[%s13176_s20 + $0x12a8] sm:$0xf0] }
 0x31f   : > { %v12118_v15 = vld [vmem:[%s13176_s20 + $0xc4c] sm:$0xf]  ;;  %v10518_v23 = vor.u32 %v12318_v14, %v10515_v9  ;;  %6484 = vmatpush.bf16.msra.mxu2 %v10262_v27 }
 0x320   : > { %v9715_v52 = vld [vmem:[%s13176_s20 + $0xc68] sm:$0xf0] }
 0x321   : > { %v12182_v30 = vld [vmem:[%s13176_s20 + $0xe4c] sm:$0xf]  ;;  %v9718_v42 = vor.u32 %v12118_v15, %v9715_v52  ;;  %6497 = vmatpush.bf16.msra.mxu3 %v10518_v23 }
 0x322   : > { %v9971_v33 = vld [vmem:[%s13176_s20 + $0xe68] sm:$0xf0] }
 0x323   : > { %v12246_v36 = vld [vmem:[%s13176_s20 + $0x104c] sm:$0xf]  ;;  %v9974_v47 = vor.u32 %v12182_v30, %v9971_v33  ;;  %6459 = vmatpush.bf16.msra.mxu0 %v9718_v42 }
 0x324   : > { %v10227_v37 = vld [vmem:[%s13176_s20 + $0x1068] sm:$0xf0] }
 0x325   : > { %v12310_v34 = vld [vmem:[%s13176_s20 + $0x124c] sm:$0xf]  ;;  %v10230_v46 = vor.u32 %v12246_v36, %v10227_v37  ;;  %6472 = vmatpush.bf16.msra.mxu1 %v9974_v47 }
 0x326   : > { %v10483_v40 = vld [vmem:[%s13176_s20 + $0x1268] sm:$0xf0] }
 0x327   : > { %v12110_v44 = vld [vmem:[%s13176_s20 + $0xc0c] sm:$0xf]  ;;  %v10486_v55 = vor.u32 %v12310_v34, %v10483_v40  ;;  %6485 = vmatpush.bf16.msra.mxu2 %v10230_v46 }
 0x328   : > { %v9683_v45 = vld [vmem:[%s13176_s20 + $0xc28] sm:$0xf0] }
 0x329   : > { %v12174_v22 = vld [vmem:[%s13176_s20 + $0xe0c] sm:$0xf]  ;;  %v9686_v57 = vor.u32 %v12110_v44, %v9683_v45  ;;  %6498 = vmatpush.bf16.msra.mxu3 %v10486_v55 }
 0x32a   : > { %v9939_v56 = vld [vmem:[%s13176_s20 + $0xe28] sm:$0xf0] }
 0x32b   : > { %v12238_v48 = vld [vmem:[%s13176_s20 + $0x100c] sm:$0xf]  ;;  %v9942_v59 = vor.u32 %v12174_v22, %v9939_v56  ;;  %6460 = vmatpush.bf16.msra.mxu0 %v9686_v57 }
 0x32c   : > { %v10195_v29 = vld [vmem:[%s13176_s20 + $0x1028] sm:$0xf0] }
 0x32d   : > { %v12302_v50 = vld [vmem:[%s13176_s20 + $0x120c] sm:$0xf]  ;;  %v10198_v60 = vor.u32 %v12238_v48, %v10195_v29  ;;  %6473 = vmatpush.bf16.msra.mxu1 %v9942_v59 }
 0x32e   : > { %v10451_v51 = vld [vmem:[%s13176_s20 + $0x1228] sm:$0xf0]  ;;  %6461 = vmatmul.bf16.vlgmr.msra.gmra.mxu0 %v13358_v35 }
 0x32f   : > { %v12422_v54 = vld [vmem:[%s13176_s20 + $0x15cc] sm:$0xf]  ;;  %v10454_v1 = vor.u32 %v12302_v50, %v10451_v51  ;;  %6486 = vmatpush.bf16.msra.mxu2 %v10198_v60 }
 0x330   : > { %v10931_v58 = vld [vmem:[%s13176_s20 + $0x15e8] sm:$0xf0]  ;;  %6474 = vmatmul.bf16.vlgmr.msra.gmra.mxu1 %v13364_v39 }
 0x331   : > { %v12486_v31 = vld [vmem:[%s13176_s20 + $0x17cc] sm:$0xf]  ;;  %v10934_v11 = vor.u32 %v12422_v54, %v10931_v58  ;;  %6499 = vmatpush.bf16.msra.mxu3 %v10454_v1  ;;  %v14219_v54 = vpop.f32.mrf.mxu0 }
 0x332   : > { %v11187_v3 = vld [vmem:[%s13176_s20 + $0x17e8] sm:$0xf0]  ;;  %6487 = vmatmul.bf16.vlgmr.msra.gmra.mxu2 %v13435_v20 }
 0x333   : > { %v12550_v62 = vld [vmem:[%s13176_s20 + $0x19cc] sm:$0xf]  ;;  %v11190_v4 = vor.u32 %v12486_v31, %v11187_v3  ;;  %6505 = vmatpush.bf16.msrb.mxu0 %v10934_v11 }
 0x334   : > { %v11443_v13 = vld [vmem:[%s13176_s20 + $0x19e8] sm:$0xf0]  ;;  %6500 = vmatmul.bf16.vlgmr.msra.gmra.mxu3 %v13442_v25 }
 0x335   : > { %v12614_v61 = vld [vmem:[%s13176_s20 + $0x1bcc] sm:$0xf]  ;;  %v11446_v5 = vor.u32 %v12550_v62, %v11443_v13  ;;  %6518 = vmatpush.bf16.msrb.mxu1 %v11190_v4  ;;  %v14224_v13 = vpop.f32.mrf.mxu1 }
 0x336   : > { %v11699_v63 = vld [vmem:[%s13176_s20 + $0x1be8] sm:$0xf0] }
 0x337   : > { %v12414_v6 = vld [vmem:[%s13176_s20 + $0x158c] sm:$0xf]  ;;  %v11702_v8 = vor.u32 %v12614_v61, %v11699_v63  ;;  %6531 = vmatpush.bf16.msrb.mxu2 %v11446_v5 }
 0x338   : > { %v10899_v2 = vld [vmem:[%s13176_s20 + $0x15a8] sm:$0xf0] }
 0x339   : > { %v12478_v7 = vld [vmem:[%s13176_s20 + $0x178c] sm:$0xf]  ;;  %v10902_v27 = vor.u32 %v12414_v6, %v10899_v2  ;;  %6544 = vmatpush.bf16.msrb.mxu3 %v11702_v8 }
 0x33a   : > { %v11155_v14 = vld [vmem:[%s13176_s20 + $0x17a8] sm:$0xf0] }
 0x33b   : > { %v12542_v9 = vld [vmem:[%s13176_s20 + $0x198c] sm:$0xf]  ;;  %v11158_v15 = vor.u32 %v12478_v7, %v11155_v14  ;;  %6506 = vmatpush.bf16.msrb.mxu0 %v10902_v27  ;;  %v14234_v14 = vpop.f32.mrf.mxu2  ;;  %v14239_v27 = vpop.f32.mrf.mxu3 }
 0x33c   : > { %v11411_v43 = vld [vmem:[%s13176_s20 + $0x19a8] sm:$0xf0] }
 0x33d   : > { %v12606_v21 = vld [vmem:[%s13176_s20 + $0x1b8c] sm:$0xf]  ;;  %v11414_v52 = vor.u32 %v12542_v9, %v11411_v43  ;;  %6519 = vmatpush.bf16.msrb.mxu1 %v11158_v15 }
 0x33e   : > { %v11667_v26 = vld [vmem:[%s13176_s20 + $0x1ba8] sm:$0xf0] }
 0x33f   : > { %v12406_v30 = vld [vmem:[%s13176_s20 + $0x154c] sm:$0xf]  ;;  %v11670_v33 = vor.u32 %v12606_v21, %v11667_v26  ;;  %6532 = vmatpush.bf16.msrb.mxu2 %v11414_v52 }
 0x340   : > { %v10867_v32 = vld [vmem:[%s13176_s20 + $0x1568] sm:$0xf0] }
 0x341   : > { %v12470_v23 = vld [vmem:[%s13176_s20 + $0x174c] sm:$0xf]  ;;  %v10870_v44 = vor.u32 %v12406_v30, %v10867_v32  ;;  %6545 = vmatpush.bf16.msrb.mxu3 %v11670_v33  ;;  %v6256_v32 = vpop.f32.mrf.mxu0 }
 0x342   : > { %v11123_v36 = vld [vmem:[%s13176_s20 + $0x1768] sm:$0xf0] }
 0x343   : > { %v12534_v37 = vld [vmem:[%s13176_s20 + $0x194c] sm:$0xf]  ;;  %v11126_v45 = vor.u32 %v12470_v23, %v11123_v36  ;;  %6507 = vmatpush.bf16.msrb.mxu0 %v10870_v44 }
 0x344   : > { %v11379_v34 = vld [vmem:[%s13176_s20 + $0x1968] sm:$0xf0] }
 0x345   : > { %v12598_v40 = vld [vmem:[%s13176_s20 + $0x1b4c] sm:$0xf]  ;;  %v11382_v47 = vor.u32 %v12534_v37, %v11379_v34  ;;  %6520 = vmatpush.bf16.msrb.mxu1 %v11126_v45 }
 0x346   : > { %v11635_v42 = vld [vmem:[%s13176_s20 + $0x1b68] sm:$0xf0] }
 0x347   : > { %v12398_v46 = vld [vmem:[%s13176_s20 + $0x150c] sm:$0xf]  ;;  %v11638_v48 = vor.u32 %v12598_v40, %v11635_v42  ;;  %6533 = vmatpush.bf16.msrb.mxu2 %v11382_v47  ;;  %v6269_v40 = vpop.f32.mrf.mxu1 }
 0x348   : > { %v10835_v22 = vld [vmem:[%s13176_s20 + $0x1528] sm:$0xf0] }
 0x349   : > { %v12462_v56 = vld [vmem:[%s13176_s20 + $0x170c] sm:$0xf]  ;;  %v10838_v53 = vor.u32 %v12398_v46, %v10835_v22  ;;  %6546 = vmatpush.bf16.msrb.mxu3 %v11638_v48 }
 0x34a   : > { %v11091_v49 = vld [vmem:[%s13176_s20 + $0x1728] sm:$0xf0] }
 0x34b   : > { %v12526_v55 = vld [vmem:[%s13176_s20 + $0x190c] sm:$0xf]  ;;  %v11094_v58 = vor.u32 %v12462_v56, %v11091_v49  ;;  %6508 = vmatpush.bf16.msrb.mxu0 %v10838_v53 }
 0x34c   : > { %v11347_v29 = vld [vmem:[%s13176_s20 + $0x1928] sm:$0xf0] }
 0x34d   : > { %v12590_v50 = vld [vmem:[%s13176_s20 + $0x1b0c] sm:$0xf]  ;;  %v11350_v31 = vor.u32 %v12526_v55, %v11347_v29  ;;  %6521 = vmatpush.bf16.msrb.mxu1 %v11094_v58  ;;  %v6282_v58 = vpop.f32.mrf.mxu2 }
 0x34e   : > { %v11603_v51 = vld [vmem:[%s13176_s20 + $0x1b28] sm:$0xf0]  ;;  %v8281_v58 = vld [vmem:[%s13176_s20 + $0x110] sm:$0xf] }
 0x34f   : > { %v12390_v57 = vld [vmem:[%s13176_s20 + $0x14cc] sm:$0xf]  ;;  %v11606_v59 = vor.u32 %v12590_v50, %v11603_v51  ;;  %6534 = vmatpush.bf16.msrb.mxu2 %v11350_v31 }
 0x350   : > { %v10803_v3 = vld [vmem:[%s13176_s20 + $0x14e8] sm:$0xf0] }
 0x351   : > { %v12454_v62 = vld [vmem:[%s13176_s20 + $0x16cc] sm:$0xf]  ;;  %v10806_v4 = vor.u32 %v12390_v57, %v10803_v3  ;;  %6547 = vmatpush.bf16.msrb.mxu3 %v11606_v59  ;;  %v6295_v59 = vpop.f32.mrf.mxu3 }
 0x352   : > { %v11059_v60 = vld [vmem:[%s13176_s20 + $0x16e8] sm:$0xf0]  ;;  %v8793_v59 = vld [vmem:[%s13176_s20 + $0x510] sm:$0xf] }
 0x353   : > { %v12518_v61 = vld [vmem:[%s13176_s20 + $0x18cc] sm:$0xf]  ;;  %v11062_v5 = vor.u32 %v12454_v62, %v11059_v60  ;;  %6509 = vmatpush.bf16.msrb.mxu0 %v10806_v4  ;;  %v8377_v60 = vld [vmem:[%s13176_s20 + $0x1d0] sm:$0xf] }
 0x354   : > { %v11315_v63 = vld [vmem:[%s13176_s20 + $0x18e8] sm:$0xf0]  ;;  %v8889_v4 = vld [vmem:[%s13176_s20 + $0x5d0] sm:$0xf] }
 0x355   : > { %v12582_v1 = vld [vmem:[%s13176_s20 + $0x1acc] sm:$0xf]  ;;  %v11318_v6 = vor.u32 %v12518_v61, %v11315_v63  ;;  %6522 = vmatpush.bf16.msrb.mxu1 %v11062_v5  ;;  %v11787_v61 = vld [vmem:[%s13176_s20 + $0x1ec] sm:$0xf0] }
 0x356   : > { %v11571_v11 = vld [vmem:[%s13176_s20 + $0x1ae8] sm:$0xf0]  ;;  %v8633_v63 = vld [vmem:[%s13176_s20 + $0x3d0] sm:$0xf] }
 0x357   : > { %v12382_v2 = vld [vmem:[%s13176_s20 + $0x148c] sm:$0xf]  ;;  %v11574_v9 = vor.u32 %v12582_v1, %v11571_v11  ;;  %6535 = vmatpush.bf16.msrb.mxu2 %v11318_v6  ;;  %v11851_v11 = vld [vmem:[%s13176_s20 + $0x3ec] sm:$0xf0] }
 0x358   : > { %v10771_v7 = vld [vmem:[%s13176_s20 + $0x14a8] sm:$0xf0]  ;;  %v11915_v5 = vld [vmem:[%s13176_s20 + $0x5ec] sm:$0xf0] }
 0x359   : > { %v12446_v8 = vld [vmem:[%s13176_s20 + $0x168c] sm:$0xf]  ;;  %v10774_v30 = vor.u32 %v12382_v2, %v10771_v7  ;;  %6548 = vmatpush.bf16.msrb.mxu3 %v11574_v9  ;;  %v9145_v7 = vld [vmem:[%s13176_s20 + $0x7d0] sm:$0xf] }
 0x35a   : > { %v11027_v43 = vld [vmem:[%s13176_s20 + $0x16a8] sm:$0xf0] }
 0x35b   : > { %v12510_v21 = vld [vmem:[%s13176_s20 + $0x188c] sm:$0xf]  ;;  %v11030_v23 = vor.u32 %v12446_v8, %v11027_v43  ;;  %6510 = vmatpush.bf16.msrb.mxu0 %v10774_v30  ;;  %v11979_v8 = vld [vmem:[%s13176_s20 + $0x7ec] sm:$0xf0]  ;;  %v8378_v43 = vor.u32 %v11787_v61, %v8377_v60  ;;  %v14293_v61 = vpop.f32.mrf.mxu0 }
 0x35c   : > { %v11283_v26 = vld [vmem:[%s13176_s20 + $0x18a8] sm:$0xf0]  ;;  %v8601_v30 = vld [vmem:[%s13176_s20 + $0x390] sm:$0xf]  ;;  %v9146_v32 = vor.u32 %v11979_v8, %v9145_v7 }
 0x35d   : > { %v12574_v15 = vld [vmem:[%s13176_s20 + $0x1a8c] sm:$0xf]  ;;  %v11286_v33 = vor.u32 %v12510_v21, %v11283_v26  ;;  %6523 = vmatpush.bf16.msrb.mxu1 %v11030_v23  ;;  %v8634_v21 = vor.u32 %v11851_v11, %v8633_v63  ;;  %v8890_v26 = vor.u32 %v11915_v5, %v8889_v4  ;;  %v11843_v23 = vld [vmem:[%s13176_s20 + $0x3ac] sm:$0xf0]  ;;  %v14297_v4 = vpop.f32.mrf.mxu1 }
 0x35e   : > { %v11539_v52 = vld [vmem:[%s13176_s20 + $0x1aa8] sm:$0xf0]  ;;  %v11891_v60 = vld [vmem:[%s13176_s20 + $0x52c] sm:$0xf0] }
 0x35f   : > { %v12374_v36 = vld [vmem:[%s13176_s20 + $0x144c] sm:$0xf]  ;;  %v11542_v42 = vor.u32 %v12574_v15, %v11539_v52  ;;  %6536 = vmatpush.bf16.msrb.mxu2 %v11286_v33  ;;  %v8345_v15 = vld [vmem:[%s13176_s20 + $0x190] sm:$0xf] }
 0x360   : > { %v10739_v37 = vld [vmem:[%s13176_s20 + $0x1468] sm:$0xf0]  ;;  %v11779_v52 = vld [vmem:[%s13176_s20 + $0x1ac] sm:$0xf0] }
 0x361   : > { %v12438_v34 = vld [vmem:[%s13176_s20 + $0x164c] sm:$0xf]  ;;  %v10742_v56 = vor.u32 %v12374_v36, %v10739_v37  ;;  %6549 = vmatpush.bf16.msrb.mxu3 %v11542_v42  ;;  %v8857_v33 = vld [vmem:[%s13176_s20 + $0x590] sm:$0xf]  ;;  %v8346_v40 = vor.u32 %v11779_v52, %v8345_v15  ;;  %v8602_v42 = vor.u32 %v11843_v23, %v8601_v30  ;;  %v6255_v30 = vadd.f32 %v14219_v54, %v14165_v19  ;;  %v14317_v54 = vpop.f32.mrf.mxu3 }
 0x362   : > { %v10995_v44 = vld [vmem:[%s13176_s20 + $0x1668] sm:$0xf0]  ;;  %v11907_v36 = vld [vmem:[%s13176_s20 + $0x5ac] sm:$0xf0] }
 0x363   : > { %v12502_v45 = vld [vmem:[%s13176_s20 + $0x184c] sm:$0xf]  ;;  %v10998_v55 = vor.u32 %v12438_v34, %v10995_v44  ;;  %6511 = vmatpush.bf16.msrb.mxu0 %v10742_v56  ;;  %v9113_v37 = vld [vmem:[%s13176_s20 + $0x790] sm:$0xf]  ;;  %v8858_v44 = vor.u32 %v11907_v36, %v8857_v33 }
 0x364   : > { %v11251_v47 = vld [vmem:[%s13176_s20 + $0x1868] sm:$0xf0]  ;;  %v11971_v34 = vld [vmem:[%s13176_s20 + $0x7ac] sm:$0xf0] }
 0x365   : > { %v12566_v46 = vld [vmem:[%s13176_s20 + $0x1a4c] sm:$0xf]  ;;  %v11254_v29 = vor.u32 %v12502_v45, %v11251_v47  ;;  %6524 = vmatpush.bf16.msrb.mxu1 %v10998_v55  ;;  %v8313_v45 = vld [vmem:[%s13176_s20 + $0x150] sm:$0xf] }
 0x366   : > { %v11507_v22 = vld [vmem:[%s13176_s20 + $0x1a68] sm:$0xf0]  ;;  %v11771_v47 = vld [vmem:[%s13176_s20 + $0x16c] sm:$0xf0] }
 0x367   : > { %v12366_v48 = vld [vmem:[%s13176_s20 + $0x140c] sm:$0xf]  ;;  %v11510_v31 = vor.u32 %v12566_v46, %v11507_v22  ;;  %6537 = vmatpush.bf16.msrb.mxu2 %v11254_v29  ;;  %v8569_v46 = vld [vmem:[%s13176_s20 + $0x350] sm:$0xf]  ;;  %v9114_v22 = vor.u32 %v11971_v34, %v9113_v37 }
 0x368   : > { %v10707_v49 = vld [vmem:[%s13176_s20 + $0x1428] sm:$0xf0]  ;;  %v11835_v56 = vld [vmem:[%s13176_s20 + $0x36c] sm:$0xf0] }
 0x369   : > { %v12430_v50 = vld [vmem:[%s13176_s20 + $0x160c] sm:$0xf]  ;;  %v10710_v1 = vor.u32 %v12366_v48, %v10707_v49  ;;  %6550 = vmatpush.bf16.msrb.mxu3 %v11510_v31  ;;  %v8825_v48 = vld [vmem:[%s13176_s20 + $0x550] sm:$0xf] }
 0x36a   : > { %v10963_v51 = vld [vmem:[%s13176_s20 + $0x1628] sm:$0xf0]  ;;  %v11899_v49 = vld [vmem:[%s13176_s20 + $0x56c] sm:$0xf0] }
 0x36b   : > { %v12494_v53 = vld [vmem:[%s13176_s20 + $0x180c] sm:$0xf]  ;;  %v10966_v6 = vor.u32 %v12430_v50, %v10963_v51  ;;  %6512 = vmatpush.bf16.msrb.mxu0 %v10710_v1  ;;  %v9081_v55 = vld [vmem:[%s13176_s20 + $0x750] sm:$0xf]  ;;  %v8314_v50 = vor.u32 %v11771_v47, %v8313_v45  ;;  %v8570_v51 = vor.u32 %v11835_v56, %v8569_v46  ;;  %v6268_v56 = vadd.f32 %v14224_v13, %v6255_v30  ;;  %v6347_v30 = vpop.f32.mrf.mxu3 }
 0x36c   : > { %v11219_v57 = vld [vmem:[%s13176_s20 + $0x1828] sm:$0xf0]  ;;  %v11963_v29 = vld [vmem:[%s13176_s20 + $0x76c] sm:$0xf0] }
 0x36d   : > { %v12558_v3 = vld [vmem:[%s13176_s20 + $0x1a0c] sm:$0xf]  ;;  %v11222_v2 = vor.u32 %v12494_v53, %v11219_v57  ;;  %6525 = vmatpush.bf16.msrb.mxu1 %v10966_v6  ;;  %v8826_v53 = vor.u32 %v11899_v49, %v8825_v48  ;;  %v11763_v31 = vld [vmem:[%s13176_s20 + $0x12c] sm:$0xf0]  ;;  %v8794_v6 = vor.u32 %v11891_v60, %v8793_v59  ;;  %v6321_v49 = vpop.f32.mrf.mxu1  ;;  %v6281_v59 = vadd.f32 %v14234_v14, %v6268_v56 }
 0x36e   : > { %v11475_v62 = vld [vmem:[%s13176_s20 + $0x1a28] sm:$0xf0]  ;;  %6513 = vmatmul.bf16.vlgmr.msrb.gmra.mxu0 %v13440_v24  ;;  %v8537_v57 = vld [vmem:[%s13176_s20 + $0x310] sm:$0xf]  ;;  %v8282_v11 = vor.u32 %v11763_v31, %v8281_v58 }
 0x36f   : > { %v11478_v9 = vor.u32 %v12558_v3, %v11475_v62  ;;  %6538 = vmatpush.bf16.msrb.mxu2 %v11222_v2  ;;  %6557 = vmatpush.bf16.msra.mxu0 %v8378_v43  ;;  %v9082_v3 = vor.u32 %v11963_v29, %v9081_v55  ;;  %v11827_v62 = vld [vmem:[%s13176_s20 + $0x32c] sm:$0xf0] }
 0x370   : > { %6526 = vmatmul.bf16.vlgmr.msrb.gmra.mxu1 %v13446_v28  ;;  %v9049_v63 = vld [vmem:[%s13176_s20 + $0x710] sm:$0xf]  ;;  %v8538_v5 = vor.u32 %v11827_v62, %v8537_v57 }
 0x371   : > { %6551 = vmatpush.bf16.msrb.mxu3 %v11478_v9  ;;  %6570 = vmatpush.bf16.msra.mxu1 %v8634_v21  ;;  %v11955_v1 = vld [vmem:[%s13176_s20 + $0x72c] sm:$0xf0] }
 0x372   : > { %6539 = vmatmul.bf16.vlgmr.msrb.gmra.mxu2 %v13513_v12  ;;  %v8249_v2 = vld [vmem:[%s13176_s20 + $0xd0] sm:$0xf]  ;;  %v9050_v9 = vor.u32 %v11955_v1, %v9049_v63 }
 0x373   : > { %6583 = vmatpush.bf16.msra.mxu2 %v8890_v26  ;;  %6558 = vmatpush.bf16.msra.mxu0 %v8346_v40  ;;  %v11755_v7 = vld [vmem:[%s13176_s20 + $0xec] sm:$0xf0] }
 0x374   : > { %6552 = vmatmul.bf16.vlgmr.msrb.gmra.mxu3 %v13518_v16  ;;  %v8505_v8 = vld [vmem:[%s13176_s20 + $0x2d0] sm:$0xf] }
 0x375   : > { %6596 = vmatpush.bf16.msra.mxu3 %v9146_v32  ;;  %6571 = vmatpush.bf16.msra.mxu1 %v8602_v42  ;;  %v11819_v43 = vld [vmem:[%s13176_s20 + $0x2ec] sm:$0xf0]  ;;  %v8250_v32 = vor.u32 %v11755_v7, %v8249_v2  ;;  %v14312_v42 = vpop.f32.mrf.mxu2 }
 0x376   : > { %v8761_v21 = vld [vmem:[%s13176_s20 + $0x4d0] sm:$0xf]  ;;  %v8506_v23 = vor.u32 %v11819_v43, %v8505_v8 }
 0x377   : > { %6584 = vmatpush.bf16.msra.mxu2 %v8858_v44  ;;  %6559 = vmatpush.bf16.msra.mxu0 %v8314_v50  ;;  %v11883_v26 = vld [vmem:[%s13176_s20 + $0x4ec] sm:$0xf0] }
 0x378   : > { %v9017_v15 = vld [vmem:[%s13176_s20 + $0x6d0] sm:$0xf]  ;;  %v8762_v33 = vor.u32 %v11883_v26, %v8761_v21 }
 0x379   : > { %6597 = vmatpush.bf16.msra.mxu3 %v9114_v22  ;;  %6572 = vmatpush.bf16.msra.mxu1 %v8570_v51  ;;  %v11947_v52 = vld [vmem:[%s13176_s20 + $0x6ec] sm:$0xf0]  ;;  %v6308_v22 = vpop.f32.mrf.mxu0 }
 0x37a   : > { %v8217_v36 = vld [vmem:[%s13176_s20 + $0x90] sm:$0xf]  ;;  %v9018_v40 = vor.u32 %v11947_v52, %v9017_v15 }
 0x37b   : > { %6585 = vmatpush.bf16.msra.mxu2 %v8826_v53  ;;  %6560 = vmatpush.bf16.msra.mxu0 %v8282_v11  ;;  %v11747_v37 = vld [vmem:[%s13176_s20 + $0xac] sm:$0xf0] }
 0x37c   : > { %v8473_v34 = vld [vmem:[%s13176_s20 + $0x290] sm:$0xf]  ;;  %v8218_v48 = vor.u32 %v11747_v37, %v8217_v36 }
 0x37d   : > { %6598 = vmatpush.bf16.msra.mxu3 %v9082_v3  ;;  %6573 = vmatpush.bf16.msra.mxu1 %v8538_v5  ;;  %v11811_v44 = vld [vmem:[%s13176_s20 + $0x2ac] sm:$0xf0]  ;;  %v6334_v21 = vpop.f32.mrf.mxu2 }
 0x37e   : > { %v8729_v45 = vld [vmem:[%s13176_s20 + $0x490] sm:$0xf]  ;;  %v8474_v55 = vor.u32 %v11811_v44, %v8473_v34 }
 0x37f   : > { %6586 = vmatpush.bf16.msra.mxu2 %v8794_v6  ;;  %v11875_v19 = vld [vmem:[%s13176_s20 + $0x4ac] sm:$0xf0]  ;;  %6561 = vmatpush.bf16.msra.mxu0 %v8250_v32  ;;  %v6294_v32 = vadd.f32 %v14239_v27, %v6281_v59 }
 0x380   : > { %v8985_v47 = vld [vmem:[%s13176_s20 + $0x690] sm:$0xf]  ;;  %v8730_v29 = vor.u32 %v11875_v19, %v8729_v45 }
 0x381   : > { %6599 = vmatpush.bf16.msra.mxu3 %v9050_v9  ;;  %v11939_v46 = vld [vmem:[%s13176_s20 + $0x6ac] sm:$0xf0]  ;;  %6574 = vmatpush.bf16.msra.mxu1 %v8506_v23  ;;  %v6307_v19 = vadd.f32 %v14293_v61, %v6294_v32  ;;  %v6358_v30 = vpop.f32.mrf.mxu0 }
 0x382   : > { %v8185_v50 = vld [vmem:[%s13176_s20 + $0x50] sm:$0xf]  ;;  %v8986_v58 = vor.u32 %v11939_v46, %v8985_v47 }
 0x383   : > { %6587 = vmatpush.bf16.msra.mxu2 %v8762_v33  ;;  %v11739_v51 = vld [vmem:[%s13176_s20 + $0x6c] sm:$0xf0]  ;;  %6562 = vmatpush.bf16.msra.mxu0 %v8218_v48 }
 0x384   : > { %v8441_v53 = vld [vmem:[%s13176_s20 + $0x250] sm:$0xf]  ;;  %v8186_v60 = vor.u32 %v11739_v51, %v8185_v50 }
 0x385   : > { %6600 = vmatpush.bf16.msra.mxu3 %v9018_v40  ;;  %v11803_v31 = vld [vmem:[%s13176_s20 + $0x26c] sm:$0xf0]  ;;  %6575 = vmatpush.bf16.msra.mxu1 %v8474_v55 }
 0x386   : > { %v8697_v13 = vld [vmem:[%s13176_s20 + $0x450] sm:$0xf]  ;;  %v8442_v11 = vor.u32 %v11803_v31, %v8441_v53 }
 0x387   : > { %v11867_v57 = vld [vmem:[%s13176_s20 + $0x46c] sm:$0xf0]  ;;  %6588 = vmatpush.bf16.msra.mxu2 %v8730_v29  ;;  %6563 = vmatpush.bf16.msra.mxu0 %v8186_v60 }
 0x388   : > { %v8953_v3 = vld [vmem:[%s13176_s20 + $0x650] sm:$0xf]  ;;  %v8698_v5 = vor.u32 %v11867_v57, %v8697_v13 }
 0x389   : > { %v11931_v62 = vld [vmem:[%s13176_s20 + $0x66c] sm:$0xf0]  ;;  %6601 = vmatpush.bf16.msra.mxu3 %v8986_v58  ;;  %6576 = vmatpush.bf16.msra.mxu1 %v8442_v11  ;;  %v6320_v58 = vadd.f32 %v14297_v4, %v6307_v19 }
 0x38a   : > { %v8153_v63 = vld [vmem:[%s13176_s20 + $0x10] sm:$0xf]  ;;  %v8954_v14 = vor.u32 %v11931_v62, %v8953_v3 }
 0x38b   : > { %v11731_v1 = vld [vmem:[%s13176_s20 + $0x2c] sm:$0xf0]  ;;  %6589 = vmatpush.bf16.msra.mxu2 %v8698_v5  ;;  %v6333_v60 = vadd.f32 %v14312_v42, %v6320_v58 }
 0x38c   : > { %v8409_v6 = vld [vmem:[%s13176_s20 + $0x210] sm:$0xf]  ;;  %v8154_v23 = vor.u32 %v11731_v1, %v8153_v63 }
 0x38d   : > { %v11795_v2 = vld [vmem:[%s13176_s20 + $0x22c] sm:$0xf0]  ;;  %6602 = vmatpush.bf16.msra.mxu3 %v8954_v14 }
 0x38e   : > { %v8665_v7 = vld [vmem:[%s13176_s20 + $0x410] sm:$0xf]  ;;  %v8410_v34 = vor.u32 %v11795_v2, %v8409_v6  ;;  %6564 = vmatpush.bf16.msra.mxu0 %v8154_v23 }
 0x38f   : > { %v11859_v8 = vld [vmem:[%s13176_s20 + $0x42c] sm:$0xf0] }
 0x390   : > { %v8921_v9 = vld [vmem:[%s13176_s20 + $0x610] sm:$0xf]  ;;  %v8666_v40 = vor.u32 %v11859_v8, %v8665_v7  ;;  %6577 = vmatpush.bf16.msra.mxu1 %v8410_v34 }
 0x391   : > { %v11923_v43 = vld [vmem:[%s13176_s20 + $0x62c] sm:$0xf0]  ;;  %6565 = vmatmul.bf16.vlgmr.msra.gmra.mxu0 %v13292_v10 }
 0x392   : > { %v9401_v26 = vld [vmem:[%s13176_s20 + $0x9d0] sm:$0xf]  ;;  %v8922_v27 = vor.u32 %v11923_v43, %v8921_v9  ;;  %6590 = vmatpush.bf16.msra.mxu2 %v8666_v40  ;;  %v6346_v43 = vadd.f32 %v14317_v54, %v6333_v60  ;;  %v6371_v54 = vpop.f32.mrf.mxu1 }
 0x393   : > { %v12043_v15 = vld [vmem:[%s13176_s20 + $0x9ec] sm:$0xf0]  ;;  %6578 = vmatmul.bf16.vlgmr.msra.gmra.mxu1 %v13301_v18 }
 0x394   : > { %v9657_v52 = vld [vmem:[%s13176_s20 + $0xbd0] sm:$0xf]  ;;  %v9402_v47 = vor.u32 %v12043_v15, %v9401_v26  ;;  %6603 = vmatpush.bf16.msra.mxu3 %v8922_v27 }
 0x395   : > { %v12107_v33 = vld [vmem:[%s13176_s20 + $0xbec] sm:$0xf0]  ;;  %6591 = vmatmul.bf16.vlgmr.msra.gmra.mxu2 %v13283_v0 }
 0x396   : > { %v9913_v36 = vld [vmem:[%s13176_s20 + $0xdd0] sm:$0xf]  ;;  %v9658_v46 = vor.u32 %v12107_v33, %v9657_v52  ;;  %6609 = vmatpush.bf16.msrb.mxu0 %v9402_v47  ;;  %v6359_v33 = vadd.f32 %v6358_v30, %v6346_v43 }
 0x397   : > { %v12171_v37 = vld [vmem:[%s13176_s20 + $0xdec] sm:$0xf0]  ;;  %6604 = vmatmul.bf16.vlgmr.msra.gmra.mxu3 %v13299_v17 }
 0x398   : > { %v10169_v44 = vld [vmem:[%s13176_s20 + $0xfd0] sm:$0xf]  ;;  %v9914_v22 = vor.u32 %v12171_v37, %v9913_v36  ;;  %6622 = vmatpush.bf16.msrb.mxu1 %v9658_v46  ;;  %v419_v37 = vld [vmem:[#allocation2 + $0x18] sm:$0xff]  ;;  %v6372_v47 = vadd.f32 %v6371_v54, %v6359_v33 }
 0x399   : > { %v12235_v45 = vld [vmem:[%s13176_s20 + $0xfec] sm:$0xf0] }
 0x39a   : > { %v9369_v56 = vld [vmem:[%s13176_s20 + $0x990] sm:$0xf]  ;;  %v10170_v55 = vor.u32 %v12235_v45, %v10169_v44  ;;  %6635 = vmatpush.bf16.msrb.mxu2 %v9914_v22 }
 0x39b   : > { %v12035_v48 = vld [vmem:[%s13176_s20 + $0x9ac] sm:$0xf0] }
 0x39c   : > { %v9625_v49 = vld [vmem:[%s13176_s20 + $0xb90] sm:$0xf]  ;;  %v9370_v31 = vor.u32 %v12035_v48, %v9369_v56  ;;  %6648 = vmatpush.bf16.msrb.mxu3 %v10170_v55  ;;  %v7287_v55 = vadd.f32 %v6372_v47, %v419_v37 }
 0x39d   : > { %v12099_v29 = vld [vmem:[%s13176_s20 + $0xbac] sm:$0xf0] }
 0x39e   : > { %v9881_v50 = vld [vmem:[%s13176_s20 + $0xd90] sm:$0xf]  ;;  %v9626_v13 = vor.u32 %v12099_v29, %v9625_v49  ;;  %6610 = vmatpush.bf16.msrb.mxu0 %v9370_v31  ;;  %7295 = vst [vmem:[#allocation2 + $0x18] sm:$0xff] %v7287_v55 }
 0x39f   : > { %v12163_v51 = vld [vmem:[%s13176_s20 + $0xdac] sm:$0xf0] }
 0x3a0   : > { %v10137_v61 = vld [vmem:[%s13176_s20 + $0xf90] sm:$0xf]  ;;  %v9882_v57 = vor.u32 %v12163_v51, %v9881_v50  ;;  %6623 = vmatpush.bf16.msrb.mxu1 %v9626_v13 }
 0x3a1   : > { %v12227_v53 = vld [vmem:[%s13176_s20 + $0xfac] sm:$0xf0] }
 0x3a2   : > { %v9337_v3 = vld [vmem:[%s13176_s20 + $0x950] sm:$0xf]  ;;  %v10138_v63 = vor.u32 %v12227_v53, %v10137_v61  ;;  %6636 = vmatpush.bf16.msrb.mxu2 %v9882_v57 }
 0x3a3   : > { %v12027_v62 = vld [vmem:[%s13176_s20 + $0x96c] sm:$0xf0] }
 0x3a4   : > { %v9593_v59 = vld [vmem:[%s13176_s20 + $0xb50] sm:$0xf]  ;;  %v9338_v42 = vor.u32 %v12027_v62, %v9337_v3  ;;  %6649 = vmatpush.bf16.msrb.mxu3 %v10138_v63  ;;  %v6384_v62 = vpop.f32.mrf.mxu2  ;;  %v6397_v63 = vpop.f32.mrf.mxu3 }
 0x3a5   : > { %v12091_v1 = vld [vmem:[%s13176_s20 + $0xb6c] sm:$0xf0] }
 0x3a6   : > { %v9849_v4 = vld [vmem:[%s13176_s20 + $0xd50] sm:$0xf]  ;;  %v9594_v2 = vor.u32 %v12091_v1, %v9593_v59  ;;  %6611 = vmatpush.bf16.msrb.mxu0 %v9338_v42  ;;  %v6360_v1 = vpop.f32.mrf.mxu0 }
 0x3a7   : > { %v12155_v11 = vld [vmem:[%s13176_s20 + $0xd6c] sm:$0xf0] }
 0x3a8   : > { %v10105_v5 = vld [vmem:[%s13176_s20 + $0xf50] sm:$0xf]  ;;  %v9850_v7 = vor.u32 %v12155_v11, %v9849_v4  ;;  %6624 = vmatpush.bf16.msrb.mxu1 %v9594_v2  ;;  %v14396_v11 = vadd.f32 %v6397_v63, %v6384_v62 }
 0x3a9   : > { %v12219_v6 = vld [vmem:[%s13176_s20 + $0xf6c] sm:$0xf0] }
 0x3aa   : > { %v9305_v14 = vld [vmem:[%s13176_s20 + $0x910] sm:$0xf]  ;;  %v10106_v21 = vor.u32 %v12219_v6, %v10105_v5  ;;  %6637 = vmatpush.bf16.msrb.mxu2 %v9850_v7  ;;  %v6373_v5 = vpop.f32.mrf.mxu1 }
 0x3ab   : > { %v12019_v8 = vld [vmem:[%s13176_s20 + $0x92c] sm:$0xf0] }
 0x3ac   : > { %v9561_v9 = vld [vmem:[%s13176_s20 + $0xb10] sm:$0xf]  ;;  %v9306_v36 = vor.u32 %v12019_v8, %v9305_v14  ;;  %6650 = vmatpush.bf16.msrb.mxu3 %v10106_v21 }
 0x3ad   : > { %v12083_v26 = vld [vmem:[%s13176_s20 + $0xb2c] sm:$0xf0] }
 0x3ae   : > { %v9817_v15 = vld [vmem:[%s13176_s20 + $0xd10] sm:$0xf]  ;;  %v9562_v34 = vor.u32 %v12083_v26, %v9561_v9  ;;  %6612 = vmatpush.bf16.msrb.mxu0 %v9306_v36 }
 0x3af   : > { %v12147_v52 = vld [vmem:[%s13176_s20 + $0xd2c] sm:$0xf0] }
 0x3b0   : > { %v10073_v32 = vld [vmem:[%s13176_s20 + $0xf10] sm:$0xf]  ;;  %v9818_v40 = vor.u32 %v12147_v52, %v9817_v15  ;;  %6625 = vmatpush.bf16.msrb.mxu1 %v9562_v34 }
 0x3b1   : > { %v12211_v23 = vld [vmem:[%s13176_s20 + $0xf2c] sm:$0xf0] }
 0x3b2   : > { %v9273_v44 = vld [vmem:[%s13176_s20 + $0x8d0] sm:$0xf]  ;;  %v10074_v27 = vor.u32 %v12211_v23, %v10073_v32  ;;  %6638 = vmatpush.bf16.msrb.mxu2 %v9818_v40 }
 0x3b3   : > { %v12011_v45 = vld [vmem:[%s13176_s20 + $0x8ec] sm:$0xf0] }
 0x3b4   : > { %v9529_v19 = vld [vmem:[%s13176_s20 + $0xad0] sm:$0xf]  ;;  %v9274_v29 = vor.u32 %v12011_v45, %v9273_v44  ;;  %6651 = vmatpush.bf16.msrb.mxu3 %v10074_v27 }
 0x3b5   : > { %v12075_v46 = vld [vmem:[%s13176_s20 + $0xaec] sm:$0xf0] }
 0x3b6   : > { %v9785_v22 = vld [vmem:[%s13176_s20 + $0xcd0] sm:$0xf]  ;;  %v9530_v51 = vor.u32 %v12075_v46, %v9529_v19  ;;  %6613 = vmatpush.bf16.msrb.mxu0 %v9274_v29  ;;  %v6386_v19 = vpop.f32.mrf.mxu2 }
 0x3b7   : > { %v12139_v56 = vld [vmem:[%s13176_s20 + $0xcec] sm:$0xf0] }
 0x3b8   : > { %v10041_v48 = vld [vmem:[%s13176_s20 + $0xed0] sm:$0xf]  ;;  %v9786_v61 = vor.u32 %v12139_v56, %v9785_v22  ;;  %6626 = vmatpush.bf16.msrb.mxu1 %v9530_v51  ;;  %v6399_v22 = vpop.f32.mrf.mxu3 }
 0x3b9   : > { %v12203_v49 = vld [vmem:[%s13176_s20 + $0xeec] sm:$0xf0] }
 0x3ba   : > { %v9241_v50 = vld [vmem:[%s13176_s20 + $0x890] sm:$0xf]  ;;  %v10042_v13 = vor.u32 %v12203_v49, %v10041_v48  ;;  %6639 = vmatpush.bf16.msrb.mxu2 %v9786_v61 }
 0x3bb   : > { %v12003_v53 = vld [vmem:[%s13176_s20 + $0x8ac] sm:$0xf0] }
 0x3bc   : > { %v9497_v58 = vld [vmem:[%s13176_s20 + $0xa90] sm:$0xf]  ;;  %v9242_v4 = vor.u32 %v12003_v53, %v9241_v50  ;;  %6652 = vmatpush.bf16.msrb.mxu3 %v10042_v13 }
 0x3bd   : > { %v12067_v31 = vld [vmem:[%s13176_s20 + $0xaac] sm:$0xf0] }
 0x3be   : > { %v9753_v57 = vld [vmem:[%s13176_s20 + $0xc90] sm:$0xf]  ;;  %v9498_v6 = vor.u32 %v12067_v31, %v9497_v58  ;;  %6614 = vmatpush.bf16.msrb.mxu0 %v9242_v4 }
 0x3bf   : > { %v12131_v3 = vld [vmem:[%s13176_s20 + $0xcac] sm:$0xf0] }
 0x3c0   : > { %v10009_v59 = vld [vmem:[%s13176_s20 + $0xe90] sm:$0xf]  ;;  %v9754_v42 = vor.u32 %v12131_v3, %v9753_v57  ;;  %6627 = vmatpush.bf16.msrb.mxu1 %v9498_v6 }
 0x3c1   : > { %v12195_v60 = vld [vmem:[%s13176_s20 + $0xeac] sm:$0xf0] }
 0x3c2   : > { %v9209_v2 = vld [vmem:[%s13176_s20 + $0x850] sm:$0xf]  ;;  %v10010_v8 = vor.u32 %v12195_v60, %v10009_v59  ;;  %6640 = vmatpush.bf16.msrb.mxu2 %v9754_v42 }
 0x3c3   : > { %v11995_v7 = vld [vmem:[%s13176_s20 + $0x86c] sm:$0xf0] }
 0x3c4   : > { %v9465_v14 = vld [vmem:[%s13176_s20 + $0xa50] sm:$0xf]  ;;  %v9210_v52 = vor.u32 %v11995_v7, %v9209_v2  ;;  %6653 = vmatpush.bf16.msrb.mxu3 %v10010_v8 }
 0x3c5   : > { %v12059_v9 = vld [vmem:[%s13176_s20 + $0xa6c] sm:$0xf0] }
 0x3c6   : > { %v9721_v43 = vld [vmem:[%s13176_s20 + $0xc50] sm:$0xf]  ;;  %v9466_v23 = vor.u32 %v12059_v9, %v9465_v14  ;;  %6615 = vmatpush.bf16.msrb.mxu0 %v9210_v52 }
 0x3c7   : > { %v12123_v21 = vld [vmem:[%s13176_s20 + $0xc6c] sm:$0xf0] }
 0x3c8   : > { %v9977_v26 = vld [vmem:[%s13176_s20 + $0xe50] sm:$0xf]  ;;  %v9722_v33 = vor.u32 %v12123_v21, %v9721_v43  ;;  %6628 = vmatpush.bf16.msrb.mxu1 %v9466_v23 }
 0x3c9   : > { %v12187_v15 = vld [vmem:[%s13176_s20 + $0xe6c] sm:$0xf0] }
 0x3ca   : > { %v9177_v30 = vld [vmem:[%s13176_s20 + $0x810] sm:$0xf]  ;;  %v9978_v34 = vor.u32 %v12187_v15, %v9977_v26  ;;  %6641 = vmatpush.bf16.msrb.mxu2 %v9722_v33 }
 0x3cb   : > { %v11987_v32 = vld [vmem:[%s13176_s20 + $0x82c] sm:$0xf0] }
 0x3cc   : > { %v9433_v36 = vld [vmem:[%s13176_s20 + $0xa10] sm:$0xf]  ;;  %v9178_v56 = vor.u32 %v11987_v32, %v9177_v30  ;;  %6654 = vmatpush.bf16.msrb.mxu3 %v9978_v34 }
 0x3cd   : > { %v12051_v37 = vld [vmem:[%s13176_s20 + $0xa2c] sm:$0xf0] }
 0x3ce   : > { %v9689_v54 = vld [vmem:[%s13176_s20 + $0xc10] sm:$0xf]  ;;  %v9434_v29 = vor.u32 %v12051_v37, %v9433_v36  ;;  %6616 = vmatpush.bf16.msrb.mxu0 %v9178_v56 }
 0x3cf   : > { %v12115_v40 = vld [vmem:[%s13176_s20 + $0xc2c] sm:$0xf0] }
 0x3d0   : > { %v9945_v44 = vld [vmem:[%s13176_s20 + $0xe10] sm:$0xf]  ;;  %v9690_v50 = vor.u32 %v12115_v40, %v9689_v54  ;;  %6629 = vmatpush.bf16.msrb.mxu1 %v9434_v29 }
 0x3d1   : > { %v12179_v45 = vld [vmem:[%s13176_s20 + $0xe2c] sm:$0xf0]  ;;  %6617 = vmatmul.bf16.vlgmr.msrb.gmra.mxu0 %v13362_v38 }
 0x3d2   : > { %v10425_v27 = vld [vmem:[%s13176_s20 + $0x11d0] sm:$0xf]  ;;  %v9946_v53 = vor.u32 %v12179_v45, %v9945_v44  ;;  %6642 = vmatpush.bf16.msrb.mxu2 %v9690_v50 }
 0x3d3   : > { %v12299_v47 = vld [vmem:[%s13176_s20 + $0x11ec] sm:$0xf0]  ;;  %6630 = vmatmul.bf16.vlgmr.msrb.gmra.mxu1 %v13366_v41 }
 0x3d4   : > { %v10681_v46 = vld [vmem:[%s13176_s20 + $0x13d0] sm:$0xf]  ;;  %v10426_v58 = vor.u32 %v12299_v47, %v10425_v27  ;;  %6655 = vmatpush.bf16.msrb.mxu3 %v9946_v53  ;;  %v14450_v47 = vpop.f32.mrf.mxu0 }
 0x3d5   : > { %v12363_v48 = vld [vmem:[%s13176_s20 + $0x13ec] sm:$0xf0]  ;;  %6643 = vmatmul.bf16.vlgmr.msrb.gmra.mxu2 %v13358_v35 }
 0x3d6   : > { %v10937_v49 = vld [vmem:[%s13176_s20 + $0x15d0] sm:$0xf]  ;;  %v10682_v31 = vor.u32 %v12363_v48, %v10681_v46  ;;  %6661 = vmatpush.bf16.msra.mxu0 %v10426_v58 }
 0x3d7   : > { %v12427_v55 = vld [vmem:[%s13176_s20 + $0x15ec] sm:$0xf0]  ;;  %6656 = vmatmul.bf16.vlgmr.msrb.gmra.mxu3 %v13364_v39 }
 0x3d8   : > { %v11193_v51 = vld [vmem:[%s13176_s20 + $0x17d0] sm:$0xf]  ;;  %v10938_v13 = vor.u32 %v12427_v55, %v10937_v49  ;;  %6674 = vmatpush.bf16.msra.mxu1 %v10682_v31  ;;  %v14455_v55 = vpop.f32.mrf.mxu1 }
 0x3d9   : > { %v12491_v61 = vld [vmem:[%s13176_s20 + $0x17ec] sm:$0xf0] }
 0x3da   : > { %v10393_v57 = vld [vmem:[%s13176_s20 + $0x1190] sm:$0xf]  ;;  %v11194_v59 = vor.u32 %v12491_v61, %v11193_v51  ;;  %6687 = vmatpush.bf16.msra.mxu2 %v10938_v13 }
 0x3db   : > { %v12291_v3 = vld [vmem:[%s13176_s20 + $0x11ac] sm:$0xf0] }
 0x3dc   : > { %v10649_v62 = vld [vmem:[%s13176_s20 + $0x1390] sm:$0xf]  ;;  %v10394_v6 = vor.u32 %v12291_v3, %v10393_v57  ;;  %6700 = vmatpush.bf16.msra.mxu3 %v11194_v59 }
 0x3dd   : > { %v12355_v60 = vld [vmem:[%s13176_s20 + $0x13ac] sm:$0xf0] }
 0x3de   : > { %v10905_v63 = vld [vmem:[%s13176_s20 + $0x1590] sm:$0xf]  ;;  %v10650_v42 = vor.u32 %v12355_v60, %v10649_v62  ;;  %6662 = vmatpush.bf16.msra.mxu0 %v10394_v6  ;;  %v14465_v60 = vpop.f32.mrf.mxu2  ;;  %v14470_v6 = vpop.f32.mrf.mxu3 }
 0x3df   : > { %v12419_v1 = vld [vmem:[%s13176_s20 + $0x15ac] sm:$0xf0] }
 0x3e0   : > { %v11161_v4 = vld [vmem:[%s13176_s20 + $0x1790] sm:$0xf]  ;;  %v10906_v2 = vor.u32 %v12419_v1, %v10905_v63  ;;  %6675 = vmatpush.bf16.msra.mxu1 %v10650_v42 }
 0x3e1   : > { %v12483_v5 = vld [vmem:[%s13176_s20 + $0x17ac] sm:$0xf0] }
 0x3e2   : > { %v10361_v7 = vld [vmem:[%s13176_s20 + $0x1150] sm:$0xf]  ;;  %v11162_v9 = vor.u32 %v12483_v5, %v11161_v4  ;;  %6688 = vmatpush.bf16.msra.mxu2 %v10906_v2 }
 0x3e3   : > { %v12283_v14 = vld [vmem:[%s13176_s20 + $0x116c] sm:$0xf0] }
 0x3e4   : > { %v10617_v8 = vld [vmem:[%s13176_s20 + $0x1350] sm:$0xf]  ;;  %v10362_v30 = vor.u32 %v12283_v14, %v10361_v7  ;;  %6701 = vmatpush.bf16.msra.mxu3 %v11162_v9  ;;  %v6412_v14 = vpop.f32.mrf.mxu0 }
 0x3e5   : > { %v12347_v43 = vld [vmem:[%s13176_s20 + $0x136c] sm:$0xf0] }
 0x3e6   : > { %v10873_v21 = vld [vmem:[%s13176_s20 + $0x1550] sm:$0xf]  ;;  %v10618_v32 = vor.u32 %v12347_v43, %v10617_v8  ;;  %6663 = vmatpush.bf16.msra.mxu0 %v10362_v30 }
 0x3e7   : > { %v12411_v26 = vld [vmem:[%s13176_s20 + $0x156c] sm:$0xf0] }
 0x3e8   : > { %v11129_v15 = vld [vmem:[%s13176_s20 + $0x1750] sm:$0xf]  ;;  %v10874_v23 = vor.u32 %v12411_v26, %v10873_v21  ;;  %6676 = vmatpush.bf16.msra.mxu1 %v10618_v32 }
 0x3e9   : > { %v12475_v52 = vld [vmem:[%s13176_s20 + $0x176c] sm:$0xf0] }
 0x3ea   : > { %v10329_v33 = vld [vmem:[%s13176_s20 + $0x1110] sm:$0xf]  ;;  %v11130_v54 = vor.u32 %v12475_v52, %v11129_v15  ;;  %6689 = vmatpush.bf16.msra.mxu2 %v10874_v23  ;;  %v6425_v15 = vpop.f32.mrf.mxu1 }
 0x3eb   : > { %v12275_v36 = vld [vmem:[%s13176_s20 + $0x112c] sm:$0xf0] }
 0x3ec   : > { %v10585_v37 = vld [vmem:[%s13176_s20 + $0x1310] sm:$0xf]  ;;  %v10330_v27 = vor.u32 %v12275_v36, %v10329_v33  ;;  %6702 = vmatpush.bf16.msra.mxu3 %v11130_v54 }
 0x3ed   : > { %v12339_v34 = vld [vmem:[%s13176_s20 + $0x132c] sm:$0xf0] }
 0x3ee   : > { %v10841_v40 = vld [vmem:[%s13176_s20 + $0x1510] sm:$0xf]  ;;  %v10586_v46 = vor.u32 %v12339_v34, %v10585_v37  ;;  %6664 = vmatpush.bf16.msra.mxu0 %v10330_v27 }
 0x3ef   : > { %v12403_v44 = vld [vmem:[%s13176_s20 + $0x152c] sm:$0xf0] }
 0x3f0   : > { %v11097_v45 = vld [vmem:[%s13176_s20 + $0x1710] sm:$0xf]  ;;  %v10842_v22 = vor.u32 %v12403_v44, %v10841_v40  ;;  %6677 = vmatpush.bf16.msra.mxu1 %v10586_v46  ;;  %v6438_v46 = vpop.f32.mrf.mxu2 }
 0x3f1   : > { %v12467_v19 = vld [vmem:[%s13176_s20 + $0x172c] sm:$0xf0] }
 0x3f2   : > { %v10297_v56 = vld [vmem:[%s13176_s20 + $0x10d0] sm:$0xf]  ;;  %v11098_v29 = vor.u32 %v12467_v19, %v11097_v45  ;;  %6690 = vmatpush.bf16.msra.mxu2 %v10842_v22 }
 0x3f3   : > { %v12267_v48 = vld [vmem:[%s13176_s20 + $0x10ec] sm:$0xf0] }
 0x3f4   : > { %v10553_v49 = vld [vmem:[%s13176_s20 + $0x12d0] sm:$0xf]  ;;  %v10298_v31 = vor.u32 %v12267_v48, %v10297_v56  ;;  %6703 = vmatpush.bf16.msra.mxu3 %v11098_v29  ;;  %v6451_v29 = vpop.f32.mrf.mxu3 }
 0x3f5   : > { %v12331_v50 = vld [vmem:[%s13176_s20 + $0x12ec] sm:$0xf0]  ;;  %v11759_v29 = vld [vmem:[%s13176_s20 + $0x114] sm:$0xf] }
 0x3f6   : > { %v10809_v51 = vld [vmem:[%s13176_s20 + $0x14d0] sm:$0xf]  ;;  %v10554_v13 = vor.u32 %v12331_v50, %v10553_v49  ;;  %6665 = vmatpush.bf16.msra.mxu0 %v10298_v31  ;;  %v11783_v31 = vld [vmem:[%s13176_s20 + $0x1d4] sm:$0xf] }
 0x3f7   : > { %v12395_v61 = vld [vmem:[%s13176_s20 + $0x14ec] sm:$0xf0] }
 0x3f8   : > { %v11065_v53 = vld [vmem:[%s13176_s20 + $0x16d0] sm:$0xf]  ;;  %v10810_v57 = vor.u32 %v12395_v61, %v10809_v51  ;;  %6678 = vmatpush.bf16.msra.mxu1 %v10554_v13  ;;  %v8379_v13 = vld [vmem:[%s13176_s20 + $0x1f0] sm:$0xf0] }
 0x3f9   : > { %v12459_v58 = vld [vmem:[%s13176_s20 + $0x16ec] sm:$0xf0] }
 0x3fa   : > { %v10265_v3 = vld [vmem:[%s13176_s20 + $0x1090] sm:$0xf]  ;;  %v11066_v63 = vor.u32 %v12459_v58, %v11065_v53  ;;  %6691 = vmatpush.bf16.msra.mxu2 %v10810_v57 }
 0x3fb   : > { %v12259_v62 = vld [vmem:[%s13176_s20 + $0x10ac] sm:$0xf0] }
 0x3fc   : > { %v10521_v59 = vld [vmem:[%s13176_s20 + $0x1290] sm:$0xf]  ;;  %v10266_v7 = vor.u32 %v12259_v62, %v10265_v3  ;;  %6704 = vmatpush.bf16.msra.mxu3 %v11066_v63  ;;  %v11847_v62 = vld [vmem:[%s13176_s20 + $0x3d4] sm:$0xf] }
 0x3fd   : > { %v12323_v1 = vld [vmem:[%s13176_s20 + $0x12ac] sm:$0xf0] }
 0x3fe   : > { %v10777_v4 = vld [vmem:[%s13176_s20 + $0x1490] sm:$0xf]  ;;  %v10522_v8 = vor.u32 %v12323_v1, %v10521_v59  ;;  %6666 = vmatpush.bf16.msra.mxu0 %v10266_v7  ;;  %v8635_v59 = vld [vmem:[%s13176_s20 + $0x3f0] sm:$0xf0] }
 0x3ff   : > { %v12387_v5 = vld [vmem:[%s13176_s20 + $0x14ac] sm:$0xf0]  ;;  %v8638_v14 = vor.u32 %v11847_v62, %v8635_v59 }
 0x400   : > { %v11033_v42 = vld [vmem:[%s13176_s20 + $0x1690] sm:$0xf]  ;;  %v10778_v9 = vor.u32 %v12387_v5, %v10777_v4  ;;  %6679 = vmatpush.bf16.msra.mxu1 %v10522_v8  ;;  %v8382_v5 = vor.u32 %v11783_v31, %v8379_v13  ;;  %v14528_v31 = vpop.f32.mrf.mxu1 }
 0x401   : > { %v12451_v2 = vld [vmem:[%s13176_s20 + $0x16ac] sm:$0xf0] }
 0x402   : > { %v10233_v43 = vld [vmem:[%s13176_s20 + $0x1050] sm:$0xf]  ;;  %v11034_v52 = vor.u32 %v12451_v2, %v11033_v42  ;;  %6692 = vmatpush.bf16.msra.mxu2 %v10778_v9  ;;  %v11775_v9 = vld [vmem:[%s13176_s20 + $0x194] sm:$0xf] }
 0x403   : > { %v12251_v21 = vld [vmem:[%s13176_s20 + $0x106c] sm:$0xf0] }
 0x404   : > { %v10489_v26 = vld [vmem:[%s13176_s20 + $0x1250] sm:$0xf]  ;;  %v10234_v37 = vor.u32 %v12251_v21, %v10233_v43  ;;  %6705 = vmatpush.bf16.msra.mxu3 %v11034_v52  ;;  %v8347_v43 = vld [vmem:[%s13176_s20 + $0x1b0] sm:$0xf0] }
 0x405   : > { %v12315_v30 = vld [vmem:[%s13176_s20 + $0x126c] sm:$0xf0]  ;;  %v11839_v21 = vld [vmem:[%s13176_s20 + $0x394] sm:$0xf] }
 0x406   : > { %v10745_v32 = vld [vmem:[%s13176_s20 + $0x1450] sm:$0xf]  ;;  %v10490_v40 = vor.u32 %v12315_v30, %v10489_v26  ;;  %6667 = vmatpush.bf16.msra.mxu0 %v10234_v37  ;;  %v8603_v26 = vld [vmem:[%s13176_s20 + $0x3b0] sm:$0xf0]  ;;  %v8350_v30 = vor.u32 %v11775_v9, %v8347_v43 }
 0x407   : > { %v12379_v23 = vld [vmem:[%s13176_s20 + $0x146c] sm:$0xf0] }
 0x408   : > { %v11001_v33 = vld [vmem:[%s13176_s20 + $0x1650] sm:$0xf]  ;;  %v10746_v44 = vor.u32 %v12379_v23, %v10745_v32  ;;  %6680 = vmatpush.bf16.msra.mxu1 %v10490_v40  ;;  %v11831_v40 = vld [vmem:[%s13176_s20 + $0x354] sm:$0xf] }
 0x409   : > { %v12443_v36 = vld [vmem:[%s13176_s20 + $0x166c] sm:$0xf0] }
 0x40a   : > { %v10201_v54 = vld [vmem:[%s13176_s20 + $0x1010] sm:$0xf]  ;;  %v11002_v22 = vor.u32 %v12443_v36, %v11001_v33  ;;  %6693 = vmatpush.bf16.msra.mxu2 %v10746_v44  ;;  %v8606_v36 = vor.u32 %v11839_v21, %v8603_v26  ;;  %v8571_v44 = vld [vmem:[%s13176_s20 + $0x370] sm:$0xf0] }
 0x40b   : > { %v12243_v34 = vld [vmem:[%s13176_s20 + $0x102c] sm:$0xf0] }
 0x40c   : > { %v10457_v45 = vld [vmem:[%s13176_s20 + $0x1210] sm:$0xf]  ;;  %v10202_v53 = vor.u32 %v12243_v34, %v10201_v54  ;;  %6706 = vmatpush.bf16.msra.mxu3 %v11002_v22  ;;  %v11767_v54 = vld [vmem:[%s13176_s20 + $0x154] sm:$0xf] }
 0x40d   : > { %v12307_v19 = vld [vmem:[%s13176_s20 + $0x122c] sm:$0xf0]  ;;  %v8315_v34 = vld [vmem:[%s13176_s20 + $0x170] sm:$0xf0] }
 0x40e   : > { %v10713_v27 = vld [vmem:[%s13176_s20 + $0x1410] sm:$0xf]  ;;  %v10458_v57 = vor.u32 %v12307_v19, %v10457_v45  ;;  %6668 = vmatpush.bf16.msra.mxu0 %v10202_v53  ;;  %v8539_v53 = vld [vmem:[%s13176_s20 + $0x330] sm:$0xf0] }
 0x40f   : > { %v12371_v56 = vld [vmem:[%s13176_s20 + $0x142c] sm:$0xf0] }
 0x410   : > { %v10969_v48 = vld [vmem:[%s13176_s20 + $0x1610] sm:$0xf]  ;;  %v10714_v3 = vor.u32 %v12371_v56, %v10713_v27  ;;  %6681 = vmatpush.bf16.msra.mxu1 %v10458_v57  ;;  %v8318_v27 = vor.u32 %v11767_v54, %v8315_v34  ;;  %v6477_v54 = vpop.f32.mrf.mxu1 }
 0x411   : > { %v12435_v49 = vld [vmem:[%s13176_s20 + $0x162c] sm:$0xf0]  ;;  %6669 = vmatmul.bf16.vlgmr.msra.gmra.mxu0 %v13435_v20  ;;  %v11903_v54 = vld [vmem:[%s13176_s20 + $0x594] sm:$0xf] }
 0x412   : > { %v11449_v50 = vld [vmem:[%s13176_s20 + $0x19d0] sm:$0xf]  ;;  %v10970_v63 = vor.u32 %v12435_v49, %v10969_v48  ;;  %6694 = vmatpush.bf16.msra.mxu2 %v10714_v3  ;;  %v8574_v48 = vor.u32 %v11831_v40, %v8571_v44 }
 0x413   : > { %v12555_v51 = vld [vmem:[%s13176_s20 + $0x19ec] sm:$0xf0]  ;;  %6682 = vmatmul.bf16.vlgmr.msra.gmra.mxu1 %v13442_v25 }
 0x414   : > { %v11705_v61 = vld [vmem:[%s13176_s20 + $0x1bd0] sm:$0xf]  ;;  %v11450_v1 = vor.u32 %v12555_v51, %v11449_v50  ;;  %6707 = vmatpush.bf16.msra.mxu3 %v10970_v63  ;;  %v8283_v50 = vld [vmem:[%s13176_s20 + $0x130] sm:$0xf0]  ;;  %v14524_v51 = vpop.f32.mrf.mxu0 }
 0x415   : > { %v12619_v58 = vld [vmem:[%s13176_s20 + $0x1bec] sm:$0xf0]  ;;  %6695 = vmatmul.bf16.vlgmr.msra.gmra.mxu2 %v13440_v24  ;;  %v8286_v57 = vor.u32 %v11759_v29, %v8283_v50 }
 0x416   : > { %v11706_v4 = vor.u32 %v12619_v58, %v11705_v61  ;;  %v11417_v42 = vld [vmem:[%s13176_s20 + $0x1990] sm:$0xf]  ;;  %6713 = vmatpush.bf16.msrb.mxu0 %v11450_v1  ;;  %6739 = vmatpush.bf16.msrb.mxu2 %v8382_v5  ;;  %v11823_v61 = vld [vmem:[%s13176_s20 + $0x314] sm:$0xf] }
 0x417   : > { %v12547_v2 = vld [vmem:[%s13176_s20 + $0x19ac] sm:$0xf0]  ;;  %6708 = vmatmul.bf16.vlgmr.msra.gmra.mxu3 %v13446_v28  ;;  %v8542_v63 = vor.u32 %v11823_v61, %v8539_v53  ;;  %v8251_v5 = vld [vmem:[%s13176_s20 + $0xf0] sm:$0xf0] }
 0x418   : > { %v11673_v7 = vld [vmem:[%s13176_s20 + $0x1b90] sm:$0xf]  ;;  %v11418_v15 = vor.u32 %v12547_v2, %v11417_v42  ;;  %6726 = vmatpush.bf16.msrb.mxu1 %v11706_v4  ;;  %6752 = vmatpush.bf16.msrb.mxu3 %v8638_v14  ;;  %v11751_v4 = vld [vmem:[%s13176_s20 + $0xd4] sm:$0xf]  ;;  %v6411_v14 = vadd.f32 %v14450_v47, %v14396_v11 }
 0x419   : > { %v12611_v8 = vld [vmem:[%s13176_s20 + $0x1bac] sm:$0xf0]  ;;  %v11815_v42 = vld [vmem:[%s13176_s20 + $0x2d4] sm:$0xf]  ;;  %v8254_v9 = vor.u32 %v11751_v4, %v8251_v5 }
 0x41a   : > { %v11674_v52 = vor.u32 %v12611_v8, %v11673_v7  ;;  %v11385_v32 = vld [vmem:[%s13176_s20 + $0x1950] sm:$0xf]  ;;  %6714 = vmatpush.bf16.msrb.mxu0 %v11418_v15  ;;  %6740 = vmatpush.bf16.msrb.mxu2 %v8350_v30  ;;  %v8507_v2 = vld [vmem:[%s13176_s20 + $0x2f0] sm:$0xf0]  ;;  %v6424_v34 = vadd.f32 %v14455_v55, %v6411_v14 }
 0x41b   : > { %v12539_v23 = vld [vmem:[%s13176_s20 + $0x196c] sm:$0xf0]  ;;  %v8510_v15 = vor.u32 %v11815_v42, %v8507_v2  ;;  %v11807_v11 = vld [vmem:[%s13176_s20 + $0x294] sm:$0xf] }
 0x41c   : > { %v11641_v33 = vld [vmem:[%s13176_s20 + $0x1b50] sm:$0xf]  ;;  %v11386_v45 = vor.u32 %v12539_v23, %v11385_v32  ;;  %6727 = vmatpush.bf16.msrb.mxu1 %v11674_v52  ;;  %6753 = vmatpush.bf16.msrb.mxu3 %v8606_v36  ;;  %v14543_v52 = vpop.f32.mrf.mxu2  ;;  %v11743_v32 = vld [vmem:[%s13176_s20 + $0x94] sm:$0xf]  ;;  %v6464_v36 = vpop.f32.mrf.mxu0  ;;  %v6437_v53 = vadd.f32 %v14465_v60, %v6424_v34 }
 0x41d   : > { %v12603_v37 = vld [vmem:[%s13176_s20 + $0x1b6c] sm:$0xf0]  ;;  %v8219_v23 = vld [vmem:[%s13176_s20 + $0xb0] sm:$0xf0] }
 0x41e   : > { %v11642_v19 = vor.u32 %v12603_v37, %v11641_v33  ;;  %v11353_v46 = vld [vmem:[%s13176_s20 + $0x1910] sm:$0xf]  ;;  %6715 = vmatpush.bf16.msrb.mxu0 %v11386_v45  ;;  %6741 = vmatpush.bf16.msrb.mxu2 %v8318_v27  ;;  %v14548_v33 = vpop.f32.mrf.mxu3  ;;  %v8475_v47 = vld [vmem:[%s13176_s20 + $0x2b0] sm:$0xf0]  ;;  %v8222_v44 = vor.u32 %v11743_v32, %v8219_v23 }
 0x41f   : > { %v12531_v22 = vld [vmem:[%s13176_s20 + $0x192c] sm:$0xf0]  ;;  %v8443_v55 = vld [vmem:[%s13176_s20 + $0x270] sm:$0xf0] }
 0x420   : > { %v11609_v56 = vld [vmem:[%s13176_s20 + $0x1b10] sm:$0xf]  ;;  %v11354_v58 = vor.u32 %v12531_v22, %v11353_v46  ;;  %6728 = vmatpush.bf16.msrb.mxu1 %v11642_v19  ;;  %6754 = vmatpush.bf16.msrb.mxu3 %v8574_v48  ;;  %v8478_v46 = vor.u32 %v11807_v11, %v8475_v47  ;;  %v8187_v48 = vld [vmem:[%s13176_s20 + $0x70] sm:$0xf0] }
 0x421   : > { %v12595_v49 = vld [vmem:[%s13176_s20 + $0x1b2c] sm:$0xf0]  ;;  %v8411_v4 = vld [vmem:[%s13176_s20 + $0x230] sm:$0xf0] }
 0x422   : > { %v11610_v13 = vor.u32 %v12595_v49, %v11609_v56  ;;  %v11321_v3 = vld [vmem:[%s13176_s20 + $0x18d0] sm:$0xf]  ;;  %6716 = vmatpush.bf16.msrb.mxu0 %v11354_v58  ;;  %6742 = vmatpush.bf16.msrb.mxu2 %v8286_v57  ;;  %v11735_v56 = vld [vmem:[%s13176_s20 + $0x54] sm:$0xf] }
 0x423   : > { %v12523_v62 = vld [vmem:[%s13176_s20 + $0x18ec] sm:$0xf0]  ;;  %v11799_v49 = vld [vmem:[%s13176_s20 + $0x254] sm:$0xf] }
 0x424   : > { %v11577_v59 = vld [vmem:[%s13176_s20 + $0x1ad0] sm:$0xf]  ;;  %v11322_v7 = vor.u32 %v12523_v62, %v11321_v3  ;;  %6729 = vmatpush.bf16.msrb.mxu1 %v11610_v13  ;;  %6755 = vmatpush.bf16.msrb.mxu3 %v8542_v63  ;;  %v8190_v13 = vor.u32 %v11735_v56, %v8187_v48  ;;  %v11727_v62 = vld [vmem:[%s13176_s20 + $0x14] sm:$0xf]  ;;  %v6490_v5 = vpop.f32.mrf.mxu2 }
 0x425   : > { %v12587_v1 = vld [vmem:[%s13176_s20 + $0x1aec] sm:$0xf0]  ;;  %v8155_v63 = vld [vmem:[%s13176_s20 + $0x30] sm:$0xf0] }
 0x426   : > { %v11578_v8 = vor.u32 %v12587_v1, %v11577_v59  ;;  %v11289_v43 = vld [vmem:[%s13176_s20 + $0x1890] sm:$0xf]  ;;  %6717 = vmatpush.bf16.msrb.mxu0 %v11322_v7  ;;  %6743 = vmatpush.bf16.msrb.mxu2 %v8254_v9  ;;  %v8446_v59 = vor.u32 %v11799_v49, %v8443_v55  ;;  %v11791_v1 = vld [vmem:[%s13176_s20 + $0x214] sm:$0xf]  ;;  %v6503_v7 = vpop.f32.mrf.mxu3 }
 0x427   : > { %v12515_v21 = vld [vmem:[%s13176_s20 + $0x18ac] sm:$0xf0]  ;;  %v11911_v60 = vld [vmem:[%s13176_s20 + $0x5d4] sm:$0xf]  ;;  %v8414_v23 = vor.u32 %v11791_v1, %v8411_v4  ;;  %v6514_v7 = vpop.f32.mrf.mxu0 }
 0x428   : > { %v11545_v26 = vld [vmem:[%s13176_s20 + $0x1a90] sm:$0xf]  ;;  %v11290_v37 = vor.u32 %v12515_v21, %v11289_v43  ;;  %6730 = vmatpush.bf16.msrb.mxu1 %v11578_v8  ;;  %6756 = vmatpush.bf16.msrb.mxu3 %v8510_v15  ;;  %v8891_v42 = vld [vmem:[%s13176_s20 + $0x5f0] sm:$0xf0]  ;;  %v6450_v21 = vadd.f32 %v14470_v6, %v6437_v53  ;;  %v8158_v15 = vor.u32 %v11727_v62, %v8155_v63 }
 0x429   : > { %v12579_v30 = vld [vmem:[%s13176_s20 + $0x1aac] sm:$0xf0]  ;;  %v11975_v2 = vld [vmem:[%s13176_s20 + $0x7d4] sm:$0xf]  ;;  %v8894_v11 = vor.u32 %v11911_v60, %v8891_v42 }
 0x42a   : > { %v11546_v40 = vor.u32 %v12579_v30, %v11545_v26  ;;  %v11257_v45 = vld [vmem:[%s13176_s20 + $0x1850] sm:$0xf]  ;;  %6718 = vmatpush.bf16.msrb.mxu0 %v11290_v37  ;;  %6744 = vmatpush.bf16.msrb.mxu2 %v8222_v44  ;;  %v9147_v8 = vld [vmem:[%s13176_s20 + $0x7f0] sm:$0xf0]  ;;  %v6463_v47 = vadd.f32 %v14524_v51, %v6450_v21 }
 0x42b   : > { %v12507_v19 = vld [vmem:[%s13176_s20 + $0x186c] sm:$0xf0]  ;;  %v12039_v9 = vld [vmem:[%s13176_s20 + $0x9d4] sm:$0xf]  ;;  %v9150_v36 = vor.u32 %v11975_v2, %v9147_v8 }
 0x42c   : > { %v11513_v27 = vld [vmem:[%s13176_s20 + $0x1a50] sm:$0xf]  ;;  %v11258_v29 = vor.u32 %v12507_v19, %v11257_v45  ;;  %6731 = vmatpush.bf16.msrb.mxu1 %v11546_v40  ;;  %6757 = vmatpush.bf16.msrb.mxu3 %v8478_v46  ;;  %v9403_v43 = vld [vmem:[%s13176_s20 + $0x9f0] sm:$0xf0] }
 0x42d   : > { %v12571_v22 = vld [vmem:[%s13176_s20 + $0x1a6c] sm:$0xf0]  ;;  %v12103_v30 = vld [vmem:[%s13176_s20 + $0xbd4] sm:$0xf]  ;;  %v9406_v37 = vor.u32 %v12039_v9, %v9403_v43  ;;  %v6527_v43 = vpop.f32.mrf.mxu1 }
 0x42e   : > { %v11225_v50 = vld [vmem:[%s13176_s20 + $0x1810] sm:$0xf]  ;;  %v11514_v58 = vor.u32 %v12571_v22, %v11513_v27  ;;  %6719 = vmatpush.bf16.msrb.mxu0 %v11258_v29  ;;  %6745 = vmatpush.bf16.msrb.mxu2 %v8190_v13  ;;  %v9659_v32 = vld [vmem:[%s13176_s20 + $0xbf0] sm:$0xf0]  ;;  %v6476_v22 = vadd.f32 %v14528_v31, %v6463_v47 }
 0x42f   : > { %v12499_v61 = vld [vmem:[%s13176_s20 + $0x182c] sm:$0xf0]  ;;  %v8859_v6 = vld [vmem:[%s13176_s20 + $0x5b0] sm:$0xf0]  ;;  %v9662_v40 = vor.u32 %v12103_v30, %v9659_v32 }
 0x430   : > { %v11481_v57 = vld [vmem:[%s13176_s20 + $0x1a10] sm:$0xf]  ;;  %v11226_v14 = vor.u32 %v12499_v61, %v11225_v50  ;;  %6732 = vmatpush.bf16.msrb.mxu1 %v11514_v58  ;;  %6758 = vmatpush.bf16.msrb.mxu3 %v8446_v59  ;;  %v11967_v34 = vld [vmem:[%s13176_s20 + $0x794] sm:$0xf]  ;;  %v8862_v51 = vor.u32 %v11903_v54, %v8859_v6  ;;  %v6489_v31 = vadd.f32 %v14543_v52, %v6476_v22 }
 0x431   : > { %v12563_v3 = vld [vmem:[%s13176_s20 + $0x1a2c] sm:$0xf0]  ;;  %v9115_v44 = vld [vmem:[%s13176_s20 + $0x7b0] sm:$0xf0] }
 0x432   : > { %v11482_v26 = vor.u32 %v12563_v3, %v11481_v57  ;;  %6720 = vmatpush.bf16.msrb.mxu0 %v11226_v14  ;;  %v12031_v45 = vld [vmem:[%s13176_s20 + $0x994] sm:$0xf]  ;;  %6746 = vmatpush.bf16.msrb.mxu2 %v8158_v15  ;;  %v9118_v56 = vor.u32 %v11967_v34, %v9115_v44  ;;  %v6502_v2 = vadd.f32 %v14548_v33, %v6489_v31 }
 0x433   : > { %v9371_v19 = vld [vmem:[%s13176_s20 + $0x9b0] sm:$0xf0] }
 0x434   : > { %6733 = vmatpush.bf16.msrb.mxu1 %v11482_v26  ;;  %v12095_v27 = vld [vmem:[%s13176_s20 + $0xb94] sm:$0xf]  ;;  %6759 = vmatpush.bf16.msrb.mxu3 %v8414_v23  ;;  %v9374_v48 = vor.u32 %v12031_v45, %v9371_v19  ;;  %v6515_v21 = vadd.f32 %v6514_v7, %v6502_v2 }
 0x435   : > { %v9627_v46 = vld [vmem:[%s13176_s20 + $0xbb0] sm:$0xf0]  ;;  %6721 = vmatmul.bf16.vlgmr.msrb.gmra.mxu0 %v13513_v12  ;;  %6747 = vmatmul.bf16.vlgmr.msrb.gmra.mxu2 %v13292_v10  ;;  %v6529_v31 = vpop.f32.mrf.mxu1 }
 0x436   : > { %6765 = vmatpush.bf16.msra.mxu0 %v8894_v11  ;;  %6791 = vmatpush.bf16.msra.mxu2 %v9406_v37  ;;  %v11895_v49 = vld [vmem:[%s13176_s20 + $0x554] sm:$0xf]  ;;  %v9630_v50 = vor.u32 %v12095_v27, %v9627_v46  ;;  %v6528_v34 = vadd.f32 %v6527_v43, %v6515_v21 }
 0x437   : > { %v8827_v55 = vld [vmem:[%s13176_s20 + $0x570] sm:$0xf0]  ;;  %6734 = vmatmul.bf16.vlgmr.msrb.gmra.mxu1 %v13518_v16  ;;  %6760 = vmatmul.bf16.vlgmr.msrb.gmra.mxu3 %v13301_v18 }
 0x438   : > { %6778 = vmatpush.bf16.msra.mxu1 %v9150_v36  ;;  %v11959_v29 = vld [vmem:[%s13176_s20 + $0x754] sm:$0xf]  ;;  %6804 = vmatpush.bf16.msra.mxu3 %v9662_v40  ;;  %v8830_v3 = vor.u32 %v11895_v49, %v8827_v55  ;;  %v6553_v55 = vpop.f32.mrf.mxu3 }
 0x439   : > { %v9083_v61 = vld [vmem:[%s13176_s20 + $0x770] sm:$0xf0] }
 0x43a   : > { %v12023_v53 = vld [vmem:[%s13176_s20 + $0x954] sm:$0xf]  ;;  %6766 = vmatpush.bf16.msra.mxu0 %v8862_v51  ;;  %6792 = vmatpush.bf16.msra.mxu2 %v9374_v48  ;;  %v9086_v62 = vor.u32 %v11959_v29, %v9083_v61  ;;  %v6540_v51 = vpop.f32.mrf.mxu2  ;;  %v6516_v61 = vpop.f32.mrf.mxu0 }
 0x43b   : > { %v9339_v58 = vld [vmem:[%s13176_s20 + $0x970] sm:$0xf0]  ;;  %v6541_v49 = vadd.f32 %v6540_v51, %v6528_v34 }
 0x43c   : > { %v12087_v13 = vld [vmem:[%s13176_s20 + $0xb54] sm:$0xf]  ;;  %6779 = vmatpush.bf16.msra.mxu1 %v9118_v56  ;;  %v9342_v59 = vor.u32 %v12023_v53, %v9339_v58  ;;  %6805 = vmatpush.bf16.msra.mxu3 %v9630_v50 }
 0x43d   : > { %v9595_v57 = vld [vmem:[%s13176_s20 + $0xb70] sm:$0xf0] }
 0x43e   : > { %v11887_v52 = vld [vmem:[%s13176_s20 + $0x514] sm:$0xf]  ;;  %v9598_v4 = vor.u32 %v12087_v13, %v9595_v57  ;;  %6767 = vmatpush.bf16.msra.mxu0 %v8830_v3  ;;  %6793 = vmatpush.bf16.msra.mxu2 %v9342_v59  ;;  %v6554_v13 = vadd.f32 %v6553_v55, %v6541_v49 }
 0x43f   : > { %v8795_v63 = vld [vmem:[%s13176_s20 + $0x530] sm:$0xf0] }
 0x440   : > { %v11951_v1 = vld [vmem:[%s13176_s20 + $0x714] sm:$0xf]  ;;  %v8798_v9 = vor.u32 %v11887_v52, %v8795_v63  ;;  %6780 = vmatpush.bf16.msra.mxu1 %v9086_v62  ;;  %6806 = vmatpush.bf16.msra.mxu3 %v9598_v4 }
 0x441   : > { %v9051_v5 = vld [vmem:[%s13176_s20 + $0x730] sm:$0xf0] }
 0x442   : > { %v12015_v60 = vld [vmem:[%s13176_s20 + $0x914] sm:$0xf]  ;;  %v9054_v26 = vor.u32 %v11951_v1, %v9051_v5  ;;  %6768 = vmatpush.bf16.msra.mxu0 %v8798_v9 }
 0x443   : > { %v9307_v42 = vld [vmem:[%s13176_s20 + $0x930] sm:$0xf0] }
 0x444   : > { %v12079_v14 = vld [vmem:[%s13176_s20 + $0xb14] sm:$0xf]  ;;  %v9310_v15 = vor.u32 %v12015_v60, %v9307_v42  ;;  %6781 = vmatpush.bf16.msra.mxu1 %v9054_v26 }
 0x445   : > { %v9563_v8 = vld [vmem:[%s13176_s20 + $0xb30] sm:$0xf0] }
 0x446   : > { %v11879_v30 = vld [vmem:[%s13176_s20 + $0x4d4] sm:$0xf]  ;;  %v9566_v23 = vor.u32 %v12079_v14, %v9563_v8  ;;  %6794 = vmatpush.bf16.msra.mxu2 %v9310_v15 }
 0x447   : > { %v8763_v32 = vld [vmem:[%s13176_s20 + $0x4f0] sm:$0xf0] }
 0x448   : > { %v11943_v33 = vld [vmem:[%s13176_s20 + $0x6d4] sm:$0xf]  ;;  %v8766_v6 = vor.u32 %v11879_v30, %v8763_v32  ;;  %6807 = vmatpush.bf16.msra.mxu3 %v9566_v23 }
 0x449   : > { %v9019_v11 = vld [vmem:[%s13176_s20 + $0x6f0] sm:$0xf0] }
 0x44a   : > { %v12007_v47 = vld [vmem:[%s13176_s20 + $0x8d4] sm:$0xf]  ;;  %v9022_v40 = vor.u32 %v11943_v33, %v9019_v11  ;;  %6769 = vmatpush.bf16.msra.mxu0 %v8766_v6  ;;  %v6542_v11 = vpop.f32.mrf.mxu2 }
 0x44b   : > { %v9275_v36 = vld [vmem:[%s13176_s20 + $0x8f0] sm:$0xf0] }
 0x44c   : > { %v12071_v37 = vld [vmem:[%s13176_s20 + $0xad4] sm:$0xf]  ;;  %v9278_v44 = vor.u32 %v12007_v47, %v9275_v36  ;;  %6782 = vmatpush.bf16.msra.mxu1 %v9022_v40 }
 0x44d   : > { %v9531_v54 = vld [vmem:[%s13176_s20 + $0xaf0] sm:$0xf0] }
 0x44e   : > { %v11871_v45 = vld [vmem:[%s13176_s20 + $0x494] sm:$0xf]  ;;  %v9534_v46 = vor.u32 %v12071_v37, %v9531_v54  ;;  %6795 = vmatpush.bf16.msra.mxu2 %v9278_v44  ;;  %v6555_v54 = vpop.f32.mrf.mxu3 }
 0x44f   : > { %v8731_v19 = vld [vmem:[%s13176_s20 + $0x4b0] sm:$0xf0] }
 0x450   : > { %v11935_v27 = vld [vmem:[%s13176_s20 + $0x694] sm:$0xf]  ;;  %v8734_v58 = vor.u32 %v11871_v45, %v8731_v19  ;;  %6808 = vmatpush.bf16.msra.mxu3 %v9534_v46 }
 0x451   : > { %v8987_v22 = vld [vmem:[%s13176_s20 + $0x6b0] sm:$0xf0] }
 0x452   : > { %v11999_v56 = vld [vmem:[%s13176_s20 + $0x894] sm:$0xf]  ;;  %v8990_v57 = vor.u32 %v11935_v27, %v8987_v22  ;;  %6770 = vmatpush.bf16.msra.mxu0 %v8734_v58 }
 0x453   : > { %v9243_v48 = vld [vmem:[%s13176_s20 + $0x8b0] sm:$0xf0] }
 0x454   : > { %v12063_v29 = vld [vmem:[%s13176_s20 + $0xa94] sm:$0xf]  ;;  %v9246_v3 = vor.u32 %v11999_v56, %v9243_v48  ;;  %6783 = vmatpush.bf16.msra.mxu1 %v8990_v57 }
 0x455   : > { %v9499_v50 = vld [vmem:[%s13176_s20 + $0xab0] sm:$0xf0] }
 0x456   : > { %v420_v53 = vld [vmem:[#allocation2 + $0x10] sm:$0xff]  ;;  %v9502_v63 = vor.u32 %v12063_v29, %v9499_v50  ;;  %6796 = vmatpush.bf16.msra.mxu2 %v9246_v3 }
 0x457   : > { %v11863_v62 = vld [vmem:[%s13176_s20 + $0x454] sm:$0xf]  ;;  %v7288_v60 = vadd.f32 %v6554_v13, %v420_v53 }
 0x458   : > { %v8699_v59 = vld [vmem:[%s13176_s20 + $0x470] sm:$0xf0]  ;;  %6809 = vmatpush.bf16.msra.mxu3 %v9502_v63 }
 0x459   : > { %v11927_v52 = vld [vmem:[%s13176_s20 + $0x654] sm:$0xf]  ;;  %v8702_v7 = vor.u32 %v11863_v62, %v8699_v59  ;;  %7296 = vst [vmem:[#allocation2 + $0x10] sm:$0xff] %v7288_v60 }
 0x45a   : > { %v8955_v1 = vld [vmem:[%s13176_s20 + $0x670] sm:$0xf0] }
 0x45b   : > { %v11991_v4 = vld [vmem:[%s13176_s20 + $0x854] sm:$0xf]  ;;  %v8958_v43 = vor.u32 %v11927_v52, %v8955_v1  ;;  %6771 = vmatpush.bf16.msra.mxu0 %v8702_v7 }
 0x45c   : > { %v9211_v5 = vld [vmem:[%s13176_s20 + $0x870] sm:$0xf0] }
 0x45d   : > { %v12055_v42 = vld [vmem:[%s13176_s20 + $0xa54] sm:$0xf]  ;;  %v9214_v21 = vor.u32 %v11991_v4, %v9211_v5  ;;  %6784 = vmatpush.bf16.msra.mxu1 %v8958_v43 }
 0x45e   : > { %v9467_v2 = vld [vmem:[%s13176_s20 + $0xa70] sm:$0xf0] }
 0x45f   : > { %v11855_v14 = vld [vmem:[%s13176_s20 + $0x414] sm:$0xf]  ;;  %v9470_v30 = vor.u32 %v12055_v42, %v9467_v2  ;;  %6797 = vmatpush.bf16.msra.mxu2 %v9214_v21 }
 0x460   : > { %v8667_v8 = vld [vmem:[%s13176_s20 + $0x430] sm:$0xf0] }
 0x461   : > { %v11919_v9 = vld [vmem:[%s13176_s20 + $0x614] sm:$0xf]  ;;  %v8670_v6 = vor.u32 %v11855_v14, %v8667_v8  ;;  %6810 = vmatpush.bf16.msra.mxu3 %v9470_v30 }
 0x462   : > { %v8923_v26 = vld [vmem:[%s13176_s20 + $0x630] sm:$0xf0] }
 0x463   : > { %v11983_v15 = vld [vmem:[%s13176_s20 + $0x814] sm:$0xf]  ;;  %v8926_v45 = vor.u32 %v11919_v9, %v8923_v26  ;;  %6772 = vmatpush.bf16.msra.mxu0 %v8670_v6 }
 0x464   : > { %v9179_v32 = vld [vmem:[%s13176_s20 + $0x830] sm:$0xf0] }
 0x465   : > { %v12047_v33 = vld [vmem:[%s13176_s20 + $0xa14] sm:$0xf]  ;;  %v9182_v19 = vor.u32 %v11983_v15, %v9179_v32  ;;  %6785 = vmatpush.bf16.msra.mxu1 %v8926_v45 }
 0x466   : > { %v9435_v23 = vld [vmem:[%s13176_s20 + $0xa30] sm:$0xf0]  ;;  %6773 = vmatmul.bf16.vlgmr.msra.gmra.mxu0 %v13283_v0 }
 0x467   : > { %v12167_v47 = vld [vmem:[%s13176_s20 + $0xdd4] sm:$0xf]  ;;  %v9438_v51 = vor.u32 %v12047_v33, %v9435_v23  ;;  %6798 = vmatpush.bf16.msra.mxu2 %v9182_v19 }
 0x468   : > { %v9915_v36 = vld [vmem:[%s13176_s20 + $0xdf0] sm:$0xf0]  ;;  %6786 = vmatmul.bf16.vlgmr.msra.gmra.mxu1 %v13299_v17 }
 0x469   : > { %v12231_v37 = vld [vmem:[%s13176_s20 + $0xfd4] sm:$0xf]  ;;  %v9918_v22 = vor.u32 %v12167_v47, %v9915_v36  ;;  %6811 = vmatpush.bf16.msra.mxu3 %v9438_v51  ;;  %v6566_v47 = vpop.f32.mrf.mxu0 }
 0x46a   : > { %v10171_v34 = vld [vmem:[%s13176_s20 + $0xff0] sm:$0xf0]  ;;  %6799 = vmatmul.bf16.vlgmr.msra.gmra.mxu2 %v13362_v38 }
 0x46b   : > { %v12295_v40 = vld [vmem:[%s13176_s20 + $0x11d4] sm:$0xf]  ;;  %v10174_v56 = vor.u32 %v12231_v37, %v10171_v34  ;;  %6817 = vmatpush.bf16.msrb.mxu0 %v9918_v22 }
 0x46c   : > { %v10427_v44 = vld [vmem:[%s13176_s20 + $0x11f0] sm:$0xf0]  ;;  %6812 = vmatmul.bf16.vlgmr.msra.gmra.mxu3 %v13366_v41 }
 0x46d   : > { %v12359_v27 = vld [vmem:[%s13176_s20 + $0x13d4] sm:$0xf]  ;;  %v10430_v48 = vor.u32 %v12295_v40, %v10427_v44  ;;  %6830 = vmatpush.bf16.msrb.mxu1 %v10174_v56  ;;  %v6579_v40 = vpop.f32.mrf.mxu1 }
 0x46e   : > { %v10683_v46 = vld [vmem:[%s13176_s20 + $0x13f0] sm:$0xf0] }
 0x46f   : > { %v12159_v49 = vld [vmem:[%s13176_s20 + $0xd94] sm:$0xf]  ;;  %v10686_v50 = vor.u32 %v12359_v27, %v10683_v46  ;;  %6843 = vmatpush.bf16.msrb.mxu2 %v10430_v48  ;;  %v6580_v46 = vadd.f32 %v6579_v40, %v6566_v47 }
 0x470   : > { %v9883_v55 = vld [vmem:[%s13176_s20 + $0xdb0] sm:$0xf0] }
 0x471   : > { %v12223_v29 = vld [vmem:[%s13176_s20 + $0xf94] sm:$0xf]  ;;  %v9886_v57 = vor.u32 %v12159_v49, %v9883_v55  ;;  %6856 = vmatpush.bf16.msrb.mxu3 %v10686_v50 }
 0x472   : > { %v10139_v61 = vld [vmem:[%s13176_s20 + $0xfb0] sm:$0xf0] }
 0x473   : > { %v12287_v53 = vld [vmem:[%s13176_s20 + $0x1194] sm:$0xf]  ;;  %v10142_v3 = vor.u32 %v12223_v29, %v10139_v61  ;;  %6818 = vmatpush.bf16.msrb.mxu0 %v9886_v57  ;;  %v6592_v61 = vpop.f32.mrf.mxu2 }
 0x474   : > { %v10395_v58 = vld [vmem:[%s13176_s20 + $0x11b0] sm:$0xf0]  ;;  %v6593_v57 = vadd.f32 %v6592_v61, %v6580_v46 }
 0x475   : > { %v12351_v31 = vld [vmem:[%s13176_s20 + $0x1394] sm:$0xf]  ;;  %v10398_v62 = vor.u32 %v12287_v53, %v10395_v58  ;;  %6831 = vmatpush.bf16.msrb.mxu1 %v10142_v3  ;;  %v6605_v3 = vpop.f32.mrf.mxu3 }
 0x476   : > { %v10651_v13 = vld [vmem:[%s13176_s20 + $0x13b0] sm:$0xf0] }
 0x477   : > { %v12151_v59 = vld [vmem:[%s13176_s20 + $0xd54] sm:$0xf]  ;;  %v10654_v1 = vor.u32 %v12351_v31, %v10651_v13  ;;  %6844 = vmatpush.bf16.msrb.mxu2 %v10398_v62 }
 0x478   : > { %v9851_v52 = vld [vmem:[%s13176_s20 + $0xd70] sm:$0xf0] }
 0x479   : > { %v12215_v63 = vld [vmem:[%s13176_s20 + $0xf54] sm:$0xf]  ;;  %v9854_v7 = vor.u32 %v12151_v59, %v9851_v52  ;;  %6857 = vmatpush.bf16.msrb.mxu3 %v10654_v1  ;;  %v6568_v1 = vpop.f32.mrf.mxu0 }
 0x47a   : > { %v10107_v4 = vld [vmem:[%s13176_s20 + $0xf70] sm:$0xf0] }
 0x47b   : > { %v12279_v5 = vld [vmem:[%s13176_s20 + $0x1154] sm:$0xf]  ;;  %v10110_v14 = vor.u32 %v12215_v63, %v10107_v4  ;;  %6819 = vmatpush.bf16.msrb.mxu0 %v9854_v7  ;;  %v14695_v63 = vadd.f32 %v6605_v3, %v6593_v57  ;;  %v6581_v7 = vpop.f32.mrf.mxu1 }
 0x47c   : > { %v10363_v60 = vld [vmem:[%s13176_s20 + $0x1170] sm:$0xf0] }
 0x47d   : > { %v12343_v42 = vld [vmem:[%s13176_s20 + $0x1354] sm:$0xf]  ;;  %v10366_v8 = vor.u32 %v12279_v5, %v10363_v60  ;;  %6832 = vmatpush.bf16.msrb.mxu1 %v10110_v14 }
 0x47e   : > { %v10619_v2 = vld [vmem:[%s13176_s20 + $0x1370] sm:$0xf0] }
 0x47f   : > { %v12143_v9 = vld [vmem:[%s13176_s20 + $0xd14] sm:$0xf]  ;;  %v10622_v26 = vor.u32 %v12343_v42, %v10619_v2  ;;  %6845 = vmatpush.bf16.msrb.mxu2 %v10366_v8 }
 0x480   : > { %v9819_v43 = vld [vmem:[%s13176_s20 + $0xd30] sm:$0xf0] }
 0x481   : > { %v12207_v21 = vld [vmem:[%s13176_s20 + $0xf14] sm:$0xf]  ;;  %v9822_v11 = vor.u32 %v12143_v9, %v9819_v43  ;;  %6858 = vmatpush.bf16.msrb.mxu3 %v10622_v26 }
 0x482   : > { %v10075_v15 = vld [vmem:[%s13176_s20 + $0xf30] sm:$0xf0] }
 0x483   : > { %v12271_v30 = vld [vmem:[%s13176_s20 + $0x1114] sm:$0xf]  ;;  %v10078_v36 = vor.u32 %v12207_v21, %v10075_v15  ;;  %6820 = vmatpush.bf16.msrb.mxu0 %v9822_v11 }
 0x484   : > { %v10331_v32 = vld [vmem:[%s13176_s20 + $0x1130] sm:$0xf0] }
 0x485   : > { %v12335_v33 = vld [vmem:[%s13176_s20 + $0x1314] sm:$0xf]  ;;  %v10334_v37 = vor.u32 %v12271_v30, %v10331_v32  ;;  %6833 = vmatpush.bf16.msrb.mxu1 %v10078_v36 }
 0x486   : > { %v10587_v23 = vld [vmem:[%s13176_s20 + $0x1330] sm:$0xf0] }
 0x487   : > { %v12135_v54 = vld [vmem:[%s13176_s20 + $0xcd4] sm:$0xf]  ;;  %v10590_v44 = vor.u32 %v12335_v33, %v10587_v23  ;;  %6846 = vmatpush.bf16.msrb.mxu2 %v10334_v37  ;;  %v6594_v37 = vpop.f32.mrf.mxu2 }
 0x488   : > { %v9787_v6 = vld [vmem:[%s13176_s20 + $0xcf0] sm:$0xf0] }
 0x489   : > { %v12199_v34 = vld [vmem:[%s13176_s20 + $0xed4] sm:$0xf]  ;;  %v9790_v56 = vor.u32 %v12135_v54, %v9787_v6  ;;  %6859 = vmatpush.bf16.msrb.mxu3 %v10590_v44  ;;  %v6607_v44 = vpop.f32.mrf.mxu3 }
 0x48a   : > { %v10043_v45 = vld [vmem:[%s13176_s20 + $0xef0] sm:$0xf0] }
 0x48b   : > { %v12263_v19 = vld [vmem:[%s13176_s20 + $0x10d4] sm:$0xf]  ;;  %v10046_v48 = vor.u32 %v12199_v34, %v10043_v45  ;;  %6821 = vmatpush.bf16.msrb.mxu0 %v9790_v56 }
 0x48c   : > { %v10299_v27 = vld [vmem:[%s13176_s20 + $0x10f0] sm:$0xf0] }
 0x48d   : > { %v12327_v51 = vld [vmem:[%s13176_s20 + $0x12d4] sm:$0xf]  ;;  %v10302_v49 = vor.u32 %v12263_v19, %v10299_v27  ;;  %6834 = vmatpush.bf16.msrb.mxu1 %v10046_v48 }
 0x48e   : > { %v10555_v22 = vld [vmem:[%s13176_s20 + $0x12f0] sm:$0xf0] }
 0x48f   : > { %v12127_v55 = vld [vmem:[%s13176_s20 + $0xc94] sm:$0xf]  ;;  %v10558_v53 = vor.u32 %v12327_v51, %v10555_v22  ;;  %6847 = vmatpush.bf16.msrb.mxu2 %v10302_v49 }
 0x490   : > { %v9755_v29 = vld [vmem:[%s13176_s20 + $0xcb0] sm:$0xf0] }
 0x491   : > { %v12191_v50 = vld [vmem:[%s13176_s20 + $0xe94] sm:$0xf]  ;;  %v9758_v52 = vor.u32 %v12127_v55, %v9755_v29  ;;  %6860 = vmatpush.bf16.msrb.mxu3 %v10558_v53 }
 0x492   : > { %v10011_v58 = vld [vmem:[%s13176_s20 + $0xeb0] sm:$0xf0] }
 0x493   : > { %v12255_v31 = vld [vmem:[%s13176_s20 + $0x1094] sm:$0xf]  ;;  %v10014_v4 = vor.u32 %v12191_v50, %v10011_v58  ;;  %6822 = vmatpush.bf16.msrb.mxu0 %v9758_v52 }
 0x494   : > { %v10267_v13 = vld [vmem:[%s13176_s20 + $0x10b0] sm:$0xf0] }
 0x495   : > { %v12319_v62 = vld [vmem:[%s13176_s20 + $0x1294] sm:$0xf]  ;;  %v10270_v5 = vor.u32 %v12255_v31, %v10267_v13  ;;  %6835 = vmatpush.bf16.msrb.mxu1 %v10014_v4 }
 0x496   : > { %v10523_v59 = vld [vmem:[%s13176_s20 + $0x12b0] sm:$0xf0] }
 0x497   : > { %v12119_v60 = vld [vmem:[%s13176_s20 + $0xc54] sm:$0xf]  ;;  %v10526_v14 = vor.u32 %v12319_v62, %v10523_v59  ;;  %6848 = vmatpush.bf16.msrb.mxu2 %v10270_v5 }
 0x498   : > { %v9723_v42 = vld [vmem:[%s13176_s20 + $0xc70] sm:$0xf0] }
 0x499   : > { %v12183_v2 = vld [vmem:[%s13176_s20 + $0xe54] sm:$0xf]  ;;  %v9726_v15 = vor.u32 %v12119_v60, %v9723_v42  ;;  %6861 = vmatpush.bf16.msrb.mxu3 %v10526_v14 }
 0x49a   : > { %v9979_v8 = vld [vmem:[%s13176_s20 + $0xe70] sm:$0xf0] }
 0x49b   : > { %v12247_v9 = vld [vmem:[%s13176_s20 + $0x1054] sm:$0xf]  ;;  %v9982_v33 = vor.u32 %v12183_v2, %v9979_v8  ;;  %6823 = vmatpush.bf16.msrb.mxu0 %v9726_v15 }
 0x49c   : > { %v10235_v43 = vld [vmem:[%s13176_s20 + $0x1070] sm:$0xf0] }
 0x49d   : > { %v12311_v21 = vld [vmem:[%s13176_s20 + $0x1254] sm:$0xf]  ;;  %v10238_v23 = vor.u32 %v12247_v9, %v10235_v43  ;;  %6836 = vmatpush.bf16.msrb.mxu1 %v9982_v33 }
 0x49e   : > { %v10491_v26 = vld [vmem:[%s13176_s20 + $0x1270] sm:$0xf0] }
 0x49f   : > { %v12111_v30 = vld [vmem:[%s13176_s20 + $0xc14] sm:$0xf]  ;;  %v10494_v54 = vor.u32 %v12311_v21, %v10491_v26  ;;  %6849 = vmatpush.bf16.msrb.mxu2 %v10238_v23 }
 0x4a0   : > { %v9691_v32 = vld [vmem:[%s13176_s20 + $0xc30] sm:$0xf0] }
 0x4a1   : > { %v12175_v11 = vld [vmem:[%s13176_s20 + $0xe14] sm:$0xf]  ;;  %v9694_v46 = vor.u32 %v12111_v30, %v9691_v32  ;;  %6862 = vmatpush.bf16.msrb.mxu3 %v10494_v54 }
 0x4a2   : > { %v9947_v47 = vld [vmem:[%s13176_s20 + $0xe30] sm:$0xf0] }
 0x4a3   : > { %v12239_v36 = vld [vmem:[%s13176_s20 + $0x1014] sm:$0xf]  ;;  %v9950_v48 = vor.u32 %v12175_v11, %v9947_v47  ;;  %6824 = vmatpush.bf16.msrb.mxu0 %v9694_v46 }
 0x4a4   : > { %v10203_v6 = vld [vmem:[%s13176_s20 + $0x1030] sm:$0xf0] }
 0x4a5   : > { %v12303_v34 = vld [vmem:[%s13176_s20 + $0x1214] sm:$0xf]  ;;  %v10206_v49 = vor.u32 %v12239_v36, %v10203_v6  ;;  %6837 = vmatpush.bf16.msrb.mxu1 %v9950_v48 }
 0x4a6   : > { %v10459_v40 = vld [vmem:[%s13176_s20 + $0x1230] sm:$0xf0]  ;;  %6825 = vmatmul.bf16.vlgmr.msrb.gmra.mxu0 %v13358_v35 }
 0x4a7   : > { %v12423_v45 = vld [vmem:[%s13176_s20 + $0x15d4] sm:$0xf]  ;;  %v10462_v50 = vor.u32 %v12303_v34, %v10459_v40  ;;  %6850 = vmatpush.bf16.msrb.mxu2 %v10206_v49 }
 0x4a8   : > { %v10939_v19 = vld [vmem:[%s13176_s20 + $0x15f0] sm:$0xf0]  ;;  %6838 = vmatmul.bf16.vlgmr.msrb.gmra.mxu1 %v13364_v39 }
 0x4a9   : > { %v12487_v27 = vld [vmem:[%s13176_s20 + $0x17d4] sm:$0xf]  ;;  %v10942_v61 = vor.u32 %v12423_v45, %v10939_v19  ;;  %6863 = vmatpush.bf16.msrb.mxu3 %v10462_v50  ;;  %v14749_v45 = vpop.f32.mrf.mxu0 }
 0x4aa   : > { %v11195_v51 = vld [vmem:[%s13176_s20 + $0x17f0] sm:$0xf0]  ;;  %6851 = vmatmul.bf16.vlgmr.msrb.gmra.mxu2 %v13435_v20 }
 0x4ab   : > { %v12551_v22 = vld [vmem:[%s13176_s20 + $0x19d4] sm:$0xf]  ;;  %v11198_v53 = vor.u32 %v12487_v27, %v11195_v51  ;;  %6869 = vmatpush.bf16.msra.mxu0 %v10942_v61 }
 0x4ac   : > { %v11451_v56 = vld [vmem:[%s13176_s20 + $0x19f0] sm:$0xf0]  ;;  %6864 = vmatmul.bf16.vlgmr.msrb.gmra.mxu3 %v13442_v25 }
 0x4ad   : > { %v12615_v55 = vld [vmem:[%s13176_s20 + $0x1bd4] sm:$0xf]  ;;  %v11454_v58 = vor.u32 %v12551_v22, %v11451_v56  ;;  %6882 = vmatpush.bf16.msra.mxu1 %v11198_v53  ;;  %v14754_v56 = vpop.f32.mrf.mxu1 }
 0x4ae   : > { %v11707_v29 = vld [vmem:[%s13176_s20 + $0x1bf0] sm:$0xf0] }
 0x4af   : > { %v12415_v31 = vld [vmem:[%s13176_s20 + $0x1594] sm:$0xf]  ;;  %v11710_v3 = vor.u32 %v12615_v55, %v11707_v29  ;;  %6895 = vmatpush.bf16.msra.mxu2 %v11454_v58 }
 0x4b0   : > { %v10907_v13 = vld [vmem:[%s13176_s20 + $0x15b0] sm:$0xf0] }
 0x4b1   : > { %v12479_v57 = vld [vmem:[%s13176_s20 + $0x1794] sm:$0xf]  ;;  %v10910_v5 = vor.u32 %v12415_v31, %v10907_v13  ;;  %6908 = vmatpush.bf16.msra.mxu3 %v11710_v3 }
 0x4b2   : > { %v11163_v62 = vld [vmem:[%s13176_s20 + $0x17b0] sm:$0xf0] }
 0x4b3   : > { %v12543_v59 = vld [vmem:[%s13176_s20 + $0x1994] sm:$0xf]  ;;  %v11166_v60 = vor.u32 %v12479_v57, %v11163_v62  ;;  %6870 = vmatpush.bf16.msra.mxu0 %v10910_v5  ;;  %v14764_v62 = vpop.f32.mrf.mxu2  ;;  %v14769_v5 = vpop.f32.mrf.mxu3 }
 0x4b4   : > { %v11419_v52 = vld [vmem:[%s13176_s20 + $0x19b0] sm:$0xf0] }
 0x4b5   : > { %v12607_v1 = vld [vmem:[%s13176_s20 + $0x1b94] sm:$0xf]  ;;  %v11422_v42 = vor.u32 %v12543_v59, %v11419_v52  ;;  %6883 = vmatpush.bf16.msra.mxu1 %v11166_v60 }
 0x4b6   : > { %v11675_v4 = vld [vmem:[%s13176_s20 + $0x1bb0] sm:$0xf0] }
 0x4b7   : > { %v12407_v2 = vld [vmem:[%s13176_s20 + $0x1554] sm:$0xf]  ;;  %v11678_v8 = vor.u32 %v12607_v1, %v11675_v4  ;;  %6896 = vmatpush.bf16.msra.mxu2 %v11422_v42 }
 0x4b8   : > { %v10875_v7 = vld [vmem:[%s13176_s20 + $0x1570] sm:$0xf0] }
 0x4b9   : > { %v12471_v14 = vld [vmem:[%s13176_s20 + $0x1754] sm:$0xf]  ;;  %v10878_v30 = vor.u32 %v12407_v2, %v10875_v7  ;;  %6909 = vmatpush.bf16.msra.mxu3 %v11678_v8  ;;  %v6620_v7 = vpop.f32.mrf.mxu0 }
 0x4ba   : > { %v11131_v9 = vld [vmem:[%s13176_s20 + $0x1770] sm:$0xf0] }
 0x4bb   : > { %v12535_v43 = vld [vmem:[%s13176_s20 + $0x1954] sm:$0xf]  ;;  %v11134_v32 = vor.u32 %v12471_v14, %v11131_v9  ;;  %6871 = vmatpush.bf16.msra.mxu0 %v10878_v30 }
 0x4bc   : > { %v11387_v21 = vld [vmem:[%s13176_s20 + $0x1970] sm:$0xf0] }
 0x4bd   : > { %v12599_v26 = vld [vmem:[%s13176_s20 + $0x1b54] sm:$0xf]  ;;  %v11390_v33 = vor.u32 %v12535_v43, %v11387_v21  ;;  %6884 = vmatpush.bf16.msra.mxu1 %v11134_v32 }
 0x4be   : > { %v11643_v15 = vld [vmem:[%s13176_s20 + $0x1b70] sm:$0xf0] }
 0x4bf   : > { %v12399_v23 = vld [vmem:[%s13176_s20 + $0x1514] sm:$0xf]  ;;  %v11646_v36 = vor.u32 %v12599_v26, %v11643_v15  ;;  %6897 = vmatpush.bf16.msra.mxu2 %v11390_v33  ;;  %v6633_v26 = vpop.f32.mrf.mxu1 }
 0x4c0   : > { %v10843_v11 = vld [vmem:[%s13176_s20 + $0x1530] sm:$0xf0] }
 0x4c1   : > { %v12463_v47 = vld [vmem:[%s13176_s20 + $0x1714] sm:$0xf]  ;;  %v10846_v44 = vor.u32 %v12399_v23, %v10843_v11  ;;  %6910 = vmatpush.bf16.msra.mxu3 %v11646_v36 }
 0x4c2   : > { %v11099_v37 = vld [vmem:[%s13176_s20 + $0x1730] sm:$0xf0] }
 0x4c3   : > { %v12527_v54 = vld [vmem:[%s13176_s20 + $0x1914] sm:$0xf]  ;;  %v11102_v19 = vor.u32 %v12463_v47, %v11099_v37  ;;  %6872 = vmatpush.bf16.msra.mxu0 %v10846_v44 }
 0x4c4   : > { %v11355_v6 = vld [vmem:[%s13176_s20 + $0x1930] sm:$0xf0] }
 0x4c5   : > { %v12591_v34 = vld [vmem:[%s13176_s20 + $0x1b14] sm:$0xf]  ;;  %v11358_v27 = vor.u32 %v12527_v54, %v11355_v6  ;;  %6885 = vmatpush.bf16.msra.mxu1 %v11102_v19  ;;  %v6646_v19 = vpop.f32.mrf.mxu2 }
 0x4c6   : > { %v11611_v40 = vld [vmem:[%s13176_s20 + $0x1b30] sm:$0xf0]  ;;  %v8289_v19 = vld [vmem:[%s13176_s20 + $0x118] sm:$0xf] }
 0x4c7   : > { %v12391_v46 = vld [vmem:[%s13176_s20 + $0x14d4] sm:$0xf]  ;;  %v11614_v48 = vor.u32 %v12591_v34, %v11611_v40  ;;  %6898 = vmatpush.bf16.msra.mxu2 %v11358_v27 }
 0x4c8   : > { %v10811_v51 = vld [vmem:[%s13176_s20 + $0x14f0] sm:$0xf0] }
 0x4c9   : > { %v12455_v22 = vld [vmem:[%s13176_s20 + $0x16d4] sm:$0xf]  ;;  %v10814_v53 = vor.u32 %v12391_v46, %v10811_v51  ;;  %6911 = vmatpush.bf16.msra.mxu3 %v11614_v48  ;;  %v6659_v48 = vpop.f32.mrf.mxu3 }
 0x4ca   : > { %v11067_v49 = vld [vmem:[%s13176_s20 + $0x16f0] sm:$0xf0]  ;;  %v8801_v48 = vld [vmem:[%s13176_s20 + $0x518] sm:$0xf] }
 0x4cb   : > { %v12519_v55 = vld [vmem:[%s13176_s20 + $0x18d4] sm:$0xf]  ;;  %v11070_v58 = vor.u32 %v12455_v22, %v11067_v49  ;;  %6873 = vmatpush.bf16.msra.mxu0 %v10814_v53  ;;  %v8385_v49 = vld [vmem:[%s13176_s20 + $0x1d8] sm:$0xf] }
 0x4cc   : > { %v11323_v29 = vld [vmem:[%s13176_s20 + $0x18f0] sm:$0xf0]  ;;  %v8897_v53 = vld [vmem:[%s13176_s20 + $0x5d8] sm:$0xf] }
 0x4cd   : > { %v12583_v50 = vld [vmem:[%s13176_s20 + $0x1ad4] sm:$0xf]  ;;  %v11326_v31 = vor.u32 %v12519_v55, %v11323_v29  ;;  %6886 = vmatpush.bf16.msra.mxu1 %v11070_v58  ;;  %v11788_v55 = vld [vmem:[%s13176_s20 + $0x1f4] sm:$0xf0] }
 0x4ce   : > { %v11579_v61 = vld [vmem:[%s13176_s20 + $0x1af0] sm:$0xf0]  ;;  %v8641_v29 = vld [vmem:[%s13176_s20 + $0x3d8] sm:$0xf] }
 0x4cf   : > { %v12383_v13 = vld [vmem:[%s13176_s20 + $0x1494] sm:$0xf]  ;;  %v11582_v59 = vor.u32 %v12583_v50, %v11579_v61  ;;  %6899 = vmatpush.bf16.msra.mxu2 %v11326_v31  ;;  %v11852_v61 = vld [vmem:[%s13176_s20 + $0x3f4] sm:$0xf0] }
 0x4d0   : > { %v10779_v57 = vld [vmem:[%s13176_s20 + $0x14b0] sm:$0xf0]  ;;  %v11916_v58 = vld [vmem:[%s13176_s20 + $0x5f4] sm:$0xf0] }
 0x4d1   : > { %v12447_v3 = vld [vmem:[%s13176_s20 + $0x1694] sm:$0xf]  ;;  %v10782_v2 = vor.u32 %v12383_v13, %v10779_v57  ;;  %6912 = vmatpush.bf16.msra.mxu3 %v11582_v59  ;;  %v9153_v57 = vld [vmem:[%s13176_s20 + $0x7d8] sm:$0xf] }
 0x4d2   : > { %v11035_v52 = vld [vmem:[%s13176_s20 + $0x16b0] sm:$0xf0] }
 0x4d3   : > { %v12511_v1 = vld [vmem:[%s13176_s20 + $0x1894] sm:$0xf]  ;;  %v11038_v14 = vor.u32 %v12447_v3, %v11035_v52  ;;  %6874 = vmatpush.bf16.msra.mxu0 %v10782_v2  ;;  %v11980_v3 = vld [vmem:[%s13176_s20 + $0x7f4] sm:$0xf0]  ;;  %v8386_v52 = vor.u32 %v11788_v55, %v8385_v49  ;;  %v14823_v55 = vpop.f32.mrf.mxu0 }
 0x4d4   : > { %v11291_v4 = vld [vmem:[%s13176_s20 + $0x18b0] sm:$0xf0]  ;;  %v8609_v2 = vld [vmem:[%s13176_s20 + $0x398] sm:$0xf]  ;;  %v9154_v7 = vor.u32 %v11980_v3, %v9153_v57 }
 0x4d5   : > { %v12575_v60 = vld [vmem:[%s13176_s20 + $0x1a94] sm:$0xf]  ;;  %v11294_v8 = vor.u32 %v12511_v1, %v11291_v4  ;;  %6887 = vmatpush.bf16.msra.mxu1 %v11038_v14  ;;  %v8642_v1 = vor.u32 %v11852_v61, %v8641_v29  ;;  %v8898_v4 = vor.u32 %v11916_v58, %v8897_v53  ;;  %v11844_v14 = vld [vmem:[%s13176_s20 + $0x3b4] sm:$0xf0]  ;;  %v14827_v53 = vpop.f32.mrf.mxu1 }
 0x4d6   : > { %v11547_v42 = vld [vmem:[%s13176_s20 + $0x1ab0] sm:$0xf0]  ;;  %v11892_v49 = vld [vmem:[%s13176_s20 + $0x534] sm:$0xf0] }
 0x4d7   : > { %v12375_v9 = vld [vmem:[%s13176_s20 + $0x1454] sm:$0xf]  ;;  %v11550_v15 = vor.u32 %v12575_v60, %v11547_v42  ;;  %6900 = vmatpush.bf16.msra.mxu2 %v11294_v8  ;;  %v8353_v60 = vld [vmem:[%s13176_s20 + $0x198] sm:$0xf] }
 0x4d8   : > { %v10747_v43 = vld [vmem:[%s13176_s20 + $0x1470] sm:$0xf0]  ;;  %v11780_v42 = vld [vmem:[%s13176_s20 + $0x1b4] sm:$0xf0] }
 0x4d9   : > { %v12439_v21 = vld [vmem:[%s13176_s20 + $0x1654] sm:$0xf]  ;;  %v10750_v47 = vor.u32 %v12375_v9, %v10747_v43  ;;  %6913 = vmatpush.bf16.msra.mxu3 %v11550_v15  ;;  %v8865_v8 = vld [vmem:[%s13176_s20 + $0x598] sm:$0xf]  ;;  %v8354_v26 = vor.u32 %v11780_v42, %v8353_v60  ;;  %v8610_v15 = vor.u32 %v11844_v14, %v8609_v2  ;;  %v6619_v2 = vadd.f32 %v14749_v45, %v14695_v63  ;;  %v14847_v45 = vpop.f32.mrf.mxu3 }
 0x4da   : > { %v11003_v30 = vld [vmem:[%s13176_s20 + $0x1670] sm:$0xf0]  ;;  %v11908_v9 = vld [vmem:[%s13176_s20 + $0x5b4] sm:$0xf0] }
 0x4db   : > { %v12503_v32 = vld [vmem:[%s13176_s20 + $0x1854] sm:$0xf]  ;;  %v11006_v54 = vor.u32 %v12439_v21, %v11003_v30  ;;  %6875 = vmatpush.bf16.msra.mxu0 %v10750_v47  ;;  %v9121_v43 = vld [vmem:[%s13176_s20 + $0x798] sm:$0xf]  ;;  %v8866_v30 = vor.u32 %v11908_v9, %v8865_v8 }
 0x4dc   : > { %v11259_v33 = vld [vmem:[%s13176_s20 + $0x1870] sm:$0xf0]  ;;  %v11972_v21 = vld [vmem:[%s13176_s20 + $0x7b4] sm:$0xf0] }
 0x4dd   : > { %v12567_v23 = vld [vmem:[%s13176_s20 + $0x1a54] sm:$0xf]  ;;  %v11262_v6 = vor.u32 %v12503_v32, %v11259_v33  ;;  %6888 = vmatpush.bf16.msra.mxu1 %v11006_v54  ;;  %v8321_v32 = vld [vmem:[%s13176_s20 + $0x158] sm:$0xf] }
 0x4de   : > { %v11515_v11 = vld [vmem:[%s13176_s20 + $0x1a70] sm:$0xf0]  ;;  %v11772_v33 = vld [vmem:[%s13176_s20 + $0x174] sm:$0xf0] }
 0x4df   : > { %v12367_v36 = vld [vmem:[%s13176_s20 + $0x1414] sm:$0xf]  ;;  %v11518_v27 = vor.u32 %v12567_v23, %v11515_v11  ;;  %6901 = vmatpush.bf16.msra.mxu2 %v11262_v6  ;;  %v8577_v23 = vld [vmem:[%s13176_s20 + $0x358] sm:$0xf]  ;;  %v9122_v11 = vor.u32 %v11972_v21, %v9121_v43 }
 0x4e0   : > { %v10715_v37 = vld [vmem:[%s13176_s20 + $0x1430] sm:$0xf0]  ;;  %v11836_v47 = vld [vmem:[%s13176_s20 + $0x374] sm:$0xf0] }
 0x4e1   : > { %v12431_v34 = vld [vmem:[%s13176_s20 + $0x1614] sm:$0xf]  ;;  %v10718_v50 = vor.u32 %v12367_v36, %v10715_v37  ;;  %6914 = vmatpush.bf16.msra.mxu3 %v11518_v27  ;;  %v8833_v36 = vld [vmem:[%s13176_s20 + $0x558] sm:$0xf] }
 0x4e2   : > { %v10971_v40 = vld [vmem:[%s13176_s20 + $0x1630] sm:$0xf0]  ;;  %v11900_v37 = vld [vmem:[%s13176_s20 + $0x574] sm:$0xf0] }
 0x4e3   : > { %v12495_v44 = vld [vmem:[%s13176_s20 + $0x1814] sm:$0xf]  ;;  %v10974_v31 = vor.u32 %v12431_v34, %v10971_v40  ;;  %6876 = vmatpush.bf16.msra.mxu0 %v10718_v50  ;;  %v9089_v54 = vld [vmem:[%s13176_s20 + $0x758] sm:$0xf]  ;;  %v8322_v34 = vor.u32 %v11772_v33, %v8321_v32  ;;  %v8578_v40 = vor.u32 %v11836_v47, %v8577_v23  ;;  %v6632_v47 = vadd.f32 %v14754_v56, %v6619_v2  ;;  %v6711_v2 = vpop.f32.mrf.mxu3 }
 0x4e4   : > { %v11227_v46 = vld [vmem:[%s13176_s20 + $0x1830] sm:$0xf0]  ;;  %v11964_v6 = vld [vmem:[%s13176_s20 + $0x774] sm:$0xf0] }
 0x4e5   : > { %v12559_v51 = vld [vmem:[%s13176_s20 + $0x1a14] sm:$0xf]  ;;  %v11230_v13 = vor.u32 %v12495_v44, %v11227_v46  ;;  %6889 = vmatpush.bf16.msra.mxu1 %v10974_v31  ;;  %v8834_v44 = vor.u32 %v11900_v37, %v8833_v36  ;;  %v11764_v27 = vld [vmem:[%s13176_s20 + $0x134] sm:$0xf0]  ;;  %v8802_v31 = vor.u32 %v11892_v49, %v8801_v48  ;;  %v6685_v37 = vpop.f32.mrf.mxu1  ;;  %v6645_v48 = vadd.f32 %v14764_v62, %v6632_v47 }
 0x4e6   : > { %v11483_v22 = vld [vmem:[%s13176_s20 + $0x1a30] sm:$0xf0]  ;;  %6877 = vmatmul.bf16.vlgmr.msra.gmra.mxu0 %v13440_v24  ;;  %v8545_v46 = vld [vmem:[%s13176_s20 + $0x318] sm:$0xf]  ;;  %v8290_v61 = vor.u32 %v11764_v27, %v8289_v19 }
 0x4e7   : > { %v11486_v59 = vor.u32 %v12559_v51, %v11483_v22  ;;  %6902 = vmatpush.bf16.msra.mxu2 %v11230_v13  ;;  %6921 = vmatpush.bf16.msrb.mxu0 %v8386_v52  ;;  %v9090_v51 = vor.u32 %v11964_v6, %v9089_v54  ;;  %v11828_v22 = vld [vmem:[%s13176_s20 + $0x334] sm:$0xf0] }
 0x4e8   : > { %6890 = vmatmul.bf16.vlgmr.msra.gmra.mxu1 %v13446_v28  ;;  %v9057_v29 = vld [vmem:[%s13176_s20 + $0x718] sm:$0xf]  ;;  %v8546_v58 = vor.u32 %v11828_v22, %v8545_v46 }
 0x4e9   : > { %6915 = vmatpush.bf16.msra.mxu3 %v11486_v59  ;;  %6934 = vmatpush.bf16.msrb.mxu1 %v8642_v1  ;;  %v11956_v50 = vld [vmem:[%s13176_s20 + $0x734] sm:$0xf0] }
 0x4ea   : > { %6903 = vmatmul.bf16.vlgmr.msra.gmra.mxu2 %v13513_v12  ;;  %v8257_v13 = vld [vmem:[%s13176_s20 + $0xd8] sm:$0xf]  ;;  %v9058_v59 = vor.u32 %v11956_v50, %v9057_v29 }
 0x4eb   : > { %6947 = vmatpush.bf16.msrb.mxu2 %v8898_v4  ;;  %6922 = vmatpush.bf16.msrb.mxu0 %v8354_v26  ;;  %v11756_v57 = vld [vmem:[%s13176_s20 + $0xf4] sm:$0xf0] }
 0x4ec   : > { %6916 = vmatmul.bf16.vlgmr.msra.gmra.mxu3 %v13518_v16  ;;  %v8513_v3 = vld [vmem:[%s13176_s20 + $0x2d8] sm:$0xf] }
 0x4ed   : > { %6960 = vmatpush.bf16.msrb.mxu3 %v9154_v7  ;;  %6935 = vmatpush.bf16.msrb.mxu1 %v8610_v15  ;;  %v11820_v52 = vld [vmem:[%s13176_s20 + $0x2f4] sm:$0xf0]  ;;  %v8258_v7 = vor.u32 %v11756_v57, %v8257_v13  ;;  %v14842_v15 = vpop.f32.mrf.mxu2 }
 0x4ee   : > { %v8769_v1 = vld [vmem:[%s13176_s20 + $0x4d8] sm:$0xf]  ;;  %v8514_v14 = vor.u32 %v11820_v52, %v8513_v3 }
 0x4ef   : > { %6948 = vmatpush.bf16.msrb.mxu2 %v8866_v30  ;;  %6923 = vmatpush.bf16.msrb.mxu0 %v8322_v34  ;;  %v11884_v4 = vld [vmem:[%s13176_s20 + $0x4f4] sm:$0xf0] }
 0x4f0   : > { %v9025_v60 = vld [vmem:[%s13176_s20 + $0x6d8] sm:$0xf]  ;;  %v8770_v8 = vor.u32 %v11884_v4, %v8769_v1 }
 0x4f1   : > { %6961 = vmatpush.bf16.msrb.mxu3 %v9122_v11  ;;  %6936 = vmatpush.bf16.msrb.mxu1 %v8578_v40  ;;  %v11948_v42 = vld [vmem:[%s13176_s20 + $0x6f4] sm:$0xf0]  ;;  %v6672_v11 = vpop.f32.mrf.mxu0 }
 0x4f2   : > { %v8225_v9 = vld [vmem:[%s13176_s20 + $0x98] sm:$0xf]  ;;  %v9026_v26 = vor.u32 %v11948_v42, %v9025_v60 }
 0x4f3   : > { %6949 = vmatpush.bf16.msrb.mxu2 %v8834_v44  ;;  %6924 = vmatpush.bf16.msrb.mxu0 %v8290_v61  ;;  %v11748_v43 = vld [vmem:[%s13176_s20 + $0xb4] sm:$0xf0] }
 0x4f4   : > { %v8481_v21 = vld [vmem:[%s13176_s20 + $0x298] sm:$0xf]  ;;  %v8226_v36 = vor.u32 %v11748_v43, %v8225_v9 }
 0x4f5   : > { %6962 = vmatpush.bf16.msrb.mxu3 %v9090_v51  ;;  %6937 = vmatpush.bf16.msrb.mxu1 %v8546_v58  ;;  %v11812_v30 = vld [vmem:[%s13176_s20 + $0x2b4] sm:$0xf0]  ;;  %v6698_v1 = vpop.f32.mrf.mxu2 }
 0x4f6   : > { %v8737_v32 = vld [vmem:[%s13176_s20 + $0x498] sm:$0xf]  ;;  %v8482_v54 = vor.u32 %v11812_v30, %v8481_v21 }
 0x4f7   : > { %6950 = vmatpush.bf16.msrb.mxu2 %v8802_v31  ;;  %v11876_v63 = vld [vmem:[%s13176_s20 + $0x4b4] sm:$0xf0]  ;;  %6925 = vmatpush.bf16.msrb.mxu0 %v8258_v7  ;;  %v6658_v7 = vadd.f32 %v14769_v5, %v6645_v48 }
 0x4f8   : > { %v8993_v33 = vld [vmem:[%s13176_s20 + $0x698] sm:$0xf]  ;;  %v8738_v6 = vor.u32 %v11876_v63, %v8737_v32 }
 0x4f9   : > { %6963 = vmatpush.bf16.msrb.mxu3 %v9058_v59  ;;  %v11940_v23 = vld [vmem:[%s13176_s20 + $0x6b4] sm:$0xf0]  ;;  %6938 = vmatpush.bf16.msrb.mxu1 %v8514_v14  ;;  %v6671_v63 = vadd.f32 %v14823_v55, %v6658_v7  ;;  %v6722_v2 = vpop.f32.mrf.mxu0 }
 0x4fa   : > { %v8193_v34 = vld [vmem:[%s13176_s20 + $0x58] sm:$0xf]  ;;  %v8994_v19 = vor.u32 %v11940_v23, %v8993_v33 }
 0x4fb   : > { %6951 = vmatpush.bf16.msrb.mxu2 %v8770_v8  ;;  %v11740_v40 = vld [vmem:[%s13176_s20 + $0x74] sm:$0xf0]  ;;  %6926 = vmatpush.bf16.msrb.mxu0 %v8226_v36 }
 0x4fc   : > { %v8449_v44 = vld [vmem:[%s13176_s20 + $0x258] sm:$0xf]  ;;  %v8194_v49 = vor.u32 %v11740_v40, %v8193_v34 }
 0x4fd   : > { %6964 = vmatpush.bf16.msrb.mxu3 %v9026_v26  ;;  %v11804_v27 = vld [vmem:[%s13176_s20 + $0x274] sm:$0xf0]  ;;  %6939 = vmatpush.bf16.msrb.mxu1 %v8482_v54 }
 0x4fe   : > { %v8705_v56 = vld [vmem:[%s13176_s20 + $0x458] sm:$0xf]  ;;  %v8450_v61 = vor.u32 %v11804_v27, %v8449_v44 }
 0x4ff   : > { %v11868_v46 = vld [vmem:[%s13176_s20 + $0x474] sm:$0xf0]  ;;  %6952 = vmatpush.bf16.msrb.mxu2 %v8738_v6  ;;  %6927 = vmatpush.bf16.msrb.mxu0 %v8194_v49 }
 0x500   : > { %v8961_v51 = vld [vmem:[%s13176_s20 + $0x658] sm:$0xf]  ;;  %v8706_v58 = vor.u32 %v11868_v46, %v8705_v56 }
 0x501   : > { %v11932_v22 = vld [vmem:[%s13176_s20 + $0x674] sm:$0xf0]  ;;  %6965 = vmatpush.bf16.msrb.mxu3 %v8994_v19  ;;  %6940 = vmatpush.bf16.msrb.mxu1 %v8450_v61  ;;  %v6684_v19 = vadd.f32 %v14827_v53, %v6671_v63 }
 0x502   : > { %v8161_v29 = vld [vmem:[%s13176_s20 + $0x18] sm:$0xf]  ;;  %v8962_v62 = vor.u32 %v11932_v22, %v8961_v51 }
 0x503   : > { %v11732_v50 = vld [vmem:[%s13176_s20 + $0x34] sm:$0xf0]  ;;  %6953 = vmatpush.bf16.msrb.mxu2 %v8706_v58  ;;  %v6697_v49 = vadd.f32 %v14842_v15, %v6684_v19 }
 0x504   : > { %v8417_v31 = vld [vmem:[%s13176_s20 + $0x218] sm:$0xf]  ;;  %v8162_v14 = vor.u32 %v11732_v50, %v8161_v29 }
 0x505   : > { %v11796_v13 = vld [vmem:[%s13176_s20 + $0x234] sm:$0xf0]  ;;  %6966 = vmatpush.bf16.msrb.mxu3 %v8962_v62 }
 0x506   : > { %v8673_v57 = vld [vmem:[%s13176_s20 + $0x418] sm:$0xf]  ;;  %v8418_v21 = vor.u32 %v11796_v13, %v8417_v31  ;;  %6928 = vmatpush.bf16.msrb.mxu0 %v8162_v14 }
 0x507   : > { %v11860_v3 = vld [vmem:[%s13176_s20 + $0x434] sm:$0xf0] }
 0x508   : > { %v8929_v59 = vld [vmem:[%s13176_s20 + $0x618] sm:$0xf]  ;;  %v8674_v26 = vor.u32 %v11860_v3, %v8673_v57  ;;  %6941 = vmatpush.bf16.msrb.mxu1 %v8418_v21 }
 0x509   : > { %v11924_v52 = vld [vmem:[%s13176_s20 + $0x634] sm:$0xf0]  ;;  %6929 = vmatmul.bf16.vlgmr.msrb.gmra.mxu0 %v13292_v10 }
 0x50a   : > { %v9409_v4 = vld [vmem:[%s13176_s20 + $0x9d8] sm:$0xf]  ;;  %v8930_v5 = vor.u32 %v11924_v52, %v8929_v59  ;;  %6954 = vmatpush.bf16.msrb.mxu2 %v8674_v26  ;;  %v6710_v52 = vadd.f32 %v14847_v45, %v6697_v49  ;;  %v6735_v45 = vpop.f32.mrf.mxu1 }
 0x50b   : > { %v12044_v60 = vld [vmem:[%s13176_s20 + $0x9f4] sm:$0xf0]  ;;  %6942 = vmatmul.bf16.vlgmr.msrb.gmra.mxu1 %v13301_v18 }
 0x50c   : > { %v9665_v42 = vld [vmem:[%s13176_s20 + $0xbd8] sm:$0xf]  ;;  %v9410_v33 = vor.u32 %v12044_v60, %v9409_v4  ;;  %6967 = vmatpush.bf16.msrb.mxu3 %v8930_v5 }
 0x50d   : > { %v12108_v8 = vld [vmem:[%s13176_s20 + $0xbf4] sm:$0xf0]  ;;  %6955 = vmatmul.bf16.vlgmr.msrb.gmra.mxu2 %v13283_v0 }
 0x50e   : > { %v9921_v9 = vld [vmem:[%s13176_s20 + $0xdd8] sm:$0xf]  ;;  %v9666_v23 = vor.u32 %v12108_v8, %v9665_v42  ;;  %6973 = vmatpush.bf16.msra.mxu0 %v9410_v33  ;;  %v6723_v8 = vadd.f32 %v6722_v2, %v6710_v52 }
 0x50f   : > { %v12172_v43 = vld [vmem:[%s13176_s20 + $0xdf4] sm:$0xf0]  ;;  %6968 = vmatmul.bf16.vlgmr.msrb.gmra.mxu3 %v13299_v17 }
 0x510   : > { %v10177_v30 = vld [vmem:[%s13176_s20 + $0xfd8] sm:$0xf]  ;;  %v9922_v11 = vor.u32 %v12172_v43, %v9921_v9  ;;  %6986 = vmatpush.bf16.msra.mxu1 %v9666_v23  ;;  %v421_v43 = vld [vmem:[#allocation2 + $0x8] sm:$0xff]  ;;  %v6736_v33 = vadd.f32 %v6735_v45, %v6723_v8 }
 0x511   : > { %v12236_v32 = vld [vmem:[%s13176_s20 + $0xff4] sm:$0xf0] }
 0x512   : > { %v9377_v47 = vld [vmem:[%s13176_s20 + $0x998] sm:$0xf]  ;;  %v10178_v54 = vor.u32 %v12236_v32, %v10177_v30  ;;  %6999 = vmatpush.bf16.msra.mxu2 %v9922_v11 }
 0x513   : > { %v12036_v36 = vld [vmem:[%s13176_s20 + $0x9b4] sm:$0xf0] }
 0x514   : > { %v9633_v37 = vld [vmem:[%s13176_s20 + $0xb98] sm:$0xf]  ;;  %v9378_v27 = vor.u32 %v12036_v36, %v9377_v47  ;;  %7012 = vmatpush.bf16.msra.mxu3 %v10178_v54  ;;  %v7289_v54 = vadd.f32 %v6736_v33, %v421_v43 }
 0x515   : > { %v12100_v6 = vld [vmem:[%s13176_s20 + $0xbb4] sm:$0xf0] }
 0x516   : > { %v9889_v34 = vld [vmem:[%s13176_s20 + $0xd98] sm:$0xf]  ;;  %v9634_v56 = vor.u32 %v12100_v6, %v9633_v37  ;;  %6974 = vmatpush.bf16.msra.mxu0 %v9378_v27  ;;  %7297 = vst [vmem:[#allocation2 + $0x8] sm:$0xff] %v7289_v54 }
 0x517   : > { %v12164_v40 = vld [vmem:[%s13176_s20 + $0xdb4] sm:$0xf0] }
 0x518   : > { %v10145_v55 = vld [vmem:[%s13176_s20 + $0xf98] sm:$0xf]  ;;  %v9890_v46 = vor.u32 %v12164_v40, %v9889_v34  ;;  %6987 = vmatpush.bf16.msra.mxu1 %v9634_v56 }
 0x519   : > { %v12228_v44 = vld [vmem:[%s13176_s20 + $0xfb4] sm:$0xf0] }
 0x51a   : > { %v9345_v51 = vld [vmem:[%s13176_s20 + $0x958] sm:$0xf]  ;;  %v10146_v29 = vor.u32 %v12228_v44, %v10145_v55  ;;  %7000 = vmatpush.bf16.msra.mxu2 %v9890_v46 }
 0x51b   : > { %v12028_v22 = vld [vmem:[%s13176_s20 + $0x974] sm:$0xf0] }
 0x51c   : > { %v9601_v48 = vld [vmem:[%s13176_s20 + $0xb58] sm:$0xf]  ;;  %v9346_v15 = vor.u32 %v12028_v22, %v9345_v51  ;;  %7013 = vmatpush.bf16.msra.mxu3 %v10146_v29  ;;  %v6748_v22 = vpop.f32.mrf.mxu2  ;;  %v6761_v29 = vpop.f32.mrf.mxu3 }
 0x51d   : > { %v12092_v50 = vld [vmem:[%s13176_s20 + $0xb74] sm:$0xf0] }
 0x51e   : > { %v9857_v53 = vld [vmem:[%s13176_s20 + $0xd58] sm:$0xf]  ;;  %v9602_v13 = vor.u32 %v12092_v50, %v9601_v48  ;;  %6975 = vmatpush.bf16.msra.mxu0 %v9346_v15  ;;  %v6724_v50 = vpop.f32.mrf.mxu0 }
 0x51f   : > { %v12156_v61 = vld [vmem:[%s13176_s20 + $0xd74] sm:$0xf0] }
 0x520   : > { %v10113_v58 = vld [vmem:[%s13176_s20 + $0xf58] sm:$0xf]  ;;  %v9858_v57 = vor.u32 %v12156_v61, %v9857_v53  ;;  %6988 = vmatpush.bf16.msra.mxu1 %v9602_v13  ;;  %v14926_v61 = vadd.f32 %v6761_v29, %v6748_v22 }
 0x521   : > { %v12220_v31 = vld [vmem:[%s13176_s20 + $0xf74] sm:$0xf0] }
 0x522   : > { %v9313_v62 = vld [vmem:[%s13176_s20 + $0x918] sm:$0xf]  ;;  %v10114_v1 = vor.u32 %v12220_v31, %v10113_v58  ;;  %7001 = vmatpush.bf16.msra.mxu2 %v9858_v57  ;;  %v6737_v58 = vpop.f32.mrf.mxu1 }
 0x523   : > { %v12020_v3 = vld [vmem:[%s13176_s20 + $0x934] sm:$0xf0] }
 0x524   : > { %v9569_v59 = vld [vmem:[%s13176_s20 + $0xb18] sm:$0xf]  ;;  %v9314_v9 = vor.u32 %v12020_v3, %v9313_v62  ;;  %7014 = vmatpush.bf16.msra.mxu3 %v10114_v1 }
 0x525   : > { %v12084_v4 = vld [vmem:[%s13176_s20 + $0xb34] sm:$0xf0] }
 0x526   : > { %v9825_v60 = vld [vmem:[%s13176_s20 + $0xd18] sm:$0xf]  ;;  %v9570_v21 = vor.u32 %v12084_v4, %v9569_v59  ;;  %6976 = vmatpush.bf16.msra.mxu0 %v9314_v9 }
 0x527   : > { %v12148_v42 = vld [vmem:[%s13176_s20 + $0xd34] sm:$0xf0] }
 0x528   : > { %v10081_v7 = vld [vmem:[%s13176_s20 + $0xf18] sm:$0xf]  ;;  %v9826_v26 = vor.u32 %v12148_v42, %v9825_v60  ;;  %6989 = vmatpush.bf16.msra.mxu1 %v9570_v21 }
 0x529   : > { %v12212_v14 = vld [vmem:[%s13176_s20 + $0xf34] sm:$0xf0] }
 0x52a   : > { %v9281_v30 = vld [vmem:[%s13176_s20 + $0x8d8] sm:$0xf]  ;;  %v10082_v5 = vor.u32 %v12212_v14, %v10081_v7  ;;  %7002 = vmatpush.bf16.msra.mxu2 %v9826_v26 }
 0x52b   : > { %v12012_v32 = vld [vmem:[%s13176_s20 + $0x8f4] sm:$0xf0] }
 0x52c   : > { %v9537_v63 = vld [vmem:[%s13176_s20 + $0xad8] sm:$0xf]  ;;  %v9282_v6 = vor.u32 %v12012_v32, %v9281_v30  ;;  %7015 = vmatpush.bf16.msra.mxu3 %v10082_v5 }
 0x52d   : > { %v12076_v23 = vld [vmem:[%s13176_s20 + $0xaf4] sm:$0xf0] }
 0x52e   : > { %v9793_v11 = vld [vmem:[%s13176_s20 + $0xcd8] sm:$0xf]  ;;  %v9538_v40 = vor.u32 %v12076_v23, %v9537_v63  ;;  %6977 = vmatpush.bf16.msra.mxu0 %v9282_v6  ;;  %v6750_v63 = vpop.f32.mrf.mxu2 }
 0x52f   : > { %v12140_v47 = vld [vmem:[%s13176_s20 + $0xcf4] sm:$0xf0] }
 0x530   : > { %v10049_v36 = vld [vmem:[%s13176_s20 + $0xed8] sm:$0xf]  ;;  %v9794_v55 = vor.u32 %v12140_v47, %v9793_v11  ;;  %6990 = vmatpush.bf16.msra.mxu1 %v9538_v40  ;;  %v6763_v11 = vpop.f32.mrf.mxu3 }
 0x531   : > { %v12204_v37 = vld [vmem:[%s13176_s20 + $0xef4] sm:$0xf0] }
 0x532   : > { %v9249_v34 = vld [vmem:[%s13176_s20 + $0x898] sm:$0xf]  ;;  %v10050_v56 = vor.u32 %v12204_v37, %v10049_v36  ;;  %7003 = vmatpush.bf16.msra.mxu2 %v9794_v55 }
 0x533   : > { %v12004_v44 = vld [vmem:[%s13176_s20 + $0x8b4] sm:$0xf0] }
 0x534   : > { %v9505_v19 = vld [vmem:[%s13176_s20 + $0xa98] sm:$0xf]  ;;  %v9250_v53 = vor.u32 %v12004_v44, %v9249_v34  ;;  %7016 = vmatpush.bf16.msra.mxu3 %v10050_v56 }
 0x535   : > { %v12068_v27 = vld [vmem:[%s13176_s20 + $0xab4] sm:$0xf0] }
 0x536   : > { %v9761_v46 = vld [vmem:[%s13176_s20 + $0xc98] sm:$0xf]  ;;  %v9506_v31 = vor.u32 %v12068_v27, %v9505_v19  ;;  %6978 = vmatpush.bf16.msra.mxu0 %v9250_v53 }
 0x537   : > { %v12132_v51 = vld [vmem:[%s13176_s20 + $0xcb4] sm:$0xf0] }
 0x538   : > { %v10017_v48 = vld [vmem:[%s13176_s20 + $0xe98] sm:$0xf]  ;;  %v9762_v15 = vor.u32 %v12132_v51, %v9761_v46  ;;  %6991 = vmatpush.bf16.msra.mxu1 %v9506_v31 }
 0x539   : > { %v12196_v49 = vld [vmem:[%s13176_s20 + $0xeb4] sm:$0xf0] }
 0x53a   : > { %v9217_v13 = vld [vmem:[%s13176_s20 + $0x858] sm:$0xf]  ;;  %v10018_v3 = vor.u32 %v12196_v49, %v10017_v48  ;;  %7004 = vmatpush.bf16.msra.mxu2 %v9762_v15 }
 0x53b   : > { %v11996_v57 = vld [vmem:[%s13176_s20 + $0x874] sm:$0xf0] }
 0x53c   : > { %v9473_v62 = vld [vmem:[%s13176_s20 + $0xa58] sm:$0xf]  ;;  %v9218_v42 = vor.u32 %v11996_v57, %v9217_v13  ;;  %7017 = vmatpush.bf16.msra.mxu3 %v10018_v3 }
 0x53d   : > { %v12060_v59 = vld [vmem:[%s13176_s20 + $0xa74] sm:$0xf0] }
 0x53e   : > { %v9729_v52 = vld [vmem:[%s13176_s20 + $0xc58] sm:$0xf]  ;;  %v9474_v14 = vor.u32 %v12060_v59, %v9473_v62  ;;  %6979 = vmatpush.bf16.msra.mxu0 %v9218_v42 }
 0x53f   : > { %v12124_v1 = vld [vmem:[%s13176_s20 + $0xc74] sm:$0xf0] }
 0x540   : > { %v9985_v4 = vld [vmem:[%s13176_s20 + $0xe58] sm:$0xf]  ;;  %v9730_v8 = vor.u32 %v12124_v1, %v9729_v52  ;;  %6992 = vmatpush.bf16.msra.mxu1 %v9474_v14 }
 0x541   : > { %v12188_v60 = vld [vmem:[%s13176_s20 + $0xe74] sm:$0xf0] }
 0x542   : > { %v9185_v2 = vld [vmem:[%s13176_s20 + $0x818] sm:$0xf]  ;;  %v9986_v21 = vor.u32 %v12188_v60, %v9985_v4  ;;  %7005 = vmatpush.bf16.msra.mxu2 %v9730_v8 }
 0x543   : > { %v11988_v7 = vld [vmem:[%s13176_s20 + $0x834] sm:$0xf0] }
 0x544   : > { %v9441_v9 = vld [vmem:[%s13176_s20 + $0xa18] sm:$0xf]  ;;  %v9186_v47 = vor.u32 %v11988_v7, %v9185_v2  ;;  %7018 = vmatpush.bf16.msra.mxu3 %v9986_v21 }
 0x545   : > { %v12052_v43 = vld [vmem:[%s13176_s20 + $0xa34] sm:$0xf0] }
 0x546   : > { %v9697_v45 = vld [vmem:[%s13176_s20 + $0xc18] sm:$0xf]  ;;  %v9442_v6 = vor.u32 %v12052_v43, %v9441_v9  ;;  %6980 = vmatpush.bf16.msra.mxu0 %v9186_v47 }
 0x547   : > { %v12116_v26 = vld [vmem:[%s13176_s20 + $0xc34] sm:$0xf0] }
 0x548   : > { %v9953_v30 = vld [vmem:[%s13176_s20 + $0xe18] sm:$0xf]  ;;  %v9698_v34 = vor.u32 %v12116_v26, %v9697_v45  ;;  %6993 = vmatpush.bf16.msra.mxu1 %v9442_v6 }
 0x549   : > { %v12180_v32 = vld [vmem:[%s13176_s20 + $0xe34] sm:$0xf0]  ;;  %6981 = vmatmul.bf16.vlgmr.msra.gmra.mxu0 %v13362_v38 }
 0x54a   : > { %v10433_v5 = vld [vmem:[%s13176_s20 + $0x11d8] sm:$0xf]  ;;  %v9954_v44 = vor.u32 %v12180_v32, %v9953_v30  ;;  %7006 = vmatpush.bf16.msra.mxu2 %v9698_v34 }
 0x54b   : > { %v12300_v33 = vld [vmem:[%s13176_s20 + $0x11f4] sm:$0xf0]  ;;  %6994 = vmatmul.bf16.vlgmr.msra.gmra.mxu1 %v13366_v41 }
 0x54c   : > { %v10689_v23 = vld [vmem:[%s13176_s20 + $0x13d8] sm:$0xf]  ;;  %v10434_v19 = vor.u32 %v12300_v33, %v10433_v5  ;;  %7019 = vmatpush.bf16.msra.mxu3 %v9954_v44  ;;  %v14980_v33 = vpop.f32.mrf.mxu0 }
 0x54d   : > { %v12364_v36 = vld [vmem:[%s13176_s20 + $0x13f4] sm:$0xf0]  ;;  %7007 = vmatmul.bf16.vlgmr.msra.gmra.mxu2 %v13358_v35 }
 0x54e   : > { %v10945_v37 = vld [vmem:[%s13176_s20 + $0x15d8] sm:$0xf]  ;;  %v10690_v27 = vor.u32 %v12364_v36, %v10689_v23  ;;  %7025 = vmatpush.bf16.msrb.mxu0 %v10434_v19 }
 0x54f   : > { %v12428_v54 = vld [vmem:[%s13176_s20 + $0x15f4] sm:$0xf0]  ;;  %7020 = vmatmul.bf16.vlgmr.msra.gmra.mxu3 %v13364_v39 }
 0x550   : > { %v11201_v40 = vld [vmem:[%s13176_s20 + $0x17d8] sm:$0xf]  ;;  %v10946_v56 = vor.u32 %v12428_v54, %v10945_v37  ;;  %7038 = vmatpush.bf16.msrb.mxu1 %v10690_v27  ;;  %v14985_v54 = vpop.f32.mrf.mxu1 }
 0x551   : > { %v12492_v55 = vld [vmem:[%s13176_s20 + $0x17f4] sm:$0xf0] }
 0x552   : > { %v10401_v46 = vld [vmem:[%s13176_s20 + $0x1198] sm:$0xf]  ;;  %v11202_v48 = vor.u32 %v12492_v55, %v11201_v40  ;;  %7051 = vmatpush.bf16.msrb.mxu2 %v10946_v56 }
 0x553   : > { %v12292_v51 = vld [vmem:[%s13176_s20 + $0x11b4] sm:$0xf0] }
 0x554   : > { %v10657_v22 = vld [vmem:[%s13176_s20 + $0x1398] sm:$0xf]  ;;  %v10402_v31 = vor.u32 %v12292_v51, %v10401_v46  ;;  %7064 = vmatpush.bf16.msrb.mxu3 %v11202_v48 }
 0x555   : > { %v12356_v49 = vld [vmem:[%s13176_s20 + $0x13b4] sm:$0xf0] }
 0x556   : > { %v10913_v29 = vld [vmem:[%s13176_s20 + $0x1598] sm:$0xf]  ;;  %v10658_v15 = vor.u32 %v12356_v49, %v10657_v22  ;;  %7026 = vmatpush.bf16.msrb.mxu0 %v10402_v31  ;;  %v14995_v49 = vpop.f32.mrf.mxu2  ;;  %v15000_v31 = vpop.f32.mrf.mxu3 }
 0x557   : > { %v12420_v50 = vld [vmem:[%s13176_s20 + $0x15b4] sm:$0xf0] }
 0x558   : > { %v11169_v53 = vld [vmem:[%s13176_s20 + $0x1798] sm:$0xf]  ;;  %v10914_v13 = vor.u32 %v12420_v50, %v10913_v29  ;;  %7039 = vmatpush.bf16.msrb.mxu1 %v10658_v15 }
 0x559   : > { %v12484_v58 = vld [vmem:[%s13176_s20 + $0x17b4] sm:$0xf0] }
 0x55a   : > { %v10369_v57 = vld [vmem:[%s13176_s20 + $0x1158] sm:$0xf]  ;;  %v11170_v59 = vor.u32 %v12484_v58, %v11169_v53  ;;  %7052 = vmatpush.bf16.msrb.mxu2 %v10914_v13 }
 0x55b   : > { %v12284_v62 = vld [vmem:[%s13176_s20 + $0x1174] sm:$0xf0] }
 0x55c   : > { %v10625_v3 = vld [vmem:[%s13176_s20 + $0x1358] sm:$0xf]  ;;  %v10370_v2 = vor.u32 %v12284_v62, %v10369_v57  ;;  %7065 = vmatpush.bf16.msrb.mxu3 %v11170_v59  ;;  %v6776_v62 = vpop.f32.mrf.mxu0 }
 0x55d   : > { %v12348_v52 = vld [vmem:[%s13176_s20 + $0x1374] sm:$0xf0] }
 0x55e   : > { %v10881_v1 = vld [vmem:[%s13176_s20 + $0x1558] sm:$0xf]  ;;  %v10626_v7 = vor.u32 %v12348_v52, %v10625_v3  ;;  %7027 = vmatpush.bf16.msrb.mxu0 %v10370_v2 }
 0x55f   : > { %v12412_v4 = vld [vmem:[%s13176_s20 + $0x1574] sm:$0xf0] }
 0x560   : > { %v11137_v60 = vld [vmem:[%s13176_s20 + $0x1758] sm:$0xf]  ;;  %v10882_v14 = vor.u32 %v12412_v4, %v10881_v1  ;;  %7040 = vmatpush.bf16.msrb.mxu1 %v10626_v7 }
 0x561   : > { %v12476_v42 = vld [vmem:[%s13176_s20 + $0x1774] sm:$0xf0] }
 0x562   : > { %v10337_v8 = vld [vmem:[%s13176_s20 + $0x1118] sm:$0xf]  ;;  %v11138_v45 = vor.u32 %v12476_v42, %v11137_v60  ;;  %7053 = vmatpush.bf16.msrb.mxu2 %v10882_v14  ;;  %v6789_v60 = vpop.f32.mrf.mxu1 }
 0x563   : > { %v12276_v9 = vld [vmem:[%s13176_s20 + $0x1134] sm:$0xf0] }
 0x564   : > { %v10593_v43 = vld [vmem:[%s13176_s20 + $0x1318] sm:$0xf]  ;;  %v10338_v5 = vor.u32 %v12276_v9, %v10337_v8  ;;  %7066 = vmatpush.bf16.msrb.mxu3 %v11138_v45 }
 0x565   : > { %v12340_v21 = vld [vmem:[%s13176_s20 + $0x1334] sm:$0xf0] }
 0x566   : > { %v10849_v26 = vld [vmem:[%s13176_s20 + $0x1518] sm:$0xf]  ;;  %v10594_v23 = vor.u32 %v12340_v21, %v10593_v43  ;;  %7028 = vmatpush.bf16.msrb.mxu0 %v10338_v5 }
 0x567   : > { %v12404_v30 = vld [vmem:[%s13176_s20 + $0x1534] sm:$0xf0] }
 0x568   : > { %v11105_v32 = vld [vmem:[%s13176_s20 + $0x1718] sm:$0xf]  ;;  %v10850_v11 = vor.u32 %v12404_v30, %v10849_v26  ;;  %7041 = vmatpush.bf16.msrb.mxu1 %v10594_v23  ;;  %v6802_v23 = vpop.f32.mrf.mxu2 }
 0x569   : > { %v12468_v63 = vld [vmem:[%s13176_s20 + $0x1734] sm:$0xf0] }
 0x56a   : > { %v10305_v47 = vld [vmem:[%s13176_s20 + $0x10d8] sm:$0xf]  ;;  %v11106_v6 = vor.u32 %v12468_v63, %v11105_v32  ;;  %7054 = vmatpush.bf16.msrb.mxu2 %v10850_v11 }
 0x56b   : > { %v12268_v36 = vld [vmem:[%s13176_s20 + $0x10f4] sm:$0xf0] }
 0x56c   : > { %v10561_v37 = vld [vmem:[%s13176_s20 + $0x12d8] sm:$0xf]  ;;  %v10306_v27 = vor.u32 %v12268_v36, %v10305_v47  ;;  %7067 = vmatpush.bf16.msrb.mxu3 %v11106_v6  ;;  %v6815_v6 = vpop.f32.mrf.mxu3 }
 0x56d   : > { %v12332_v34 = vld [vmem:[%s13176_s20 + $0x12f4] sm:$0xf0]  ;;  %v11760_v6 = vld [vmem:[%s13176_s20 + $0x11c] sm:$0xf] }
 0x56e   : > { %v10817_v40 = vld [vmem:[%s13176_s20 + $0x14d8] sm:$0xf]  ;;  %v10562_v56 = vor.u32 %v12332_v34, %v10561_v37  ;;  %7029 = vmatpush.bf16.msrb.mxu0 %v10306_v27  ;;  %v11784_v27 = vld [vmem:[%s13176_s20 + $0x1dc] sm:$0xf] }
 0x56f   : > { %v12396_v55 = vld [vmem:[%s13176_s20 + $0x14f4] sm:$0xf0] }
 0x570   : > { %v11073_v44 = vld [vmem:[%s13176_s20 + $0x16d8] sm:$0xf]  ;;  %v10818_v46 = vor.u32 %v12396_v55, %v10817_v40  ;;  %7042 = vmatpush.bf16.msrb.mxu1 %v10562_v56  ;;  %v8387_v56 = vld [vmem:[%s13176_s20 + $0x1f8] sm:$0xf0] }
 0x571   : > { %v12460_v19 = vld [vmem:[%s13176_s20 + $0x16f4] sm:$0xf0] }
 0x572   : > { %v10273_v51 = vld [vmem:[%s13176_s20 + $0x1098] sm:$0xf]  ;;  %v11074_v29 = vor.u32 %v12460_v19, %v11073_v44  ;;  %7055 = vmatpush.bf16.msrb.mxu2 %v10818_v46 }
 0x573   : > { %v12260_v22 = vld [vmem:[%s13176_s20 + $0x10b4] sm:$0xf0] }
 0x574   : > { %v10529_v48 = vld [vmem:[%s13176_s20 + $0x1298] sm:$0xf]  ;;  %v10274_v57 = vor.u32 %v12260_v22, %v10273_v51  ;;  %7068 = vmatpush.bf16.msrb.mxu3 %v11074_v29  ;;  %v11848_v22 = vld [vmem:[%s13176_s20 + $0x3dc] sm:$0xf] }
 0x575   : > { %v12324_v50 = vld [vmem:[%s13176_s20 + $0x12b4] sm:$0xf0] }
 0x576   : > { %v10785_v53 = vld [vmem:[%s13176_s20 + $0x1498] sm:$0xf]  ;;  %v10530_v3 = vor.u32 %v12324_v50, %v10529_v48  ;;  %7030 = vmatpush.bf16.msrb.mxu0 %v10274_v57  ;;  %v8643_v48 = vld [vmem:[%s13176_s20 + $0x3f8] sm:$0xf0] }
 0x577   : > { %v12388_v58 = vld [vmem:[%s13176_s20 + $0x14b4] sm:$0xf0]  ;;  %v8646_v62 = vor.u32 %v11848_v22, %v8643_v48 }
 0x578   : > { %v11041_v15 = vld [vmem:[%s13176_s20 + $0x1698] sm:$0xf]  ;;  %v10786_v59 = vor.u32 %v12388_v58, %v10785_v53  ;;  %7043 = vmatpush.bf16.msrb.mxu1 %v10530_v3  ;;  %v8390_v58 = vor.u32 %v11784_v27, %v8387_v56  ;;  %v15058_v27 = vpop.f32.mrf.mxu1 }
 0x579   : > { %v12452_v13 = vld [vmem:[%s13176_s20 + $0x16b4] sm:$0xf0] }
 0x57a   : > { %v10241_v52 = vld [vmem:[%s13176_s20 + $0x1058] sm:$0xf]  ;;  %v11042_v42 = vor.u32 %v12452_v13, %v11041_v15  ;;  %7056 = vmatpush.bf16.msrb.mxu2 %v10786_v59  ;;  %v11776_v59 = vld [vmem:[%s13176_s20 + $0x19c] sm:$0xf] }
 0x57b   : > { %v12252_v1 = vld [vmem:[%s13176_s20 + $0x1074] sm:$0xf0] }
 0x57c   : > { %v10497_v4 = vld [vmem:[%s13176_s20 + $0x1258] sm:$0xf]  ;;  %v10242_v43 = vor.u32 %v12252_v1, %v10241_v52  ;;  %7069 = vmatpush.bf16.msrb.mxu3 %v11042_v42  ;;  %v8355_v52 = vld [vmem:[%s13176_s20 + $0x1b8] sm:$0xf0] }
 0x57d   : > { %v12316_v2 = vld [vmem:[%s13176_s20 + $0x1274] sm:$0xf0]  ;;  %v11840_v1 = vld [vmem:[%s13176_s20 + $0x39c] sm:$0xf] }
 0x57e   : > { %v10753_v7 = vld [vmem:[%s13176_s20 + $0x1458] sm:$0xf]  ;;  %v10498_v26 = vor.u32 %v12316_v2, %v10497_v4  ;;  %7031 = vmatpush.bf16.msrb.mxu0 %v10242_v43  ;;  %v8611_v4 = vld [vmem:[%s13176_s20 + $0x3b8] sm:$0xf0]  ;;  %v8358_v2 = vor.u32 %v11776_v59, %v8355_v52 }
 0x57f   : > { %v12380_v14 = vld [vmem:[%s13176_s20 + $0x1474] sm:$0xf0] }
 0x580   : > { %v11009_v8 = vld [vmem:[%s13176_s20 + $0x1658] sm:$0xf]  ;;  %v10754_v30 = vor.u32 %v12380_v14, %v10753_v7  ;;  %7044 = vmatpush.bf16.msrb.mxu1 %v10498_v26  ;;  %v11832_v26 = vld [vmem:[%s13176_s20 + $0x35c] sm:$0xf] }
 0x581   : > { %v12444_v9 = vld [vmem:[%s13176_s20 + $0x1674] sm:$0xf0] }
 0x582   : > { %v10209_v45 = vld [vmem:[%s13176_s20 + $0x1018] sm:$0xf]  ;;  %v11010_v11 = vor.u32 %v12444_v9, %v11009_v8  ;;  %7057 = vmatpush.bf16.msrb.mxu2 %v10754_v30  ;;  %v8614_v9 = vor.u32 %v11840_v1, %v8611_v4  ;;  %v8579_v30 = vld [vmem:[%s13176_s20 + $0x378] sm:$0xf0] }
 0x583   : > { %v12244_v21 = vld [vmem:[%s13176_s20 + $0x1034] sm:$0xf0] }
 0x584   : > { %v10465_v32 = vld [vmem:[%s13176_s20 + $0x1218] sm:$0xf]  ;;  %v10210_v44 = vor.u32 %v12244_v21, %v10209_v45  ;;  %7070 = vmatpush.bf16.msrb.mxu3 %v11010_v11  ;;  %v11768_v45 = vld [vmem:[%s13176_s20 + $0x15c] sm:$0xf] }
 0x585   : > { %v12308_v63 = vld [vmem:[%s13176_s20 + $0x1234] sm:$0xf0]  ;;  %v8323_v21 = vld [vmem:[%s13176_s20 + $0x178] sm:$0xf0] }
 0x586   : > { %v10721_v5 = vld [vmem:[%s13176_s20 + $0x1418] sm:$0xf]  ;;  %v10466_v46 = vor.u32 %v12308_v63, %v10465_v32  ;;  %7032 = vmatpush.bf16.msrb.mxu0 %v10210_v44  ;;  %v8547_v44 = vld [vmem:[%s13176_s20 + $0x338] sm:$0xf0] }
 0x587   : > { %v12372_v47 = vld [vmem:[%s13176_s20 + $0x1434] sm:$0xf0] }
 0x588   : > { %v10977_v36 = vld [vmem:[%s13176_s20 + $0x1618] sm:$0xf]  ;;  %v10722_v51 = vor.u32 %v12372_v47, %v10721_v5  ;;  %7045 = vmatpush.bf16.msrb.mxu1 %v10466_v46  ;;  %v8326_v5 = vor.u32 %v11768_v45, %v8323_v21  ;;  %v6841_v45 = vpop.f32.mrf.mxu1 }
 0x589   : > { %v12436_v37 = vld [vmem:[%s13176_s20 + $0x1634] sm:$0xf0]  ;;  %7033 = vmatmul.bf16.vlgmr.msrb.gmra.mxu0 %v13435_v20  ;;  %v11904_v45 = vld [vmem:[%s13176_s20 + $0x59c] sm:$0xf] }
 0x58a   : > { %v11457_v34 = vld [vmem:[%s13176_s20 + $0x19d8] sm:$0xf]  ;;  %v10978_v29 = vor.u32 %v12436_v37, %v10977_v36  ;;  %7058 = vmatpush.bf16.msrb.mxu2 %v10722_v51  ;;  %v8582_v36 = vor.u32 %v11832_v26, %v8579_v30 }
 0x58b   : > { %v12556_v40 = vld [vmem:[%s13176_s20 + $0x19f4] sm:$0xf0]  ;;  %7046 = vmatmul.bf16.vlgmr.msrb.gmra.mxu1 %v13442_v25 }
 0x58c   : > { %v11713_v55 = vld [vmem:[%s13176_s20 + $0x1bd8] sm:$0xf]  ;;  %v11458_v50 = vor.u32 %v12556_v40, %v11457_v34  ;;  %7071 = vmatpush.bf16.msrb.mxu3 %v10978_v29  ;;  %v8291_v34 = vld [vmem:[%s13176_s20 + $0x138] sm:$0xf0]  ;;  %v15054_v40 = vpop.f32.mrf.mxu0 }
 0x58d   : > { %v12620_v19 = vld [vmem:[%s13176_s20 + $0x1bf4] sm:$0xf0]  ;;  %7059 = vmatmul.bf16.vlgmr.msrb.gmra.mxu2 %v13440_v24  ;;  %v8294_v46 = vor.u32 %v11760_v6, %v8291_v34 }
 0x58e   : > { %v11714_v53 = vor.u32 %v12620_v19, %v11713_v55  ;;  %v11425_v15 = vld [vmem:[%s13176_s20 + $0x1998] sm:$0xf]  ;;  %7077 = vmatpush.bf16.msra.mxu0 %v11458_v50  ;;  %7103 = vmatpush.bf16.msra.mxu2 %v8390_v58  ;;  %v11824_v55 = vld [vmem:[%s13176_s20 + $0x31c] sm:$0xf] }
 0x58f   : > { %v12548_v13 = vld [vmem:[%s13176_s20 + $0x19b4] sm:$0xf0]  ;;  %7072 = vmatmul.bf16.vlgmr.msrb.gmra.mxu3 %v13446_v28  ;;  %v8550_v29 = vor.u32 %v11824_v55, %v8547_v44  ;;  %v8259_v58 = vld [vmem:[%s13176_s20 + $0xf8] sm:$0xf0] }
 0x590   : > { %v11681_v57 = vld [vmem:[%s13176_s20 + $0x1b98] sm:$0xf]  ;;  %v11426_v60 = vor.u32 %v12548_v13, %v11425_v15  ;;  %7090 = vmatpush.bf16.msra.mxu1 %v11714_v53  ;;  %7116 = vmatpush.bf16.msra.mxu3 %v8646_v62  ;;  %v11752_v53 = vld [vmem:[%s13176_s20 + $0xdc] sm:$0xf]  ;;  %v6775_v62 = vadd.f32 %v14980_v33, %v14926_v61 }
 0x591   : > { %v12612_v3 = vld [vmem:[%s13176_s20 + $0x1bb4] sm:$0xf0]  ;;  %v11816_v15 = vld [vmem:[%s13176_s20 + $0x2dc] sm:$0xf]  ;;  %v8262_v59 = vor.u32 %v11752_v53, %v8259_v58 }
 0x592   : > { %v11682_v42 = vor.u32 %v12612_v3, %v11681_v57  ;;  %v11393_v7 = vld [vmem:[%s13176_s20 + $0x1958] sm:$0xf]  ;;  %7078 = vmatpush.bf16.msra.mxu0 %v11426_v60  ;;  %7104 = vmatpush.bf16.msra.mxu2 %v8358_v2  ;;  %v8515_v13 = vld [vmem:[%s13176_s20 + $0x2f8] sm:$0xf0]  ;;  %v6788_v21 = vadd.f32 %v14985_v54, %v6775_v62 }
 0x593   : > { %v12540_v14 = vld [vmem:[%s13176_s20 + $0x1974] sm:$0xf0]  ;;  %v8518_v60 = vor.u32 %v11816_v15, %v8515_v13  ;;  %v11808_v61 = vld [vmem:[%s13176_s20 + $0x29c] sm:$0xf] }
 0x594   : > { %v11649_v8 = vld [vmem:[%s13176_s20 + $0x1b58] sm:$0xf]  ;;  %v11394_v32 = vor.u32 %v12540_v14, %v11393_v7  ;;  %7091 = vmatpush.bf16.msra.mxu1 %v11682_v42  ;;  %7117 = vmatpush.bf16.msra.mxu3 %v8614_v9  ;;  %v15073_v42 = vpop.f32.mrf.mxu2  ;;  %v11744_v7 = vld [vmem:[%s13176_s20 + $0x9c] sm:$0xf]  ;;  %v6828_v9 = vpop.f32.mrf.mxu0  ;;  %v6801_v44 = vadd.f32 %v14995_v49, %v6788_v21 }
 0x595   : > { %v12604_v43 = vld [vmem:[%s13176_s20 + $0x1b74] sm:$0xf0]  ;;  %v8227_v14 = vld [vmem:[%s13176_s20 + $0xb8] sm:$0xf0] }
 0x596   : > { %v11650_v63 = vor.u32 %v12604_v43, %v11649_v8  ;;  %v11361_v23 = vld [vmem:[%s13176_s20 + $0x1918] sm:$0xf]  ;;  %7079 = vmatpush.bf16.msra.mxu0 %v11394_v32  ;;  %7105 = vmatpush.bf16.msra.mxu2 %v8326_v5  ;;  %v15078_v8 = vpop.f32.mrf.mxu3  ;;  %v8483_v33 = vld [vmem:[%s13176_s20 + $0x2b8] sm:$0xf0]  ;;  %v8230_v30 = vor.u32 %v11744_v7, %v8227_v14 }
 0x597   : > { %v12532_v11 = vld [vmem:[%s13176_s20 + $0x1934] sm:$0xf0]  ;;  %v8451_v54 = vld [vmem:[%s13176_s20 + $0x278] sm:$0xf0] }
 0x598   : > { %v11617_v47 = vld [vmem:[%s13176_s20 + $0x1b18] sm:$0xf]  ;;  %v11362_v19 = vor.u32 %v12532_v11, %v11361_v23  ;;  %7092 = vmatpush.bf16.msra.mxu1 %v11650_v63  ;;  %7118 = vmatpush.bf16.msra.mxu3 %v8582_v36  ;;  %v8486_v23 = vor.u32 %v11808_v61, %v8483_v33  ;;  %v8195_v36 = vld [vmem:[%s13176_s20 + $0x78] sm:$0xf0] }
 0x599   : > { %v12596_v37 = vld [vmem:[%s13176_s20 + $0x1b34] sm:$0xf0]  ;;  %v8419_v53 = vld [vmem:[%s13176_s20 + $0x238] sm:$0xf0] }
 0x59a   : > { %v11618_v56 = vor.u32 %v12596_v37, %v11617_v47  ;;  %v11329_v51 = vld [vmem:[%s13176_s20 + $0x18d8] sm:$0xf]  ;;  %7080 = vmatpush.bf16.msra.mxu0 %v11362_v19  ;;  %7106 = vmatpush.bf16.msra.mxu2 %v8294_v46  ;;  %v11736_v47 = vld [vmem:[%s13176_s20 + $0x5c] sm:$0xf] }
 0x59b   : > { %v12524_v22 = vld [vmem:[%s13176_s20 + $0x18f4] sm:$0xf0]  ;;  %v11800_v37 = vld [vmem:[%s13176_s20 + $0x25c] sm:$0xf] }
 0x59c   : > { %v11585_v48 = vld [vmem:[%s13176_s20 + $0x1ad8] sm:$0xf]  ;;  %v11330_v57 = vor.u32 %v12524_v22, %v11329_v51  ;;  %7093 = vmatpush.bf16.msra.mxu1 %v11618_v56  ;;  %7119 = vmatpush.bf16.msra.mxu3 %v8550_v29  ;;  %v8198_v56 = vor.u32 %v11736_v47, %v8195_v36  ;;  %v11728_v22 = vld [vmem:[%s13176_s20 + $0x1c] sm:$0xf]  ;;  %v6854_v58 = vpop.f32.mrf.mxu2 }
 0x59d   : > { %v12588_v50 = vld [vmem:[%s13176_s20 + $0x1af4] sm:$0xf0]  ;;  %v8163_v29 = vld [vmem:[%s13176_s20 + $0x38] sm:$0xf0] }
 0x59e   : > { %v11586_v3 = vor.u32 %v12588_v50, %v11585_v48  ;;  %v11297_v52 = vld [vmem:[%s13176_s20 + $0x1898] sm:$0xf]  ;;  %7081 = vmatpush.bf16.msra.mxu0 %v11330_v57  ;;  %7107 = vmatpush.bf16.msra.mxu2 %v8262_v59  ;;  %v8454_v48 = vor.u32 %v11800_v37, %v8451_v54  ;;  %v11792_v50 = vld [vmem:[%s13176_s20 + $0x21c] sm:$0xf]  ;;  %v6867_v57 = vpop.f32.mrf.mxu3 }
 0x59f   : > { %v12516_v1 = vld [vmem:[%s13176_s20 + $0x18b4] sm:$0xf0]  ;;  %v11912_v49 = vld [vmem:[%s13176_s20 + $0x5dc] sm:$0xf]  ;;  %v8422_v14 = vor.u32 %v11792_v50, %v8419_v53 }
 0x5a0   : > { %v11553_v4 = vld [vmem:[%s13176_s20 + $0x1a98] sm:$0xf]  ;;  %v11298_v43 = vor.u32 %v12516_v1, %v11297_v52  ;;  %7094 = vmatpush.bf16.msra.mxu1 %v11586_v3  ;;  %7120 = vmatpush.bf16.msra.mxu3 %v8518_v60  ;;  %v8899_v15 = vld [vmem:[%s13176_s20 + $0x5f8] sm:$0xf0]  ;;  %v6814_v1 = vadd.f32 %v15000_v31, %v6801_v44  ;;  %v8166_v60 = vor.u32 %v11728_v22, %v8163_v29 }
 0x5a1   : > { %v12580_v2 = vld [vmem:[%s13176_s20 + $0x1ab4] sm:$0xf0]  ;;  %v11976_v13 = vld [vmem:[%s13176_s20 + $0x7dc] sm:$0xf]  ;;  %v8902_v61 = vor.u32 %v11912_v49, %v8899_v15 }
 0x5a2   : > { %v11554_v26 = vor.u32 %v12580_v2, %v11553_v4  ;;  %v11265_v32 = vld [vmem:[%s13176_s20 + $0x1858] sm:$0xf]  ;;  %7082 = vmatpush.bf16.msra.mxu0 %v11298_v43  ;;  %7108 = vmatpush.bf16.msra.mxu2 %v8230_v30  ;;  %v9155_v3 = vld [vmem:[%s13176_s20 + $0x7f8] sm:$0xf0]  ;;  %v6827_v33 = vadd.f32 %v15054_v40, %v6814_v1 }
 0x5a3   : > { %v12508_v63 = vld [vmem:[%s13176_s20 + $0x1874] sm:$0xf0]  ;;  %v12040_v59 = vld [vmem:[%s13176_s20 + $0x9dc] sm:$0xf]  ;;  %v9158_v9 = vor.u32 %v11976_v13, %v9155_v3  ;;  %v6878_v13 = vpop.f32.mrf.mxu0  ;;  %v6891_v3 = vpop.f32.mrf.mxu1 }
 0x5a4   : > { %v11521_v5 = vld [vmem:[%s13176_s20 + $0x1a58] sm:$0xf]  ;;  %v11266_v6 = vor.u32 %v12508_v63, %v11265_v32  ;;  %7095 = vmatpush.bf16.msra.mxu1 %v11554_v26  ;;  %7121 = vmatpush.bf16.msra.mxu3 %v8486_v23  ;;  %v9411_v52 = vld [vmem:[%s13176_s20 + $0x9f8] sm:$0xf0] }
 0x5a5   : > { %v12572_v11 = vld [vmem:[%s13176_s20 + $0x1a74] sm:$0xf0]  ;;  %v12104_v2 = vld [vmem:[%s13176_s20 + $0xbdc] sm:$0xf]  ;;  %v9414_v43 = vor.u32 %v12040_v59, %v9411_v52 }
 0x5a6   : > { %v11233_v34 = vld [vmem:[%s13176_s20 + $0x1818] sm:$0xf]  ;;  %v11522_v19 = vor.u32 %v12572_v11, %v11521_v5  ;;  %7083 = vmatpush.bf16.msra.mxu0 %v11266_v6  ;;  %7109 = vmatpush.bf16.msra.mxu2 %v8198_v56  ;;  %v9667_v7 = vld [vmem:[%s13176_s20 + $0xbf8] sm:$0xf0]  ;;  %v6840_v11 = vadd.f32 %v15058_v27, %v6827_v33 }
 0x5a7   : > { %v12500_v55 = vld [vmem:[%s13176_s20 + $0x1834] sm:$0xf0]  ;;  %v8867_v31 = vld [vmem:[%s13176_s20 + $0x5b8] sm:$0xf0]  ;;  %v9670_v26 = vor.u32 %v12104_v2, %v9667_v7 }
 0x5a8   : > { %v11489_v46 = vld [vmem:[%s13176_s20 + $0x1a18] sm:$0xf]  ;;  %v11234_v62 = vor.u32 %v12500_v55, %v11233_v34  ;;  %7096 = vmatpush.bf16.msra.mxu1 %v11522_v19  ;;  %7122 = vmatpush.bf16.msra.mxu3 %v8454_v48  ;;  %v11968_v21 = vld [vmem:[%s13176_s20 + $0x79c] sm:$0xf]  ;;  %v8870_v40 = vor.u32 %v11904_v45, %v8867_v31  ;;  %v6853_v27 = vadd.f32 %v15073_v42, %v6840_v11 }
 0x5a9   : > { %v12564_v51 = vld [vmem:[%s13176_s20 + $0x1a34] sm:$0xf0]  ;;  %v9123_v30 = vld [vmem:[%s13176_s20 + $0x7b8] sm:$0xf0] }
 0x5aa   : > { %v11490_v4 = vor.u32 %v12564_v51, %v11489_v46  ;;  %7084 = vmatpush.bf16.msra.mxu0 %v11234_v62  ;;  %v12032_v32 = vld [vmem:[%s13176_s20 + $0x99c] sm:$0xf]  ;;  %7110 = vmatpush.bf16.msra.mxu2 %v8166_v60  ;;  %v9126_v47 = vor.u32 %v11968_v21, %v9123_v30  ;;  %v6866_v15 = vadd.f32 %v15078_v8, %v6853_v27 }
 0x5ab   : > { %v9379_v63 = vld [vmem:[%s13176_s20 + $0x9b8] sm:$0xf0] }
 0x5ac   : > { %7097 = vmatpush.bf16.msra.mxu1 %v11490_v4  ;;  %v12096_v5 = vld [vmem:[%s13176_s20 + $0xb9c] sm:$0xf]  ;;  %7123 = vmatpush.bf16.msra.mxu3 %v8422_v14  ;;  %v9382_v36 = vor.u32 %v12032_v32, %v9379_v63  ;;  %v6879_v59 = vadd.f32 %v6878_v13, %v6866_v15 }
 0x5ad   : > { %v9635_v23 = vld [vmem:[%s13176_s20 + $0xbb8] sm:$0xf0]  ;;  %7085 = vmatmul.bf16.vlgmr.msra.gmra.mxu0 %v13513_v12  ;;  %7111 = vmatmul.bf16.vlgmr.msra.gmra.mxu2 %v13292_v10 }
 0x5ae   : > { %7129 = vmatpush.bf16.msrb.mxu0 %v8902_v61  ;;  %7155 = vmatpush.bf16.msrb.mxu2 %v9414_v43  ;;  %v11896_v37 = vld [vmem:[%s13176_s20 + $0x55c] sm:$0xf]  ;;  %v9638_v34 = vor.u32 %v12096_v5, %v9635_v23  ;;  %v6892_v45 = vadd.f32 %v6891_v3, %v6879_v59  ;;  %v6904_v5 = vpop.f32.mrf.mxu2 }
 0x5af   : > { %v8835_v54 = vld [vmem:[%s13176_s20 + $0x578] sm:$0xf0]  ;;  %7098 = vmatmul.bf16.vlgmr.msra.gmra.mxu1 %v13518_v16  ;;  %7124 = vmatmul.bf16.vlgmr.msra.gmra.mxu3 %v13301_v18 }
 0x5b0   : > { %7142 = vmatpush.bf16.msrb.mxu1 %v9158_v9  ;;  %v11960_v6 = vld [vmem:[%s13176_s20 + $0x75c] sm:$0xf]  ;;  %7168 = vmatpush.bf16.msrb.mxu3 %v9670_v26  ;;  %v8838_v51 = vor.u32 %v11896_v37, %v8835_v54 }
 0x5b1   : > { %v9091_v55 = vld [vmem:[%s13176_s20 + $0x778] sm:$0xf0] }
 0x5b2   : > { %v12024_v44 = vld [vmem:[%s13176_s20 + $0x95c] sm:$0xf]  ;;  %7130 = vmatpush.bf16.msrb.mxu0 %v8870_v40  ;;  %7156 = vmatpush.bf16.msrb.mxu2 %v9382_v36  ;;  %v9094_v22 = vor.u32 %v11960_v6, %v9091_v55  ;;  %v6917_v36 = vpop.f32.mrf.mxu3  ;;  %v6880_v6 = vpop.f32.mrf.mxu0 }
 0x5b3   : > { %v9347_v19 = vld [vmem:[%s13176_s20 + $0x978] sm:$0xf0] }
 0x5b4   : > { %v12088_v56 = vld [vmem:[%s13176_s20 + $0xb5c] sm:$0xf]  ;;  %7143 = vmatpush.bf16.msrb.mxu1 %v9126_v47  ;;  %v9350_v48 = vor.u32 %v12024_v44, %v9347_v19  ;;  %7169 = vmatpush.bf16.msrb.mxu3 %v9638_v34  ;;  %v6905_v47 = vadd.f32 %v6904_v5, %v6892_v45  ;;  %v422_v34 = vld [vmem:[#allocation2 + $0x20] sm:$0xff]  ;;  %v6893_v44 = vpop.f32.mrf.mxu1 }
 0x5b5   : > { %v9603_v46 = vld [vmem:[%s13176_s20 + $0xb78] sm:$0xf0] }
 0x5b6   : > { %v11888_v42 = vld [vmem:[%s13176_s20 + $0x51c] sm:$0xf]  ;;  %v9606_v53 = vor.u32 %v12088_v56, %v9603_v46  ;;  %7131 = vmatpush.bf16.msrb.mxu0 %v8838_v51  ;;  %7157 = vmatpush.bf16.msrb.mxu2 %v9350_v48  ;;  %v6918_v19 = vadd.f32 %v6917_v36, %v6905_v47 }
 0x5b7   : > { %v8803_v29 = vld [vmem:[%s13176_s20 + $0x538] sm:$0xf0] }
 0x5b8   : > { %v11952_v50 = vld [vmem:[%s13176_s20 + $0x71c] sm:$0xf]  ;;  %v8806_v62 = vor.u32 %v11888_v42, %v8803_v29  ;;  %7144 = vmatpush.bf16.msrb.mxu1 %v9094_v22  ;;  %7170 = vmatpush.bf16.msrb.mxu3 %v9606_v53  ;;  %v7290_v53 = vadd.f32 %v6918_v19, %v422_v34 }
 0x5b9   : > { %v9059_v58 = vld [vmem:[%s13176_s20 + $0x738] sm:$0xf0] }
 0x5ba   : > { %v12016_v49 = vld [vmem:[%s13176_s20 + $0x91c] sm:$0xf]  ;;  %v9062_v52 = vor.u32 %v11952_v50, %v9059_v58  ;;  %7132 = vmatpush.bf16.msrb.mxu0 %v8806_v62  ;;  %7298 = vst [vmem:[#allocation2 + $0x20] sm:$0xff] %v7290_v53 }
 0x5bb   : > { %v9315_v10 = vld [vmem:[%s13176_s20 + $0x938] sm:$0xf0] }
 0x5bc   : > { %v12080_v18 = vld [vmem:[%s13176_s20 + $0xb1c] sm:$0xf]  ;;  %v9318_v1 = vor.u32 %v12016_v49, %v9315_v10  ;;  %7145 = vmatpush.bf16.msrb.mxu1 %v9062_v52 }
 0x5bd   : > { %v9571_v57 = vld [vmem:[%s13176_s20 + $0xb38] sm:$0xf0] }
 0x5be   : > { %v11880_v4 = vld [vmem:[%s13176_s20 + $0x4dc] sm:$0xf]  ;;  %v9574_v2 = vor.u32 %v12080_v18, %v9571_v57  ;;  %7158 = vmatpush.bf16.msrb.mxu2 %v9318_v1 }
 0x5bf   : > { %v8771_v60 = vld [vmem:[%s13176_s20 + $0x4f8] sm:$0xf0] }
 0x5c0   : > { %v11944_v8 = vld [vmem:[%s13176_s20 + $0x6dc] sm:$0xf]  ;;  %v8774_v43 = vor.u32 %v11880_v4, %v8771_v60  ;;  %7171 = vmatpush.bf16.msrb.mxu3 %v9574_v2 }
 0x5c1   : > { %v9027_v7 = vld [vmem:[%s13176_s20 + $0x6f8] sm:$0xf0] }
 0x5c2   : > { %v12008_v14 = vld [vmem:[%s13176_s20 + $0x8dc] sm:$0xf]  ;;  %v9030_v31 = vor.u32 %v11944_v8, %v9027_v7  ;;  %7133 = vmatpush.bf16.msrb.mxu0 %v8774_v43  ;;  %v6906_v8 = vpop.f32.mrf.mxu2 }
 0x5c3   : > { %v9283_v61 = vld [vmem:[%s13176_s20 + $0x8f8] sm:$0xf0] }
 0x5c4   : > { %v12072_v33 = vld [vmem:[%s13176_s20 + $0xadc] sm:$0xf]  ;;  %v9286_v21 = vor.u32 %v12008_v14, %v9283_v61  ;;  %7146 = vmatpush.bf16.msrb.mxu1 %v9030_v31  ;;  %v6919_v61 = vpop.f32.mrf.mxu3 }
 0x5c5   : > { %v9539_v9 = vld [vmem:[%s13176_s20 + $0xaf8] sm:$0xf0] }
 0x5c6   : > { %v11872_v26 = vld [vmem:[%s13176_s20 + $0x49c] sm:$0xf]  ;;  %v9542_v63 = vor.u32 %v12072_v33, %v9539_v9  ;;  %7159 = vmatpush.bf16.msrb.mxu2 %v9286_v21 }
 0x5c7   : > { %v8739_v30 = vld [vmem:[%s13176_s20 + $0x4b8] sm:$0xf0] }
 0x5c8   : > { %v11936_v32 = vld [vmem:[%s13176_s20 + $0x69c] sm:$0xf]  ;;  %v8742_v55 = vor.u32 %v11872_v26, %v8739_v30  ;;  %7172 = vmatpush.bf16.msrb.mxu3 %v9542_v63 }
 0x5c9   : > { %v8995_v23 = vld [vmem:[%s13176_s20 + $0x6b8] sm:$0xf0] }
 0x5ca   : > { %v12000_v40 = vld [vmem:[%s13176_s20 + $0x89c] sm:$0xf]  ;;  %v8998_v27 = vor.u32 %v11936_v32, %v8995_v23  ;;  %7134 = vmatpush.bf16.msrb.mxu0 %v8742_v55 }
 0x5cb   : > { %v9251_v11 = vld [vmem:[%s13176_s20 + $0x8b8] sm:$0xf0] }
 0x5cc   : > { %v12064_v37 = vld [vmem:[%s13176_s20 + $0xa9c] sm:$0xf]  ;;  %v9254_v56 = vor.u32 %v12000_v40, %v9251_v11  ;;  %7147 = vmatpush.bf16.msrb.mxu1 %v8998_v27 }
 0x5cd   : > { %v9507_v54 = vld [vmem:[%s13176_s20 + $0xab8] sm:$0xf0] }
 0x5ce   : > { %v11864_v46 = vld [vmem:[%s13176_s20 + $0x45c] sm:$0xf]  ;;  %v9510_v48 = vor.u32 %v12064_v37, %v9507_v54  ;;  %7160 = vmatpush.bf16.msrb.mxu2 %v9254_v56 }
 0x5cf   : > { %v8707_v51 = vld [vmem:[%s13176_s20 + $0x478] sm:$0xf0] }
 0x5d0   : > { %v11928_v22 = vld [vmem:[%s13176_s20 + $0x65c] sm:$0xf]  ;;  %v8710_v10 = vor.u32 %v11864_v46, %v8707_v51  ;;  %7173 = vmatpush.bf16.msrb.mxu3 %v9510_v48 }
 0x5d1   : > { %v8963_v42 = vld [vmem:[%s13176_s20 + $0x678] sm:$0xf0] }
 0x5d2   : > { %v11992_v29 = vld [vmem:[%s13176_s20 + $0x85c] sm:$0xf]  ;;  %v8966_v57 = vor.u32 %v11928_v22, %v8963_v42  ;;  %7135 = vmatpush.bf16.msrb.mxu0 %v8710_v10 }
 0x5d3   : > { %v9219_v50 = vld [vmem:[%s13176_s20 + $0x878] sm:$0xf0] }
 0x5d4   : > { %v12056_v58 = vld [vmem:[%s13176_s20 + $0xa5c] sm:$0xf]  ;;  %v9222_v62 = vor.u32 %v11992_v29, %v9219_v50  ;;  %7148 = vmatpush.bf16.msrb.mxu1 %v8966_v57 }
 0x5d5   : > { %v9475_v49 = vld [vmem:[%s13176_s20 + $0xa78] sm:$0xf0] }
 0x5d6   : > { %v11856_v15 = vld [vmem:[%s13176_s20 + $0x41c] sm:$0xf]  ;;  %v9478_v52 = vor.u32 %v12056_v58, %v9475_v49  ;;  %7161 = vmatpush.bf16.msrb.mxu2 %v9222_v62 }
 0x5d7   : > { %v8675_v13 = vld [vmem:[%s13176_s20 + $0x438] sm:$0xf0] }
 0x5d8   : > { %v11920_v18 = vld [vmem:[%s13176_s20 + $0x61c] sm:$0xf]  ;;  %v8678_v33 = vor.u32 %v11856_v15, %v8675_v13  ;;  %7174 = vmatpush.bf16.msrb.mxu3 %v9478_v52 }
 0x5d9   : > { %v8931_v3 = vld [vmem:[%s13176_s20 + $0x638] sm:$0xf0] }
 0x5da   : > { %v11984_v59 = vld [vmem:[%s13176_s20 + $0x81c] sm:$0xf]  ;;  %v8934_v31 = vor.u32 %v11920_v18, %v8931_v3  ;;  %7136 = vmatpush.bf16.msrb.mxu0 %v8678_v33 }
 0x5db   : > { %v9187_v1 = vld [vmem:[%s13176_s20 + $0x838] sm:$0xf0] }
 0x5dc   : > { %v12048_v4 = vld [vmem:[%s13176_s20 + $0xa1c] sm:$0xf]  ;;  %v9190_v21 = vor.u32 %v11984_v59, %v9187_v1  ;;  %7149 = vmatpush.bf16.msrb.mxu1 %v8934_v31  ;;  %v6930_v59 = vpop.f32.mrf.mxu0 }
 0x5dd   : > { %v9443_v60 = vld [vmem:[%s13176_s20 + $0xa38] sm:$0xf0]  ;;  %7137 = vmatmul.bf16.vlgmr.msrb.gmra.mxu0 %v13283_v0 }
 0x5de   : > { %v12168_v2 = vld [vmem:[%s13176_s20 + $0xddc] sm:$0xf]  ;;  %v9446_v32 = vor.u32 %v12048_v4, %v9443_v60  ;;  %7162 = vmatpush.bf16.msrb.mxu2 %v9190_v21 }
 0x5df   : > { %v9923_v7 = vld [vmem:[%s13176_s20 + $0xdf8] sm:$0xf0]  ;;  %7150 = vmatmul.bf16.vlgmr.msrb.gmra.mxu1 %v13299_v17 }
 0x5e0   : > { %v12232_v14 = vld [vmem:[%s13176_s20 + $0xfdc] sm:$0xf]  ;;  %v9926_v63 = vor.u32 %v12168_v2, %v9923_v7  ;;  %7175 = vmatpush.bf16.msrb.mxu3 %v9446_v32  ;;  %v6943_v2 = vpop.f32.mrf.mxu1 }
 0x5e1   : > { %v10179_v9 = vld [vmem:[%s13176_s20 + $0xff8] sm:$0xf0]  ;;  %7163 = vmatmul.bf16.vlgmr.msrb.gmra.mxu2 %v13362_v38 }
 0x5e2   : > { %v12296_v43 = vld [vmem:[%s13176_s20 + $0x11dc] sm:$0xf]  ;;  %v10182_v5 = vor.u32 %v12232_v14, %v10179_v9  ;;  %7181 = vmatpush.bf16.msra.mxu0 %v9926_v63  ;;  %v6944_v9 = vadd.f32 %v6943_v2, %v6930_v59 }
 0x5e3   : > { %v10435_v45 = vld [vmem:[%s13176_s20 + $0x11f8] sm:$0xf0]  ;;  %7176 = vmatmul.bf16.vlgmr.msrb.gmra.mxu3 %v13366_v41 }
 0x5e4   : > { %v12360_v26 = vld [vmem:[%s13176_s20 + $0x13dc] sm:$0xf]  ;;  %v10438_v23 = vor.u32 %v12296_v43, %v10435_v45  ;;  %7194 = vmatpush.bf16.msra.mxu1 %v10182_v5  ;;  %v6956_v5 = vpop.f32.mrf.mxu2 }
 0x5e5   : > { %v10691_v30 = vld [vmem:[%s13176_s20 + $0x13f8] sm:$0xf0] }
 0x5e6   : > { %v12160_v40 = vld [vmem:[%s13176_s20 + $0xd9c] sm:$0xf]  ;;  %v10694_v36 = vor.u32 %v12360_v26, %v10691_v30  ;;  %7207 = vmatpush.bf16.msra.mxu2 %v10438_v23 }
 0x5e7   : > { %v9891_v11 = vld [vmem:[%s13176_s20 + $0xdb8] sm:$0xf0] }
 0x5e8   : > { %v12224_v47 = vld [vmem:[%s13176_s20 + $0xf9c] sm:$0xf]  ;;  %v9894_v44 = vor.u32 %v12160_v40, %v9891_v11  ;;  %7220 = vmatpush.bf16.msra.mxu3 %v10694_v36  ;;  %v6957_v36 = vadd.f32 %v6956_v5, %v6944_v9 }
 0x5e9   : > { %v10147_v37 = vld [vmem:[%s13176_s20 + $0xfb8] sm:$0xf0] }
 0x5ea   : > { %v12288_v54 = vld [vmem:[%s13176_s20 + $0x119c] sm:$0xf]  ;;  %v10150_v19 = vor.u32 %v12224_v47, %v10147_v37  ;;  %7182 = vmatpush.bf16.msra.mxu0 %v9894_v44  ;;  %v6969_v37 = vpop.f32.mrf.mxu3  ;;  %v6932_v44 = vpop.f32.mrf.mxu0 }
 0x5eb   : > { %v10403_v6 = vld [vmem:[%s13176_s20 + $0x11b8] sm:$0xf0] }
 0x5ec   : > { %v12352_v34 = vld [vmem:[%s13176_s20 + $0x139c] sm:$0xf]  ;;  %v10406_v27 = vor.u32 %v12288_v54, %v10403_v6  ;;  %7195 = vmatpush.bf16.msra.mxu1 %v10150_v19 }
 0x5ed   : > { %v10659_v55 = vld [vmem:[%s13176_s20 + $0x13b8] sm:$0xf0] }
 0x5ee   : > { %v12152_v56 = vld [vmem:[%s13176_s20 + $0xd5c] sm:$0xf]  ;;  %v10662_v22 = vor.u32 %v12352_v34, %v10659_v55  ;;  %7208 = vmatpush.bf16.msra.mxu2 %v10406_v27  ;;  %v15225_v55 = vadd.f32 %v6969_v37, %v6957_v36 }
 0x5ef   : > { %v9859_v46 = vld [vmem:[%s13176_s20 + $0xd78] sm:$0xf0] }
 0x5f0   : > { %v12216_v51 = vld [vmem:[%s13176_s20 + $0xf5c] sm:$0xf]  ;;  %v9862_v58 = vor.u32 %v12152_v56, %v9859_v46  ;;  %7221 = vmatpush.bf16.msra.mxu3 %v10662_v22  ;;  %v6945_v22 = vpop.f32.mrf.mxu1 }
 0x5f1   : > { %v10115_v48 = vld [vmem:[%s13176_s20 + $0xf78] sm:$0xf0] }
 0x5f2   : > { %v12280_v42 = vld [vmem:[%s13176_s20 + $0x115c] sm:$0xf]  ;;  %v10118_v38 = vor.u32 %v12216_v51, %v10115_v48  ;;  %7183 = vmatpush.bf16.msra.mxu0 %v9862_v58 }
 0x5f3   : > { %v10371_v29 = vld [vmem:[%s13176_s20 + $0x1178] sm:$0xf0] }
 0x5f4   : > { %v12344_v50 = vld [vmem:[%s13176_s20 + $0x135c] sm:$0xf]  ;;  %v10374_v49 = vor.u32 %v12280_v42, %v10371_v29  ;;  %7196 = vmatpush.bf16.msra.mxu1 %v10118_v38 }
 0x5f5   : > { %v10627_v53 = vld [vmem:[%s13176_s20 + $0x1378] sm:$0xf0] }
 0x5f6   : > { %v12144_v10 = vld [vmem:[%s13176_s20 + $0xd1c] sm:$0xf]  ;;  %v10630_v41 = vor.u32 %v12344_v50, %v10627_v53  ;;  %7209 = vmatpush.bf16.msra.mxu2 %v10374_v49 }
 0x5f7   : > { %v9827_v15 = vld [vmem:[%s13176_s20 + $0xd38] sm:$0xf0] }
 0x5f8   : > { %v12208_v0 = vld [vmem:[%s13176_s20 + $0xf1c] sm:$0xf]  ;;  %v9830_v17 = vor.u32 %v12144_v10, %v9827_v15  ;;  %7222 = vmatpush.bf16.msra.mxu3 %v10630_v41 }
 0x5f9   : > { %v10083_v13 = vld [vmem:[%s13176_s20 + $0xf38] sm:$0xf0] }
 0x5fa   : > { %v12272_v18 = vld [vmem:[%s13176_s20 + $0x111c] sm:$0xf]  ;;  %v10086_v52 = vor.u32 %v12208_v0, %v10083_v13  ;;  %7184 = vmatpush.bf16.msra.mxu0 %v9830_v17 }
 0x5fb   : > { %v10339_v57 = vld [vmem:[%s13176_s20 + $0x1138] sm:$0xf0] }
 0x5fc   : > { %v12336_v62 = vld [vmem:[%s13176_s20 + $0x131c] sm:$0xf]  ;;  %v10342_v1 = vor.u32 %v12272_v18, %v10339_v57  ;;  %7197 = vmatpush.bf16.msra.mxu1 %v10086_v52  ;;  %v6958_v57 = vpop.f32.mrf.mxu2  ;;  %v6971_v52 = vpop.f32.mrf.mxu3 }
 0x5fd   : > { %v10595_v3 = vld [vmem:[%s13176_s20 + $0x1338] sm:$0xf0] }
 0x5fe   : > { %v12136_v4 = vld [vmem:[%s13176_s20 + $0xcdc] sm:$0xf]  ;;  %v10598_v7 = vor.u32 %v12336_v62, %v10595_v3  ;;  %7210 = vmatpush.bf16.msra.mxu2 %v10342_v1 }
 0x5ff   : > { %v9795_v60 = vld [vmem:[%s13176_s20 + $0xcf8] sm:$0xf0] }
 0x600   : > { %v12200_v8 = vld [vmem:[%s13176_s20 + $0xedc] sm:$0xf]  ;;  %v9798_v31 = vor.u32 %v12136_v4, %v9795_v60  ;;  %7223 = vmatpush.bf16.msra.mxu3 %v10598_v7 }
 0x601   : > { %v10051_v14 = vld [vmem:[%s13176_s20 + $0xef8] sm:$0xf0] }
 0x602   : > { %v12264_v61 = vld [vmem:[%s13176_s20 + $0x10dc] sm:$0xf]  ;;  %v10054_v21 = vor.u32 %v12200_v8, %v10051_v14  ;;  %7185 = vmatpush.bf16.msra.mxu0 %v9798_v31 }
 0x603   : > { %v10307_v33 = vld [vmem:[%s13176_s20 + $0x10f8] sm:$0xf0] }
 0x604   : > { %v12328_v43 = vld [vmem:[%s13176_s20 + $0x12dc] sm:$0xf]  ;;  %v10310_v26 = vor.u32 %v12264_v61, %v10307_v33  ;;  %7198 = vmatpush.bf16.msra.mxu1 %v10054_v21 }
 0x605   : > { %v10563_v45 = vld [vmem:[%s13176_s20 + $0x12f8] sm:$0xf0] }
 0x606   : > { %v12128_v30 = vld [vmem:[%s13176_s20 + $0xc9c] sm:$0xf]  ;;  %v10566_v23 = vor.u32 %v12328_v43, %v10563_v45  ;;  %7211 = vmatpush.bf16.msra.mxu2 %v10310_v26 }
 0x607   : > { %v9763_v32 = vld [vmem:[%s13176_s20 + $0xcb8] sm:$0xf0] }
 0x608   : > { %v12192_v63 = vld [vmem:[%s13176_s20 + $0xe9c] sm:$0xf]  ;;  %v9766_v34 = vor.u32 %v12128_v30, %v9763_v32  ;;  %7224 = vmatpush.bf16.msra.mxu3 %v10566_v23 }
 0x609   : > { %v10019_v40 = vld [vmem:[%s13176_s20 + $0xeb8] sm:$0xf0] }
 0x60a   : > { %v12256_v11 = vld [vmem:[%s13176_s20 + $0x109c] sm:$0xf]  ;;  %v10022_v19 = vor.u32 %v12192_v63, %v10019_v40  ;;  %7186 = vmatpush.bf16.msra.mxu0 %v9766_v34 }
 0x60b   : > { %v10275_v47 = vld [vmem:[%s13176_s20 + $0x10b8] sm:$0xf0] }
 0x60c   : > { %v12320_v54 = vld [vmem:[%s13176_s20 + $0x129c] sm:$0xf]  ;;  %v10278_v27 = vor.u32 %v12256_v11, %v10275_v47  ;;  %7199 = vmatpush.bf16.msra.mxu1 %v10022_v19 }
 0x60d   : > { %v10531_v6 = vld [vmem:[%s13176_s20 + $0x12b8] sm:$0xf0] }
 0x60e   : > { %v12120_v56 = vld [vmem:[%s13176_s20 + $0xc5c] sm:$0xf]  ;;  %v10534_v48 = vor.u32 %v12320_v54, %v10531_v6  ;;  %7212 = vmatpush.bf16.msra.mxu2 %v10278_v27 }
 0x60f   : > { %v9731_v46 = vld [vmem:[%s13176_s20 + $0xc78] sm:$0xf0] }
 0x610   : > { %v12184_v51 = vld [vmem:[%s13176_s20 + $0xe5c] sm:$0xf]  ;;  %v9734_v38 = vor.u32 %v12120_v56, %v9731_v46  ;;  %7225 = vmatpush.bf16.msra.mxu3 %v10534_v48 }
 0x611   : > { %v9987_v42 = vld [vmem:[%s13176_s20 + $0xe78] sm:$0xf0] }
 0x612   : > { %v12248_v29 = vld [vmem:[%s13176_s20 + $0x105c] sm:$0xf]  ;;  %v9990_v15 = vor.u32 %v12184_v51, %v9987_v42  ;;  %7187 = vmatpush.bf16.msra.mxu0 %v9734_v38 }
 0x613   : > { %v10243_v50 = vld [vmem:[%s13176_s20 + $0x1078] sm:$0xf0] }
 0x614   : > { %v12312_v53 = vld [vmem:[%s13176_s20 + $0x125c] sm:$0xf]  ;;  %v10246_v0 = vor.u32 %v12248_v29, %v10243_v50  ;;  %7200 = vmatpush.bf16.msra.mxu1 %v9990_v15 }
 0x615   : > { %v10499_v58 = vld [vmem:[%s13176_s20 + $0x1278] sm:$0xf0] }
 0x616   : > { %v12112_v49 = vld [vmem:[%s13176_s20 + $0xc1c] sm:$0xf]  ;;  %v10502_v62 = vor.u32 %v12312_v53, %v10499_v58  ;;  %7213 = vmatpush.bf16.msra.mxu2 %v10246_v0  ;;  %v15279_v0 = vpop.f32.mrf.mxu0 }
 0x617   : > { %v9699_v10 = vld [vmem:[%s13176_s20 + $0xc38] sm:$0xf0] }
 0x618   : > { %v12176_v41 = vld [vmem:[%s13176_s20 + $0xe1c] sm:$0xf]  ;;  %v9702_v8 = vor.u32 %v12112_v49, %v9699_v10  ;;  %7226 = vmatpush.bf16.msra.mxu3 %v10502_v62 }
 0x619   : > { %v9955_v13 = vld [vmem:[%s13176_s20 + $0xe38] sm:$0xf0] }
 0x61a   : > { %v12240_v18 = vld [vmem:[%s13176_s20 + $0x101c] sm:$0xf]  ;;  %v9958_v61 = vor.u32 %v12176_v41, %v9955_v13  ;;  %7188 = vmatpush.bf16.msra.mxu0 %v9702_v8 }
 0x61b   : > { %v10211_v3 = vld [vmem:[%s13176_s20 + $0x1038] sm:$0xf0] }
 0x61c   : > { %v12304_v17 = vld [vmem:[%s13176_s20 + $0x121c] sm:$0xf]  ;;  %v10214_v33 = vor.u32 %v12240_v18, %v10211_v3  ;;  %7201 = vmatpush.bf16.msra.mxu1 %v9958_v61  ;;  %v15284_v3 = vpop.f32.mrf.mxu1 }
 0x61d   : > { %v10467_v59 = vld [vmem:[%s13176_s20 + $0x1238] sm:$0xf0]  ;;  %7189 = vmatmul.bf16.vlgmr.msra.gmra.mxu0 %v13358_v35 }
 0x61e   : > { %v12424_v1 = vld [vmem:[%s13176_s20 + $0x15dc] sm:$0xf]  ;;  %v10470_v45 = vor.u32 %v12304_v17, %v10467_v59  ;;  %7214 = vmatpush.bf16.msra.mxu2 %v10214_v33 }
 0x61f   : > { %v10947_v4 = vld [vmem:[%s13176_s20 + $0x15f8] sm:$0xf0]  ;;  %7202 = vmatmul.bf16.vlgmr.msra.gmra.mxu1 %v13364_v39 }
 0x620   : > { %v12488_v60 = vld [vmem:[%s13176_s20 + $0x17dc] sm:$0xf]  ;;  %v10950_v31 = vor.u32 %v12424_v1, %v10947_v4  ;;  %7227 = vmatpush.bf16.msra.mxu3 %v10470_v45 }
 0x621   : > { %v11203_v2 = vld [vmem:[%s13176_s20 + $0x17f8] sm:$0xf0]  ;;  %7215 = vmatmul.bf16.vlgmr.msra.gmra.mxu2 %v13435_v20 }
 0x622   : > { %v12552_v7 = vld [vmem:[%s13176_s20 + $0x19dc] sm:$0xf]  ;;  %v11206_v21 = vor.u32 %v12488_v60, %v11203_v2  ;;  %7233 = vmatpush.bf16.msrb.mxu0 %v10950_v31 }
 0x623   : > { %v11459_v14 = vld [vmem:[%s13176_s20 + $0x19f8] sm:$0xf0]  ;;  %7228 = vmatmul.bf16.vlgmr.msra.gmra.mxu3 %v13442_v25 }
 0x624   : > { %v12616_v9 = vld [vmem:[%s13176_s20 + $0x1bdc] sm:$0xf]  ;;  %v11462_v26 = vor.u32 %v12552_v7, %v11459_v14  ;;  %7246 = vmatpush.bf16.msrb.mxu1 %v11206_v21 }
 0x625   : > { %v11715_v43 = vld [vmem:[%s13176_s20 + $0x1bf8] sm:$0xf0] }
 0x626   : > { %v12416_v30 = vld [vmem:[%s13176_s20 + $0x159c] sm:$0xf]  ;;  %v11718_v5 = vor.u32 %v12616_v9, %v11715_v43  ;;  %7259 = vmatpush.bf16.msrb.mxu2 %v11462_v26  ;;  %v15294_v9 = vpop.f32.mrf.mxu2  ;;  %v15299_v26 = vpop.f32.mrf.mxu3 }
 0x627   : > { %v10915_v32 = vld [vmem:[%s13176_s20 + $0x15b8] sm:$0xf0] }
 0x628   : > { %v12480_v63 = vld [vmem:[%s13176_s20 + $0x179c] sm:$0xf]  ;;  %v10918_v37 = vor.u32 %v12416_v30, %v10915_v32  ;;  %7272 = vmatpush.bf16.msrb.mxu3 %v11718_v5  ;;  %v6984_v5 = vpop.f32.mrf.mxu0 }
 0x629   : > { %v11171_v23 = vld [vmem:[%s13176_s20 + $0x17b8] sm:$0xf0] }
 0x62a   : > { %v12544_v40 = vld [vmem:[%s13176_s20 + $0x199c] sm:$0xf]  ;;  %v11174_v54 = vor.u32 %v12480_v63, %v11171_v23  ;;  %7234 = vmatpush.bf16.msrb.mxu0 %v10918_v37  ;;  %v6997_v37 = vpop.f32.mrf.mxu1 }
 0x62b   : > { %v11427_v11 = vld [vmem:[%s13176_s20 + $0x19b8] sm:$0xf0] }
 0x62c   : > { %v12608_v47 = vld [vmem:[%s13176_s20 + $0x1b9c] sm:$0xf]  ;;  %v11430_v6 = vor.u32 %v12544_v40, %v11427_v11  ;;  %7247 = vmatpush.bf16.msrb.mxu1 %v11174_v54 }
 0x62d   : > { %v11683_v36 = vld [vmem:[%s13176_s20 + $0x1bb8] sm:$0xf0] }
 0x62e   : > { %v12408_v34 = vld [vmem:[%s13176_s20 + $0x155c] sm:$0xf]  ;;  %v11686_v27 = vor.u32 %v12608_v47, %v11683_v36  ;;  %7260 = vmatpush.bf16.msrb.mxu2 %v11430_v6 }
 0x62f   : > { %v10883_v44 = vld [vmem:[%s13176_s20 + $0x1578] sm:$0xf0] }
 0x630   : > { %v12472_v19 = vld [vmem:[%s13176_s20 + $0x175c] sm:$0xf]  ;;  %v10886_v35 = vor.u32 %v12408_v34, %v10883_v44  ;;  %7273 = vmatpush.bf16.msrb.mxu3 %v11686_v27 }
 0x631   : > { %v11139_v56 = vld [vmem:[%s13176_s20 + $0x1778] sm:$0xf0] }
 0x632   : > { %v12536_v46 = vld [vmem:[%s13176_s20 + $0x195c] sm:$0xf]  ;;  %v11142_v42 = vor.u32 %v12472_v19, %v11139_v56  ;;  %7235 = vmatpush.bf16.msrb.mxu0 %v10886_v35 }
 0x633   : > { %v11395_v51 = vld [vmem:[%s13176_s20 + $0x1978] sm:$0xf0] }
 0x634   : > { %v12600_v22 = vld [vmem:[%s13176_s20 + $0x1b5c] sm:$0xf]  ;;  %v11398_v29 = vor.u32 %v12536_v46, %v11395_v51  ;;  %7248 = vmatpush.bf16.msrb.mxu1 %v11142_v42  ;;  %v7010_v42 = vpop.f32.mrf.mxu2 }
 0x635   : > { %v11651_v48 = vld [vmem:[%s13176_s20 + $0x1b78] sm:$0xf0] }
 0x636   : > { %v12400_v50 = vld [vmem:[%s13176_s20 + $0x151c] sm:$0xf]  ;;  %v11654_v39 = vor.u32 %v12600_v22, %v11651_v48  ;;  %7261 = vmatpush.bf16.msrb.mxu2 %v11398_v29 }
 0x637   : > { %v10851_v53 = vld [vmem:[%s13176_s20 + $0x1538] sm:$0xf0] }
 0x638   : > { %v12464_v20 = vld [vmem:[%s13176_s20 + $0x171c] sm:$0xf]  ;;  %v10854_v15 = vor.u32 %v12400_v50, %v10851_v53  ;;  %7274 = vmatpush.bf16.msrb.mxu3 %v11654_v39  ;;  %v7023_v39 = vpop.f32.mrf.mxu3 }
 0x639   : > { %v11107_v58 = vld [vmem:[%s13176_s20 + $0x1738] sm:$0xf0] }
 0x63a   : > { %v12528_v38 = vld [vmem:[%s13176_s20 + $0x191c] sm:$0xf]  ;;  %v11110_v41 = vor.u32 %v12464_v20, %v11107_v58  ;;  %7236 = vmatpush.bf16.msrb.mxu0 %v10854_v15 }
 0x63b   : > { %v11363_v49 = vld [vmem:[%s13176_s20 + $0x1938] sm:$0xf0] }
 0x63c   : > { %v12592_v25 = vld [vmem:[%s13176_s20 + $0x1b1c] sm:$0xf]  ;;  %v11366_v13 = vor.u32 %v12528_v38, %v11363_v49  ;;  %7249 = vmatpush.bf16.msrb.mxu1 %v11110_v41  ;;  %v7034_v41 = vpop.f32.mrf.mxu0 }
 0x63d   : > { %v11619_v10 = vld [vmem:[%s13176_s20 + $0x1b38] sm:$0xf0] }
 0x63e   : > { %v12392_v18 = vld [vmem:[%s13176_s20 + $0x14dc] sm:$0xf]  ;;  %v11622_v17 = vor.u32 %v12592_v25, %v11619_v10  ;;  %7262 = vmatpush.bf16.msrb.mxu2 %v11366_v13  ;;  %v7047_v13 = vpop.f32.mrf.mxu1 }
 0x63f   : > { %v10819_v57 = vld [vmem:[%s13176_s20 + $0x14f8] sm:$0xf0] }
 0x640   : > { %v12456_v62 = vld [vmem:[%s13176_s20 + $0x16dc] sm:$0xf]  ;;  %v10822_v8 = vor.u32 %v12392_v18, %v10819_v57  ;;  %7275 = vmatpush.bf16.msrb.mxu3 %v11622_v17  ;;  %v6983_v18 = vadd.f32 %v15279_v0, %v15225_v55  ;;  %v7060_v57 = vpop.f32.mrf.mxu2  ;;  %v423_v55 = vld [vmem:[#allocation2 + $0x28] sm:$0xff] }
 0x641   : > { %v11075_v59 = vld [vmem:[%s13176_s20 + $0x16f8] sm:$0xf0] }
 0x642   : > { %v12520_v52 = vld [vmem:[%s13176_s20 + $0x18dc] sm:$0xf]  ;;  %v11078_v2 = vor.u32 %v12456_v62, %v11075_v59  ;;  %7237 = vmatpush.bf16.msrb.mxu0 %v10822_v8  ;;  %v7073_v62 = vpop.f32.mrf.mxu3  ;;  %v6996_v59 = vadd.f32 %v15284_v3, %v6983_v18 }
 0x643   : > { %v11331_v1 = vld [vmem:[%s13176_s20 + $0x18f8] sm:$0xf0] }
 0x644   : > { %v12584_v4 = vld [vmem:[%s13176_s20 + $0x1adc] sm:$0xf]  ;;  %v11334_v7 = vor.u32 %v12520_v52, %v11331_v1  ;;  %7250 = vmatpush.bf16.msrb.mxu1 %v11078_v2  ;;  %v7036_v17 = vpop.f32.mrf.mxu0  ;;  %v7009_v1 = vadd.f32 %v15294_v9, %v6996_v59 }
 0x645   : > { %v11587_v60 = vld [vmem:[%s13176_s20 + $0x1af8] sm:$0xf0] }
 0x646   : > { %v12384_v14 = vld [vmem:[%s13176_s20 + $0x149c] sm:$0xf]  ;;  %v11590_v43 = vor.u32 %v12584_v4, %v11587_v60  ;;  %7263 = vmatpush.bf16.msrb.mxu2 %v11334_v7  ;;  %v7049_v52 = vpop.f32.mrf.mxu1 }
 0x647   : > { %v10787_v61 = vld [vmem:[%s13176_s20 + $0x14b8] sm:$0xf0] }
 0x648   : > { %v12448_v33 = vld [vmem:[%s13176_s20 + $0x169c] sm:$0xf]  ;;  %v10790_v63 = vor.u32 %v12384_v14, %v10787_v61  ;;  %7276 = vmatpush.bf16.msrb.mxu3 %v11590_v43 }
 0x649   : > { %v11043_v45 = vld [vmem:[%s13176_s20 + $0x16b8] sm:$0xf0] }
 0x64a   : > { %v12512_v31 = vld [vmem:[%s13176_s20 + $0x189c] sm:$0xf]  ;;  %v11046_v23 = vor.u32 %v12448_v33, %v11043_v45  ;;  %7238 = vmatpush.bf16.msrb.mxu0 %v10790_v63  ;;  %v7075_v4 = vpop.f32.mrf.mxu3 }
 0x64b   : > { %v11299_v21 = vld [vmem:[%s13176_s20 + $0x18b8] sm:$0xf0] }
 0x64c   : > { %v12576_v30 = vld [vmem:[%s13176_s20 + $0x1a9c] sm:$0xf]  ;;  %v11302_v40 = vor.u32 %v12512_v31, %v11299_v21  ;;  %7251 = vmatpush.bf16.msrb.mxu1 %v11046_v23  ;;  %v7086_v2 = vpop.f32.mrf.mxu0 }
 0x64d   : > { %v11555_v32 = vld [vmem:[%s13176_s20 + $0x1ab8] sm:$0xf0] }
 0x64e   : > { %v12376_v11 = vld [vmem:[%s13176_s20 + $0x145c] sm:$0xf]  ;;  %v11558_v54 = vor.u32 %v12576_v30, %v11555_v32  ;;  %7264 = vmatpush.bf16.msrb.mxu2 %v11302_v40  ;;  %v7099_v14 = vpop.f32.mrf.mxu1 }
 0x64f   : > { %v10755_v47 = vld [vmem:[%s13176_s20 + $0x1478] sm:$0xf0] }
 0x650   : > { %v12440_v36 = vld [vmem:[%s13176_s20 + $0x165c] sm:$0xf]  ;;  %v10758_v56 = vor.u32 %v12376_v11, %v10755_v47  ;;  %7277 = vmatpush.bf16.msrb.mxu3 %v11558_v54 }
 0x651   : > { %v11011_v6 = vld [vmem:[%s13176_s20 + $0x1678] sm:$0xf0] }
 0x652   : > { %v12504_v34 = vld [vmem:[%s13176_s20 + $0x185c] sm:$0xf]  ;;  %v11014_v46 = vor.u32 %v12440_v36, %v11011_v6  ;;  %7239 = vmatpush.bf16.msrb.mxu0 %v10758_v56  ;;  %v7125_v3 = vpop.f32.mrf.mxu3 }
 0x653   : > { %v11267_v44 = vld [vmem:[%s13176_s20 + $0x1878] sm:$0xf0] }
 0x654   : > { %v12568_v19 = vld [vmem:[%s13176_s20 + $0x1a5c] sm:$0xf]  ;;  %v11270_v51 = vor.u32 %v12504_v34, %v11267_v44  ;;  %7252 = vmatpush.bf16.msrb.mxu1 %v11014_v46  ;;  %v7088_v43 = vpop.f32.mrf.mxu0 }
 0x655   : > { %v11523_v27 = vld [vmem:[%s13176_s20 + $0x1a78] sm:$0xf0] }
 0x656   : > { %v12368_v22 = vld [vmem:[%s13176_s20 + $0x141c] sm:$0xf]  ;;  %v11526_v29 = vor.u32 %v12568_v19, %v11523_v27  ;;  %7265 = vmatpush.bf16.msrb.mxu2 %v11270_v51  ;;  %v7101_v9 = vpop.f32.mrf.mxu1 }
 0x657   : > { %v10723_v48 = vld [vmem:[%s13176_s20 + $0x1438] sm:$0xf0] }
 0x658   : > { %v12432_v35 = vld [vmem:[%s13176_s20 + $0x161c] sm:$0xf]  ;;  %v10726_v49 = vor.u32 %v12368_v22, %v10723_v48  ;;  %7278 = vmatpush.bf16.msrb.mxu3 %v11526_v29 }
 0x659   : > { %v10979_v50 = vld [vmem:[%s13176_s20 + $0x1638] sm:$0xf0] }
 0x65a   : > { %v12496_v53 = vld [vmem:[%s13176_s20 + $0x181c] sm:$0xf]  ;;  %v10982_v25 = vor.u32 %v12432_v35, %v10979_v50  ;;  %7240 = vmatpush.bf16.msrb.mxu0 %v10726_v49  ;;  %v7127_v21 = vpop.f32.mrf.mxu3 }
 0x65b   : > { %v11235_v20 = vld [vmem:[%s13176_s20 + $0x1838] sm:$0xf0] }
 0x65c   : > { %v12560_v58 = vld [vmem:[%s13176_s20 + $0x1a1c] sm:$0xf]  ;;  %v11238_v10 = vor.u32 %v12496_v53, %v11235_v20  ;;  %7253 = vmatpush.bf16.msrb.mxu1 %v10982_v25  ;;  %v7138_v30 = vpop.f32.mrf.mxu0 }
 0x65d   : > { %v11491_v38 = vld [vmem:[%s13176_s20 + $0x1a38] sm:$0xf0]  ;;  %7241 = vmatmul.bf16.vlgmr.msrb.gmra.mxu0 %v13440_v24  ;;  %v7062_v24 = vpop.f32.mrf.mxu2 }
 0x65e   : > { %v11494_v15 = vor.u32 %v12560_v58, %v11491_v38  ;;  %7266 = vmatpush.bf16.msrb.mxu2 %v11238_v10  ;;  %v424_v25 = vld [vmem:[#allocation2 + $0x38] sm:$0xff] }
 0x65f   : > { %7254 = vmatmul.bf16.vlgmr.msrb.gmra.mxu1 %v13446_v28  ;;  %v7022_v28 = vadd.f32 %v15299_v26, %v7009_v1  ;;  %v7151_v26 = vpop.f32.mrf.mxu1 }
 0x660   : > { %7279 = vmatpush.bf16.msrb.mxu3 %v11494_v15 }
 0x661   : > { %7267 = vmatmul.bf16.vlgmr.msrb.gmra.mxu2 %v13513_v12  ;;  %v7035_v12 = vadd.f32 %v7034_v41, %v7022_v28 }
 0x663   : > { %7280 = vmatmul.bf16.vlgmr.msrb.gmra.mxu3 %v13518_v16  ;;  %v7048_v60 = vadd.f32 %v7047_v13, %v7035_v12 }
 0x664   : > { %v7140_v5 = vpop.f32.mrf.mxu0 }
 0x665   : > { %v7061_v16 = vadd.f32 %v7060_v57, %v7048_v60  ;;  %v7112_v33 = vpop.f32.mrf.mxu2 }
 0x666   : > { %v7126_v45 = vadd.f32 %v7125_v3, %v7112_v33  ;;  %v7177_v63 = vpop.f32.mrf.mxu3 }
 0x667   : > { %v7074_v8 = vadd.f32 %v7073_v62, %v7061_v16  ;;  %v7153_v23 = vpop.f32.mrf.mxu1 }
 0x668   : > { %v7139_v37 = vadd.f32 %v7138_v30, %v7126_v45 }
 0x669   : > { %v7087_v7 = vadd.f32 %v7086_v2, %v7074_v8 }
 0x66a   : > { %v7152_v44 = vadd.f32 %v7151_v26, %v7139_v37 }
 0x66b   : > { %v7100_v0 = vadd.f32 %v7099_v14, %v7087_v7 }
 0x66d   : > { %v7291_v61 = vadd.f32 %v7100_v0, %v423_v55  ;;  %v7114_v31 = vpop.f32.mrf.mxu2 }
 0x66e   : > { %v7179_v11 = vpop.f32.mrf.mxu3 }
 0x66f   : > { %7299 = vst [vmem:[#allocation2 + $0x28] sm:$0xff] %v7291_v61 }
 0x675   : > { %v7164_v32 = vpop.f32.mrf.mxu2 }
 0x676   : > { %v7165_v27 = vadd.f32 %v7164_v32, %v7152_v44 }
 0x678   : > { %v7178_v51 = vadd.f32 %v7177_v63, %v7165_v27 }
 0x67d   : > { %v7166_v40 = vpop.f32.mrf.mxu2 }
 0x69a   : > { %v7190_v47 = vpop.f32.mrf.mxu0 }
 0x69b   : > { %v7191_v22 = vadd.f32 %v7190_v47, %v7178_v51 }
 0x69c   : > { %v7203_v36 = vpop.f32.mrf.mxu1 }
 0x69d   : > { %v7204_v48 = vadd.f32 %v7203_v36, %v7191_v22 }
 0x6a2   : > { %v7192_v34 = vpop.f32.mrf.mxu0 }
 0x6a4   : > { %v7216_v54 = vpop.f32.mrf.mxu2  ;;  %v7205_v19 = vpop.f32.mrf.mxu1 }
 0x6a5   : > { %v7217_v35 = vadd.f32 %v7216_v54, %v7204_v48 }
 0x6a6   : > { %v7229_v6 = vpop.f32.mrf.mxu3 }
 0x6a7   : > { %v7230_v42 = vadd.f32 %v7229_v6, %v7217_v35 }
 0x6ac   : > { %v7218_v56 = vpop.f32.mrf.mxu2 }
 0x6ae   : > { %v7231_v46 = vpop.f32.mrf.mxu3 }
 0x6da   : > { %v7242_v29 = vpop.f32.mrf.mxu0 }
 0x6db   : > { %v7243_v53 = vadd.f32 %v7242_v29, %v7230_v42 }
 0x6dc   : > { %v7255_v50 = vpop.f32.mrf.mxu1 }
 0x6dd   : > { %v7256_v20 = vadd.f32 %v7255_v50, %v7243_v53 }
 0x6e2   : > { %v7244_v49 = vpop.f32.mrf.mxu0 }
 0x6e4   : > { %v7268_v39 = vpop.f32.mrf.mxu2  ;;  %v7257_v10 = vpop.f32.mrf.mxu1 }
 0x6e5   : > { %v7269_v58 = vadd.f32 %v7268_v39, %v7256_v20 }
 0x6e6   : > { %v7281_v38 = vpop.f32.mrf.mxu3 }
 0x6e7   : > { %v7282_v15 = vadd.f32 %v7281_v38, %v7269_v58 }
 0x6e9   : > { %v7292_v41 = vadd.f32 %v7282_v15, %v424_v25 }
 0x6ea   : > { %7304 = sbr.rel (%p11719_p1) target bundleno = 2176 (0x880), region = 84 }
 0x6eb   : > { %7300 = vst [vmem:[#allocation2 + $0x38] sm:$0xff] %v7292_v41 }
 0x6ec   : > { %v7270_v13 = vpop.f32.mrf.mxu2 }
 0x6ee   : > { %v7283_v18 = vpop.f32.mrf.mxu3 }
 0x6ef   : > { %v7441_v57 = vld [vmem:[#allocation8 + $0x2f0] sm:$0xff]  ;;  %v7439_v17 = vld [vmem:[#allocation8 + $0x2e0] sm:$0xff] }
 0x6f0   : > { %v7377_v62 = vld [vmem:[#allocation8 + $0xf0] sm:$0xff]  ;;  %7649 = vmatpush.msra.mxu2 %v7441_v57  ;;  %v7375_v52 = vld [vmem:[#allocation8 + $0xe0] sm:$0xff] }
 0x6f1   : > { %7609 = vmatpush.msra.mxu0 %v7377_v62  ;;  %v7473_v59 = vld [vmem:[#allocation8 + $0x3f0] sm:$0xff]  ;;  %v7471_v4 = vld [vmem:[#allocation8 + $0x3e0] sm:$0xff] }
 0x6f2   : > { %v7409_v1 = vld [vmem:[#allocation8 + $0x1f0] sm:$0xff]  ;;  %7669 = vmatpush.msra.mxu3 %v7473_v59  ;;  %7650 = vmatpush.msra.mxu2 %v7439_v17  ;;  %v7407_v12 = vld [vmem:[#allocation8 + $0x1e0] sm:$0xff] }
 0x6f3   : > { %7629 = vmatpush.msra.mxu1 %v7409_v1  ;;  %v7437_v24 = vld [vmem:[#allocation8 + $0x2d0] sm:$0xff]  ;;  %7610 = vmatpush.msra.mxu0 %v7375_v52  ;;  %v7435_v16 = vld [vmem:[#allocation8 + $0x2c0] sm:$0xff] }
 0x6f4   : > { %v7373_v28 = vld [vmem:[#allocation8 + $0xd0] sm:$0xff]  ;;  %7670 = vmatpush.msra.mxu3 %v7471_v4  ;;  %v7371_v8 = vld [vmem:[#allocation8 + $0xc0] sm:$0xff]  ;;  %7651 = vmatpush.msra.mxu2 %v7437_v24 }
 0x6f5   : > { %v7469_v60 = vld [vmem:[#allocation8 + $0x3d0] sm:$0xff]  ;;  %7630 = vmatpush.msra.mxu1 %v7407_v12  ;;  %7611 = vmatpush.msra.mxu0 %v7373_v28  ;;  %v7467_v7 = vld [vmem:[#allocation8 + $0x3c0] sm:$0xff] }
 0x6f6   : > { %v7405_v2 = vld [vmem:[#allocation8 + $0x1d0] sm:$0xff]  ;;  %v7403_v14 = vld [vmem:[#allocation8 + $0x1c0] sm:$0xff]  ;;  %7671 = vmatpush.msra.mxu3 %v7469_v60  ;;  %7652 = vmatpush.msra.mxu2 %v7435_v16 }
 0x6f7   : > { %7631 = vmatpush.msra.mxu1 %v7405_v2  ;;  %v7433_v55 = vld [vmem:[#allocation8 + $0x2b0] sm:$0xff]  ;;  %7612 = vmatpush.msra.mxu0 %v7371_v8  ;;  %v7431_v3 = vld [vmem:[#allocation8 + $0x2a0] sm:$0xff] }
 0x6f8   : > { %v7369_v0 = vld [vmem:[#allocation8 + $0xb0] sm:$0xff]  ;;  %7672 = vmatpush.msra.mxu3 %v7467_v7  ;;  %v7367_v43 = vld [vmem:[#allocation8 + $0xa0] sm:$0xff]  ;;  %7653 = vmatpush.msra.mxu2 %v7433_v55 }
 0x6f9   : > { %v7465_v61 = vld [vmem:[#allocation8 + $0x3b0] sm:$0xff]  ;;  %7632 = vmatpush.msra.mxu1 %v7403_v14  ;;  %7613 = vmatpush.msra.mxu0 %v7369_v0  ;;  %v7463_v45 = vld [vmem:[#allocation8 + $0x3a0] sm:$0xff] }
 0x6fa   : > { %v7401_v33 = vld [vmem:[#allocation8 + $0x1b0] sm:$0xff]  ;;  %v7399_v9 = vld [vmem:[#allocation8 + $0x1a0] sm:$0xff]  ;;  %7673 = vmatpush.msra.mxu3 %v7465_v61  ;;  %7654 = vmatpush.msra.mxu2 %v7431_v3 }
 0x6fb   : > { %7633 = vmatpush.msra.mxu1 %v7401_v33  ;;  %v7429_v31 = vld [vmem:[#allocation8 + $0x290] sm:$0xff]  ;;  %7614 = vmatpush.msra.mxu0 %v7367_v43  ;;  %v7427_v32 = vld [vmem:[#allocation8 + $0x280] sm:$0xff] }
 0x6fc   : > { %v7365_v21 = vld [vmem:[#allocation8 + $0x90] sm:$0xff]  ;;  %7674 = vmatpush.msra.mxu3 %v7463_v45  ;;  %v7363_v63 = vld [vmem:[#allocation8 + $0x80] sm:$0xff]  ;;  %7655 = vmatpush.msra.mxu2 %v7429_v31 }
 0x6fd   : > { %v7461_v30 = vld [vmem:[#allocation8 + $0x390] sm:$0xff]  ;;  %7634 = vmatpush.msra.mxu1 %v7399_v9  ;;  %7615 = vmatpush.msra.mxu0 %v7365_v21  ;;  %v7459_v5 = vld [vmem:[#allocation8 + $0x380] sm:$0xff] }
 0x6fe   : > { %v7397_v26 = vld [vmem:[#allocation8 + $0x190] sm:$0xff]  ;;  %v7395_v23 = vld [vmem:[#allocation8 + $0x180] sm:$0xff]  ;;  %7675 = vmatpush.msra.mxu3 %v7461_v30  ;;  %7656 = vmatpush.msra.mxu2 %v7427_v32 }
 0x6ff   : > { %7635 = vmatpush.msra.mxu1 %v7397_v26  ;;  %v7425_v40 = vld [vmem:[#allocation8 + $0x270] sm:$0xff]  ;;  %7616 = vmatpush.msra.mxu0 %v7363_v63  ;;  %v7423_v37 = vld [vmem:[#allocation8 + $0x260] sm:$0xff] }
 0x700   : > { %v7361_v11 = vld [vmem:[#allocation8 + $0x70] sm:$0xff]  ;;  %7676 = vmatpush.msra.mxu3 %v7459_v5  ;;  %v7359_v54 = vld [vmem:[#allocation8 + $0x60] sm:$0xff]  ;;  %7657 = vmatpush.msra.mxu2 %v7425_v40 }
 0x701   : > { %v7457_v47 = vld [vmem:[#allocation8 + $0x370] sm:$0xff]  ;;  %7636 = vmatpush.msra.mxu1 %v7395_v23  ;;  %7617 = vmatpush.msra.mxu0 %v7361_v11  ;;  %v7455_v6 = vld [vmem:[#allocation8 + $0x360] sm:$0xff] }
 0x702   : > { %v7393_v36 = vld [vmem:[#allocation8 + $0x170] sm:$0xff]  ;;  %v7391_v34 = vld [vmem:[#allocation8 + $0x160] sm:$0xff]  ;;  %7677 = vmatpush.msra.mxu3 %v7457_v47  ;;  %7658 = vmatpush.msra.mxu2 %v7423_v37 }
 0x703   : > { %7637 = vmatpush.msra.mxu1 %v7393_v36  ;;  %v7421_v44 = vld [vmem:[#allocation8 + $0x250] sm:$0xff]  ;;  %7618 = vmatpush.msra.mxu0 %v7359_v54  ;;  %v7419_v46 = vld [vmem:[#allocation8 + $0x240] sm:$0xff] }
 0x704   : > { %v7357_v19 = vld [vmem:[#allocation8 + $0x50] sm:$0xff]  ;;  %7678 = vmatpush.msra.mxu3 %v7455_v6  ;;  %v7355_v51 = vld [vmem:[#allocation8 + $0x40] sm:$0xff]  ;;  %7659 = vmatpush.msra.mxu2 %v7421_v44  ;;  %v15329_v6 = vld [vmem:[#allocation7] sm:$0xff] }
 0x705   : > { %v7453_v27 = vld [vmem:[#allocation8 + $0x350] sm:$0xff]  ;;  %7638 = vmatpush.msra.mxu1 %v7391_v34  ;;  %7619 = vmatpush.msra.mxu0 %v7357_v19  ;;  %v7451_v22 = vld [vmem:[#allocation8 + $0x340] sm:$0xff] }
 0x706   : > { %v7389_v56 = vld [vmem:[#allocation8 + $0x150] sm:$0xff]  ;;  %v7387_v48 = vld [vmem:[#allocation8 + $0x140] sm:$0xff]  ;;  %7679 = vmatpush.msra.mxu3 %v7453_v27  ;;  %7660 = vmatpush.msra.mxu2 %v7419_v46 }
 0x707   : > { %7639 = vmatpush.msra.mxu1 %v7389_v56  ;;  %v7417_v35 = vld [vmem:[#allocation8 + $0x230] sm:$0xff]  ;;  %7620 = vmatpush.msra.mxu0 %v7355_v51  ;;  %v7415_v53 = vld [vmem:[#allocation8 + $0x220] sm:$0xff]  ;;  %v7317_v51 = vperm.slane %v15329_v6, 2 }
 0x708   : > { %v7353_v42 = vld [vmem:[#allocation8 + $0x30] sm:$0xff]  ;;  %7680 = vmatpush.msra.mxu3 %v7451_v22  ;;  %v7351_v20 = vld [vmem:[#allocation8 + $0x20] sm:$0xff]  ;;  %7661 = vmatpush.msra.mxu2 %v7417_v35 }
 0x709   : > { %v7449_v29 = vld [vmem:[#allocation8 + $0x330] sm:$0xff]  ;;  %7640 = vmatpush.msra.mxu1 %v7387_v48  ;;  %7621 = vmatpush.msra.mxu0 %v7353_v42  ;;  %v7447_v39 = vld [vmem:[#allocation8 + $0x320] sm:$0xff] }
 0x70a   : > { %v7385_v50 = vld [vmem:[#allocation8 + $0x130] sm:$0xff]  ;;  %v7383_v58 = vld [vmem:[#allocation8 + $0x120] sm:$0xff]  ;;  %7681 = vmatpush.msra.mxu3 %v7449_v29  ;;  %7662 = vmatpush.msra.mxu2 %v7415_v53 }
 0x70b   : > { %7641 = vmatpush.msra.mxu1 %v7385_v50  ;;  %v7413_v38 = vld [vmem:[#allocation8 + $0x210] sm:$0xff]  ;;  %7622 = vmatpush.msra.mxu0 %v7351_v20  ;;  %v7411_v15 = vld [vmem:[#allocation8 + $0x200] sm:$0xff]  ;;  %v7315_v50 = vperm.slane %v15329_v6, 0 }
 0x70c   : > { %v7349_v49 = vld [vmem:[#allocation8 + $0x10] sm:$0xff]  ;;  %7682 = vmatpush.msra.mxu3 %v7447_v39  ;;  %v7347_v41 = vld [vmem:[#allocation8] sm:$0xff]  ;;  %7663 = vmatpush.msra.mxu2 %v7413_v38  ;;  %v7305_v39 = vld [vmem:[#allocation2 + $0x30] sm:$0xff] }
 0x70d   : > { %v7445_v25 = vld [vmem:[#allocation8 + $0x310] sm:$0xff]  ;;  %7642 = vmatpush.msra.mxu1 %v7383_v58  ;;  %7623 = vmatpush.msra.mxu0 %v7349_v49  ;;  %v7443_v18 = vld [vmem:[#allocation8 + $0x300] sm:$0xff]  ;;  %v7318_v58 = vperm.slane %v15329_v6, 3 }
 0x70e   : > { %v7381_v10 = vld [vmem:[#allocation8 + $0x110] sm:$0xff]  ;;  %7683 = vmatpush.msra.mxu3 %v7445_v25  ;;  %7664 = vmatpush.msra.mxu2 %v7411_v15  ;;  %v7567_v17 = vld [vmem:[#allocation8 + $0x6e0] sm:$0xff] }
 0x70f   : > { %v7569_v13 = vld [vmem:[#allocation8 + $0x6f0] sm:$0xff]  ;;  %7643 = vmatpush.msra.mxu1 %v7381_v10  ;;  %7624 = vmatpush.msra.mxu0 %v7347_v41  ;;  %v7379_v59 = vld [vmem:[#allocation8 + $0x100] sm:$0xff]  ;;  %v7308_v10 = vld [vmem:[#allocation2 + $0x10] sm:$0xff] }
 0x710   : > { %v7505_v57 = vld [vmem:[#allocation8 + $0x4f0] sm:$0xff]  ;;  %7729 = vmatpush.msrb.mxu2 %v7569_v13  ;;  %7684 = vmatpush.msra.mxu3 %v7443_v18  ;;  %v7503_v52 = vld [vmem:[#allocation8 + $0x4e0] sm:$0xff] }
 0x711   : > { %v7601_v62 = vld [vmem:[#allocation8 + $0x7f0] sm:$0xff]  ;;  %7689 = vmatpush.msrb.mxu0 %v7505_v57  ;;  %v7599_v4 = vld [vmem:[#allocation8 + $0x7e0] sm:$0xff]  ;;  %7644 = vmatpush.msra.mxu1 %v7379_v59  ;;  %v15336_v57 = vadd.f32 %v7315_v50, %v7305_v39  ;;  %v7402_v39 = vld [vmem:[#allocation8 + $0x1b8] sm:$0xff] }
 0x712   : > { %v7537_v1 = vld [vmem:[#allocation8 + $0x5f0] sm:$0xff]  ;;  %7749 = vmatpush.msrb.mxu3 %v7601_v62  ;;  %7730 = vmatpush.msrb.mxu2 %v7567_v17  ;;  %v7535_v12 = vld [vmem:[#allocation8 + $0x5e0] sm:$0xff]  ;;  %v7316_v62 = vperm.slane %v15329_v6, 1 }
 0x713   : > { %v7565_v24 = vld [vmem:[#allocation8 + $0x6d0] sm:$0xff]  ;;  %7690 = vmatpush.msrb.mxu0 %v7503_v52  ;;  %7709 = vmatpush.msrb.mxu1 %v7537_v1  ;;  %v7563_v60 = vld [vmem:[#allocation8 + $0x6c0] sm:$0xff]  ;;  %v15339_v52 = vadd.f32 %v7318_v58, %v7308_v10  ;;  %v7306_v1 = vld [vmem:[#allocation2] sm:$0xff] }
 0x714   : > { %v7501_v28 = vld [vmem:[#allocation8 + $0x4d0] sm:$0xff]  ;;  %7731 = vmatpush.msrb.mxu2 %v7565_v24  ;;  %7750 = vmatpush.msrb.mxu3 %v7599_v4  ;;  %v7499_v8 = vld [vmem:[#allocation8 + $0x4c0] sm:$0xff]  ;;  %v7430_v58 = vld [vmem:[#allocation8 + $0x298] sm:$0xff] }
 0x715   : > { %v7597_v16 = vld [vmem:[#allocation8 + $0x7d0] sm:$0xff]  ;;  %7691 = vmatpush.msrb.mxu0 %v7501_v28  ;;  %7710 = vmatpush.msrb.mxu1 %v7535_v12  ;;  %v7595_v14 = vld [vmem:[#allocation8 + $0x7c0] sm:$0xff]  ;;  %v7400_v10 = vld [vmem:[#allocation8 + $0x1a8] sm:$0xff] }
 0x716   : > { %v7533_v2 = vld [vmem:[#allocation8 + $0x5d0] sm:$0xff]  ;;  %7732 = vmatpush.msrb.mxu2 %v7563_v60  ;;  %7751 = vmatpush.msrb.mxu3 %v7597_v16  ;;  %v7531_v0 = vld [vmem:[#allocation8 + $0x5c0] sm:$0xff]  ;;  %v7442_v60 = vld [vmem:[#allocation8 + $0x2f8] sm:$0xff] }
 0x717   : > { %v7561_v7 = vld [vmem:[#allocation8 + $0x6b0] sm:$0xff]  ;;  %7692 = vmatpush.msrb.mxu0 %v7499_v8  ;;  %7711 = vmatpush.msrb.mxu1 %v7533_v2  ;;  %v7559_v61 = vld [vmem:[#allocation8 + $0x6a0] sm:$0xff]  ;;  %v7339_v8 = vmax.f32 %v15336_v57, 0.0  ;;  %v15343_v2 = vadd.f32 %v7316_v62, %v7306_v1  ;;  %v7426_v62 = vld [vmem:[#allocation8 + $0x278] sm:$0xff] }
 0x718   : > { %v7497_v55 = vld [vmem:[#allocation8 + $0x4b0] sm:$0xff]  ;;  %7733 = vmatpush.msrb.mxu2 %v7561_v7  ;;  %7752 = vmatpush.msrb.mxu3 %v7595_v14  ;;  %v7495_v3 = vld [vmem:[#allocation8 + $0x4a0] sm:$0xff]  ;;  %v7321_v7 = vperm.slane %v15329_v6, 6  ;;  %v7396_v1 = vld [vmem:[#allocation8 + $0x188] sm:$0xff] }
 0x719   : > { %v7593_v33 = vld [vmem:[#allocation8 + $0x7b0] sm:$0xff]  ;;  %7693 = vmatpush.msrb.mxu0 %v7497_v55  ;;  %7712 = vmatpush.msrb.mxu1 %v7531_v0  ;;  %v7591_v9 = vld [vmem:[#allocation8 + $0x7a0] sm:$0xff]  ;;  %v7342_v55 = vmax.f32 %v15339_v52, 0.0  ;;  %v7540_v57 = vld [vmem:[#allocation8 + $0x608] sm:$0xff] }
 0x71a   : > { %v7529_v43 = vld [vmem:[#allocation8 + $0x5b0] sm:$0xff]  ;;  %7734 = vmatpush.msrb.mxu2 %v7559_v61  ;;  %7753 = vmatpush.msrb.mxu3 %v7593_v33  ;;  %v7527_v21 = vld [vmem:[#allocation8 + $0x5a0] sm:$0xff]  ;;  %v7378_v61 = vld [vmem:[#allocation8 + $0xf8] sm:$0xff] }
 0x71b   : > { %v7557_v45 = vld [vmem:[#allocation8 + $0x690] sm:$0xff]  ;;  %7694 = vmatpush.msrb.mxu0 %v7495_v3  ;;  %7713 = vmatpush.msrb.mxu1 %v7529_v43  ;;  %v7555_v30 = vld [vmem:[#allocation8 + $0x680] sm:$0xff]  ;;  %v7440_v33 = vld [vmem:[#allocation8 + $0x2e8] sm:$0xff]  ;;  %v7319_v3 = vperm.slane %v15329_v6, 4 }
 0x71c   : > { %v7493_v31 = vld [vmem:[#allocation8 + $0x490] sm:$0xff]  ;;  %7735 = vmatpush.msrb.mxu2 %v7557_v45  ;;  %7754 = vmatpush.msrb.mxu3 %v7591_v9  ;;  %v7491_v32 = vld [vmem:[#allocation8 + $0x480] sm:$0xff]  ;;  %v7474_v43 = vld [vmem:[#allocation8 + $0x3f8] sm:$0xff]  ;;  %v7322_v9 = vperm.slane %v15329_v6, 7 }
 0x71d   : > { %v7589_v26 = vld [vmem:[#allocation8 + $0x790] sm:$0xff]  ;;  %7695 = vmatpush.msrb.mxu0 %v7493_v31  ;;  %7714 = vmatpush.msrb.mxu1 %v7527_v21  ;;  %v7587_v23 = vld [vmem:[#allocation8 + $0x780] sm:$0xff]  ;;  %v7340_v21 = vmax.f32 %v15343_v2, 0.0  ;;  %v7476_v52 = vld [vmem:[#allocation8 + $0x408] sm:$0xff] }
 0x71e   : > { %v7525_v63 = vld [vmem:[#allocation8 + $0x590] sm:$0xff]  ;;  %7736 = vmatpush.msrb.mxu2 %v7555_v30  ;;  %7755 = vmatpush.msrb.mxu3 %v7589_v26  ;;  %v7523_v11 = vld [vmem:[#allocation8 + $0x580] sm:$0xff]  ;;  %v7376_v30 = vld [vmem:[#allocation8 + $0xe8] sm:$0xff] }
 0x71f   : > { %v7553_v5 = vld [vmem:[#allocation8 + $0x670] sm:$0xff]  ;;  %7696 = vmatpush.msrb.mxu0 %v7491_v32  ;;  %7715 = vmatpush.msrb.mxu1 %v7525_v63  ;;  %v7551_v47 = vld [vmem:[#allocation8 + $0x660] sm:$0xff]  ;;  %v7438_v63 = vld [vmem:[#allocation8 + $0x2d8] sm:$0xff] }
 0x720   : > { %v7489_v40 = vld [vmem:[#allocation8 + $0x470] sm:$0xff]  ;;  %7737 = vmatpush.msrb.mxu2 %v7553_v5  ;;  %7756 = vmatpush.msrb.mxu3 %v7587_v23  ;;  %v7487_v37 = vld [vmem:[#allocation8 + $0x460] sm:$0xff]  ;;  %v7320_v5 = vperm.slane %v15329_v6, 5  ;;  %v7410_v23 = vld [vmem:[#allocation8 + $0x1f8] sm:$0xff] }
 0x721   : > { %v7585_v36 = vld [vmem:[#allocation8 + $0x770] sm:$0xff]  ;;  %7697 = vmatpush.msrb.mxu0 %v7489_v40  ;;  %7716 = vmatpush.msrb.mxu1 %v7523_v11  ;;  %v7583_v44 = vld [vmem:[#allocation8 + $0x760] sm:$0xff]  ;;  %v7472_v40 = vld [vmem:[#allocation8 + $0x3e8] sm:$0xff] }
 0x722   : > { %v7521_v54 = vld [vmem:[#allocation8 + $0x570] sm:$0xff]  ;;  %7738 = vmatpush.msrb.mxu2 %v7551_v47  ;;  %7757 = vmatpush.msrb.mxu3 %v7585_v36  ;;  %v7519_v27 = vld [vmem:[#allocation8 + $0x560] sm:$0xff]  ;;  %v7310_v47 = vld [vmem:[#allocation2 + $0x20] sm:$0xff] }
 0x723   : > { %v7549_v34 = vld [vmem:[#allocation8 + $0x650] sm:$0xff]  ;;  %7698 = vmatpush.msrb.mxu0 %v7487_v37  ;;  %7717 = vmatpush.msrb.mxu1 %v7521_v54  ;;  %v7547_v56 = vld [vmem:[#allocation8 + $0x640] sm:$0xff]  ;;  %v7374_v36 = vld [vmem:[#allocation8 + $0xd8] sm:$0xff] }
 0x724   : > { %v7485_v19 = vld [vmem:[#allocation8 + $0x450] sm:$0xff]  ;;  %7739 = vmatpush.msrb.mxu2 %v7549_v34  ;;  %7758 = vmatpush.msrb.mxu3 %v7583_v44  ;;  %v7483_v22 = vld [vmem:[#allocation8 + $0x440] sm:$0xff]  ;;  %v7436_v37 = vld [vmem:[#allocation8 + $0x2c8] sm:$0xff] }
 0x725   : > { %v7581_v46 = vld [vmem:[#allocation8 + $0x750] sm:$0xff]  ;;  %7699 = vmatpush.msrb.mxu0 %v7485_v19  ;;  %7718 = vmatpush.msrb.mxu1 %v7519_v27  ;;  %v7579_v29 = vld [vmem:[#allocation8 + $0x740] sm:$0xff]  ;;  %v7408_v34 = vld [vmem:[#allocation8 + $0x1e8] sm:$0xff]  ;;  %v15366_v27 = vadd.f32 %v7320_v5, %v7310_v47 }
 0x726   : > { %v7517_v48 = vld [vmem:[#allocation8 + $0x550] sm:$0xff]  ;;  %7740 = vmatpush.msrb.mxu2 %v7547_v56  ;;  %7759 = vmatpush.msrb.mxu3 %v7581_v46  ;;  %v7515_v20 = vld [vmem:[#allocation8 + $0x540] sm:$0xff]  ;;  %v7470_v44 = vld [vmem:[#allocation8 + $0x3d8] sm:$0xff] }
 0x727   : > { %v7307_v35 = vld [vmem:[#allocation2 + $0x18] sm:$0xff]  ;;  %7700 = vmatpush.msrb.mxu0 %v7483_v22  ;;  %7719 = vmatpush.msrb.mxu1 %v7517_v48  ;;  %v7543_v38 = vld [vmem:[#allocation8 + $0x620] sm:$0xff]  ;;  %v7372_v19 = vld [vmem:[#allocation8 + $0xc8] sm:$0xff]  ;;  %v7344_v50 = vmax.f32 %v15366_v27, 0.0 }
 0x728   : > { %v7545_v42 = vld [vmem:[#allocation8 + $0x630] sm:$0xff]  ;;  %v15334_v25 = vadd.f32 %v7317_v51, %v7307_v35  ;;  %7760 = vmatpush.msrb.mxu3 %v7579_v29  ;;  %v7479_v15 = vld [vmem:[#allocation8 + $0x420] sm:$0xff]  ;;  %7625 = vmatmul.f32.vlgmr.msra.gmra.mxu0 %v7339_v8  ;;  %v7406_v56 = vld [vmem:[#allocation8 + $0x1d8] sm:$0xff] }
 0x729   : > { %v7481_v53 = vld [vmem:[#allocation8 + $0x430] sm:$0xff]  ;;  %7741 = vmatpush.msrb.mxu2 %v7545_v42  ;;  %7720 = vmatpush.msrb.mxu1 %v7515_v20  ;;  %v7575_v18 = vld [vmem:[#allocation8 + $0x720] sm:$0xff]  ;;  %v7434_v46 = vld [vmem:[#allocation8 + $0x2b8] sm:$0xff] }
 0x72a   : > { %v7577_v49 = vld [vmem:[#allocation8 + $0x730] sm:$0xff]  ;;  %7701 = vmatpush.msrb.mxu0 %v7481_v53  ;;  %v7511_v59 = vld [vmem:[#allocation8 + $0x520] sm:$0xff]  ;;  %v7341_v28 = vmax.f32 %v15334_v25, 0.0  ;;  %7685 = vmatmul.f32.vlgmr.msra.gmra.mxu3 %v7342_v55  ;;  %v7468_v22 = vld [vmem:[#allocation8 + $0x3c8] sm:$0xff] }
 0x72b   : > { %v7513_v41 = vld [vmem:[#allocation8 + $0x530] sm:$0xff]  ;;  %7742 = vmatpush.msrb.mxu2 %v7543_v38  ;;  %7761 = vmatpush.msrb.mxu3 %v7577_v49  ;;  %v7539_v24 = vld [vmem:[#allocation8 + $0x600] sm:$0xff]  ;;  %v7370_v35 = vld [vmem:[#allocation8 + $0xb8] sm:$0xff] }
 0x72c   : > { %v7541_v13 = vld [vmem:[#allocation8 + $0x610] sm:$0xff]  ;;  %7702 = vmatpush.msrb.mxu0 %v7479_v15  ;;  %7721 = vmatpush.msrb.mxu1 %v7513_v41  ;;  %v7475_v12 = vld [vmem:[#allocation8 + $0x400] sm:$0xff]  ;;  %v7404_v42 = vld [vmem:[#allocation8 + $0x1c8] sm:$0xff] }
 0x72d   : > { %v7477_v17 = vld [vmem:[#allocation8 + $0x410] sm:$0xff]  ;;  %7743 = vmatpush.msrb.mxu2 %v7541_v13  ;;  %7762 = vmatpush.msrb.mxu3 %v7575_v18  ;;  %v7571_v14 = vld [vmem:[#allocation8 + $0x700] sm:$0xff]  ;;  %v7432_v29 = vld [vmem:[#allocation8 + $0x2a8] sm:$0xff] }
 0x72e   : > { %v7573_v4 = vld [vmem:[#allocation8 + $0x710] sm:$0xff]  ;;  %7703 = vmatpush.msrb.mxu0 %v7477_v17  ;;  %7722 = vmatpush.msrb.mxu1 %v7511_v59  ;;  %v7311_v0 = vld [vmem:[#allocation2 + $0x28] sm:$0xff]  ;;  %v7466_v53 = vld [vmem:[#allocation8 + $0x3b8] sm:$0xff] }
 0x72f   : > { %v7509_v16 = vld [vmem:[#allocation8 + $0x510] sm:$0xff]  ;;  %7744 = vmatpush.msrb.mxu2 %v7539_v24  ;;  %7763 = vmatpush.msrb.mxu3 %v7573_v4  ;;  %v7309_v45 = vld [vmem:[#allocation2 + $0x8] sm:$0xff]  ;;  %v15354_v26 = vadd.f32 %v7321_v7, %v7311_v0  ;;  %v7368_v20 = vld [vmem:[#allocation8 + $0xa8] sm:$0xff] }
 0x730   : > { %7665 = vmatmul.f32.vlgmr.msra.gmra.mxu2 %v7341_v28  ;;  %7704 = vmatpush.msrb.mxu0 %v7475_v12  ;;  %v7507_v31 = vld [vmem:[#allocation8 + $0x500] sm:$0xff]  ;;  %v7312_v32 = vld [vmem:[#allocation2 + $0x38] sm:$0xff]  ;;  %v15359_v11 = vadd.f32 %v7319_v3, %v7309_v45  ;;  %v7464_v38 = vld [vmem:[#allocation8 + $0x3a8] sm:$0xff] }
 0x731   : > { %7809 = vmatpush.msra.mxu2 %v7442_v60  ;;  %7723 = vmatpush.msrb.mxu1 %v7509_v16  ;;  %v15361_v54 = vadd.f32 %v7322_v9, %v7312_v32  ;;  %v7345_v6 = vmax.f32 %v15354_v26, 0.0  ;;  %v7366_v49 = vld [vmem:[#allocation8 + $0x98] sm:$0xff]  ;;  %v7428_v15 = vld [vmem:[#allocation8 + $0x288] sm:$0xff] }
 0x732   : > { %7764 = vmatpush.msrb.mxu3 %v7571_v14  ;;  %7769 = vmatpush.msra.mxu0 %v7378_v61  ;;  %v7343_v51 = vmax.f32 %v15359_v11, 0.0  ;;  %v7462_v41 = vld [vmem:[#allocation8 + $0x398] sm:$0xff]  ;;  %v7364_v13 = vld [vmem:[#allocation8 + $0x88] sm:$0xff] }
 0x733   : > { %7810 = vmatpush.msra.mxu2 %v7440_v33  ;;  %7724 = vmatpush.msrb.mxu1 %v7507_v31  ;;  %v7346_v48 = vmax.f32 %v15361_v54, 0.0  ;;  %v7398_v18 = vld [vmem:[#allocation8 + $0x198] sm:$0xff]  ;;  %v7460_v17 = vld [vmem:[#allocation8 + $0x388] sm:$0xff] }
 0x734   : > { %7829 = vmatpush.msra.mxu3 %v7474_v43  ;;  %7770 = vmatpush.msra.mxu0 %v7376_v30  ;;  %v7362_v59 = vld [vmem:[#allocation8 + $0x78] sm:$0xff]  ;;  %v7424_v24 = vld [vmem:[#allocation8 + $0x268] sm:$0xff] }
 0x735   : > { %7645 = vmatmul.f32.vlgmr.msra.gmra.mxu1 %v7340_v21  ;;  %7811 = vmatpush.msra.mxu2 %v7438_v63  ;;  %v7458_v4 = vld [vmem:[#allocation8 + $0x378] sm:$0xff]  ;;  %v7360_v12 = vld [vmem:[#allocation8 + $0x68] sm:$0xff] }
 0x736   : > { %7789 = vmatpush.msra.mxu1 %v7410_v23  ;;  %7830 = vmatpush.msra.mxu3 %v7472_v40  ;;  %v7394_v60 = vld [vmem:[#allocation8 + $0x178] sm:$0xff]  ;;  %v7456_v7 = vld [vmem:[#allocation8 + $0x368] sm:$0xff] }
 0x737   : > { %7771 = vmatpush.msra.mxu0 %v7374_v36  ;;  %7812 = vmatpush.msra.mxu2 %v7436_v37  ;;  %v7422_v16 = vld [vmem:[#allocation8 + $0x258] sm:$0xff]  ;;  %v7392_v0 = vld [vmem:[#allocation8 + $0x168] sm:$0xff] }
 0x738   : > { %7790 = vmatpush.msra.mxu1 %v7408_v34  ;;  %7831 = vmatpush.msra.mxu3 %v7470_v44  ;;  %v7358_v14 = vld [vmem:[#allocation8 + $0x58] sm:$0xff]  ;;  %v7420_v61 = vld [vmem:[#allocation8 + $0x248] sm:$0xff] }
 0x739   : > { %7745 = vmatmul.f32.vlgmr.msrb.gmra.mxu2 %v7345_v6  ;;  %7772 = vmatpush.msra.mxu0 %v7372_v19  ;;  %v7454_v33 = vld [vmem:[#allocation8 + $0x358] sm:$0xff]  ;;  %v7356_v3 = vld [vmem:[#allocation8 + $0x48] sm:$0xff] }
 0x73a   : > { %7791 = vmatpush.msra.mxu1 %v7406_v56  ;;  %7813 = vmatpush.msra.mxu2 %v7434_v46  ;;  %v7390_v43 = vld [vmem:[#allocation8 + $0x158] sm:$0xff]  ;;  %v7452_v9 = vld [vmem:[#allocation8 + $0x348] sm:$0xff] }
 0x73b   : > { %7832 = vmatpush.msra.mxu3 %v7468_v22  ;;  %7705 = vmatmul.f32.vlgmr.msrb.gmra.mxu0 %v7343_v51  ;;  %v7418_v45 = vld [vmem:[#allocation8 + $0x238] sm:$0xff]  ;;  %v7388_v30 = vld [vmem:[#allocation8 + $0x148] sm:$0xff] }
 0x73c   : > { %7765 = vmatmul.f32.vlgmr.msrb.gmra.mxu3 %v7346_v48  ;;  %7773 = vmatpush.msra.mxu0 %v7370_v35  ;;  %v7354_v31 = vld [vmem:[#allocation8 + $0x38] sm:$0xff]  ;;  %v7416_v32 = vld [vmem:[#allocation8 + $0x228] sm:$0xff] }
 0x73d   : > { %7792 = vmatpush.msra.mxu1 %v7404_v42  ;;  %7814 = vmatpush.msra.mxu2 %v7432_v29  ;;  %v7450_v63 = vld [vmem:[#allocation8 + $0x338] sm:$0xff]  ;;  %v7352_v5 = vld [vmem:[#allocation8 + $0x28] sm:$0xff] }
 0x73e   : > { %7833 = vmatpush.msra.mxu3 %v7466_v53  ;;  %7725 = vmatmul.f32.vlgmr.msrb.gmra.mxu1 %v7344_v50  ;;  %v7386_v23 = vld [vmem:[#allocation8 + $0x138] sm:$0xff]  ;;  %v7448_v47 = vld [vmem:[#allocation8 + $0x328] sm:$0xff] }
 0x73f   : > { %7774 = vmatpush.msra.mxu0 %v7368_v20  ;;  %7793 = vmatpush.msra.mxu1 %v7402_v39  ;;  %v7414_v40 = vld [vmem:[#allocation8 + $0x218] sm:$0xff]  ;;  %v7384_v37 = vld [vmem:[#allocation8 + $0x128] sm:$0xff] }
 0x740   : > { %7815 = vmatpush.msra.mxu2 %v7430_v58  ;;  %7834 = vmatpush.msra.mxu3 %v7464_v38  ;;  %v7350_v36 = vld [vmem:[#allocation8 + $0x18] sm:$0xff]  ;;  %v7412_v34 = vld [vmem:[#allocation8 + $0x208] sm:$0xff] }
 0x741   : > { %7775 = vmatpush.msra.mxu0 %v7366_v49  ;;  %7794 = vmatpush.msra.mxu1 %v7400_v10  ;;  %v7446_v44 = vld [vmem:[#allocation8 + $0x318] sm:$0xff]  ;;  %v7348_v56 = vld [vmem:[#allocation8 + $0x8] sm:$0xff] }
 0x742   : > { %7816 = vmatpush.msra.mxu2 %v7428_v15  ;;  %7835 = vmatpush.msra.mxu3 %v7462_v41  ;;  %v7570_v19 = vld [vmem:[#allocation8 + $0x6f8] sm:$0xff]  ;;  %v7444_v22 = vld [vmem:[#allocation8 + $0x308] sm:$0xff] }
 0x743   : > { %7776 = vmatpush.msra.mxu0 %v7364_v13  ;;  %7795 = vmatpush.msra.mxu1 %v7398_v18  ;;  %v7382_v46 = vld [vmem:[#allocation8 + $0x118] sm:$0xff]  ;;  %v7568_v42 = vld [vmem:[#allocation8 + $0x6e8] sm:$0xff] }
 0x744   : > { %7817 = vmatpush.msra.mxu2 %v7426_v62  ;;  %7836 = vmatpush.msra.mxu3 %v7460_v17  ;;  %v7506_v35 = vld [vmem:[#allocation8 + $0x4f8] sm:$0xff]  ;;  %v7380_v53 = vld [vmem:[#allocation8 + $0x108] sm:$0xff] }
 0x745   : > { %7777 = vmatpush.msra.mxu0 %v7362_v59  ;;  %7796 = vmatpush.msra.mxu1 %v7396_v1  ;;  %v7602_v29 = vld [vmem:[#allocation8 + $0x7f8] sm:$0xff]  ;;  %v7504_v20 = vld [vmem:[#allocation8 + $0x4e8] sm:$0xff] }
 0x746   : > { %7818 = vmatpush.msra.mxu2 %v7424_v24  ;;  %7837 = vmatpush.msra.mxu3 %v7458_v4  ;;  %v7538_v39 = vld [vmem:[#allocation8 + $0x5f8] sm:$0xff]  ;;  %v7600_v38 = vld [vmem:[#allocation8 + $0x7e8] sm:$0xff] }
 0x747   : > { %7778 = vmatpush.msra.mxu0 %v7360_v12  ;;  %7797 = vmatpush.msra.mxu1 %v7394_v60  ;;  %v7566_v58 = vld [vmem:[#allocation8 + $0x6d8] sm:$0xff]  ;;  %v7536_v10 = vld [vmem:[#allocation8 + $0x5e8] sm:$0xff] }
 0x748   : > { %7819 = vmatpush.msra.mxu2 %v7422_v16  ;;  %7838 = vmatpush.msra.mxu3 %v7456_v7  ;;  %v7502_v49 = vld [vmem:[#allocation8 + $0x4d8] sm:$0xff]  ;;  %v7564_v15 = vld [vmem:[#allocation8 + $0x6c8] sm:$0xff] }
 0x749   : > { %7779 = vmatpush.msra.mxu0 %v7358_v14  ;;  %7798 = vmatpush.msra.mxu1 %v7392_v0  ;;  %v7598_v41 = vld [vmem:[#allocation8 + $0x7d8] sm:$0xff]  ;;  %v7500_v13 = vld [vmem:[#allocation8 + $0x4c8] sm:$0xff] }
 0x74a   : > { %7820 = vmatpush.msra.mxu2 %v7420_v61  ;;  %7839 = vmatpush.msra.mxu3 %v7454_v33  ;;  %v7534_v18 = vld [vmem:[#allocation8 + $0x5d8] sm:$0xff]  ;;  %v7596_v17 = vld [vmem:[#allocation8 + $0x7c8] sm:$0xff] }
 0x74b   : > { %7780 = vmatpush.msra.mxu0 %v7356_v3  ;;  %7799 = vmatpush.msra.mxu1 %v7390_v43  ;;  %v7562_v62 = vld [vmem:[#allocation8 + $0x6b8] sm:$0xff]  ;;  %v7532_v1 = vld [vmem:[#allocation8 + $0x5c8] sm:$0xff] }
 0x74c   : > { %7821 = vmatpush.msra.mxu2 %v7418_v45  ;;  %7840 = vmatpush.msra.mxu3 %v7452_v9  ;;  %v7498_v59 = vld [vmem:[#allocation8 + $0x4b8] sm:$0xff]  ;;  %v7560_v24 = vld [vmem:[#allocation8 + $0x6a8] sm:$0xff] }
 0x74d   : > { %7781 = vmatpush.msra.mxu0 %v7354_v31  ;;  %7800 = vmatpush.msra.mxu1 %v7388_v30  ;;  %v7594_v4 = vld [vmem:[#allocation8 + $0x7b8] sm:$0xff]  ;;  %v7496_v12 = vld [vmem:[#allocation8 + $0x4a8] sm:$0xff] }
 0x74e   : > { %7822 = vmatpush.msra.mxu2 %v7416_v32  ;;  %7841 = vmatpush.msra.mxu3 %v7450_v63  ;;  %v7530_v60 = vld [vmem:[#allocation8 + $0x5b8] sm:$0xff]  ;;  %v7592_v7 = vld [vmem:[#allocation8 + $0x7a8] sm:$0xff] }
 0x74f   : > { %7782 = vmatpush.msra.mxu0 %v7352_v5  ;;  %7801 = vmatpush.msra.mxu1 %v7386_v23  ;;  %v7558_v16 = vld [vmem:[#allocation8 + $0x698] sm:$0xff]  ;;  %v7528_v0 = vld [vmem:[#allocation8 + $0x5a8] sm:$0xff] }
 0x750   : > { %7823 = vmatpush.msra.mxu2 %v7414_v40  ;;  %7842 = vmatpush.msra.mxu3 %v7448_v47  ;;  %v7494_v14 = vld [vmem:[#allocation8 + $0x498] sm:$0xff]  ;;  %v7556_v61 = vld [vmem:[#allocation8 + $0x688] sm:$0xff] }
 0x751   : > { %7783 = vmatpush.msra.mxu0 %v7350_v36  ;;  %7802 = vmatpush.msra.mxu1 %v7384_v37  ;;  %v7590_v33 = vld [vmem:[#allocation8 + $0x798] sm:$0xff]  ;;  %v7492_v3 = vld [vmem:[#allocation8 + $0x488] sm:$0xff] }
 0x752   : > { %7824 = vmatpush.msra.mxu2 %v7412_v34  ;;  %7843 = vmatpush.msra.mxu3 %v7446_v44  ;;  %v7526_v43 = vld [vmem:[#allocation8 + $0x598] sm:$0xff]  ;;  %v7588_v9 = vld [vmem:[#allocation8 + $0x788] sm:$0xff] }
 0x753   : > { %7784 = vmatpush.msra.mxu0 %v7348_v56  ;;  %7803 = vmatpush.msra.mxu1 %v7382_v46  ;;  %v7554_v45 = vld [vmem:[#allocation8 + $0x678] sm:$0xff]  ;;  %v7524_v30 = vld [vmem:[#allocation8 + $0x588] sm:$0xff] }
 0x754   : > { %7889 = vmatpush.msrb.mxu2 %v7570_v19  ;;  %7844 = vmatpush.msra.mxu3 %v7444_v22  ;;  %v7490_v31 = vld [vmem:[#allocation8 + $0x478] sm:$0xff]  ;;  %v7552_v32 = vld [vmem:[#allocation8 + $0x668] sm:$0xff] }
 0x755   : > { %7849 = vmatpush.msrb.mxu0 %v7506_v35  ;;  %7804 = vmatpush.msra.mxu1 %v7380_v53  ;;  %v7586_v63 = vld [vmem:[#allocation8 + $0x778] sm:$0xff]  ;;  %v7488_v5 = vld [vmem:[#allocation8 + $0x468] sm:$0xff] }
 0x756   : > { %7890 = vmatpush.msrb.mxu2 %v7568_v42  ;;  %7909 = vmatpush.msrb.mxu3 %v7602_v29  ;;  %v7522_v23 = vld [vmem:[#allocation8 + $0x578] sm:$0xff]  ;;  %v7584_v47 = vld [vmem:[#allocation8 + $0x768] sm:$0xff] }
 0x757   : > { %7850 = vmatpush.msrb.mxu0 %v7504_v20  ;;  %7869 = vmatpush.msrb.mxu1 %v7538_v39  ;;  %v7550_v40 = vld [vmem:[#allocation8 + $0x658] sm:$0xff]  ;;  %v7520_v37 = vld [vmem:[#allocation8 + $0x568] sm:$0xff] }
 0x758   : > { %7891 = vmatpush.msrb.mxu2 %v7566_v58  ;;  %7910 = vmatpush.msrb.mxu3 %v7600_v38  ;;  %v7486_v36 = vld [vmem:[#allocation8 + $0x458] sm:$0xff]  ;;  %v7548_v34 = vld [vmem:[#allocation8 + $0x648] sm:$0xff] }
 0x759   : > { %7851 = vmatpush.msrb.mxu0 %v7502_v49  ;;  %7870 = vmatpush.msrb.mxu1 %v7536_v10  ;;  %v7582_v44 = vld [vmem:[#allocation8 + $0x758] sm:$0xff]  ;;  %v7484_v19 = vld [vmem:[#allocation8 + $0x448] sm:$0xff] }
 0x75a   : > { %7892 = vmatpush.msrb.mxu2 %v7564_v15  ;;  %7911 = vmatpush.msrb.mxu3 %v7598_v41  ;;  %v7518_v56 = vld [vmem:[#allocation8 + $0x558] sm:$0xff]  ;;  %v7580_v22 = vld [vmem:[#allocation8 + $0x748] sm:$0xff] }
 0x75b   : > { %7852 = vmatpush.msrb.mxu0 %v7500_v13  ;;  %7871 = vmatpush.msrb.mxu1 %v7534_v18  ;;  %v7546_v46 = vld [vmem:[#allocation8 + $0x638] sm:$0xff]  ;;  %v7516_v42 = vld [vmem:[#allocation8 + $0x548] sm:$0xff] }
 0x75c   : > { %7893 = vmatpush.msrb.mxu2 %v7562_v62  ;;  %7912 = vmatpush.msrb.mxu3 %v7596_v17  ;;  %v7482_v35 = vld [vmem:[#allocation8 + $0x438] sm:$0xff]  ;;  %v7544_v29 = vld [vmem:[#allocation8 + $0x628] sm:$0xff] }
 0x75d   : > { %7853 = vmatpush.msrb.mxu0 %v7498_v59  ;;  %7872 = vmatpush.msrb.mxu1 %v7532_v1  ;;  %v7578_v53 = vld [vmem:[#allocation8 + $0x738] sm:$0xff]  ;;  %v7480_v20 = vld [vmem:[#allocation8 + $0x428] sm:$0xff] }
 0x75e   : > { %7894 = vmatpush.msrb.mxu2 %v7560_v24  ;;  %7913 = vmatpush.msrb.mxu3 %v7594_v4  ;;  %v7514_v39 = vld [vmem:[#allocation8 + $0x538] sm:$0xff]  ;;  %v7512_v38 = vld [vmem:[#allocation8 + $0x528] sm:$0xff]  ;;  %v7603_v4 = vld [vmem:[#allocation10] sm:$0x3] }
 0x75f   : > { %7854 = vmatpush.msrb.mxu0 %v7496_v12  ;;  %7873 = vmatpush.msrb.mxu1 %v7530_v60  ;;  %v7542_v25 = vld [vmem:[#allocation8 + $0x618] sm:$0xff]  ;;  %v7572_v49 = vld [vmem:[#allocation8 + $0x708] sm:$0xff] }
 0x760   : > { %7895 = vmatpush.msrb.mxu2 %v7558_v16  ;;  %7914 = vmatpush.msrb.mxu3 %v7592_v7  ;;  %v7478_v58 = vld [vmem:[#allocation8 + $0x418] sm:$0xff]  ;;  %v7508_v2 = vld [vmem:[#allocation8 + $0x508] sm:$0xff]  ;;  %v7605_v16 = vperm.slane %v7603_v4, 0 }
 0x761   : > { %7855 = vmatpush.msrb.mxu0 %v7494_v14  ;;  %7874 = vmatpush.msrb.mxu1 %v7528_v0  ;;  %v7945_v10 = vld [vmem:[#allocation11 + $0x70] sm:$0xff]  ;;  %v7944_v15 = vld [vmem:[#allocation11 + $0x68] sm:$0xff]  ;;  %v7943_v26 = vld [vmem:[#allocation11 + $0x60] sm:$0xff] }
 0x762   : > { %7896 = vmatpush.msrb.mxu2 %v7556_v61  ;;  %7915 = vmatpush.msrb.mxu3 %v7590_v33  ;;  %v7941_v41 = vld [vmem:[#allocation11 + $0x50] sm:$0xff]  ;;  %v7940_v11 = vld [vmem:[#allocation11 + $0x48] sm:$0xff]  ;;  %v7938_v54 = vld [vmem:[#allocation11 + $0x38] sm:$0xff] }
 0x763   : > { %7856 = vmatpush.msrb.mxu0 %v7492_v3  ;;  %7875 = vmatpush.msrb.mxu1 %v7526_v43  ;;  %v7936_v13 = vld [vmem:[#allocation11 + $0x28] sm:$0xff]  ;;  %v7935_v27 = vld [vmem:[#allocation11 + $0x20] sm:$0xff]  ;;  %v7933_v18 = vld [vmem:[#allocation11 + $0x10] sm:$0xff] }
 0x764   : > { %7897 = vmatpush.msrb.mxu2 %v7554_v45  ;;  %7916 = vmatpush.msrb.mxu3 %v7588_v9  ;;  %v7932_v62 = vld [vmem:[#allocation11 + $0x8] sm:$0xff]  ;;  %v7931_v17 = vld [vmem:[#allocation11] sm:$0xff]  ;;  %v7962_v59 = vld [vmem:[#allocation11 + $0xf8] sm:$0xff] }
 0x765   : > { %7857 = vmatpush.msrb.mxu0 %v7490_v31  ;;  %7876 = vmatpush.msrb.mxu1 %v7524_v30  ;;  %v7961_v1 = vld [vmem:[#allocation11 + $0xf0] sm:$0xff]  ;;  %v7960_v24 = vld [vmem:[#allocation11 + $0xe8] sm:$0xff]  ;;  %v7959_v12 = vld [vmem:[#allocation11 + $0xe0] sm:$0xff] }
 0x766   : > { %7898 = vmatpush.msrb.mxu2 %v7552_v32  ;;  %7917 = vmatpush.msrb.mxu3 %v7586_v63  ;;  %v7958_v60 = vld [vmem:[#allocation11 + $0xd8] sm:$0xff]  ;;  %v7957_v7 = vld [vmem:[#allocation11 + $0xd0] sm:$0xff] }
 0x767   : > { %7858 = vmatpush.msrb.mxu0 %v7488_v5  ;;  %7877 = vmatpush.msrb.mxu1 %v7522_v23 }
 0x768   : > { %7899 = vmatpush.msrb.mxu2 %v7550_v40  ;;  %7918 = vmatpush.msrb.mxu3 %v7584_v47 }
 0x769   : > { %7859 = vmatpush.msrb.mxu0 %v7486_v36  ;;  %7878 = vmatpush.msrb.mxu1 %v7520_v37  ;;  %v7956_v37 = vld [vmem:[#allocation11 + $0xc8] sm:$0xff] }
 0x76a   : > { %7900 = vmatpush.msrb.mxu2 %v7548_v34  ;;  %7919 = vmatpush.msrb.mxu3 %v7582_v44  ;;  %v7955_v34 = vld [vmem:[#allocation11 + $0xc0] sm:$0xff]  ;;  %v7954_v44 = vld [vmem:[#allocation11 + $0xb8] sm:$0xff] }
 0x76b   : > { %7825 = vmatmul.f32.vlgmr.msra.gmra.mxu2 %v7341_v28  ;;  %7860 = vmatpush.msrb.mxu0 %v7484_v19  ;;  %v7576_v28 = vld [vmem:[#allocation8 + $0x728] sm:$0xff]  ;;  %v7953_v19 = vld [vmem:[#allocation11 + $0xb0] sm:$0xff] }
 0x76c   : > { %7879 = vmatpush.msrb.mxu1 %v7518_v56  ;;  %7901 = vmatpush.msrb.mxu2 %v7546_v46  ;;  %v7952_v56 = vld [vmem:[#allocation11 + $0xa8] sm:$0xff]  ;;  %v7951_v46 = vld [vmem:[#allocation11 + $0xa0] sm:$0xff] }
 0x76d   : > { %7920 = vmatpush.msrb.mxu3 %v7580_v22  ;;  %7785 = vmatmul.f32.vlgmr.msra.gmra.mxu0 %v7339_v8  ;;  %v7574_v8 = vld [vmem:[#allocation8 + $0x718] sm:$0xff] }
 0x76e   : > { %7845 = vmatmul.f32.vlgmr.msra.gmra.mxu3 %v7342_v55  ;;  %7861 = vmatpush.msrb.mxu0 %v7482_v35  ;;  %v7510_v55 = vld [vmem:[#allocation8 + $0x518] sm:$0xff] }
 0x76f   : > { %7880 = vmatpush.msrb.mxu1 %v7516_v42  ;;  %7902 = vmatpush.msrb.mxu2 %v7544_v29  ;;  %v7950_v22 = vld [vmem:[#allocation11 + $0x98] sm:$0xff]  ;;  %v7949_v35 = vld [vmem:[#allocation11 + $0x90] sm:$0xff]  ;;  %v7948_v42 = vld [vmem:[#allocation11 + $0x88] sm:$0xff] }
 0x770   : > { %7921 = vmatpush.msrb.mxu3 %v7578_v53  ;;  %7805 = vmatmul.f32.vlgmr.msra.gmra.mxu1 %v7340_v21  ;;  %v7946_v21 = vld [vmem:[#allocation11 + $0x78] sm:$0xff]  ;;  %v7947_v29 = vld [vmem:[#allocation11 + $0x80] sm:$0xff]  ;;  %v7606_v53 = vperm.slane %v7603_v4, 1 }
 0x771   : > { %7862 = vmatpush.msrb.mxu0 %v7480_v20  ;;  %7881 = vmatpush.msrb.mxu1 %v7514_v39 }
 0x772   : > { %7903 = vmatpush.msrb.mxu2 %v7542_v25  ;;  %7922 = vmatpush.msrb.mxu3 %v7576_v28 }
 0x773   : > { %7863 = vmatpush.msrb.mxu0 %v7478_v58  ;;  %7882 = vmatpush.msrb.mxu1 %v7512_v38 }
 0x774   : > { %7904 = vmatpush.msrb.mxu2 %v7540_v57  ;;  %7923 = vmatpush.msrb.mxu3 %v7574_v8 }
 0x775   : > { %7905 = vmatmul.f32.vlgmr.msrb.gmra.mxu2 %v7345_v6  ;;  %7864 = vmatpush.msrb.mxu0 %v7476_v52  ;;  %v7942_v6 = vld [vmem:[#allocation11 + $0x58] sm:$0xff] }
 0x776   : > { %7883 = vmatpush.msrb.mxu1 %v7510_v55  ;;  %7924 = vmatpush.msrb.mxu3 %v7572_v49 }
 0x777   : > { %7865 = vmatmul.f32.vlgmr.msrb.gmra.mxu0 %v7343_v51  ;;  %7925 = vmatmul.f32.vlgmr.msrb.gmra.mxu3 %v7346_v48  ;;  %v7939_v51 = vld [vmem:[#allocation11 + $0x40] sm:$0xff]  ;;  %v7937_v48 = vld [vmem:[#allocation11 + $0x30] sm:$0xff] }
 0x778   : > { %7884 = vmatpush.msrb.mxu1 %v7508_v2  ;;  %7967 = vmatpush.msra.mxu0 %v7946_v21 }
 0x779   : > { %7885 = vmatmul.f32.vlgmr.msrb.gmra.mxu1 %v7344_v50  ;;  %v7934_v50 = vld [vmem:[#allocation11 + $0x18] sm:$0xff] }
 0x77a   : > { %7968 = vmatpush.msra.mxu0 %v7945_v10  ;;  %7987 = vmatpush.msra.mxu1 %v7962_v59 }
 0x77c   : > { %7969 = vmatpush.msra.mxu0 %v7944_v15  ;;  %7988 = vmatpush.msra.mxu1 %v7961_v1 }
 0x77e   : > { %7970 = vmatpush.msra.mxu0 %v7943_v26  ;;  %7989 = vmatpush.msra.mxu1 %v7960_v24 }
 0x780   : > { %7971 = vmatpush.msra.mxu0 %v7942_v6  ;;  %7990 = vmatpush.msra.mxu1 %v7959_v12 }
 0x782   : > { %7972 = vmatpush.msra.mxu0 %v7941_v41  ;;  %7991 = vmatpush.msra.mxu1 %v7958_v60  ;;  %v12728_v41 = vld [vmem:[#allocation13] ss:$0 sm:$0xff] }
 0x784   : > { %7973 = vmatpush.msra.mxu0 %v7940_v11  ;;  %7992 = vmatpush.msra.mxu1 %v7957_v7 }
 0x786   : > { %7974 = vmatpush.msra.mxu0 %v7939_v51  ;;  %7993 = vmatpush.msra.mxu1 %v7956_v37 }
 0x788   : > { %7975 = vmatpush.msra.mxu0 %v7938_v54  ;;  %7994 = vmatpush.msra.mxu1 %v7955_v34 }
 0x78a   : > { %7976 = vmatpush.msra.mxu0 %v7937_v48  ;;  %7995 = vmatpush.msra.mxu1 %v7954_v44 }
 0x78c   : > { %7977 = vmatpush.msra.mxu0 %v7936_v13  ;;  %7996 = vmatpush.msra.mxu1 %v7953_v19 }
 0x78e   : > { %7978 = vmatpush.msra.mxu0 %v7935_v27  ;;  %7997 = vmatpush.msra.mxu1 %v7952_v56 }
 0x790   : > { %7979 = vmatpush.msra.mxu0 %v7934_v50  ;;  %7998 = vmatpush.msra.mxu1 %v7951_v46 }
 0x792   : > { %7980 = vmatpush.msra.mxu0 %v7933_v18  ;;  %7999 = vmatpush.msra.mxu1 %v7950_v22 }
 0x794   : > { %7981 = vmatpush.msra.mxu0 %v7932_v62  ;;  %8000 = vmatpush.msra.mxu1 %v7949_v35 }
 0x796   : > { %7982 = vmatpush.msra.mxu0 %v7931_v17  ;;  %8001 = vmatpush.msra.mxu1 %v7948_v42 }
 0x798   : > { %8002 = vmatpush.msra.mxu1 %v7947_v29 }
 0x7a5   : > { %v7626_v14 = vpop.f32.mrf.mxu0 }
 0x7a6   : > { %v7627_v0 = vadd.f32 %v7626_v14, %v7605_v16 }
 0x7ad   : > { %v7686_v45 = vpop.f32.mrf.mxu3 }
 0x7b2   : > { %v7646_v61 = vpop.f32.mrf.mxu1 }
 0x7b3   : > { %v7666_v33 = vpop.f32.mrf.mxu2  ;;  %v7647_v3 = vadd.f32 %v7646_v61, %v7627_v0 }
 0x7b5   : > { %v7667_v43 = vadd.f32 %v7666_v33, %v7647_v3 }
 0x7b7   : > { %v7687_v9 = vadd.f32 %v7686_v45, %v7667_v43 }
 0x7b8   : > { %v7706_v31 = vpop.f32.mrf.mxu0 }
 0x7b9   : > { %v7707_v30 = vadd.f32 %v7706_v31, %v7687_v9 }
 0x7bb   : > { %v7726_v32 = vpop.f32.mrf.mxu1 }
 0x7bc   : > { %v7727_v63 = vadd.f32 %v7726_v32, %v7707_v30  ;;  %v7746_v5 = vpop.f32.mrf.mxu2 }
 0x7be   : > { %v7747_v23 = vadd.f32 %v7746_v5, %v7727_v63 }
 0x7bf   : > { %v7766_v40 = vpop.f32.mrf.mxu3 }
 0x7c0   : > { %v7767_v47 = vadd.f32 %v7766_v40, %v7747_v23 }
 0x7c2   : > { %v7929_v36 = vmax.f32 %v7767_v47, 0.0 }
 0x7c4   : > { %7983 = vmatmul.f32.vlgmr.msra.gmra.mxu0 %v7929_v36 }
 0x7ea   : > { %v7786_v20 = vpop.f32.mrf.mxu0 }
 0x7eb   : > { %v7787_v39 = vadd.f32 %v7786_v20, %v7606_v53 }
 0x7ed   : > { %v7806_v25 = vpop.f32.mrf.mxu1 }
 0x7ee   : > { %v7807_v28 = vadd.f32 %v7806_v25, %v7787_v39  ;;  %v7826_v58 = vpop.f32.mrf.mxu2 }
 0x7f0   : > { %v7827_v38 = vadd.f32 %v7826_v58, %v7807_v28 }
 0x7f1   : > { %v7846_v57 = vpop.f32.mrf.mxu3 }
 0x7f2   : > { %v7847_v8 = vadd.f32 %v7846_v57, %v7827_v38 }
 0x7f4   : > { %v7866_v52 = vpop.f32.mrf.mxu0 }
 0x7f5   : > { %v7867_v55 = vadd.f32 %v7866_v52, %v7847_v8 }
 0x7f6   : > { %v7886_v49 = vpop.f32.mrf.mxu1 }
 0x7f7   : > { %v7887_v2 = vadd.f32 %v7886_v49, %v7867_v55 }
 0x7f8   : > { %v7906_v21 = vpop.f32.mrf.mxu2 }
 0x7f9   : > { %v7907_v10 = vadd.f32 %v7906_v21, %v7887_v2 }
 0x7fa   : > { %v7926_v15 = vpop.f32.mrf.mxu3 }
 0x7fb   : > { %v7927_v26 = vadd.f32 %v7926_v15, %v7907_v10 }
 0x7fd   : > { %v7930_v6 = vmax.f32 %v7927_v26, 0.0 }
 0x7ff   : > { %8003 = vmatmul.f32.vlgmr.msra.gmra.mxu1 %v7930_v6 }
 0x841   : > { %v7984_v11 = vpop.f32.mrf.mxu0 }
 0x842   : > { %v7985_v51 = vadd.f32 %v12728_v41, %v7984_v11 }
 0x87c   : > { %v8004_v54 = vpop.f32.mrf.mxu1 }
 0x87d   : > { %v8005_v48 = vadd.f32 %v8004_v54, %v7985_v51 }
 0x87f   : > { %8007 = vst [vmem:[%s15418_s7] sm:$0xff] %v8005_v48 }
 0x880 PF: > { %p22_p3 = scmp.ge.s32.totalorder %s13108_s21, 6   ;;  %s15425_s24 = smov %s12981_s25 }
 0x881   : > { %s15426_s25 = smov %s12985_s26  ;;  %s15427_s26 = smov %s13119_s28 }
 0x882   : > { %s15428_s27 = smov %s13108_s21  ;;  %24 = sbr.rel (!%p22_p3) target bundleno = 9 (0x9), region = 125 }
 0x887   :  { %8019 = vsyncpa [#allocation4], 1 }
 0x888   :  { %8021 = vsyncpa [#allocation4 + $0x1], 1 }
 0x889   :  { %8022 = vsyncpa [#allocation6], 1 }
 0x88a   :  { %8024 = vsyncpa [#allocation6 + $0x1], 1 }
 0x88b   :  { %8025 = vsyncpa [#allocation9], 1 }
 0x88c   :  { %8026 = vsyncpa [#allocation12], 1 }

</bundles_post_ra>
